<compile_context>
chip_gen: v7x
topology: tpu7x:2x2x1
jax: 0.10.0
libtpu: 0.0.40
codegen_flags: <defaults>
</compile_context>

<pallas_src>
import jax
import jax.numpy as jnp
import numpy as np
from jax import lax
from jax.experimental import pallas as pl
from jax.experimental.pallas import tpu as pltpu


def _basic_block_kernel(xpad_ref, w1_ref, w2_ref,
                        s1_ref, b1_ref, s2_ref, b2_ref,
                        out_ref, mid_ref):
    """conv3x3 -> BN -> ReLU -> conv3x3 -> BN -> +x -> ReLU, fused.

    xpad_ref : (B, H+2, W+2, C)  bf16  zero-padded input tile (also residual src)
    w1_ref   : (9*C, P)          bf16  conv1 weight, (kh, kw, I, O) flattened
    w2_ref   : (9*P, P)          bf16  conv2 weight
    s*_ref   : (1, P)            f32   folded BN scale
    b*_ref   : (1, P)            f32   folded BN bias
    out_ref  : (B, H, W, P)      f32
    mid_ref  : (B, H+2, W+2, P)  f32   VMEM scratch: padded intermediate act.
    """
    B, Hp2, Wp2, C = xpad_ref.shape
    H, W = Hp2 - 2, Wp2 - 2
    P = out_ref.shape[3]
    M = B * H * W

    # Load the input tile once; window slicing / elementwise math in f32,
    # MXU operands in bf16.
    xp = xpad_ref[...].astype(jnp.float32)                     # (B, H+2, W+2, C)

    # ---- conv1: im2col (concat the 9 shifted windows on the lane axis) -> 1 matmul
    cols1 = jnp.concatenate(
        [xp[:, dy:dy + H, dx:dx + W, :] for dy in range(3) for dx in range(3)],
        axis=-1).reshape(M, 9 * C)                             # (M, 9C) f32
    acc1 = jnp.dot(cols1.astype(jnp.bfloat16), w1_ref[...],
                   preferred_element_type=jnp.float32)         # (M, P) f32

    # BN1 (folded) + ReLU
    out1 = jnp.maximum(acc1 * s1_ref[...] + b1_ref[...], 0.0)

    # Stage the padded intermediate.  Only the 1-pixel border needs zeros; the
    # interior is fully rewritten every step, so no full-slab zero-fill.
    zrow = jnp.zeros((B, 1, Wp2, P), jnp.float32)
    zcol = jnp.zeros((B, Hp2, 1, P), jnp.float32)
    mid_ref[:, 0:1, :, :] = zrow
    mid_ref[:, H + 1:H + 2, :, :] = zrow
    mid_ref[:, :, 0:1, :] = zcol
    mid_ref[:, :, W + 1:W + 2, :] = zcol
    mid_ref[:, 1:1 + H, 1:1 + W, :] = out1.reshape(B, H, W, P)
    mid = mid_ref[...]                                         # (B, H+2, W+2, P)

    # ---- conv2: same im2col -> 1 matmul
    cols2 = jnp.concatenate(
        [mid[:, dy:dy + H, dx:dx + W, :] for dy in range(3) for dx in range(3)],
        axis=-1).reshape(M, 9 * P)
    acc2 = jnp.dot(cols2.astype(jnp.bfloat16), w2_ref[...],
                   preferred_element_type=jnp.float32)         # (M, P) f32

    # BN2 (folded) + identity residual (downsample is None) + ReLU
    res = xp[:, 1:1 + H, 1:1 + W, :].reshape(M, C)
    y = jnp.maximum(acc2 * s2_ref[...] + b2_ref[...] + res, 0.0)
    out_ref[...] = y.reshape(B, H, W, P).astype(out_ref.dtype)


def basic_block_forward(x_nchw, w1_oihw, w2_oihw,
                        gamma1, beta1, mean1, var1,
                        gamma2, beta2, mean2, var2, eps=1e-5):
    """Pallas implementation of BasicBlock.forward (stride=1, downsample=None)."""
    N, Cin, H, W = x_nchw.shape
    P = w1_oihw.shape[0]
    assert Cin == P, "downsample=None requires inplanes == planes"
    # TODO(synk): stride > 1 / downsample path not implemented (module default
    #             stride=1, downsample=None is what this kernel covers).

    # batch tile: fold several images into the matmul M dimension per grid step
    b_tile = next(d for d in (8, 4, 2, 1) if N % d == 0)

    # NCHW -> NHWC, zero-pad spatially; bf16 halves HBM->VMEM DMA and feeds the
    # MXU's native bf16 path (accumulation stays f32 in-kernel).
    x = jnp.transpose(x_nchw, (0, 2, 3, 1))
    xpad = jnp.pad(x, ((0, 0), (1, 1), (1, 1), (0, 0))).astype(jnp.bfloat16)

    # (O, I, kh, kw) -> (kh, kw, I, O) -> (9*I, O)
    w1 = jnp.transpose(w1_oihw, (2, 3, 1, 0)).reshape(9 * Cin, P).astype(jnp.bfloat16)
    w2 = jnp.transpose(w2_oihw, (2, 3, 1, 0)).reshape(9 * P, P).astype(jnp.bfloat16)

    # fold BatchNorm (eval semantics) into per-channel scale/bias (f32)
    inv1 = gamma1 / jnp.sqrt(var1 + eps)
    inv2 = gamma2 / jnp.sqrt(var2 + eps)
    s1 = inv1.reshape(1, P).astype(jnp.float32)
    b1 = (beta1 - mean1 * inv1).reshape(1, P).astype(jnp.float32)
    s2 = inv2.reshape(1, P).astype(jnp.float32)
    b2 = (beta2 - mean2 * inv2).reshape(1, P).astype(jnp.float32)

    out_nhwc = pl.pallas_call(
        _basic_block_kernel,
        out_shape=jax.ShapeDtypeStruct((N, H, W, P), jnp.float32),
        grid_spec=pltpu.PrefetchScalarGridSpec(
            num_scalar_prefetch=0,
            grid=(N // b_tile,),
            in_specs=[
                pl.BlockSpec((b_tile, H + 2, W + 2, Cin), lambda n: (n, 0, 0, 0)),
                pl.BlockSpec((9 * Cin, P), lambda n: (0, 0)),
                pl.BlockSpec((9 * P, P), lambda n: (0, 0)),
                pl.BlockSpec((1, P), lambda n: (0, 0)),
                pl.BlockSpec((1, P), lambda n: (0, 0)),
                pl.BlockSpec((1, P), lambda n: (0, 0)),
                pl.BlockSpec((1, P), lambda n: (0, 0)),
            ],
            out_specs=pl.BlockSpec((b_tile, H, W, P), lambda n: (n, 0, 0, 0)),
            scratch_shapes=[pltpu.VMEM((b_tile, H + 2, W + 2, P), jnp.float32)],
        ),
        compiler_params=pltpu.CompilerParams(
            dimension_semantics=("parallel",)),   # batch tiles independent -> v7x megacore
    )(xpad, w1, w2, s1, b1, s2, b2)

    # NHWC -> NCHW
    return jnp.transpose(out_nhwc, (0, 3, 1, 2))


def basic_block_reference(x, w1, w2, g1, be1, m1, v1, g2, be2, m2, v2, eps=1e-5):
    """Pure-JAX reference (NCHW, same as PyTorch eval forward)."""
    dn = ("NCHW", "OIHW", "NCHW")
    conv = lambda a, w: lax.conv_general_dilated(a, w, (1, 1), ((1, 1), (1, 1)),
                                                 dimension_numbers=dn)
    bn = lambda a, g, b, m, v: (a - m[None, :, None, None]) / jnp.sqrt(
        v[None, :, None, None] + eps) * g[None, :, None, None] + b[None, :, None, None]
    out = jnp.maximum(bn(conv(x, w1), g1, be1, m1, v1), 0.0)
    out = bn(conv(out, w2), g2, be2, m2, v2)
    return jnp.maximum(out + x, 0.0)


if __name__ == "__main__":
    # small shapes consistent with the module: inplanes = planes = 8, stride = 1
    N, C, H, W = 2, 8, 16, 16
    key = jax.random.PRNGKey(0)
    ks = jax.random.split(key, 8)

    x = jax.random.normal(ks[0], (N, C, H, W), jnp.float32)
    w1 = jax.random.normal(ks[1], (C, C, 3, 3), jnp.float32) * 0.1
    w2 = jax.random.normal(ks[2], (C, C, 3, 3), jnp.float32) * 0.1
    gamma1 = 1.0 + 0.1 * jax.random.normal(ks[3], (C,), jnp.float32)
    beta1 = 0.1 * jax.random.normal(ks[4], (C,), jnp.float32)
    mean1 = 0.1 * jax.random.normal(ks[5], (C,), jnp.float32)
    var1 = 1.0 + 0.1 * jnp.abs(jax.random.normal(ks[6], (C,), jnp.float32))
    gamma2 = jnp.ones((C,), jnp.float32)
    beta2 = jnp.zeros((C,), jnp.float32)
    mean2 = 0.05 * jax.random.normal(ks[7], (C,), jnp.float32)
    var2 = jnp.ones((C,), jnp.float32)

    out = basic_block_forward(x, w1, w2, gamma1, beta1, mean1, var1,
                              gamma2, beta2, mean2, var2)
    out = jax.block_until_ready(out)

    ref = basic_block_reference(x, w1, w2, gamma1, beta1, mean1, var1,
                                gamma2, beta2, mean2, var2)
    # bf16 activations/weights on the MXU -> looser tolerance than pure-f32.
    np.testing.assert_allclose(np.asarray(out), np.asarray(ref), rtol=5e-2, atol=5e-2)

    print("KERNEL_OK")
</pallas_src>

<mosaic_0001>
module attributes {stable_mosaic.version = 11 : i64} {
  func.func @_basic_block_kernel(%arg0: i32, %arg1: memref<2x18x18x8xbf16, #tpu.memory_space<vmem>>, %arg2: memref<72x8xbf16, #tpu.memory_space<vmem>>, %arg3: memref<72x8xbf16, #tpu.memory_space<vmem>>, %arg4: memref<1x8xf32, #tpu.memory_space<vmem>>, %arg5: memref<1x8xf32, #tpu.memory_space<vmem>>, %arg6: memref<1x8xf32, #tpu.memory_space<vmem>>, %arg7: memref<1x8xf32, #tpu.memory_space<vmem>>, %arg8: memref<2x16x16x8xf32, #tpu.memory_space<vmem>>, %arg9: memref<2x18x18x8xf32, #tpu.memory_space<vmem>>) attributes {dimension_semantics = [#tpu.dimension_semantics<parallel>], iteration_bounds = array<i64: 1>, scalar_prefetch = 0 : i64, scratch_operands = 1 : i64, tpu.core_type = #tpu.core_type<tc>, window_params = [{transform_indices = @transform_0, window_bounds = array<i64: 2, 18, 18, 8>}, {pipeline_mode = #tpu.pipeline_mode<synchronous>, transform_indices = @transform_1, window_bounds = array<i64: 72, 8>}, {pipeline_mode = #tpu.pipeline_mode<synchronous>, transform_indices = @transform_2, window_bounds = array<i64: 72, 8>}, {pipeline_mode = #tpu.pipeline_mode<synchronous>, transform_indices = @transform_3, window_bounds = array<i64: 1, 8>}, {pipeline_mode = #tpu.pipeline_mode<synchronous>, transform_indices = @transform_4, window_bounds = array<i64: 1, 8>}, {pipeline_mode = #tpu.pipeline_mode<synchronous>, transform_indices = @transform_5, window_bounds = array<i64: 1, 8>}, {pipeline_mode = #tpu.pipeline_mode<synchronous>, transform_indices = @transform_6, window_bounds = array<i64: 1, 8>}, {transform_indices = @transform_7, window_bounds = array<i64: 2, 16, 16, 8>}]} {
    %c0 = arith.constant 0 : index
    %c0_0 = arith.constant 0 : index
    %c0_1 = arith.constant 0 : index
    %c0_2 = arith.constant 0 : index
    %0 = vector.load %arg1[%c0, %c0_0, %c0_1, %c0_2] : memref<2x18x18x8xbf16, #tpu.memory_space<vmem>>, vector<2x18x18x8xbf16>
    %1 = arith.extf %0 : vector<2x18x18x8xbf16> to vector<2x18x18x8xf32>
    %2 = vector.extract_strided_slice %1 {offsets = [0, 0, 0, 0], sizes = [2, 16, 16, 8], strides = [1, 1, 1, 1]} : vector<2x18x18x8xf32> to vector<2x16x16x8xf32>
    %3 = vector.extract_strided_slice %1 {offsets = [0, 0, 1, 0], sizes = [2, 16, 16, 8], strides = [1, 1, 1, 1]} : vector<2x18x18x8xf32> to vector<2x16x16x8xf32>
    %4 = vector.extract_strided_slice %1 {offsets = [0, 0, 2, 0], sizes = [2, 16, 16, 8], strides = [1, 1, 1, 1]} : vector<2x18x18x8xf32> to vector<2x16x16x8xf32>
    %5 = vector.extract_strided_slice %1 {offsets = [0, 1, 0, 0], sizes = [2, 16, 16, 8], strides = [1, 1, 1, 1]} : vector<2x18x18x8xf32> to vector<2x16x16x8xf32>
    %6 = vector.extract_strided_slice %1 {offsets = [0, 1, 1, 0], sizes = [2, 16, 16, 8], strides = [1, 1, 1, 1]} : vector<2x18x18x8xf32> to vector<2x16x16x8xf32>
    %7 = vector.extract_strided_slice %1 {offsets = [0, 1, 2, 0], sizes = [2, 16, 16, 8], strides = [1, 1, 1, 1]} : vector<2x18x18x8xf32> to vector<2x16x16x8xf32>
    %8 = vector.extract_strided_slice %1 {offsets = [0, 2, 0, 0], sizes = [2, 16, 16, 8], strides = [1, 1, 1, 1]} : vector<2x18x18x8xf32> to vector<2x16x16x8xf32>
    %9 = vector.extract_strided_slice %1 {offsets = [0, 2, 1, 0], sizes = [2, 16, 16, 8], strides = [1, 1, 1, 1]} : vector<2x18x18x8xf32> to vector<2x16x16x8xf32>
    %10 = vector.extract_strided_slice %1 {offsets = [0, 2, 2, 0], sizes = [2, 16, 16, 8], strides = [1, 1, 1, 1]} : vector<2x18x18x8xf32> to vector<2x16x16x8xf32>
    %11 = tpu.concatenate %2, %3, %4, %5, %6, %7, %8, %9, %10 in 3 : vector<2x16x16x8xf32>, vector<2x16x16x8xf32>, vector<2x16x16x8xf32>, vector<2x16x16x8xf32>, vector<2x16x16x8xf32>, vector<2x16x16x8xf32>, vector<2x16x16x8xf32>, vector<2x16x16x8xf32>, vector<2x16x16x8xf32> -> vector<2x16x16x72xf32>
    %12 = vector.shape_cast %11 : vector<2x16x16x72xf32> to vector<512x72xf32>
    %13 = arith.truncf %12 : vector<512x72xf32> to vector<512x72xbf16>
    %c0_3 = arith.constant 0 : index
    %c0_4 = arith.constant 0 : index
    %14 = vector.load %arg2[%c0_3, %c0_4] : memref<72x8xbf16, #tpu.memory_space<vmem>>, vector<72x8xbf16>
    %cst = arith.constant dense<0.000000e+00> : vector<512x8xf32>
    %15 = tpu.matmul %13, %14, %cst {dimension_numbers = #tpu.dot_dimension_numbers<[1], [0], [0], [1], [0, 0, 1, 1], [], []>} : vector<512x72xbf16>, vector<72x8xbf16>, vector<512x8xf32> -> vector<512x8xf32>
    %c0_5 = arith.constant 0 : index
    %c0_6 = arith.constant 0 : index
    %16 = vector.load %arg4[%c0_5, %c0_6] : memref<1x8xf32, #tpu.memory_space<vmem>>, vector<1x8xf32>
    %17 = vector.broadcast %16 : vector<1x8xf32> to vector<512x8xf32>
    %18 = arith.mulf %15, %17 : vector<512x8xf32>
    %c0_7 = arith.constant 0 : index
    %c0_8 = arith.constant 0 : index
    %19 = vector.load %arg5[%c0_7, %c0_8] : memref<1x8xf32, #tpu.memory_space<vmem>>, vector<1x8xf32>
    %20 = vector.broadcast %19 : vector<1x8xf32> to vector<512x8xf32>
    %21 = arith.addf %18, %20 : vector<512x8xf32>
    %cst_9 = arith.constant 0.000000e+00 : f32
    %22 = vector.broadcast %cst_9 : f32 to vector<512x8xf32>
    %23 = arith.maximumf %21, %22 : vector<512x8xf32>
    %cst_10 = arith.constant 0.000000e+00 : f32
    %24 = vector.broadcast %cst_10 : f32 to vector<2x1x18x8xf32>
    %cst_11 = arith.constant 0.000000e+00 : f32
    %25 = vector.broadcast %cst_11 : f32 to vector<2x18x1x8xf32>
    %c0_12 = arith.constant 0 : index
    %c0_13 = arith.constant 0 : index
    %c0_14 = arith.constant 0 : index
    %c0_15 = arith.constant 0 : index
    %26 = vector.load %arg9[%c0_12, %c0_13, %c0_14, %c0_15] : memref<2x18x18x8xf32, #tpu.memory_space<vmem>>, vector<2x1x18x8xf32>
    tpu.vector_store %arg9[%c0_12, %c0_13, %c0_14, %c0_15], %24 {strides = array<i32>} : memref<2x18x18x8xf32, #tpu.memory_space<vmem>>, vector<2x1x18x8xf32>,
    %c0_16 = arith.constant 0 : index
    %c17 = arith.constant 17 : index
    %c0_17 = arith.constant 0 : index
    %c0_18 = arith.constant 0 : index
    %27 = vector.load %arg9[%c0_16, %c17, %c0_17, %c0_18] : memref<2x18x18x8xf32, #tpu.memory_space<vmem>>, vector<2x1x18x8xf32>
    tpu.vector_store %arg9[%c0_16, %c17, %c0_17, %c0_18], %24 {strides = array<i32>} : memref<2x18x18x8xf32, #tpu.memory_space<vmem>>, vector<2x1x18x8xf32>,
    %c0_19 = arith.constant 0 : index
    %c0_20 = arith.constant 0 : index
    %c0_21 = arith.constant 0 : index
    %c0_22 = arith.constant 0 : index
    %28 = vector.load %arg9[%c0_19, %c0_20, %c0_21, %c0_22] : memref<2x18x18x8xf32, #tpu.memory_space<vmem>>, vector<2x18x1x8xf32>
    tpu.vector_store %arg9[%c0_19, %c0_20, %c0_21, %c0_22], %25 {strides = array<i32>} : memref<2x18x18x8xf32, #tpu.memory_space<vmem>>, vector<2x18x1x8xf32>,
    %c0_23 = arith.constant 0 : index
    %c0_24 = arith.constant 0 : index
    %c17_25 = arith.constant 17 : index
    %c0_26 = arith.constant 0 : index
    %29 = vector.load %arg9[%c0_23, %c0_24, %c17_25, %c0_26] : memref<2x18x18x8xf32, #tpu.memory_space<vmem>>, vector<2x18x1x8xf32>
    tpu.vector_store %arg9[%c0_23, %c0_24, %c17_25, %c0_26], %25 {strides = array<i32>} : memref<2x18x18x8xf32, #tpu.memory_space<vmem>>, vector<2x18x1x8xf32>,
    %30 = vector.shape_cast %23 : vector<512x8xf32> to vector<2x16x16x8xf32>
    %c0_27 = arith.constant 0 : index
    %c1 = arith.constant 1 : index
    %c1_28 = arith.constant 1 : index
    %c0_29 = arith.constant 0 : index
    %31 = vector.load %arg9[%c0_27, %c1, %c1_28, %c0_29] : memref<2x18x18x8xf32, #tpu.memory_space<vmem>>, vector<2x16x16x8xf32>
    tpu.vector_store %arg9[%c0_27, %c1, %c1_28, %c0_29], %30 {strides = array<i32>} : memref<2x18x18x8xf32, #tpu.memory_space<vmem>>, vector<2x16x16x8xf32>,
    %c0_30 = arith.constant 0 : index
    %c0_31 = arith.constant 0 : index
    %c0_32 = arith.constant 0 : index
    %c0_33 = arith.constant 0 : index
    %32 = vector.load %arg9[%c0_30, %c0_31, %c0_32, %c0_33] : memref<2x18x18x8xf32, #tpu.memory_space<vmem>>, vector<2x18x18x8xf32>
    %33 = vector.extract_strided_slice %32 {offsets = [0, 0, 0, 0], sizes = [2, 16, 16, 8], strides = [1, 1, 1, 1]} : vector<2x18x18x8xf32> to vector<2x16x16x8xf32>
    %34 = vector.extract_strided_slice %32 {offsets = [0, 0, 1, 0], sizes = [2, 16, 16, 8], strides = [1, 1, 1, 1]} : vector<2x18x18x8xf32> to vector<2x16x16x8xf32>
    %35 = vector.extract_strided_slice %32 {offsets = [0, 0, 2, 0], sizes = [2, 16, 16, 8], strides = [1, 1, 1, 1]} : vector<2x18x18x8xf32> to vector<2x16x16x8xf32>
    %36 = vector.extract_strided_slice %32 {offsets = [0, 1, 0, 0], sizes = [2, 16, 16, 8], strides = [1, 1, 1, 1]} : vector<2x18x18x8xf32> to vector<2x16x16x8xf32>
    %37 = vector.extract_strided_slice %32 {offsets = [0, 1, 1, 0], sizes = [2, 16, 16, 8], strides = [1, 1, 1, 1]} : vector<2x18x18x8xf32> to vector<2x16x16x8xf32>
    %38 = vector.extract_strided_slice %32 {offsets = [0, 1, 2, 0], sizes = [2, 16, 16, 8], strides = [1, 1, 1, 1]} : vector<2x18x18x8xf32> to vector<2x16x16x8xf32>
    %39 = vector.extract_strided_slice %32 {offsets = [0, 2, 0, 0], sizes = [2, 16, 16, 8], strides = [1, 1, 1, 1]} : vector<2x18x18x8xf32> to vector<2x16x16x8xf32>
    %40 = vector.extract_strided_slice %32 {offsets = [0, 2, 1, 0], sizes = [2, 16, 16, 8], strides = [1, 1, 1, 1]} : vector<2x18x18x8xf32> to vector<2x16x16x8xf32>
    %41 = vector.extract_strided_slice %32 {offsets = [0, 2, 2, 0], sizes = [2, 16, 16, 8], strides = [1, 1, 1, 1]} : vector<2x18x18x8xf32> to vector<2x16x16x8xf32>
    %42 = tpu.concatenate %33, %34, %35, %36, %37, %38, %39, %40, %41 in 3 : vector<2x16x16x8xf32>, vector<2x16x16x8xf32>, vector<2x16x16x8xf32>, vector<2x16x16x8xf32>, vector<2x16x16x8xf32>, vector<2x16x16x8xf32>, vector<2x16x16x8xf32>, vector<2x16x16x8xf32>, vector<2x16x16x8xf32> -> vector<2x16x16x72xf32>
    %43 = vector.shape_cast %42 : vector<2x16x16x72xf32> to vector<512x72xf32>
    %44 = arith.truncf %43 : vector<512x72xf32> to vector<512x72xbf16>
    %c0_34 = arith.constant 0 : index
    %c0_35 = arith.constant 0 : index
    %45 = vector.load %arg3[%c0_34, %c0_35] : memref<72x8xbf16, #tpu.memory_space<vmem>>, vector<72x8xbf16>
    %cst_36 = arith.constant dense<0.000000e+00> : vector<512x8xf32>
    %46 = tpu.matmul %44, %45, %cst_36 {dimension_numbers = #tpu.dot_dimension_numbers<[1], [0], [0], [1], [0, 0, 1, 1], [], []>} : vector<512x72xbf16>, vector<72x8xbf16>, vector<512x8xf32> -> vector<512x8xf32>
    %47 = vector.extract_strided_slice %1 {offsets = [0, 1, 1, 0], sizes = [2, 16, 16, 8], strides = [1, 1, 1, 1]} : vector<2x18x18x8xf32> to vector<2x16x16x8xf32>
    %48 = vector.shape_cast %47 : vector<2x16x16x8xf32> to vector<512x8xf32>
    %c0_37 = arith.constant 0 : index
    %c0_38 = arith.constant 0 : index
    %49 = vector.load %arg6[%c0_37, %c0_38] : memref<1x8xf32, #tpu.memory_space<vmem>>, vector<1x8xf32>
    %50 = vector.broadcast %49 : vector<1x8xf32> to vector<512x8xf32>
    %51 = arith.mulf %46, %50 : vector<512x8xf32>
    %c0_39 = arith.constant 0 : index
    %c0_40 = arith.constant 0 : index
    %52 = vector.load %arg7[%c0_39, %c0_40] : memref<1x8xf32, #tpu.memory_space<vmem>>, vector<1x8xf32>
    %53 = vector.broadcast %52 : vector<1x8xf32> to vector<512x8xf32>
    %54 = arith.addf %51, %53 : vector<512x8xf32>
    %55 = arith.addf %54, %48 : vector<512x8xf32>
    %cst_41 = arith.constant 0.000000e+00 : f32
    %56 = vector.broadcast %cst_41 : f32 to vector<512x8xf32>
    %57 = arith.maximumf %55, %56 : vector<512x8xf32>
    %58 = vector.shape_cast %57 : vector<512x8xf32> to vector<2x16x16x8xf32>
    %c0_42 = arith.constant 0 : index
    %c0_43 = arith.constant 0 : index
    %c0_44 = arith.constant 0 : index
    %c0_45 = arith.constant 0 : index
    %59 = vector.load %arg8[%c0_42, %c0_43, %c0_44, %c0_45] : memref<2x16x16x8xf32, #tpu.memory_space<vmem>>, vector<2x16x16x8xf32>
    tpu.vector_store %arg8[%c0_42, %c0_43, %c0_44, %c0_45], %58 {strides = array<i32>} : memref<2x16x16x8xf32, #tpu.memory_space<vmem>>, vector<2x16x16x8xf32>,
    return
  }
  func.func @transform_0(%arg0: i32) -> (i32, i32, i32, i32) {
    %c0_i32 = arith.constant 0 : i32
    %c0_i32_0 = arith.constant 0 : i32
    %c0_i32_1 = arith.constant 0 : i32
    %c0_i32_2 = arith.constant 0 : i32
    return %arg0, %c0_i32, %c0_i32_0, %c0_i32_1 : i32, i32, i32, i32
  }
  func.func @transform_1(%arg0: i32) -> (i32, i32) {
    %c0_i32 = arith.constant 0 : i32
    %c0_i32_0 = arith.constant 0 : i32
    %c0_i32_1 = arith.constant 0 : i32
    return %c0_i32, %c0_i32_0 : i32, i32
  }
  func.func @transform_2(%arg0: i32) -> (i32, i32) {
    %c0_i32 = arith.constant 0 : i32
    %c0_i32_0 = arith.constant 0 : i32
    %c0_i32_1 = arith.constant 0 : i32
    return %c0_i32, %c0_i32_0 : i32, i32
  }
  func.func @transform_3(%arg0: i32) -> (i32, i32) {
    %c0_i32 = arith.constant 0 : i32
    %c0_i32_0 = arith.constant 0 : i32
    %c0_i32_1 = arith.constant 0 : i32
    return %c0_i32, %c0_i32_0 : i32, i32
  }
  func.func @transform_4(%arg0: i32) -> (i32, i32) {
    %c0_i32 = arith.constant 0 : i32
    %c0_i32_0 = arith.constant 0 : i32
    %c0_i32_1 = arith.constant 0 : i32
    return %c0_i32, %c0_i32_0 : i32, i32
  }
  func.func @transform_5(%arg0: i32) -> (i32, i32) {
    %c0_i32 = arith.constant 0 : i32
    %c0_i32_0 = arith.constant 0 : i32
    %c0_i32_1 = arith.constant 0 : i32
    return %c0_i32, %c0_i32_0 : i32, i32
  }
  func.func @transform_6(%arg0: i32) -> (i32, i32) {
    %c0_i32 = arith.constant 0 : i32
    %c0_i32_0 = arith.constant 0 : i32
    %c0_i32_1 = arith.constant 0 : i32
    return %c0_i32, %c0_i32_0 : i32, i32
  }
  func.func @transform_7(%arg0: i32) -> (i32, i32, i32, i32) {
    %c0_i32 = arith.constant 0 : i32
    %c0_i32_0 = arith.constant 0 : i32
    %c0_i32_1 = arith.constant 0 : i32
    %c0_i32_2 = arith.constant 0 : i32
    return %arg0, %c0_i32, %c0_i32_0, %c0_i32_1 : i32, i32, i32, i32
  }
}

</mosaic_0001>

<bundles_post_ra>
// kernel: tpu_custom_call.1
= control target key start
LH: loop header
LB: loop body
LE: loop exit
PB: predicated region body
PF: predicated region fallthrough
CT: control target
= control target key end

     0   :  { %vm339_vm0 = vcmask 1046528   ;;  %s10138_s23 = smov 8   ;;  %vm692_vm1 = vcmask 1045504   ;;  %s10139_s19 = smov 16   ;;  %vm2249_vm2 = vcmask 64512   ;;  %vm2314_vm3 = vcmask 130048   ;;  %s18399_s0 = inlined_call_operand.vmem [shape: bf16[2,18,18,8], index: 0, kind: input, shape index: {}]   ;;  %s18400_s1 = inlined_call_operand.vmem [shape: bf16[72,8], index: 1, kind: input, shape index: {}]   ;;  %s18401_s3 = inlined_call_operand.vmem [shape: f32[1,8], index: 3, kind: input, shape index: {}]   ;;  %s18402_s4 = inlined_call_operand.vmem [shape: f32[1,8], index: 4, kind: input, shape index: {}]   ;;  %s18403_s2 = inlined_call_operand.vmem [shape: bf16[72,8], index: 2, kind: input, shape index: {}]   ;;  %s18404_s5 = inlined_call_operand.vmem [shape: f32[1,8], index: 5, kind: input, shape index: {}]   ;;  %s18405_s6 = inlined_call_operand.vmem [shape: f32[1,8], index: 6, kind: input, shape index: {}]   ;;  %s18406_s7 = inlined_call_operand.vmem [shape: f32[2,16,16,8], index: 7, kind: output, shape index: {}]  }
   0x1   :  { %v7217_v0 = vld [vmem:[%s18399_s0 + $0x18] sm:$0xff]   ;;  %v10193_v1 = vld [vmem:[%s18399_s0 + $0x20] sm:$0x1]  ;;  %v10208_v7 = vld [vmem:[%s18399_s0 + $0x8] sm:$0x1]  ;;  %s10140_s20 = smov 24  }
   0x2   :  { %v7146_v2 = vld [vmem:[%s18399_s0] sm:$0xff]   ;;  %v10198_v3 = vunpack.c.l.bf16 %v7217_v0  ;;  %v10200_v4 = vunpack.c.h.bf16 %v7217_v0  ;;  %v18411_v5 = vunpack.c.l.bf16 %v10193_v1  ;;  %v10216_v9 = vld [vmem:[%s18399_s0 + $0x2c] sm:$0x1]  ;;  %v18414_v11 = vunpack.c.l.bf16 %v10208_v7  ;;  %v10241_v23 = vld [vmem:[%s18399_s0 + $0x14] sm:$0x1]  ;;  %s10141_s26 = smov 32  }
   0x3   :  { %v10203_v6 = vunpack.c.l.bf16 %v7146_v2  ;;  %v36_v8 = vld [vmem:[%s18399_s0 + $0x24] sm:$0xff]   ;;  %v10218_v10 = vunpack.c.h.bf16 %v7146_v2  ;;  %v30_v14 = vld [vmem:[%s18399_s0 + $0xc] sm:$0xff]   ;;  %v18413_v21 = vunpack.c.l.bf16 %v10216_v9  ;;  %v42_v28 = vld [vmem:[%s18399_s0 + $0x3c] sm:$0xff]   ;;  %v18415_v37 = vunpack.c.l.bf16 %v10241_v23  ;;  %s10142_s8 = smov 40   ;;  %s10143_s9 = smov 48  }
   0x4   :  { %19296 = vst [vmem:[#allocation3_spill] sm:$0xff] %v10198_v3  ;;  %v10221_v12 = vunpack.c.l.bf16 %v36_v8  ;;  %v10223_v13 = vunpack.c.h.bf16 %v36_v8  ;;  %v350_v15 = vrot.slane %v10198_v3, 1  ;;  %v351_v16 = vrot.slane %v10200_v4, 1  ;;  %v10266_v33 = vld [vmem:[%s18399_s0 + $0x44] sm:$0x1]  ;;  %v7218_v38 = vld [vmem:[%s18399_s0 + $0x30] sm:$0xff]  }
   0x5   :  { %19297 = vst [vmem:[#allocation4_spill] sm:$0xff] %v10203_v6  ;;  %19298 = vst [vmem:[#allocation5_spill] sm:$0xff] %v10218_v10  ;;  %v353_v17 = vrot.slane %v18411_v5, 1  ;;  %v340_v18 = vrot.slane %v10203_v6, 1  ;;  %v341_v19 = vrot.slane %v10218_v10, 1  ;;  %v343_v20 = vrot.slane %v18414_v11, 1 }
   0x6   :  { %19299 = vst [vmem:[#allocation6_spill] sm:$0xff] %v10221_v12  ;;  %19300 = vst [vmem:[#allocation7_spill] sm:$0xff] %v10223_v13  ;;  %v355_v22 = vrot.slane %v10221_v12, 1  ;;  %v10244_v24 = vsel %vm339_vm0, %v350_v15, %v351_v16  ;;  %v356_v26 = vrot.slane %v10223_v13, 1  ;;  %v10250_v27 = vunpack.c.l.bf16 %v30_v14  ;;  %v10290_v43 = vld [vmem:[%s18399_s0 + $0x38] sm:$0x1] }
   0x7   :  { %19301 = vst [vmem:[#allocation8_spill] sm:$0xff] %v10244_v24  ;;  %v10247_v25 = vsel %vm339_vm0, %v351_v16, %v353_v17  ;;  %v342_v30 = vsel %vm339_vm0, %v340_v18, %v341_v19  ;;  %v344_v31 = vsel %vm339_vm0, %v341_v19, %v343_v20  ;;  %v358_v32 = vrot.slane %v18413_v21, 1  ;;  %v48_v52 = vld [vmem:[%s18399_s0 + $0x54] sm:$0xff]   ;;  %v10322_v57 = vld [vmem:[%s18399_s0 + $0x5c] sm:$0x1]  ;;  %v7219_v58 = vld [vmem:[%s18399_s0 + $0x48] sm:$0xff]  }
   0x8   :  { %19302 = vst [vmem:[#allocation9_spill] sm:$0xff] %v10247_v25  ;;  %19303 = vst [vmem:[#allocation10_spill] sm:$0xff] %v10250_v27  ;;  %v10257_v29 = vpack.i.bf16 %v10247_v25, %v10244_v24  ;;  %v7467_v34 = vpack.i.bf16 %v344_v31, %v342_v30  ;;  %v10269_v35 = vsel %vm339_vm0, %v355_v22, %v356_v26  ;;  %v10271_v36 = vunpack.c.h.bf16 %v30_v14  ;;  %v10350_v14 = vld [vmem:[%s18399_s0 + $0x50] sm:$0x1]  ;;  %v10377_v30 = vld [vmem:[%s18399_s0 + $0x74] sm:$0x1] }
   0x9   :  { %19305 = vst [vmem:[#allocation12_spill] sm:$0xff] %v10269_v35  ;;  %v10280_v39 = vsel %vm339_vm0, %v356_v26, %v358_v32  ;;  %v345_v40 = vrot.slane %v10250_v27, 1  ;;  %v10283_v41 = vunpack.c.l.bf16 %v42_v28  ;;  %v10285_v42 = vunpack.c.h.bf16 %v42_v28  ;;  %v54_v19 = vld [vmem:[%s18399_s0 + $0x6c] sm:$0xff]   ;;  %v7220_v31 = vld [vmem:[%s18399_s0 + $0x60] sm:$0xff]   ;;  %s10144_s14 = smov 56  }
   0xa   :  { %19304 = vst [vmem:[#allocation11_spill] sm:$0xff] %v10257_v29  ;;  %19306 = vst [vmem:[#allocation13_spill] sm:$0xff] %v10271_v36  ;;  %7478 = vrot.lane.b32.xlu1 %v10257_v29, %s10138_s23  ;;  %7468 = vrot.lane.b32.xlu0 %v7467_v34, %s10138_s23  ;;  %v10295_v44 = vpack.i.bf16 %v10280_v39, %v10269_v35  ;;  %v346_v45 = vrot.slane %v10271_v36, 1  ;;  %v348_v46 = vrot.slane %v18415_v37, 1  ;;  %v18410_v47 = vunpack.c.l.bf16 %v10266_v33  ;;  %v10438_v5 = vld [vmem:[%s18399_s0 + $0x8c] sm:$0x1] }
   0xb   :  { %19307 = vst [vmem:[#allocation14_spill] sm:$0xff] %v10280_v39  ;;  %19308 = vst [vmem:[#allocation15_spill] sm:$0xff] %v10283_v41  ;;  %v365_v48 = vrot.slane %v10283_v41, 1  ;;  %v366_v49 = vrot.slane %v10285_v42, 1  ;;  %v10303_v50 = vunpack.c.l.bf16 %v7218_v38  ;;  %v10305_v51 = vunpack.c.h.bf16 %v7218_v38 }
   0xc   :  { %19309 = vst [vmem:[#allocation16_spill] sm:$0xff] %v10285_v42  ;;  %19310 = vst [vmem:[#allocation17_spill] sm:$0xff] %v10295_v44  ;;  %v10311_v53 = vsel %vm339_vm0, %v345_v40, %v346_v45  ;;  %v10314_v54 = vsel %vm339_vm0, %v346_v45, %v348_v46  ;;  %v368_v55 = vrot.slane %v18410_v47, 1  ;;  %v18409_v56 = vunpack.c.l.bf16 %v10290_v43 }
   0xd   :  { %19311 = vst [vmem:[#allocation18_spill] sm:$0xff] %v10303_v50  ;;  %19312 = vst [vmem:[#allocation19_spill] sm:$0xff] %v10305_v51  ;;  %v10331_v59 = vpack.i.bf16 %v10314_v54, %v10311_v53  ;;  %v10334_v60 = vsel %vm339_vm0, %v365_v48, %v366_v49  ;;  %v360_v61 = vrot.slane %v10303_v50, 1  ;;  %v361_v62 = vrot.slane %v10305_v51, 1 }
   0xe   :  { %19313 = vst [vmem:[#allocation20_spill] sm:$0xff] %v10311_v53  ;;  %19314 = vst [vmem:[#allocation21_spill] sm:$0xff] %v10314_v54  ;;  %7483 = vrot.lane.b32.xlu1 %v10295_v44, %s10138_s23  ;;  %v10339_v63 = vsel %vm339_vm0, %v366_v49, %v368_v55  ;;  %v363_v0 = vrot.slane %v18409_v56, 1  ;;  %v10343_v2 = vunpack.c.l.bf16 %v48_v52  ;;  %v10345_v8 = vunpack.c.h.bf16 %v48_v52  ;;  %v10403_v52 = vld [vmem:[%s18399_s0 + $0x68] sm:$0x1] }
   0xf   :  { %19315 = vst [vmem:[#allocation22_spill] sm:$0xff] %v10331_v59  ;;  %19316 = vst [vmem:[#allocation23_spill] sm:$0xff] %v10334_v60  ;;  %7473 = vrot.lane.b32.xlu0 %v10331_v59, %s10138_s23  ;;  %v10356_v15 = vpack.i.bf16 %v10339_v63, %v10334_v60  ;;  %v10359_v16 = vsel %vm339_vm0, %v360_v61, %v361_v62  ;;  %v18408_v17 = vunpack.c.l.bf16 %v10322_v57  ;;  %v10362_v18 = vunpack.c.l.bf16 %v7219_v58 }
  0x10   :  { %19317 = vst [vmem:[#allocation24_spill] sm:$0xff] %v10339_v63  ;;  %19318 = vst [vmem:[#allocation25_spill] sm:$0xff] %v10343_v2  ;;  %v10368_v20 = vsel %vm339_vm0, %v361_v62, %v363_v0  ;;  %v375_v22 = vrot.slane %v10343_v2, 1  ;;  %v376_v26 = vrot.slane %v10345_v8, 1  ;;  %v10372_v28 = vunpack.c.h.bf16 %v7219_v58  ;;  %v60_v0 = vld [vmem:[%s18399_s0 + $0x84] sm:$0xff]  }
  0x11   :  { %19319 = vst [vmem:[#allocation26_spill] sm:$0xff] %v10345_v8  ;;  %19320 = vst [vmem:[#allocation27_spill] sm:$0xff] %v10356_v15  ;;  %v10386_v32 = vpack.i.bf16 %v10368_v20, %v10359_v16  ;;  %v378_v34 = vrot.slane %v18408_v17, 1  ;;  %v18407_v38 = vunpack.c.l.bf16 %v10350_v14  ;;  %v370_v40 = vrot.slane %v10362_v18, 1 }
  0x12   :  { %19321 = vst [vmem:[#allocation28_spill] sm:$0xff] %v10359_v16  ;;  %19322 = vst [vmem:[#allocation29_spill] sm:$0xff] %v10362_v18  ;;  %7493 = vrot.lane.b32.xlu1 %v10356_v15, %s10138_s23  ;;  %v10393_v45 = vsel %vm339_vm0, %v375_v22, %v376_v26  ;;  %v371_v46 = vrot.slane %v10372_v28, 1  ;;  %v10396_v48 = vunpack.c.l.bf16 %v54_v19  ;;  %v10398_v49 = vunpack.c.h.bf16 %v54_v19 }
  0x13   :  { %19323 = vst [vmem:[#allocation30_spill] sm:$0xff] %v10368_v20  ;;  %19324 = vst [vmem:[#allocation31_spill] sm:$0xff] %v10372_v28  ;;  %7488 = vrot.lane.b32.xlu0 %v10386_v32, %s10138_s23  ;;  %v10408_v55 = vsel %vm339_vm0, %v376_v26, %v378_v34  ;;  %v373_v58 = vrot.slane %v18407_v38, 1  ;;  %v18412_v61 = vunpack.c.l.bf16 %v10377_v30  ;;  %v10413_v62 = vunpack.c.l.bf16 %v7220_v31 }
  0x14   :  { %19325 = vst [vmem:[#allocation32_spill] sm:$0xff] %v10386_v32  ;;  %19326 = vst [vmem:[#allocation33_spill] sm:$0xff] %v10393_v45  ;;  %v10420_v19 = vpack.i.bf16 %v10408_v55, %v10393_v45  ;;  %v10423_v22 = vsel %vm339_vm0, %v370_v40, %v371_v46  ;;  %v385_v26 = vrot.slane %v10396_v48, 1  ;;  %v386_v34 = vrot.slane %v10398_v49, 1  ;;  %v7221_v40 = vld [vmem:[%s18399_s0 + $0x78] sm:$0xff]  }
  0x15   :  { %19327 = vst [vmem:[#allocation34_spill] sm:$0xff] %v10396_v48  ;;  %19328 = vst [vmem:[#allocation35_spill] sm:$0xff] %v10398_v49  ;;  %v10428_v38 = vsel %vm339_vm0, %v371_v46, %v373_v58  ;;  %v388_v17 = vrot.slane %v18412_v61, 1  ;;  %v10432_v56 = vunpack.c.h.bf16 %v7220_v31  ;;  %v18419_v47 = vunpack.c.l.bf16 %v10403_v52  ;;  %v10466_v45 = vld [vmem:[%s18399_s0 + $0x80] sm:$0x1] }
  0x16   :  { %19329 = vst [vmem:[#allocation36_spill] sm:$0xff] %v10408_v55  ;;  %19330 = vst [vmem:[#allocation37_spill] sm:$0xff] %v10413_v62  ;;  %7503 = vrot.lane.b32.xlu1 %v10420_v19, %s10138_s23  ;;  %v10447_v46 = vpack.i.bf16 %v10428_v38, %v10423_v22  ;;  %v10450_v31 = vsel %vm339_vm0, %v385_v26, %v386_v34  ;;  %v380_v58 = vrot.slane %v10413_v62, 1  ;;  %v10453_v61 = vunpack.c.l.bf16 %v60_v0 }
  0x17   :  { %19331 = vst [vmem:[#allocation38_spill] sm:$0xff] %v10420_v19  ;;  %19332 = vst [vmem:[#allocation39_spill] sm:$0xff] %v10423_v22  ;;  %v10456_v21 = vsel %vm339_vm0, %v386_v34, %v388_v17  ;;  %v381_v11 = vrot.slane %v10432_v56, 1  ;;  %v383_v37 = vrot.slane %v18419_v47, 1  ;;  %v10461_v55 = vunpack.c.h.bf16 %v60_v0  ;;  %v66_v0 = vld [vmem:[%s18399_s0 + $0x9c] sm:$0xff]  }
  0x18   :  { %19333 = vst [vmem:[#allocation40_spill] sm:$0xff] %v10428_v38  ;;  %19334 = vst [vmem:[#allocation41_spill] sm:$0xff] %v10432_v56  ;;  %7498 = vrot.lane.b32.xlu0 %v10447_v46, %s10138_s23  ;;  %v10472_v26 = vpack.i.bf16 %v10456_v21, %v10450_v31  ;;  %v395_v34 = vrot.slane %v10453_v61, 1  ;;  %v10476_v63 = vunpack.c.l.bf16 %v7221_v40  ;;  %v10493_v17 = vld [vmem:[%s18399_s0 + $0xa4] sm:$0x1]  ;;  %v10512_v35 = vunpack.c.l.bf16 %v66_v0 }
  0x19   :  { %19335 = vst [vmem:[#allocation42_spill] sm:$0xff] %v10447_v46  ;;  %19336 = vst [vmem:[#allocation43_spill] sm:$0xff] %v10450_v31  ;;  %v10482_v47 = vsel %vm339_vm0, %v380_v58, %v381_v11  ;;  %v10485_v38 = vsel %vm339_vm0, %v381_v11, %v383_v37  ;;  %v396_v60 = vrot.slane %v10461_v55, 1  ;;  %v7222_v31 = vld [vmem:[%s18399_s0 + $0x90] sm:$0xff]   ;;  %v19346_v37 = vunpack.c.l.bf16 %v10438_v5 }
  0x1a   :  { %19337 = vst [vmem:[#allocation44_spill] sm:$0xff] %v10453_v61  ;;  %19338 = vst [vmem:[#allocation45_spill] sm:$0xff] %v10456_v21  ;;  %v10488_v21 = vunpack.c.h.bf16 %v7221_v40  ;;  %7513 = vrot.lane.b32.xlu1 %v10472_v26, %s10138_s23  ;;  %v10502_v11 = vpack.i.bf16 %v10485_v38, %v10482_v47  ;;  %v18434_v58 = vunpack.c.l.bf16 %v10466_v45  ;;  %v390_v22 = vrot.slane %v10476_v63, 1 }
  0x1b   :  { %19339 = vst [vmem:[#allocation46_spill] sm:$0xff] %v10461_v55  ;;  %19340 = vst [vmem:[#allocation47_spill] sm:$0xff] %v10472_v26  ;;  %v398_v40 = vrot.slane %v19346_v37, 1  ;;  %v10509_v39 = vsel %vm339_vm0, %v395_v34, %v396_v60  ;;  %v10514_v16 = vunpack.c.h.bf16 %v66_v0  ;;  %v10529_v54 = vunpack.c.l.bf16 %v7222_v31  ;;  %v72_v0 = vld [vmem:[%s18399_s0 + $0xb4] sm:$0xff]  }
  0x1c   :  { %19341 = vst [vmem:[#allocation48_spill] sm:$0xff] %v10476_v63  ;;  %19342 = vst [vmem:[#allocation49_spill] sm:$0xff] %v10482_v47  ;;  %v391_v20 = vrot.slane %v10488_v21, 1  ;;  %7508 = vrot.lane.b32.xlu0 %v10502_v11, %s10138_s23  ;;  %v393_v34 = vrot.slane %v18434_v58, 1  ;;  %v18441_v47 = vunpack.c.l.bf16 %v10493_v17  ;;  %v10548_v26 = vunpack.c.h.bf16 %v7222_v31 }
  0x1d   :  { %19343 = vst [vmem:[#allocation50_spill] sm:$0xff] %v10485_v38  ;;  %19344 = vst [vmem:[#allocation51_spill] sm:$0xff] %v10488_v21  ;;  %v10519_v38 = vld [vmem:[%s18399_s0 + $0x98] sm:$0x1]  ;;  %v10524_v37 = vsel %vm339_vm0, %v396_v60, %v398_v40  ;;  %v405_v60 = vrot.slane %v10512_v35, 1  ;;  %v406_v40 = vrot.slane %v10514_v16, 1 }
  0x1e   :  { %19345 = vst [vmem:[#allocation52_spill] sm:$0xff] %v10502_v11  ;;  %19347 = vst [vmem:[#allocation53_spill] sm:$0xff] %v10509_v39  ;;  %v10536_v25 = vpack.i.bf16 %v10524_v37, %v10509_v39  ;;  %v10539_v53 = vsel %vm339_vm0, %v390_v22, %v391_v20  ;;  %v10544_v58 = vsel %vm339_vm0, %v391_v20, %v393_v34  ;;  %v408_v24 = vrot.slane %v18441_v47, 1  ;;  %v7223_v22 = vld [vmem:[%s18399_s0 + $0xa8] sm:$0xff]  }
  0x1f   :  { %19348 = vst [vmem:[#allocation54_spill] sm:$0xff] %v10512_v35  ;;  %19349 = vst [vmem:[#allocation55_spill] sm:$0xff] %v10514_v16  ;;  %v10563_v20 = vpack.i.bf16 %v10544_v58, %v10539_v53  ;;  %v10566_v31 = vsel %vm339_vm0, %v405_v60, %v406_v40  ;;  %v400_v34 = vrot.slane %v10529_v54, 1  ;;  %v10569_v47 = vunpack.c.l.bf16 %v72_v0 }
  0x20   :  { %19350 = vst [vmem:[#allocation56_spill] sm:$0xff] %v10524_v37  ;;  %19351 = vst [vmem:[#allocation57_spill] sm:$0xff] %v10529_v54  ;;  %v10554_v37 = vld [vmem:[%s18399_s0 + $0xbc] sm:$0x1]  ;;  %7523 = vrot.lane.b32.xlu1 %v10536_v25, %s10138_s23  ;;  %v10572_v19 = vsel %vm339_vm0, %v406_v40, %v408_v24  ;;  %v401_v39 = vrot.slane %v10548_v26, 1  ;;  %v19361_v11 = vunpack.c.l.bf16 %v10519_v38  ;;  %vm2934_vm4 = vcmask 1043456  }
  0x21   :  { %19352 = vst [vmem:[#allocation58_spill] sm:$0xff] %v10536_v25  ;;  %19353 = vst [vmem:[#allocation59_spill] sm:$0xff] %v10539_v53  ;;  %v10577_v25 = vunpack.c.h.bf16 %v72_v0  ;;  %7518 = vrot.lane.b32.xlu0 %v10563_v20, %s10138_s23  ;;  %v10588_v60 = vpack.i.bf16 %v10572_v19, %v10566_v31  ;;  %v415_v40 = vrot.slane %v10569_v47, 1  ;;  %v10592_v53 = vunpack.c.l.bf16 %v7223_v22  ;;  %v10609_v24 = vld [vmem:[%s18399_s0 + $0xec] sm:$0x1] }
  0x22   :  { %19354 = vst [vmem:[#allocation60_spill] sm:$0xff] %v10544_v58  ;;  %19355 = vst [vmem:[#allocation61_spill] sm:$0xff] %v10548_v26  ;;  %v403_v15 = vrot.slane %v19361_v11, 1  ;;  %v10582_v58 = vld [vmem:[%s18399_s0 + $0xb0] sm:$0x1]  ;;  %v84_v11 = vld [vmem:[%s18399_s0 + $0xe4] sm:$0xff]   ;;  %v10598_v0 = vsel %vm339_vm0, %v400_v34, %v401_v39 }
  0x23   :  { %19356 = vst [vmem:[#allocation62_spill] sm:$0xff] %v10554_v37  ;;  %19357 = vst [vmem:[#allocation63_spill] sm:$0xff] %v10563_v20  ;;  %v416_v20 = vrot.slane %v10577_v25, 1  ;;  %v18474_v34 = vunpack.c.l.bf16 %v10582_v58  ;;  %v410_v44 = vrot.slane %v10592_v53, 1  ;;  %v10628_v29 = vunpack.c.l.bf16 %v84_v11 }
  0x24   :  { %19358 = vst [vmem:[#allocation64_spill] sm:$0xff] %v10566_v31  ;;  %19359 = vst [vmem:[#allocation65_spill] sm:$0xff] %v10569_v47  ;;  %v10601_v46 = vsel %vm339_vm0, %v401_v39, %v403_v15  ;;  %v7225_v31 = vld [vmem:[%s18399_s0 + $0xd8] sm:$0xff]   ;;  %7533 = vrot.lane.b32.xlu1 %v10588_v60, %s10138_s23  ;;  %v19371_v15 = vunpack.c.l.bf16 %v10554_v37  ;;  %vm2379_vm5 = vcmask 195584   ;;  %vm2444_vm6 = vcmask 261120  }
  0x25   :  { %19360 = vst [vmem:[#allocation66_spill] sm:$0xff] %v10572_v19  ;;  %19362 = vst [vmem:[#allocation67_spill] sm:$0xff] %v10577_v25  ;;  %v10604_v19 = vunpack.c.h.bf16 %v7223_v22  ;;  %v10618_v39 = vpack.i.bf16 %v10601_v46, %v10598_v0  ;;  %v10625_v32 = vsel %vm339_vm0, %v415_v40, %v416_v20  ;;  %v10630_v25 = vunpack.c.h.bf16 %v84_v11  ;;  %v90_v11 = vld [vmem:[%s18399_s0 + $0xfc] sm:$0xff]  }
  0x26   :  { %19363 = vst [vmem:[#allocation68_spill] sm:$0xff] %v10582_v58  ;;  %19364 = vst [vmem:[#allocation69_spill] sm:$0xff] %v10588_v60  ;;  %v418_v22 = vrot.slane %v19371_v15, 1  ;;  %v413_v40 = vrot.slane %v18474_v34, 1  ;;  %v10645_v60 = vunpack.c.l.bf16 %v7225_v31  ;;  %vm2509_vm7 = vcmask 326656  }
  0x27   :  { %19365 = vst [vmem:[#allocation70_spill] sm:$0xff] %v10592_v53  ;;  %19366 = vst [vmem:[#allocation71_spill] sm:$0xff] %v10598_v0  ;;  %v411_v59 = vrot.slane %v10604_v19, 1  ;;  %7528 = vrot.lane.b32.xlu0 %v10618_v39, %s10138_s23  ;;  %v18480_v0 = vunpack.c.l.bf16 %v10609_v24  ;;  %v10664_v53 = vunpack.c.h.bf16 %v7225_v31  ;;  %vm2574_vm8 = vcmask 392192  }
  0x28   :  { %19367 = vst [vmem:[#allocation72_spill] sm:$0xff] %v10601_v46  ;;  %19368 = vst [vmem:[#allocation73_spill] sm:$0xff] %v10604_v19  ;;  %v10635_v46 = vld [vmem:[%s18399_s0 + $0xe0] sm:$0x1]  ;;  %v10640_v15 = vsel %vm339_vm0, %v416_v20, %v418_v22  ;;  %v425_v20 = vrot.slane %v10628_v29, 1  ;;  %v426_v22 = vrot.slane %v10630_v25, 1 }
  0x29   :  { %19369 = vst [vmem:[#allocation74_spill] sm:$0xff] %v10609_v24  ;;  %19370 = vst [vmem:[#allocation75_spill] sm:$0xff] %v10618_v39  ;;  %v10652_v19 = vpack.i.bf16 %v10640_v15, %v10625_v32  ;;  %v10655_v39 = vsel %vm339_vm0, %v410_v44, %v411_v59  ;;  %v10660_v34 = vsel %vm339_vm0, %v411_v59, %v413_v40  ;;  %v428_v58 = vrot.slane %v18480_v0, 1  ;;  %v7226_v44 = vld [vmem:[%s18399_s0 + $0xf0] sm:$0xff]  }
  0x2a   :  { %19372 = vst [vmem:[#allocation76_spill] sm:$0xff] %v10625_v32  ;;  %19373 = vst [vmem:[#allocation77_spill] sm:$0xff] %v10628_v29  ;;  %v10679_v59 = vpack.i.bf16 %v10660_v34, %v10655_v39  ;;  %v10682_v31 = vsel %vm339_vm0, %v425_v20, %v426_v22  ;;  %v420_v40 = vrot.slane %v10645_v60, 1  ;;  %v10685_v0 = vunpack.c.l.bf16 %v90_v11 }
  0x2b   :  { %19374 = vst [vmem:[#allocation78_spill] sm:$0xff] %v10630_v25  ;;  %19375 = vst [vmem:[#allocation79_spill] sm:$0xff] %v10635_v46  ;;  %7543 = vrot.lane.b32.xlu1 %v10652_v19, %s10138_s23  ;;  %v10688_v37 = vsel %vm339_vm0, %v426_v22, %v428_v58  ;;  %v421_v32 = vrot.slane %v10664_v53, 1  ;;  %v19387_v24 = vunpack.c.l.bf16 %v10635_v46  ;;  %v10721_v58 = vld [vmem:[%s18399_s0 + $0x11c] sm:$0x1]  ;;  %vm2639_vm9 = vcmask 457728  }
  0x2c   :  { %19376 = vst [vmem:[#allocation80_spill] sm:$0xff] %v10640_v15  ;;  %19377 = vst [vmem:[#allocation81_spill] sm:$0xff] %v10645_v60  ;;  %v10670_v15 = vld [vmem:[%s18399_s0 + $0x104] sm:$0x1]  ;;  %7538 = vrot.lane.b32.xlu0 %v10679_v59, %s10138_s23  ;;  %v10704_v20 = vpack.i.bf16 %v10688_v37, %v10682_v31  ;;  %v435_v22 = vrot.slane %v10685_v0, 1  ;;  %vm2704_vm10 = vcmask 523264  }
  0x2d   :  { %19378 = vst [vmem:[#allocation82_spill] sm:$0xff] %v10652_v19  ;;  %19379 = vst [vmem:[#allocation83_spill] sm:$0xff] %v10655_v39  ;;  %v423_v25 = vrot.slane %v19387_v24, 1  ;;  %v10693_v19 = vunpack.c.h.bf16 %v90_v11  ;;  %v10708_v39 = vunpack.c.l.bf16 %v7226_v44  ;;  %v96_v24 = vld [vmem:[%s18399_s0 + $0x114] sm:$0xff]   ;;  %v422_v11 = vsel %vm339_vm0, %v420_v40, %v421_v32 }
  0x2e   :  { %19380 = vst [vmem:[#allocation84_spill] sm:$0xff] %v10660_v34  ;;  %19381 = vst [vmem:[#allocation85_spill] sm:$0xff] %v10664_v53  ;;  %v10698_v34 = vld [vmem:[%s18399_s0 + $0xf8] sm:$0x1]  ;;  %v10716_v53 = vunpack.c.h.bf16 %v7226_v44  ;;  %v19394_v40 = vunpack.c.l.bf16 %v10670_v15  ;;  %v10736_v60 = vunpack.c.l.bf16 %v96_v24  ;;  %v10738_v29 = vunpack.c.h.bf16 %v96_v24  ;;  %v102_v24 = vld [vmem:[%s18399_s0 + $0x12c] sm:$0xff]  }
  0x2f   :  { %19382 = vst [vmem:[#allocation86_spill] sm:$0xff] %v10670_v15  ;;  %19383 = vst [vmem:[#allocation87_spill] sm:$0xff] %v10679_v59  ;;  %v424_v46 = vsel %vm339_vm0, %v421_v32, %v423_v25  ;;  %v436_v59 = vrot.slane %v10693_v19, 1  ;;  %7553 = vrot.lane.b32.xlu1 %v10704_v20, %s10138_s23  ;;  %v18507_v32 = vunpack.c.l.bf16 %v10698_v34  ;;  %v430_v44 = vrot.slane %v10708_v39, 1 }
  0x30   :  { %19384 = vst [vmem:[#allocation88_spill] sm:$0xff] %v10682_v31  ;;  %19385 = vst [vmem:[#allocation89_spill] sm:$0xff] %v10685_v0  ;;  %v7547_v31 = vpack.i.bf16 %v424_v46, %v422_v11  ;;  %v438_v25 = vrot.slane %v19394_v40, 1  ;;  %v431_v0 = vrot.slane %v10716_v53, 1  ;;  %v10743_v46 = vld [vmem:[%s18399_s0 + $0x110] sm:$0x1]  ;;  %v18513_v40 = vunpack.c.l.bf16 %v10721_v58 }
  0x31   :  { %19386 = vst [vmem:[#allocation90_spill] sm:$0xff] %v10688_v37  ;;  %19388 = vst [vmem:[#allocation91_spill] sm:$0xff] %v10693_v19  ;;  %v7227_v37 = vld [vmem:[%s18399_s0 + $0x108] sm:$0xff]   ;;  %v10733_v19 = vsel %vm339_vm0, %v435_v22, %v436_v59  ;;  %v433_v22 = vrot.slane %v18507_v32, 1  ;;  %vm2837_vm11 = vcmask 588800   ;;  %vm3435_vm12 = vcmask 58368  }
  0x32   :  { %19389 = vst [vmem:[#allocation92_spill] sm:$0xff] %v10698_v34  ;;  %19390 = vst [vmem:[#allocation93_spill] sm:$0xff] %v10704_v20  ;;  %7548 = vrot.lane.b32.xlu0 %v7547_v31, %s10138_s23  ;;  %v10747_v11 = vsel %vm339_vm0, %v436_v59, %v438_v25  ;;  %v10752_v20 = vunpack.c.l.bf16 %v7227_v37  ;;  %v10762_v31 = vsel %vm339_vm0, %v430_v44, %v431_v0  ;;  %v445_v59 = vrot.slane %v10736_v60, 1  ;;  %v7228_v44 = vld [vmem:[%s18399_s0 + $0x120] sm:$0xff]  }
  0x33   :  { %19391 = vst [vmem:[#allocation94_spill] sm:$0xff] %v10708_v39  ;;  %19392 = vst [vmem:[#allocation95_spill] sm:$0xff] %v10716_v53  ;;  %v10759_v53 = vpack.i.bf16 %v10747_v11, %v10733_v19  ;;  %v446_v25 = vrot.slane %v10738_v29, 1  ;;  %v10767_v32 = vsel %vm339_vm0, %v431_v0, %v433_v22  ;;  %v448_v34 = vrot.slane %v18513_v40, 1 }
  0x34   :  { %19393 = vst [vmem:[#allocation96_spill] sm:$0xff] %v10721_v58  ;;  %19395 = vst [vmem:[#allocation97_spill] sm:$0xff] %v10733_v19  ;;  %v10771_v39 = vunpack.c.h.bf16 %v7227_v37  ;;  %v10786_v0 = vpack.i.bf16 %v10767_v32, %v10762_v31  ;;  %v440_v22 = vrot.slane %v10752_v20, 1  ;;  %v10792_v40 = vunpack.c.l.bf16 %v102_v24 }
  0x35   :  { %19396 = vst [vmem:[#allocation98_spill] sm:$0xff] %v10736_v60  ;;  %19397 = vst [vmem:[#allocation99_spill] sm:$0xff] %v10738_v29  ;;  %7563 = vrot.lane.b32.xlu1 %v10759_v53, %s10138_s23  ;;  %v10789_v37 = vsel %vm339_vm0, %v445_v59, %v446_v25  ;;  %v10795_v15 = vsel %vm339_vm0, %v446_v25, %v448_v34  ;;  %v19410_v58 = vunpack.c.l.bf16 %v10743_v46  ;;  %v10832_v34 = vld [vmem:[%s18399_s0 + $0x14c] sm:$0x1]  ;;  %vm3447_vm13 = vcmask 57344  }
  0x36   :  { %19398 = vst [vmem:[#allocation100_spill] sm:$0xff] %v10743_v46  ;;  %19399 = vst [vmem:[#allocation101_spill] sm:$0xff] %v10747_v11  ;;  %v10777_v11 = vld [vmem:[%s18399_s0 + $0x134] sm:$0x1]  ;;  %v441_v19 = vrot.slane %v10771_v39, 1  ;;  %7558 = vrot.lane.b32.xlu0 %v10786_v0, %s10138_s23  ;;  %v10811_v59 = vpack.i.bf16 %v10795_v15, %v10789_v37  ;;  %v455_v25 = vrot.slane %v10792_v40, 1 }
  0x37   :  { %19400 = vst [vmem:[#allocation102_spill] sm:$0xff] %v10752_v20  ;;  %19401 = vst [vmem:[#allocation103_spill] sm:$0xff] %v10759_v53  ;;  %v443_v29 = vrot.slane %v19410_v58, 1  ;;  %v10800_v53 = vunpack.c.h.bf16 %v102_v24  ;;  %v108_v58 = vld [vmem:[%s18399_s0 + $0x144] sm:$0xff]  }
  0x38   :  { %19402 = vst [vmem:[#allocation104_spill] sm:$0xff] %v10762_v31  ;;  %19403 = vst [vmem:[#allocation105_spill] sm:$0xff] %v10767_v32  ;;  %v10805_v32 = vld [vmem:[%s18399_s0 + $0x128] sm:$0x1]  ;;  %v10815_v31 = vunpack.c.l.bf16 %v7228_v44  ;;  %v10821_v24 = vsel %vm339_vm0, %v440_v22, %v441_v19  ;;  %v10851_v20 = vunpack.c.l.bf16 %v108_v58  ;;  %v10853_v60 = vunpack.c.h.bf16 %v108_v58  ;;  %v114_v58 = vld [vmem:[%s18399_s0 + $0x15c] sm:$0xff]  }
  0x39   :  { %19404 = vst [vmem:[#allocation106_spill] sm:$0xff] %v10771_v39  ;;  %19405 = vst [vmem:[#allocation107_spill] sm:$0xff] %v10777_v11  ;;  %v10824_v46 = vsel %vm339_vm0, %v441_v19, %v443_v29  ;;  %7573 = vrot.lane.b32.xlu1 %v10811_v59, %s10138_s23  ;;  %v19420_v19 = vunpack.c.l.bf16 %v10777_v11  ;;  %v18545_v22 = vunpack.c.l.bf16 %v10805_v32 }
  0x3a   :  { %19406 = vst [vmem:[#allocation108_spill] sm:$0xff] %v10786_v0  ;;  %19407 = vst [vmem:[#allocation109_spill] sm:$0xff] %v10789_v37  ;;  %v456_v0 = vrot.slane %v10800_v53, 1  ;;  %v7229_v37 = vld [vmem:[%s18399_s0 + $0x138] sm:$0xff]   ;;  %v10841_v29 = vpack.i.bf16 %v10824_v46, %v10821_v24 }
  0x3b   :  { %19408 = vst [vmem:[#allocation110_spill] sm:$0xff] %v10792_v40  ;;  %19409 = vst [vmem:[#allocation111_spill] sm:$0xff] %v10795_v15  ;;  %v10827_v15 = vunpack.c.h.bf16 %v7228_v44  ;;  %v458_v44 = vrot.slane %v19420_v19, 1 }
  0x3c   :  { %19411 = vst [vmem:[#allocation112_spill] sm:$0xff] %v10800_v53  ;;  %19412 = vst [vmem:[#allocation113_spill] sm:$0xff] %v10805_v32  ;;  %v450_v53 = vrot.slane %v10815_v31, 1  ;;  %v10848_v40 = vsel %vm339_vm0, %v455_v25, %v456_v0  ;;  %7568 = vrot.lane.b32.xlu0 %v10841_v29, %s10138_s23  ;;  %v453_v25 = vrot.slane %v18545_v22, 1 }
  0x3d   :  { %19413 = vst [vmem:[#allocation114_spill] sm:$0xff] %v10811_v59  ;;  %19414 = vst [vmem:[#allocation115_spill] sm:$0xff] %v10815_v31  ;;  %v451_v39 = vrot.slane %v10827_v15, 1  ;;  %v10863_v19 = vsel %vm339_vm0, %v456_v0, %v458_v44  ;;  %v10868_v59 = vunpack.c.l.bf16 %v7229_v37  ;;  %v465_v0 = vrot.slane %v10851_v20, 1 }
  0x3e   :  { %19415 = vst [vmem:[#allocation116_spill] sm:$0xff] %v10821_v24  ;;  %19416 = vst [vmem:[#allocation117_spill] sm:$0xff] %v10824_v46  ;;  %v10858_v46 = vld [vmem:[%s18399_s0 + $0x140] sm:$0x1]  ;;  %v18551_v24 = vunpack.c.l.bf16 %v10832_v34  ;;  %v466_v44 = vrot.slane %v10853_v60, 1  ;;  %v10887_v31 = vunpack.c.h.bf16 %v7229_v37 }
  0x3f   :  { %19417 = vst [vmem:[#allocation118_spill] sm:$0xff] %v10827_v15  ;;  %19418 = vst [vmem:[#allocation119_spill] sm:$0xff] %v10832_v34  ;;  %v10875_v15 = vpack.i.bf16 %v10863_v19, %v10848_v40  ;;  %v10883_v22 = vsel %vm339_vm0, %v451_v39, %v453_v25  ;;  %v460_v25 = vrot.slane %v10868_v59, 1  ;;  %v19436_v34 = vunpack.c.l.bf16 %v10858_v46 }
  0x40   :  { %19419 = vst [vmem:[#allocation120_spill] sm:$0xff] %v10841_v29  ;;  %19421 = vst [vmem:[#allocation121_spill] sm:$0xff] %v10848_v40  ;;  %v10878_v29 = vsel %vm339_vm0, %v450_v53, %v451_v39  ;;  %v468_v32 = vrot.slane %v18551_v24, 1  ;;  %v7230_v53 = vld [vmem:[%s18399_s0 + $0x150] sm:$0xff]   ;;  %v10905_v37 = vsel %vm339_vm0, %v465_v0, %v466_v44  ;;  %v10908_v24 = vunpack.c.l.bf16 %v114_v58 }
  0x41   :  { %19422 = vst [vmem:[#allocation122_spill] sm:$0xff] %v10851_v20  ;;  %19423 = vst [vmem:[#allocation123_spill] sm:$0xff] %v10853_v60  ;;  %7583 = vrot.lane.b32.xlu1 %v10875_v15, %s10138_s23  ;;  %v10902_v39 = vpack.i.bf16 %v10883_v22, %v10878_v29  ;;  %v461_v40 = vrot.slane %v10887_v31, 1  ;;  %v463_v60 = vrot.slane %v19436_v34, 1  ;;  %v120_v34 = vld [vmem:[%s18399_s0 + $0x174] sm:$0xff]  }
  0x42   :  { %19424 = vst [vmem:[#allocation124_spill] sm:$0xff] %v10858_v46  ;;  %19425 = vst [vmem:[#allocation125_spill] sm:$0xff] %v10863_v19  ;;  %v10893_v19 = vld [vmem:[%s18399_s0 + $0x164] sm:$0x1]  ;;  %v10911_v11 = vsel %vm339_vm0, %v466_v44, %v468_v32  ;;  %v475_v44 = vrot.slane %v10908_v24, 1  ;;  %v10969_v20 = vunpack.c.h.bf16 %v120_v34 }
  0x43   :  { %19426 = vst [vmem:[#allocation126_spill] sm:$0xff] %v10868_v59  ;;  %19427 = vst [vmem:[#allocation127_spill] sm:$0xff] %v10875_v15  ;;  %v10916_v15 = vunpack.c.h.bf16 %v114_v58  ;;  %7578 = vrot.lane.b32.xlu0 %v10902_v39, %s10138_s23  ;;  %v10927_v0 = vpack.i.bf16 %v10911_v11, %v10905_v37  ;;  %v10937_v58 = vsel %vm339_vm0, %v460_v25, %v461_v40  ;;  %v10948_v32 = vld [vmem:[%s18399_s0 + $0x17c] sm:$0x1]  ;;  %v10967_v59 = vunpack.c.l.bf16 %v120_v34  ;;  %v126_v34 = vld [vmem:[%s18399_s0 + $0x18c] sm:$0xff]  }
  0x44   :  { %19428 = vst [vmem:[#allocation128_spill] sm:$0xff] %v10878_v29  ;;  %19429 = vst [vmem:[#allocation129_spill] sm:$0xff] %v10883_v22  ;;  %v10921_v22 = vld [vmem:[%s18399_s0 + $0x158] sm:$0x1]  ;;  %v10931_v29 = vunpack.c.l.bf16 %v7230_v53  ;;  %v10940_v46 = vsel %vm339_vm0, %v461_v40, %v463_v60  ;;  %v19446_v40 = vunpack.c.l.bf16 %v10893_v19 }
  0x45   :  { %19430 = vst [vmem:[#allocation130_spill] sm:$0xff] %v10887_v31  ;;  %19431 = vst [vmem:[#allocation131_spill] sm:$0xff] %v10893_v19  ;;  %7593 = vrot.lane.b32.xlu1 %v10927_v0, %s10138_s23  ;;  %v10957_v60 = vpack.i.bf16 %v10940_v46, %v10937_v58  ;;  %v18583_v25 = vunpack.c.l.bf16 %v10921_v22 }
  0x46   :  { %19432 = vst [vmem:[#allocation132_spill] sm:$0xff] %v10902_v39  ;;  %19433 = vst [vmem:[#allocation133_spill] sm:$0xff] %v10905_v37  ;;  %v476_v39 = vrot.slane %v10916_v15, 1  ;;  %v7231_v37 = vld [vmem:[%s18399_s0 + $0x168] sm:$0xff]  }
  0x47   :  { %19434 = vst [vmem:[#allocation134_spill] sm:$0xff] %v10908_v24  ;;  %19435 = vst [vmem:[#allocation135_spill] sm:$0xff] %v10911_v11  ;;  %v10943_v11 = vunpack.c.h.bf16 %v7230_v53  ;;  %v478_v53 = vrot.slane %v19446_v40, 1  ;;  %7588 = vrot.lane.b32.xlu0 %v10957_v60, %s10138_s23 }
  0x48   :  { %19437 = vst [vmem:[#allocation136_spill] sm:$0xff] %v10916_v15  ;;  %19438 = vst [vmem:[#allocation137_spill] sm:$0xff] %v10921_v22  ;;  %v470_v15 = vrot.slane %v10931_v29, 1  ;;  %v10964_v24 = vsel %vm339_vm0, %v475_v44, %v476_v39  ;;  %v473_v44 = vrot.slane %v18583_v25, 1 }
  0x49   :  { %19439 = vst [vmem:[#allocation138_spill] sm:$0xff] %v10927_v0  ;;  %19440 = vst [vmem:[#allocation139_spill] sm:$0xff] %v10931_v29  ;;  %v471_v31 = vrot.slane %v10943_v11, 1  ;;  %v10979_v40 = vsel %vm339_vm0, %v476_v39, %v478_v53  ;;  %v10984_v0 = vunpack.c.l.bf16 %v7231_v37  ;;  %v485_v39 = vrot.slane %v10967_v59, 1 }
  0x4a   :  { %19441 = vst [vmem:[#allocation140_spill] sm:$0xff] %v10937_v58  ;;  %19442 = vst [vmem:[#allocation141_spill] sm:$0xff] %v10940_v46  ;;  %v10974_v46 = vld [vmem:[%s18399_s0 + $0x170] sm:$0x1]  ;;  %v18589_v58 = vunpack.c.l.bf16 %v10948_v32  ;;  %v486_v53 = vrot.slane %v10969_v20, 1  ;;  %v11003_v29 = vunpack.c.h.bf16 %v7231_v37 }
  0x4b   :  { %19443 = vst [vmem:[#allocation142_spill] sm:$0xff] %v10943_v11  ;;  %19444 = vst [vmem:[#allocation143_spill] sm:$0xff] %v10948_v32  ;;  %v10991_v11 = vpack.i.bf16 %v10979_v40, %v10964_v24  ;;  %v10999_v25 = vsel %vm339_vm0, %v471_v31, %v473_v44  ;;  %v480_v44 = vrot.slane %v10984_v0, 1  ;;  %v19461_v32 = vunpack.c.l.bf16 %v10974_v46 }
  0x4c   :  { %19445 = vst [vmem:[#allocation144_spill] sm:$0xff] %v10957_v60  ;;  %19447 = vst [vmem:[#allocation145_spill] sm:$0xff] %v10964_v24  ;;  %v10994_v60 = vsel %vm339_vm0, %v470_v15, %v471_v31  ;;  %v488_v22 = vrot.slane %v18589_v58, 1  ;;  %v7232_v15 = vld [vmem:[%s18399_s0 + $0x180] sm:$0xff]   ;;  %v11021_v37 = vsel %vm339_vm0, %v485_v39, %v486_v53  ;;  %v11024_v58 = vunpack.c.l.bf16 %v126_v34 }
  0x4d   :  { %19448 = vst [vmem:[#allocation146_spill] sm:$0xff] %v10967_v59  ;;  %19449 = vst [vmem:[#allocation147_spill] sm:$0xff] %v10969_v20  ;;  %7603 = vrot.lane.b32.xlu1 %v10991_v11, %s10138_s23  ;;  %v11018_v31 = vpack.i.bf16 %v10999_v25, %v10994_v60  ;;  %v481_v24 = vrot.slane %v11003_v29, 1  ;;  %v483_v20 = vrot.slane %v19461_v32, 1 }
  0x4e   :  { %19450 = vst [vmem:[#allocation148_spill] sm:$0xff] %v10974_v46  ;;  %19451 = vst [vmem:[#allocation149_spill] sm:$0xff] %v10979_v40  ;;  %v11009_v40 = vld [vmem:[%s18399_s0 + $0x194] sm:$0x1]  ;;  %v11027_v19 = vsel %vm339_vm0, %v486_v53, %v488_v22  ;;  %v495_v53 = vrot.slane %v11024_v58, 1 }
  0x4f   :  { %19452 = vst [vmem:[#allocation150_spill] sm:$0xff] %v10984_v0  ;;  %19453 = vst [vmem:[#allocation151_spill] sm:$0xff] %v10991_v11  ;;  %v11032_v11 = vunpack.c.h.bf16 %v126_v34  ;;  %7598 = vrot.lane.b32.xlu0 %v11018_v31, %s10138_s23  ;;  %v11043_v39 = vpack.i.bf16 %v11027_v19, %v11021_v37  ;;  %v11050_v32 = vsel %vm339_vm0, %v480_v44, %v481_v24 }
  0x50   :  { %19454 = vst [vmem:[#allocation152_spill] sm:$0xff] %v10994_v60  ;;  %19455 = vst [vmem:[#allocation153_spill] sm:$0xff] %v10999_v25  ;;  %v11037_v25 = vld [vmem:[%s18399_s0 + $0x188] sm:$0x1]  ;;  %v11047_v60 = vunpack.c.l.bf16 %v7232_v15  ;;  %v11053_v34 = vsel %vm339_vm0, %v481_v24, %v483_v20 }
  0x51   :  { %19456 = vst [vmem:[#allocation154_spill] sm:$0xff] %v11003_v29  ;;  %19457 = vst [vmem:[#allocation155_spill] sm:$0xff] %v11018_v31  ;;  %v496_v46 = vrot.slane %v11032_v11, 1  ;;  %v11056_v29 = vunpack.c.h.bf16 %v7232_v15  ;;  %7613 = vrot.lane.b32.xlu1 %v11043_v39, %s10138_s23  ;;  %v11062_v22 = vpack.i.bf16 %v11053_v34, %v11050_v32  ;;  %v18617_v44 = vunpack.c.l.bf16 %v11037_v25 }
  0x52   :  { %19458 = vst [vmem:[#allocation156_spill] sm:$0xff] %v11021_v37  ;;  %19459 = vst [vmem:[#allocation157_spill] sm:$0xff] %v11024_v58  ;;  %v490_v31 = vrot.slane %v11047_v60, 1  ;;  %v698_v15 = vrot.slane %v10250_v27, 2 }
  0x53   :  { %19460 = vst [vmem:[#allocation158_spill] sm:$0xff] %v11027_v19  ;;  %19462 = vst [vmem:[#allocation159_spill] sm:$0xff] %v11032_v11  ;;  %v19469_v19 = vunpack.c.l.bf16 %v11009_v40  ;;  %v11069_v20 = vsel %vm339_vm0, %v495_v53, %v496_v46  ;;  %v491_v24 = vrot.slane %v11056_v29, 1  ;;  %7608 = vrot.lane.b32.xlu0 %v11062_v22, %s10138_s23  ;;  %v693_v53 = vrot.slane %v10203_v6, 2 }
  0x54   :  { %19463 = vst [vmem:[#allocation160_spill] sm:$0xff] %v11043_v39  ;;  %19464 = vst [vmem:[#allocation161_spill] sm:$0xff] %v11047_v60  ;;  %v699_v39 = vrot.slane %v10271_v36, 2  ;;  %v708_v6 = vrot.slane %v10221_v12, 2 }
  0x55   :  { %19465 = vst [vmem:[#allocation162_spill] sm:$0xff] %v11050_v32  ;;  %19466 = vst [vmem:[#allocation163_spill] sm:$0xff] %v11053_v34  ;;  %v498_v37 = vrot.slane %v19469_v19, 1  ;;  %v493_v19 = vrot.slane %v18617_v44, 1  ;;  %v19472_v32 = vunpack.c.l.bf16 %v10241_v23  ;;  %v11089_v36 = vsel %vm339_vm0, %v490_v31, %v491_v24 }
  0x56   :  { %19467 = vst [vmem:[#allocation164_spill] sm:$0xff] %v11056_v29  ;;  %19468 = vst [vmem:[#allocation165_spill] sm:$0xff] %v11062_v22  ;;  %v700_v22 = vsel %vm692_vm1, %v698_v15, %v699_v39  ;;  %v19476_v23 = vunpack.c.l.bf16 %v10208_v7  ;;  %v19479_v7 = vunpack.c.l.bf16 %v10216_v9  ;;  %v719_v9 = vrot.slane %v10285_v42, 2 }
  0x57   :  { %19470 = vst [vmem:[#allocation166_spill] sm:$0xff] %v11069_v20  ;;  %v11077_v34 = vsel %vm339_vm0, %v496_v46, %v498_v37  ;;  %v701_v60 = vrot.slane %v19472_v32, 2  ;;  %19474 = vst [vmem:[#allocation169_spill] sm:$0xff] %v11089_v36  ;;  %v694_v46 = vrot.slane %v10218_v10, 2  ;;  %v11094_v37 = vsel %vm339_vm0, %v491_v24, %v493_v19 }
  0x58   :  { %19471 = vst [vmem:[#allocation167_spill] sm:$0xff] %v11077_v34  ;;  %v11086_v29 = vpack.i.bf16 %v11077_v34, %v11069_v20  ;;  %19475 = vst [vmem:[#allocation170_spill] sm:$0xff] %v11094_v37  ;;  %v696_v32 = vrot.slane %v19476_v23, 2  ;;  %v11104_v31 = vpack.i.bf16 %v11094_v37, %v11089_v36  ;;  %v703_v19 = vrot.slane %v10198_v3, 2 }
  0x59   :  { %v702_v44 = vsel %vm692_vm1, %v699_v39, %v701_v60  ;;  %v695_v34 = vsel %vm692_vm1, %v693_v53, %v694_v46  ;;  %v709_v60 = vrot.slane %v10223_v13, 2  ;;  %v711_v39 = vrot.slane %v19479_v7, 2 }
  0x5a   :  { %19473 = vst [vmem:[#allocation168_spill] sm:$0xff] %v11086_v29  ;;  %7623 = vrot.lane.b32.xlu1 %v11086_v29, %s10138_s23  ;;  %19477 = vst [vmem:[#allocation171_spill] sm:$0xff] %v11104_v31  ;;  %v11106_v15 = vpack.i.bf16 %v702_v44, %v700_v22  ;;  %v697_v24 = vsel %vm692_vm1, %v694_v46, %v696_v32  ;;  %7618 = vrot.lane.b32.xlu0 %v11104_v31, %s10138_s23  ;;  %v704_v20 = vrot.slane %v10200_v4, 2 }
  0x5b   :  { %v7627_v23 = vpack.i.bf16 %v697_v24, %v695_v34  ;;  %v19480_v22 = vunpack.c.l.bf16 %v10193_v1  ;;  %v718_v53 = vrot.slane %v10283_v41, 2  ;;  %v710_v46 = vsel %vm692_vm1, %v708_v6, %v709_v60 }
  0x5c   :  { %19478 = vst [vmem:[#allocation172_spill] sm:$0xff] %v11106_v15  ;;  %v712_v32 = vsel %vm692_vm1, %v709_v60, %v711_v39  ;;  %v19481_v7 = vunpack.c.l.bf16 %v10266_v33  ;;  %v705_v1 = vsel %vm692_vm1, %v703_v19, %v704_v20  ;;  %v714_v33 = vrot.slane %v10305_v51, 2 }
  0x5d   :  { %v706_v44 = vrot.slane %v19480_v22, 2  ;;  %v11127_v34 = vpack.i.bf16 %v712_v32, %v710_v46  ;;  %v713_v22 = vrot.slane %v10303_v50, 2  ;;  %v720_v60 = vsel %vm692_vm1, %v718_v53, %v719_v9 }
  0x5e   :  { %v721_v37 = vrot.slane %v19481_v7, 2  ;;  %7633 = vrot.lane.b32.xlu1 %v11106_v15, %s10139_s19  ;;  %7628 = vrot.lane.b32.xlu0 %v7627_v23, %s10139_s19  ;;  %v19485_v46 = vunpack.c.l.bf16 %v10290_v43  ;;  %v728_v19 = vrot.slane %v10343_v2, 2 }
  0x5f   :  { %19482 = vst [vmem:[#allocation173_spill] sm:$0xff] %v11127_v34  ;;  %v707_v24 = vsel %vm692_vm1, %v704_v20, %v706_v44  ;;  %v729_v20 = vrot.slane %v10345_v8, 2  ;;  %v715_v44 = vsel %vm692_vm1, %v713_v22, %v714_v33 }
  0x60   :  { %v11132_v6 = vpack.i.bf16 %v707_v24, %v705_v1  ;;  %v722_v39 = vsel %vm692_vm1, %v719_v9, %v721_v37  ;;  %v716_v32 = vrot.slane %v19485_v46, 2  ;;  %v19486_v1 = vunpack.c.l.bf16 %v10322_v57 }
  0x61   :  { %v11138_v7 = vpack.i.bf16 %v722_v39, %v720_v60  ;;  %v723_v37 = vrot.slane %v10362_v18, 2  ;;  %v724_v9 = vrot.slane %v10372_v28, 2  ;;  %v730_v43 = vsel %vm692_vm1, %v728_v19, %v729_v20 }
  0x62   :  { %19483 = vst [vmem:[#allocation174_spill] sm:$0xff] %v11132_v6  ;;  %v731_v53 = vrot.slane %v19486_v1, 2  ;;  %7643 = vrot.lane.b32.xlu1 %v11127_v34, %s10139_s19  ;;  %v717_v23 = vsel %vm692_vm1, %v714_v33, %v716_v32  ;;  %v19487_v24 = vunpack.c.l.bf16 %v10350_v14  ;;  %v738_v39 = vrot.slane %v10396_v48, 2  ;;  %7638 = vrot.lane.b32.xlu0 %v11132_v6, %s10139_s19 }
  0x63   :  { %19484 = vst [vmem:[#allocation175_spill] sm:$0xff] %v11138_v7  ;;  %v11156_v22 = vpack.i.bf16 %v717_v23, %v715_v44  ;;  %v739_v46 = vrot.slane %v10398_v49, 2  ;;  %v725_v33 = vsel %vm692_vm1, %v723_v37, %v724_v9  ;;  %v19490_v32 = vunpack.c.l.bf16 %v10377_v30 }
  0x64   :  { %v726_v60 = vrot.slane %v19487_v24, 2  ;;  %v732_v57 = vsel %vm692_vm1, %v729_v20, %v731_v53  ;;  %v733_v14 = vrot.slane %v10413_v62, 2  ;;  %v734_v20 = vrot.slane %v10432_v56, 2 }
  0x65   :  { %19488 = vst [vmem:[#allocation176_spill] sm:$0xff] %v11156_v22  ;;  %v11162_v1 = vpack.i.bf16 %v732_v57, %v730_v43  ;;  %v741_v19 = vrot.slane %v19490_v32, 2  ;;  %v740_v44 = vsel %vm692_vm1, %v738_v39, %v739_v46  ;;  %v19491_v53 = vunpack.c.l.bf16 %v10403_v52 }
  0x66   :  { %v727_v24 = vsel %vm692_vm1, %v724_v9, %v726_v60  ;;  %7653 = vrot.lane.b32.xlu1 %v11138_v7, %s10139_s19  ;;  %v748_v37 = vrot.slane %v10453_v61, 2  ;;  %v749_v30 = vrot.slane %v10461_v55, 2  ;;  %v19492_v57 = vunpack.c.l.bf16 %v10438_v5  ;;  %7648 = vrot.lane.b32.xlu0 %v11156_v22, %s10139_s19  ;;  %v19504_v7 = vld [vmem:[#allocation78_spill] sm:$0xff]  ;;  %v19510_v22 = vld [vmem:[#allocation68_spill] sm:$0xff] }
  0x67   :  { %19489 = vst [vmem:[#allocation177_spill] sm:$0xff] %v11162_v1  ;;  %v736_v23 = vrot.slane %v19491_v53, 2  ;;  %v742_v43 = vsel %vm692_vm1, %v739_v46, %v741_v19  ;;  %v11182_v9 = vpack.i.bf16 %v727_v24, %v725_v33  ;;  %v735_v52 = vsel %vm692_vm1, %v733_v14, %v734_v20 }
  0x68   :  { %v751_v32 = vrot.slane %v19492_v57, 2  ;;  %v11184_v60 = vpack.i.bf16 %v742_v43, %v740_v44  ;;  %v750_v46 = vsel %vm692_vm1, %v748_v37, %v749_v30  ;;  %v743_v19 = vrot.slane %v10476_v63, 2 }
  0x69   :  { %19493 = vst [vmem:[#allocation178_spill] sm:$0xff] %v11182_v9  ;;  %v737_v39 = vsel %vm692_vm1, %v734_v20, %v736_v23  ;;  %v744_v53 = vrot.slane %v10488_v21, 2  ;;  %v19495_v5 = vunpack.c.l.bf16 %v10466_v45  ;;  %v758_v24 = vrot.slane %v10512_v35, 2 }
  0x6a   :  { %19494 = vst [vmem:[#allocation179_spill] sm:$0xff] %v11184_v60  ;;  %7663 = vrot.lane.b32.xlu1 %v11162_v1, %s10139_s19  ;;  %v752_v33 = vsel %vm692_vm1, %v749_v30, %v751_v32  ;;  %v759_v14 = vrot.slane %v10514_v16, 2  ;;  %v19496_v44 = vunpack.c.l.bf16 %v10493_v17  ;;  %7658 = vrot.lane.b32.xlu0 %v11182_v9, %s10139_s19  ;;  %v11202_v23 = vpack.i.bf16 %v737_v39, %v735_v52  ;;  %v19501_v1 = vld [vmem:[#allocation62_spill] sm:$0xff] }
  0x6b   :  { %v746_v57 = vrot.slane %v19495_v5, 2  ;;  %v753_v45 = vrot.slane %v10529_v54, 2  ;;  %v754_v43 = vrot.slane %v10548_v26, 2  ;;  %v19498_v37 = vunpack.c.l.bf16 %v10519_v38  ;;  %v19505_v9 = vld [vmem:[#allocation74_spill] sm:$0xff] }
  0x6c   :  { %v761_v20 = vrot.slane %v19496_v44, 2  ;;  %19497 = vst [vmem:[#allocation180_spill] sm:$0xff] %v11202_v23  ;;  %v11208_v30 = vpack.i.bf16 %v752_v33, %v750_v46  ;;  %v745_v32 = vsel %vm692_vm1, %v743_v19, %v744_v53  ;;  %v760_v17 = vsel %vm692_vm1, %v758_v24, %v759_v14  ;;  %v19500_v44 = vld [vmem:[#allocation67_spill] sm:$0xff]  ;;  %v19503_v46 = vld [vmem:[#allocation77_spill] sm:$0xff] }
  0x6d   :  { %v756_v5 = vrot.slane %v19498_v37, 2  ;;  %v747_v36 = vsel %vm692_vm1, %v744_v53, %v746_v57  ;;  %v768_v39 = vrot.slane %v10569_v47, 2  ;;  %v769_v10 = vrot.slane %v19500_v44, 2 }
  0x6e   :  { %19499 = vst [vmem:[#allocation181_spill] sm:$0xff] %v11208_v30  ;;  %7673 = vrot.lane.b32.xlu1 %v11184_v60, %s10139_s19  ;;  %v762_v52 = vsel %vm692_vm1, %v759_v14, %v761_v20  ;;  %v19502_v38 = vunpack.c.l.bf16 %v19501_v1  ;;  %v778_v33 = vrot.slane %v19503_v46, 2  ;;  %v779_v19 = vrot.slane %v19504_v7, 2  ;;  %7668 = vrot.lane.b32.xlu0 %v11202_v23, %s10139_s19  ;;  %v19508_v60 = vld [vmem:[#allocation70_spill] sm:$0xff]  ;;  %v19509_v1 = vld [vmem:[#allocation73_spill] sm:$0xff]  ;;  %v19530_v23 = vld [vmem:[#allocation99_spill] sm:$0xff] }
  0x6f   :  { %v19506_v53 = vunpack.c.l.bf16 %v19505_v9  ;;  %v11226_v24 = vpack.i.bf16 %v747_v36, %v745_v32  ;;  %v755_v14 = vsel %vm692_vm1, %v753_v45, %v754_v43  ;;  %v757_v20 = vsel %vm692_vm1, %v754_v43, %v756_v5 }
  0x70   :  { %v771_v37 = vrot.slane %v19502_v38, 2  ;;  %v763_v34 = vrot.slane %v19508_v60, 2  ;;  %v764_v38 = vrot.slane %v19509_v1, 2  ;;  %v19511_v15 = vunpack.c.l.bf16 %v19510_v22 }
  0x71   :  { %v781_v57 = vrot.slane %v19506_v53, 2  ;;  %19507 = vst [vmem:[#allocation62_spill] sm:$0xff] %v11226_v24  ;;  %v780_v29 = vsel %vm692_vm1, %v778_v33, %v779_v19  ;;  %v11238_v36 = vpack.i.bf16 %v762_v52, %v760_v17  ;;  %v770_v45 = vsel %vm692_vm1, %v768_v39, %v769_v10  ;;  %v19516_v33 = vld [vmem:[#allocation85_spill] sm:$0xff]  ;;  %v19517_v52 = vld [vmem:[#allocation79_spill] sm:$0xff] }
  0x72   :  { %v766_v6 = vrot.slane %v19511_v15, 2  ;;  %7683 = vrot.lane.b32.xlu1 %v11208_v30, %s10139_s19  ;;  %v772_v43 = vsel %vm692_vm1, %v769_v10, %v771_v37  ;;  %7678 = vrot.lane.b32.xlu0 %v11226_v24, %s10139_s19  ;;  %v11246_v22 = vpack.i.bf16 %v757_v20, %v755_v14  ;;  %v19515_v15 = vld [vmem:[#allocation81_spill] sm:$0xff]  ;;  %v765_v53 = vsel %vm692_vm1, %v763_v34, %v764_v38  ;;  %v19521_v14 = vld [vmem:[#allocation91_spill] sm:$0xff] }
  0x73   :  { %v782_v9 = vsel %vm692_vm1, %v779_v19, %v781_v57  ;;  %19512 = vst [vmem:[#allocation74_spill] sm:$0xff] %v11238_v36  ;;  %v773_v5 = vrot.slane %v19515_v15, 2  ;;  %v774_v19 = vrot.slane %v19516_v33, 2  ;;  %v11256_v10 = vpack.i.bf16 %v772_v43, %v770_v45  ;;  %v19520_v39 = vld [vmem:[#allocation89_spill] sm:$0xff]  ;;  %v19526_v45 = vld [vmem:[#allocation95_spill] sm:$0xff]  ;;  %v19527_v33 = vld [vmem:[#allocation92_spill] sm:$0xff] }
  0x74   :  { %v11240_v32 = vpack.i.bf16 %v782_v9, %v780_v29  ;;  %19514 = vst [vmem:[#allocation182_spill] sm:$0xff] %v11246_v22  ;;  %v767_v17 = vsel %vm692_vm1, %v764_v38, %v766_v6  ;;  %v19518_v29 = vunpack.c.l.bf16 %v19517_v52  ;;  %v788_v37 = vrot.slane %v19520_v39, 2  ;;  %v19522_v9 = vld [vmem:[#allocation86_spill] sm:$0xff] }
  0x75   :  { %19519 = vst [vmem:[#allocation79_spill] sm:$0xff] %v11256_v10  ;;  %v789_v20 = vrot.slane %v19521_v14, 2  ;;  %v19523_v15 = vunpack.c.l.bf16 %v19522_v9  ;;  %v11264_v34 = vpack.i.bf16 %v767_v17, %v765_v53  ;;  %v775_v6 = vsel %vm692_vm1, %v773_v5, %v774_v19  ;;  %v19525_v52 = vld [vmem:[#allocation94_spill] sm:$0xff]  ;;  %v19531_v17 = vld [vmem:[#allocation96_spill] sm:$0xff] }
  0x76   :  { %19513 = vst [vmem:[#allocation68_spill] sm:$0xff] %v11240_v32  ;;  %v776_v57 = vrot.slane %v19518_v29, 2  ;;  %7693 = vrot.lane.b32.xlu1 %v11238_v36, %s10139_s19  ;;  %7688 = vrot.lane.b32.xlu0 %v11246_v22, %s10139_s19  ;;  %v783_v29 = vrot.slane %v19525_v52, 2  ;;  %v784_v43 = vrot.slane %v19526_v45, 2  ;;  %v19528_v36 = vunpack.c.l.bf16 %v19527_v33  ;;  %v19533_v33 = vld [vmem:[#allocation102_spill] sm:$0xff] }
  0x77   :  { %v791_v30 = vrot.slane %v19523_v15, 2  ;;  %19524 = vst [vmem:[#allocation86_spill] sm:$0xff] %v11264_v34  ;;  %v19529_v15 = vld [vmem:[#allocation98_spill] sm:$0xff]  ;;  %v799_v22 = vrot.slane %v19530_v23, 2  ;;  %v790_v53 = vsel %vm692_vm1, %v788_v37, %v789_v20  ;;  %v19535_v23 = vld [vmem:[#allocation100_spill] sm:$0xff] }
  0x78   :  { %v777_v38 = vsel %vm692_vm1, %v774_v19, %v776_v57  ;;  %v786_v24 = vrot.slane %v19528_v36, 2  ;;  %v798_v9 = vrot.slane %v19529_v15, 2  ;;  %v19532_v19 = vunpack.c.l.bf16 %v19531_v17  ;;  %v19534_v14 = vld [vmem:[#allocation106_spill] sm:$0xff] }
  0x79   :  { %v792_v5 = vsel %vm692_vm1, %v789_v20, %v791_v30  ;;  %v7707_v31 = vpack.i.bf16 %v777_v38, %v775_v6  ;;  %v793_v36 = vrot.slane %v19533_v33, 2  ;;  %v794_v39 = vrot.slane %v19534_v14, 2  ;;  %v19538_v38 = vld [vmem:[#allocation110_spill] sm:$0xff]  ;;  %v19540_v14 = vld [vmem:[#allocation107_spill] sm:$0xff] }
  0x7a   :  { %7703 = vrot.lane.b32.xlu1 %v11256_v10, %s10139_s19  ;;  %v801_v57 = vrot.slane %v19532_v19, 2  ;;  %7698 = vrot.lane.b32.xlu0 %v11264_v34, %s10139_s19  ;;  %v785_v10 = vsel %vm692_vm1, %v783_v29, %v784_v43  ;;  %v787_v15 = vsel %vm692_vm1, %v784_v43, %v786_v24  ;;  %v19536_v7 = vunpack.c.l.bf16 %v19535_v23  ;;  %v19539_v19 = vld [vmem:[#allocation112_spill] sm:$0xff]  ;;  %v19543_v43 = vld [vmem:[#allocation115_spill] sm:$0xff] }
  0x7b   :  { %v11290_v30 = vpack.i.bf16 %v792_v5, %v790_v53  ;;  %v800_v20 = vsel %vm692_vm1, %v798_v9, %v799_v22  ;;  %v808_v17 = vrot.slane %v19538_v38, 2  ;;  %v809_v34 = vrot.slane %v19539_v19, 2  ;;  %v19544_v9 = vld [vmem:[#allocation118_spill] sm:$0xff] }
  0x7c   :  { %v796_v37 = vrot.slane %v19536_v7, 2  ;;  %v802_v6 = vsel %vm692_vm1, %v799_v22, %v801_v57  ;;  %v19541_v29 = vunpack.c.l.bf16 %v19540_v14  ;;  %v11299_v23 = vpack.i.bf16 %v787_v15, %v785_v10  ;;  %v19545_v22 = vld [vmem:[#allocation113_spill] sm:$0xff]  ;;  %v19549_v10 = vld [vmem:[#allocation123_spill] sm:$0xff] }
  0x7d   :  { %19537 = vst [vmem:[#allocation92_spill] sm:$0xff] %v11290_v30  ;;  %v795_v7 = vsel %vm692_vm1, %v793_v36, %v794_v39  ;;  %v803_v53 = vrot.slane %v19543_v43, 2  ;;  %v804_v5 = vrot.slane %v19544_v9, 2  ;;  %v19546_v57 = vunpack.c.l.bf16 %v19545_v22  ;;  %v19555_v9 = vld [vmem:[#allocation124_spill] sm:$0xff] }
  0x7e   :  { %7713 = vrot.lane.b32.xlu1 %v11240_v32, %s10139_s19  ;;  %v811_v33 = vrot.slane %v19541_v29, 2  ;;  %7708 = vrot.lane.b32.xlu0 %v7707_v31, %s10139_s19  ;;  %19542 = vst [vmem:[#allocation96_spill] sm:$0xff] %v11299_v23  ;;  %v797_v24 = vsel %vm692_vm1, %v794_v39, %v796_v37  ;;  %v11309_v14 = vpack.i.bf16 %v802_v6, %v800_v20  ;;  %v19548_v29 = vld [vmem:[#allocation122_spill] sm:$0xff]  ;;  %v819_v15 = vrot.slane %v19549_v10, 2  ;;  %v19550_v37 = vld [vmem:[#allocation119_spill] sm:$0xff] }
  0x7f   :  { %v806_v32 = vrot.slane %v19546_v57, 2  ;;  %v818_v31 = vrot.slane %v19548_v29, 2  ;;  %v810_v36 = vsel %vm692_vm1, %v808_v17, %v809_v34  ;;  %v19551_v19 = vunpack.c.l.bf16 %v19550_v37  ;;  %v19553_v57 = vld [vmem:[#allocation126_spill] sm:$0xff]  ;;  %v19559_v37 = vld [vmem:[#allocation136_spill] sm:$0xff] }
  0x80   :  { %19547 = vst [vmem:[#allocation100_spill] sm:$0xff] %v11309_v14  ;;  %v812_v39 = vsel %vm692_vm1, %v809_v34, %v811_v33  ;;  %v11319_v22 = vpack.i.bf16 %v797_v24, %v795_v7  ;;  %v19554_v20 = vld [vmem:[#allocation130_spill] sm:$0xff]  ;;  %v805_v29 = vsel %vm692_vm1, %v803_v53, %v804_v5  ;;  %v19556_v17 = vunpack.c.l.bf16 %v19555_v9 }
  0x81   :  { %v821_v38 = vrot.slane %v19551_v19, 2  ;;  %v814_v6 = vrot.slane %v19554_v20, 2  ;;  %v807_v10 = vsel %vm692_vm1, %v804_v5, %v806_v32  ;;  %v11329_v34 = vpack.i.bf16 %v812_v39, %v810_v36  ;;  %v19558_v7 = vld [vmem:[#allocation134_spill] sm:$0xff]  ;;  %v19560_v20 = vld [vmem:[#allocation131_spill] sm:$0xff]  ;;  %v11343_v36 = vpop.permute.xlu1 %7478 }
  0x82   :  { %7723 = vrot.lane.b32.xlu1 %v11290_v30, %s10139_s19  ;;  %7718 = vrot.lane.b32.xlu0 %v11299_v23, %s10139_s19  ;;  %19552 = vst [vmem:[#allocation107_spill] sm:$0xff] %v11319_v22  ;;  %v813_v30 = vrot.slane %v19553_v57, 2  ;;  %v816_v43 = vrot.slane %v19556_v17, 2  ;;  %v820_v33 = vsel %vm692_vm1, %v818_v31, %v819_v15  ;;  %v828_v24 = vrot.slane %v19558_v7, 2  ;;  %19563 = vst [vmem:[#allocation124_spill] sm:$0xff] %v11343_v36  ;;  %v19564_v31 = vld [vmem:[#allocation139_spill] sm:$0xff] }
  0x83   :  { %19557 = vst [vmem:[#allocation113_spill] sm:$0xff] %v11329_v34  ;;  %v822_v19 = vsel %vm692_vm1, %v819_v15, %v821_v38  ;;  %v829_v23 = vrot.slane %v19559_v37, 2  ;;  %v19561_v53 = vunpack.c.l.bf16 %v19560_v20  ;;  %v11339_v32 = vpack.i.bf16 %v807_v10, %v805_v29  ;;  %v19565_v15 = vld [vmem:[#allocation142_spill] sm:$0xff]  ;;  %v19566_v17 = vld [vmem:[#allocation137_spill] sm:$0xff]  ;;  %v11353_v29 = vpop.permute.xlu0 %7468  ;;  %v19570_v10 = vld [vmem:[#allocation147_spill] sm:$0xff] }
  0x84   :  { %v815_v9 = vsel %vm692_vm1, %v813_v30, %v814_v6  ;;  %v817_v5 = vsel %vm692_vm1, %v814_v6, %v816_v43  ;;  %v823_v38 = vrot.slane %v19564_v31, 2  ;;  %v824_v39 = vrot.slane %v19565_v15, 2  ;;  %19569 = vst [vmem:[#allocation137_spill] sm:$0xff] %v11353_v29  ;;  %v19571_v36 = vld [vmem:[#allocation143_spill] sm:$0xff] }
  0x85   :  { %v831_v57 = vrot.slane %v19561_v53, 2  ;;  %19562 = vst [vmem:[#allocation119_spill] sm:$0xff] %v11339_v32  ;;  %v11351_v20 = vpack.i.bf16 %v822_v19, %v820_v33  ;;  %v838_v30 = vrot.slane %v10967_v59, 2  ;;  %v839_v43 = vrot.slane %v19570_v10, 2  ;;  %v19574_v19 = vld [vmem:[#allocation154_spill] sm:$0xff]  ;;  %v11369_v10 = vpop.permute.xlu1 %7483 }
  0x86   :  { %7733 = vrot.lane.b32.xlu1 %v11309_v14, %s10139_s19  ;;  %7728 = vrot.lane.b32.xlu0 %v11319_v22, %s10139_s19  ;;  %v19567_v14 = vunpack.c.l.bf16 %v19566_v17  ;;  %v830_v6 = vsel %vm692_vm1, %v828_v24, %v829_v23  ;;  %v19572_v22 = vunpack.c.l.bf16 %v19571_v36  ;;  %v833_v33 = vrot.slane %v10984_v0, 2  ;;  %19575 = vst [vmem:[#allocation183_spill] sm:$0xff] %v11369_v10  ;;  %v19576_v24 = vld [vmem:[#allocation148_spill] sm:$0xff] }
  0x87   :  { %19568 = vst [vmem:[#allocation131_spill] sm:$0xff] %v11351_v20  ;;  %v832_v53 = vsel %vm692_vm1, %v829_v23, %v831_v57  ;;  %v834_v17 = vrot.slane %v19574_v19, 2  ;;  %v825_v29 = vsel %vm692_vm1, %v823_v38, %v824_v39  ;;  %v19577_v23 = vunpack.c.l.bf16 %v19576_v24 }
  0x88   :  { %v826_v37 = vrot.slane %v19567_v14, 2  ;;  %v841_v7 = vrot.slane %v19572_v22, 2  ;;  %v11363_v14 = vpack.i.bf16 %v817_v5, %v815_v9  ;;  %v11375_v22 = vpack.i.bf16 %v832_v53, %v830_v6  ;;  %v11378_v5 = vpop.permute.xlu0 %7473 }
  0x89   :  { %v836_v57 = vrot.slane %v19577_v23, 2  ;;  %v840_v9 = vsel %vm692_vm1, %v838_v30, %v839_v43  ;;  %19579 = vst [vmem:[#allocation184_spill] sm:$0xff] %v11378_v5  ;;  %v848_v38 = vrot.slane %v11024_v58, 2  ;;  %v835_v6 = vsel %vm692_vm1, %v833_v33, %v834_v17  ;;  %v11391_v53 = vpop.permute.xlu1 %7493  ;;  %v19583_v23 = vld [vmem:[#allocation161_spill] sm:$0xff] }
  0x8a   :  { %7743 = vrot.lane.b32.xlu1 %v11329_v34, %s10139_s19  ;;  %7738 = vrot.lane.b32.xlu0 %v11339_v32, %s10139_s19  ;;  %19573 = vst [vmem:[#allocation143_spill] sm:$0xff] %v11363_v14  ;;  %v827_v34 = vsel %vm692_vm1, %v824_v39, %v826_v37  ;;  %19578 = vst [vmem:[#allocation148_spill] sm:$0xff] %v11375_v22  ;;  %v842_v36 = vsel %vm692_vm1, %v839_v43, %v841_v7  ;;  %v849_v37 = vrot.slane %v11032_v11, 2  ;;  %v19584_v43 = vld [vmem:[#allocation164_spill] sm:$0xff] }
  0x8b   :  { %v19580_v39 = vunpack.c.l.bf16 %v11009_v40  ;;  %v11387_v24 = vpack.i.bf16 %v827_v34, %v825_v29  ;;  %v837_v30 = vsel %vm692_vm1, %v834_v17, %v836_v57  ;;  %19582 = vst [vmem:[#allocation186_spill] sm:$0xff] %v11391_v53  ;;  %v843_v7 = vrot.slane %v19583_v23, 2 }
  0x8c   :  { %v844_v5 = vrot.slane %v19584_v43, 2  ;;  %v11399_v40 = vpack.i.bf16 %v842_v36, %v840_v9  ;;  %v11401_v34 = vpop.permute.xlu0 %7488  ;;  %v850_v29 = vsel %vm692_vm1, %v848_v38, %v849_v37  ;;  %v11407_v17 = vpack.i.bf16 %v837_v30, %v835_v6  ;;  %v19594_v38 = vld [vmem:[#allocation13_spill] sm:$0xff] }
  0x8d   :  { %v851_v10 = vrot.slane %v19580_v39, 2  ;;  %19581 = vst [vmem:[#allocation185_spill] sm:$0xff] %v11387_v24  ;;  %19587 = vst [vmem:[#allocation188_spill] sm:$0xff] %v11401_v34  ;;  %v11415_v9 = vpop.permute.xlu1 %7503  ;;  %v11441_v6 = vpack.i.bf16 %v10305_v51, %v10303_v50  ;;  %v19652_v50 = vld [vmem:[#allocation42_spill] sm:$0xff] }
  0x8e   :  { %7753 = vrot.lane.b32.xlu1 %v11351_v20, %s10139_s19  ;;  %7748 = vrot.lane.b32.xlu0 %v11363_v14, %s10139_s19  ;;  %v19585_v20 = vunpack.c.l.bf16 %v11037_v25  ;;  %19586 = vst [vmem:[#allocation187_spill] sm:$0xff] %v11399_v40  ;;  %19588 = vst [vmem:[#allocation189_spill] sm:$0xff] %v11407_v17  ;;  %v845_v57 = vsel %vm692_vm1, %v843_v7, %v844_v5  ;;  %v11448_v7 = vpack.i.bf16 %v10223_v13, %v10221_v12  ;;  %v19667_v13 = vld [vmem:[#allocation58_spill] sm:$0xff] }
  0x8f   :  { %v852_v33 = vsel %vm692_vm1, %v849_v37, %v851_v10  ;;  %19590 = vst [vmem:[#allocation191_spill] sm:$0xff] %v11415_v9  ;;  %v7787_v37 = vpack.i.bf16 %v19594_v38, %v10250_v27  ;;  %v19661_v27 = vld [vmem:[#allocation47_spill] sm:$0xff] }
  0x90   :  { %v846_v32 = vrot.slane %v19585_v20, 2  ;;  %v11413_v20 = vpack.i.bf16 %v852_v33, %v850_v29  ;;  %v11421_v36 = vpop.permute.xlu0 %7498  ;;  %v11456_v33 = vpack.i.bf16 %v10372_v28, %v10362_v18  ;;  %v11488_v28 = vpack.i.bf16 %v10488_v21, %v10476_v63  ;;  %v7224_v63 = vld [vmem:[%s18399_s0 + $0xc0] sm:$0xff]  }
  0x91   :  { %19592 = vst [vmem:[#allocation193_spill] sm:$0xff] %v11421_v36  ;;  %v11513_v21 = vpack.i.bf16 %v10461_v55, %v10453_v61  ;;  %v11533_v61 = vpack.i.bf16 %v10514_v16, %v10512_v35  ;;  %v19610_v35 = vld [vmem:[#allocation78_spill] sm:$0xff]  ;;  %v19656_v36 = vld [vmem:[#allocation52_spill] sm:$0xff] }
  0x92   :  { %7763 = vrot.lane.b32.xlu1 %v11375_v22, %s10139_s19  ;;  %7758 = vrot.lane.b32.xlu0 %v11387_v24, %s10139_s19  ;;  %v847_v25 = vsel %vm692_vm1, %v844_v5, %v846_v32  ;;  %19589 = vst [vmem:[#allocation190_spill] sm:$0xff] %v11413_v20  ;;  %v11427_v32 = vpack.i.bf16 %v10200_v4, %v10198_v3  ;;  %v11429_v5 = vpop.permute.xlu1 %7513  ;;  %v19613_v55 = vld [vmem:[#allocation106_spill] sm:$0xff]  ;;  %v19701_v3 = vld [vmem:[#allocation151_spill] sm:$0xff] }
  0x93   :  { %v11419_v10 = vpack.i.bf16 %v847_v25, %v845_v57  ;;  %19593 = vst [vmem:[#allocation194_spill] sm:$0xff] %v11429_v5  ;;  %v11464_v25 = vpack.i.bf16 %v10285_v42, %v10283_v41  ;;  %v7867_v16 = vpack.i.bf16 %v19610_v35, %v19503_v46  ;;  %v19618_v46 = vld [vmem:[#allocation118_spill] sm:$0xff]  ;;  %v19653_v5 = vld [vmem:[#allocation27_spill] sm:$0xff] }
  0x94   :  { %v11435_v39 = vpop.permute.xlu0 %7508 }
  0x95   :  { %19591 = vst [vmem:[#allocation192_spill] sm:$0xff] %v11419_v10  ;;  %19595 = vst [vmem:[#allocation195_spill] sm:$0xff] %v11435_v39  ;;  %v19649_v39 = vld [vmem:[#allocation17_spill] sm:$0xff] }
  0x96   :  { %7773 = vrot.lane.b32.xlu1 %v11399_v40, %s10139_s19  ;;  %7768 = vrot.lane.b32.xlu0 %v11407_v17, %s10139_s19  ;;  %v11443_v30 = vpop.permute.xlu1 %7523 }
  0x97   :  { %19596 = vst [vmem:[#allocation196_spill] sm:$0xff] %v11443_v30 }
  0x98   :  { %v11450_v29 = vpop.permute.xlu0 %7518 }
  0x99   :  { %19597 = vst [vmem:[#allocation197_spill] sm:$0xff] %v11450_v29  ;;  %v11472_v29 = vpack.i.bf16 %v10432_v56, %v10413_v62  ;;  %v11494_v62 = vpack.i.bf16 %v10398_v49, %v10396_v48  ;;  %v19616_v49 = vld [vmem:[#allocation91_spill] sm:$0xff] }
  0x9a   :  { %7783 = vrot.lane.b32.xlu1 %v11413_v20, %s10139_s19  ;;  %7778 = vrot.lane.b32.xlu0 %v11419_v10, %s10139_s19  ;;  %v11458_v57 = vpop.permute.xlu1 %7533 }
  0x9b   :  { %19598 = vst [vmem:[#allocation198_spill] sm:$0xff] %v11458_v57  ;;  %v11478_v57 = vpack.i.bf16 %v10345_v8, %v10343_v2 }
  0x9e   :  { %7793 = vrot.lane.b32.xlu1 %v11427_v32, %s10140_s20  ;;  %7788 = vrot.lane.b32.xlu0 %v7787_v37, %s10140_s20  ;;  %v11466_v37 = vpop.permute.xlu0 %7528  ;;  %v11480_v18 = vpop.permute.xlu1 %7543 }
  0x9f   :  { %19599 = vst [vmem:[#allocation199_spill] sm:$0xff] %v11466_v37  ;;  %19600 = vst [vmem:[#allocation200_spill] sm:$0xff] %v11480_v18 }
  0xa2   :  { %7803 = vrot.lane.b32.xlu1 %v11441_v6, %s10140_s20  ;;  %7798 = vrot.lane.b32.xlu0 %v11448_v7, %s10140_s20  ;;  %v11484_v37 = vpop.permute.xlu0 %7538  ;;  %v11496_v56 = vpop.permute.xlu1 %7553 }
  0xa3   :  { %19601 = vst [vmem:[#allocation201_spill] sm:$0xff] %v11484_v37  ;;  %19602 = vst [vmem:[#allocation202_spill] sm:$0xff] %v11496_v56  ;;  %v11504_v37 = vpack.i.bf16 %v10548_v26, %v10529_v54  ;;  %v11521_v54 = vpack.i.bf16 %v19509_v1, %v19508_v60  ;;  %v11525_v26 = vunpack.c.h.bf16 %v7224_v63  ;;  %v11557_v1 = vpack.i.bf16 %v19526_v45, %v19525_v52  ;;  %v19615_v45 = vld [vmem:[#allocation89_spill] sm:$0xff] }
  0xa4   :  { %v11578_v2 = vpack.i.bf16 %v19616_v49, %v19615_v45  ;;  %v19623_v45 = vld [vmem:[#allocation126_spill] sm:$0xff] }
  0xa5   :  { %v19624_v49 = vld [vmem:[#allocation130_spill] sm:$0xff]  ;;  %v1244_v9 = vrot.slane %v11525_v26, 1 }
  0xa6   :  { %7813 = vrot.lane.b32.xlu1 %v11456_v33, %s10140_s20  ;;  %7808 = vrot.lane.b32.xlu0 %v11464_v25, %s10140_s20  ;;  %v11500_v18 = vpop.permute.xlu0 %7548  ;;  %v11600_v30 = vpack.i.bf16 %v19624_v49, %v19623_v45  ;;  %v19630_v45 = vld [vmem:[#allocation122_spill] sm:$0xff]  ;;  %v19631_v49 = vld [vmem:[#allocation123_spill] sm:$0xff] }
  0xa7   :  { %19603 = vst [vmem:[#allocation203_spill] sm:$0xff] %v11500_v18  ;;  %v11515_v56 = vpop.permute.xlu1 %7563  ;;  %v11523_v18 = vunpack.c.l.bf16 %v7224_v63 }
  0xa8   :  { %19604 = vst [vmem:[#allocation204_spill] sm:$0xff] %v11515_v56 }
  0xa9   :  { %v11541_v60 = vpack.i.bf16 %v11525_v26, %v11523_v18  ;;  %v1243_v42 = vrot.slane %v11523_v18, 1 }
  0xaa   :  { %7823 = vrot.lane.b32.xlu1 %v11472_v29, %s10140_s20  ;;  %7818 = vrot.lane.b32.xlu0 %v11478_v57, %s10140_s20  ;;  %v11527_v48 = vpop.permute.xlu0 %7558 }
  0xab   :  { %19605 = vst [vmem:[#allocation205_spill] sm:$0xff] %v11527_v48  ;;  %v11535_v56 = vpop.permute.xlu1 %7573  ;;  %v11549_v48 = vpack.i.bf16 %v19500_v44, %v10569_v47  ;;  %v19612_v44 = vld [vmem:[#allocation102_spill] sm:$0xff] }
  0xac   :  { %19606 = vst [vmem:[#allocation206_spill] sm:$0xff] %v11535_v56 }
  0xae   :  { %7833 = vrot.lane.b32.xlu1 %v11488_v28, %s10140_s20  ;;  %7828 = vrot.lane.b32.xlu0 %v11494_v62, %s10140_s20  ;;  %v11543_v63 = vpop.permute.xlu0 %7568 }
  0xaf   :  { %19607 = vst [vmem:[#allocation207_spill] sm:$0xff] %v11543_v63 }
  0xb2   :  { %7843 = vrot.lane.b32.xlu1 %v11504_v37, %s10140_s20  ;;  %7838 = vrot.lane.b32.xlu0 %v11513_v21, %s10140_s20 }
  0xb3   :  { %v11553_v56 = vpop.permute.xlu1 %7583 }
  0xb4   :  { %19608 = vst [vmem:[#allocation208_spill] sm:$0xff] %v11553_v56  ;;  %v11571_v56 = vpack.i.bf16 %v19613_v55, %v19612_v44  ;;  %v19620_v44 = vld [vmem:[#allocation98_spill] sm:$0xff] }
  0xb5   :  { %v11561_v63 = vpop.permute.xlu0 %7578 }
  0xb6   :  { %7853 = vrot.lane.b32.xlu1 %v11521_v54, %s10140_s20  ;;  %7848 = vrot.lane.b32.xlu0 %v11533_v61, %s10140_s20  ;;  %19609 = vst [vmem:[#allocation209_spill] sm:$0xff] %v11561_v63  ;;  %v19617_v63 = vld [vmem:[#allocation115_spill] sm:$0xff] }
  0xb7   :  { %v11567_v47 = vpop.permute.xlu1 %7593  ;;  %v11584_v35 = vpack.i.bf16 %v19618_v46, %v19617_v63  ;;  %v19626_v46 = vld [vmem:[#allocation110_spill] sm:$0xff] }
  0xb8   :  { %19611 = vst [vmem:[#allocation210_spill] sm:$0xff] %v11567_v47 }
  0xb9   :  { %v11574_v52 = vpop.permute.xlu0 %7588 }
  0xba   :  { %7863 = vrot.lane.b32.xlu1 %v11541_v60, %s10140_s20  ;;  %7858 = vrot.lane.b32.xlu0 %v11549_v48, %s10140_s20  ;;  %19614 = vst [vmem:[#allocation211_spill] sm:$0xff] %v11574_v52 }
  0xbe   :  { %7873 = vrot.lane.b32.xlu1 %v11557_v1, %s10140_s20  ;;  %7868 = vrot.lane.b32.xlu0 %v7867_v16, %s10140_s20  ;;  %v19621_v16 = vld [vmem:[#allocation99_spill] sm:$0xff] }
  0xbf   :  { %v11586_v47 = vpop.permute.xlu1 %7603  ;;  %v11592_v55 = vpack.i.bf16 %v19621_v16, %v19620_v44  ;;  %v11624_v16 = vpack.i.bf16 %v19631_v49, %v19630_v45  ;;  %v19635_v45 = vld [vmem:[#allocation136_spill] sm:$0xff] }
  0xc0   :  { %19619 = vst [vmem:[#allocation212_spill] sm:$0xff] %v11586_v47  ;;  %v19627_v47 = vld [vmem:[#allocation112_spill] sm:$0xff] }
  0xc1   :  { %v11594_v52 = vpop.permute.xlu0 %7598  ;;  %v11608_v8 = vpack.i.bf16 %v19627_v47, %v19626_v46 }
  0xc2   :  { %7883 = vrot.lane.b32.xlu1 %v11571_v56, %s10140_s20  ;;  %7878 = vrot.lane.b32.xlu0 %v11578_v2, %s10140_s20  ;;  %19622 = vst [vmem:[#allocation213_spill] sm:$0xff] %v11594_v52  ;;  %v11616_v52 = vpack.i.bf16 %v19565_v15, %v19564_v31  ;;  %v7233_v31 = vld [vmem:[%s18399_s0 + $0x198] sm:$0xff]  }
  0xc3   :  { %v11602_v63 = vpop.permute.xlu1 %7613  ;;  %v11655_v47 = vunpack.c.h.bf16 %v7233_v31 }
  0xc4   :  { %19625 = vst [vmem:[#allocation214_spill] sm:$0xff] %v11602_v63 }
  0xc5   :  { %v11610_v44 = vpop.permute.xlu0 %7608 }
  0xc6   :  { %7893 = vrot.lane.b32.xlu1 %v11584_v35, %s10140_s20  ;;  %7888 = vrot.lane.b32.xlu0 %v11592_v55, %s10140_s20  ;;  %19628 = vst [vmem:[#allocation215_spill] sm:$0xff] %v11610_v44  ;;  %v11632_v44 = vpack.i.bf16 %v19574_v19, %v10984_v0  ;;  %v11651_v0 = vpack.i.bf16 %v19584_v43, %v19583_v23  ;;  %v11653_v19 = vunpack.c.l.bf16 %v7233_v31 }
  0xc8   :  { %v11671_v23 = vpack.i.bf16 %v11655_v47, %v11653_v19 }
  0xca   :  { %7903 = vrot.lane.b32.xlu1 %v11600_v30, %s10140_s20  ;;  %7898 = vrot.lane.b32.xlu0 %v11608_v8, %s10140_s20 }
  0xcc   :  { %v11620_v63 = vpop.permute.xlu1 %7623  ;;  %v11626_v46 = vpop.permute.xlu0 %7618 }
  0xcd   :  { %19629 = vst [vmem:[#allocation216_spill] sm:$0xff] %v11620_v63  ;;  %19632 = vst [vmem:[#allocation217_spill] sm:$0xff] %v11626_v46  ;;  %v19634_v63 = vld [vmem:[#allocation134_spill] sm:$0xff] }
  0xce   :  { %7913 = vrot.lane.b32.xlu1 %v11616_v52, %s10140_s20  ;;  %7908 = vrot.lane.b32.xlu0 %v11624_v16, %s10140_s20  ;;  %v11643_v49 = vpack.i.bf16 %v19635_v45, %v19634_v63  ;;  %v19638_v63 = vld [vmem:[#allocation147_spill] sm:$0xff] }
  0xcf   :  { %v11663_v45 = vpack.i.bf16 %v19638_v63, %v10967_v59  ;;  %v19644_v63 = vld [vmem:[#allocation11_spill] sm:$0xff] }
  0xd0   :  { %v11639_v15 = vpop.permute.xlu1 %7633  ;;  %v11645_v46 = vpop.permute.xlu0 %7628 }
  0xd1   :  { %19633 = vst [vmem:[#allocation218_spill] sm:$0xff] %v11639_v15  ;;  %19636 = vst [vmem:[#allocation219_spill] sm:$0xff] %v11645_v46 }
  0xd2   :  { %7923 = vrot.lane.b32.xlu1 %v11632_v44, %s10140_s20  ;;  %7918 = vrot.lane.b32.xlu0 %v11643_v49, %s10140_s20 }
  0xd4   :  { %v11659_v15 = vpop.permute.xlu1 %7643  ;;  %v11665_v46 = vpop.permute.xlu0 %7638 }
  0xd5   :  { %19637 = vst [vmem:[#allocation220_spill] sm:$0xff] %v11659_v15  ;;  %19639 = vst [vmem:[#allocation221_spill] sm:$0xff] %v11665_v46  ;;  %v11679_v15 = vpack.i.bf16 %v11032_v11, %v11024_v58  ;;  %v19648_v11 = vld [vmem:[#allocation32_spill] sm:$0xff] }
  0xd6   :  { %7933 = vrot.lane.b32.xlu1 %v11651_v0, %s10140_s20  ;;  %7928 = vrot.lane.b32.xlu0 %v11663_v45, %s10140_s20 }
  0xd8   :  { %v11675_v31 = vpop.permute.xlu1 %7653  ;;  %v11681_v43 = vpop.permute.xlu0 %7648 }
  0xd9   :  { %19640 = vst [vmem:[#allocation222_spill] sm:$0xff] %v11675_v31  ;;  %19641 = vst [vmem:[#allocation223_spill] sm:$0xff] %v11681_v43  ;;  %v19645_v31 = vld [vmem:[#allocation22_spill] sm:$0xff] }
  0xda   :  { %7943 = vrot.lane.b32.xlu1 %v11671_v23, %s10140_s20  ;;  %7938 = vrot.lane.b32.xlu0 %v11679_v15, %s10140_s20 }
  0xdc   :  { %v11687_v46 = vpop.permute.xlu1 %7663  ;;  %v11689_v59 = vpop.permute.xlu0 %7658 }
  0xdd   :  { %19642 = vst [vmem:[#allocation224_spill] sm:$0xff] %v11687_v46  ;;  %19643 = vst [vmem:[#allocation225_spill] sm:$0xff] %v11689_v59 }
  0xde   :  { %7953 = vrot.lane.b32.xlu1 %v19644_v63, %s10141_s26  ;;  %7948 = vrot.lane.b32.xlu0 %v19645_v31, %s10141_s26 }
  0xe0   :  { %v11695_v58 = vpop.permute.xlu1 %7673  ;;  %v11697_v43 = vpop.permute.xlu0 %7668 }
  0xe1   :  { %19646 = vst [vmem:[#allocation11_spill] sm:$0xff] %v11695_v58  ;;  %19647 = vst [vmem:[#allocation22_spill] sm:$0xff] %v11697_v43  ;;  %v11716_v43 = vld [vmem:[%s18399_s0 + $0xc8] sm:$0x1] }
  0xe2   :  { %7963 = vrot.lane.b32.xlu1 %v19648_v11, %s10141_s26  ;;  %7958 = vrot.lane.b32.xlu0 %v19649_v39, %s10141_s26 }
  0xe4   :  { %v11703_v46 = vpop.permute.xlu1 %7683  ;;  %v11705_v59 = vpop.permute.xlu0 %7678 }
  0xe5   :  { %19650 = vst [vmem:[#allocation32_spill] sm:$0xff] %v11703_v46  ;;  %19651 = vst [vmem:[#allocation17_spill] sm:$0xff] %v11705_v59  ;;  %v18758_v59 = vunpack.c.l.bf16 %v11716_v43  ;;  %v19657_v46 = vld [vmem:[#allocation38_spill] sm:$0xff] }
  0xe6   :  { %7973 = vrot.lane.b32.xlu1 %v19652_v50, %s10141_s26  ;;  %7968 = vrot.lane.b32.xlu0 %v19653_v5, %s10141_s26 }
  0xe8   :  { %v11711_v31 = vpop.permute.xlu1 %7693  ;;  %v11718_v58 = vpop.permute.xlu0 %7688 }
  0xe9   :  { %19654 = vst [vmem:[#allocation42_spill] sm:$0xff] %v11711_v31  ;;  %19655 = vst [vmem:[#allocation27_spill] sm:$0xff] %v11718_v58  ;;  %v19660_v31 = vld [vmem:[#allocation63_spill] sm:$0xff]  ;;  %v1246_v58 = vrot.slane %v18758_v59, 1 }
  0xea   :  { %7983 = vrot.lane.b32.xlu1 %v19656_v36, %s10141_s26  ;;  %7978 = vrot.lane.b32.xlu0 %v19657_v46, %s10141_s26 }
  0xeb   :  { %v11747_v34 = vsel %vm339_vm0, %v1244_v9, %v1246_v58 }
  0xec   :  { %v11725_v51 = vpop.permute.xlu1 %7703  ;;  %v11727_v41 = vpop.permute.xlu0 %7698  ;;  %19666 = vst [vmem:[#allocation228_spill] sm:$0xff] %v11747_v34 }
  0xed   :  { %19658 = vst [vmem:[#allocation52_spill] sm:$0xff] %v11725_v51  ;;  %19659 = vst [vmem:[#allocation38_spill] sm:$0xff] %v11727_v41  ;;  %v19664_v51 = vld [vmem:[#allocation75_spill] sm:$0xff]  ;;  %v11744_v41 = vsel %vm339_vm0, %v1243_v42, %v1244_v9  ;;  %v19672_v42 = vld [vmem:[#allocation69_spill] sm:$0xff] }
  0xee   :  { %7993 = vrot.lane.b32.xlu1 %v19660_v31, %s10141_s26  ;;  %7988 = vrot.lane.b32.xlu0 %v19661_v27, %s10141_s26  ;;  %19665 = vst [vmem:[#allocation227_spill] sm:$0xff] %v11744_v41  ;;  %v19675_v9 = vld [vmem:[#allocation82_spill] sm:$0xff] }
  0xf0   :  { %v11737_v38 = vpop.permute.xlu1 %7713  ;;  %v11739_v12 = vpop.permute.xlu0 %7708 }
  0xf1   :  { %19662 = vst [vmem:[#allocation47_spill] sm:$0xff] %v11737_v38  ;;  %19663 = vst [vmem:[#allocation226_spill] sm:$0xff] %v11739_v12  ;;  %v19670_v38 = vld [vmem:[#allocation87_spill] sm:$0xff]  ;;  %v11759_v12 = vpack.i.bf16 %v11747_v34, %v11744_v41  ;;  %v19678_v34 = vld [vmem:[#allocation108_spill] sm:$0xff] }
  0xf2   :  { %8003 = vrot.lane.b32.xlu1 %v19664_v51, %s10141_s26  ;;  %7998 = vrot.lane.b32.xlu0 %v19667_v13, %s10141_s26  ;;  %v19679_v41 = vld [vmem:[#allocation93_spill] sm:$0xff] }
  0xf3   :  { %19671 = vst [vmem:[#allocation231_spill] sm:$0xff] %v11759_v12 }
  0xf4   :  { %v11751_v59 = vpop.permute.xlu1 %7723  ;;  %v11753_v31 = vpop.permute.xlu0 %7718 }
  0xf5   :  { %19668 = vst [vmem:[#allocation229_spill] sm:$0xff] %v11751_v59  ;;  %19669 = vst [vmem:[#allocation230_spill] sm:$0xff] %v11753_v31 }
  0xf6   :  { %8013 = vrot.lane.b32.xlu1 %v19670_v38, %s10141_s26  ;;  %8008 = vrot.lane.b32.xlu0 %v19672_v42, %s10141_s26  ;;  %v1249_v42 = vrot.slane %v11655_v47, 1 }
  0xf8   :  { %v11763_v51 = vpop.permute.xlu1 %7733  ;;  %v11765_v58 = vpop.permute.xlu0 %7728 }
  0xf9   :  { %19673 = vst [vmem:[#allocation232_spill] sm:$0xff] %v11763_v51  ;;  %19674 = vst [vmem:[#allocation233_spill] sm:$0xff] %v11765_v58  ;;  %v19682_v58 = vld [vmem:[#allocation120_spill] sm:$0xff] }
  0xfa   :  { %8023 = vrot.lane.b32.xlu1 %v11759_v12, %s10141_s26  ;;  %8018 = vrot.lane.b32.xlu0 %v19675_v9, %s10141_s26  ;;  %v19683_v12 = vld [vmem:[#allocation103_spill] sm:$0xff] }
  0xfc   :  { %v11771_v31 = vpop.permute.xlu1 %7743  ;;  %v11773_v59 = vpop.permute.xlu0 %7738 }
  0xfd   :  { %19676 = vst [vmem:[#allocation234_spill] sm:$0xff] %v11771_v31  ;;  %19677 = vst [vmem:[#allocation235_spill] sm:$0xff] %v11773_v59  ;;  %v19686_v59 = vld [vmem:[#allocation132_spill] sm:$0xff] }
  0xfe   :  { %8033 = vrot.lane.b32.xlu1 %v19678_v34, %s10141_s26  ;;  %8028 = vrot.lane.b32.xlu0 %v19679_v41, %s10141_s26  ;;  %v19687_v34 = vld [vmem:[#allocation114_spill] sm:$0xff] }
 0x100   :  { %v11779_v38 = vpop.permute.xlu1 %7753  ;;  %v11781_v51 = vpop.permute.xlu0 %7748 }
 0x101   :  { %19680 = vst [vmem:[#allocation93_spill] sm:$0xff] %v11779_v38  ;;  %19681 = vst [vmem:[#allocation236_spill] sm:$0xff] %v11781_v51  ;;  %v11800_v51 = vld [vmem:[%s18399_s0 + $0x1a0] sm:$0x1] }
 0x102   :  { %8043 = vrot.lane.b32.xlu1 %v19682_v58, %s10141_s26  ;;  %8038 = vrot.lane.b32.xlu0 %v19683_v12, %s10141_s26  ;;  %v19690_v58 = vld [vmem:[#allocation144_spill] sm:$0xff]  ;;  %v1248_v12 = vrot.slane %v11653_v19, 1 }
 0x104   :  { %v11787_v9 = vpop.permute.xlu1 %7763  ;;  %v11789_v31 = vpop.permute.xlu0 %7758 }
 0x105   :  { %19684 = vst [vmem:[#allocation237_spill] sm:$0xff] %v11787_v9  ;;  %19685 = vst [vmem:[#allocation238_spill] sm:$0xff] %v11789_v31  ;;  %v18780_v31 = vunpack.c.l.bf16 %v11800_v51  ;;  %v19691_v9 = vld [vmem:[#allocation127_spill] sm:$0xff] }
 0x106   :  { %8053 = vrot.lane.b32.xlu1 %v19686_v59, %s10141_s26  ;;  %8048 = vrot.lane.b32.xlu0 %v19687_v34, %s10141_s26 }
 0x108   :  { %v11795_v41 = vpop.permute.xlu1 %7773  ;;  %v11802_v38 = vpop.permute.xlu0 %7768 }
 0x109   :  { %19688 = vst [vmem:[#allocation239_spill] sm:$0xff] %v11795_v41  ;;  %19689 = vst [vmem:[#allocation240_spill] sm:$0xff] %v11802_v38  ;;  %v19694_v41 = vld [vmem:[#allocation155_spill] sm:$0xff]  ;;  %v1251_v38 = vrot.slane %v18780_v31, 1 }
 0x10a   :  { %8063 = vrot.lane.b32.xlu1 %v19690_v58, %s10141_s26  ;;  %8058 = vrot.lane.b32.xlu0 %v19691_v9, %s10141_s26  ;;  %v19695_v58 = vld [vmem:[#allocation138_spill] sm:$0xff] }
 0x10c   :  { %v11809_v59 = vpop.permute.xlu1 %7783  ;;  %v11811_v34 = vpop.permute.xlu0 %7778 }
 0x10d   :  { %19692 = vst [vmem:[#allocation241_spill] sm:$0xff] %v11809_v59  ;;  %19693 = vst [vmem:[#allocation242_spill] sm:$0xff] %v11811_v34  ;;  %v19698_v59 = vld [vmem:[#allocation165_spill] sm:$0xff]  ;;  %v11828_v34 = vsel %vm339_vm0, %v1248_v12, %v1249_v42  ;;  %v19706_v12 = vld [vmem:[#allocation160_spill] sm:$0xff] }
 0x10e   :  { %8073 = vrot.lane.b32.xlu1 %v19694_v41, %s10141_s26  ;;  %8068 = vrot.lane.b32.xlu0 %v19695_v58, %s10141_s26  ;;  %19699 = vst [vmem:[#allocation244_spill] sm:$0xff] %v11828_v34  ;;  %v11831_v41 = vsel %vm339_vm0, %v1249_v42, %v1251_v38  ;;  %v19709_v42 = vld [vmem:[#allocation168_spill] sm:$0xff] }
 0x10f   :  { %19700 = vst [vmem:[#allocation245_spill] sm:$0xff] %v11831_v41 }
 0x110   :  { %v11821_v53 = vpop.permute.xlu1 %7793  ;;  %v11823_v9 = vpop.permute.xlu0 %7788 }
 0x111   :  { %19696 = vst [vmem:[#allocation138_spill] sm:$0xff] %v11821_v53  ;;  %19697 = vst [vmem:[#allocation243_spill] sm:$0xff] %v11823_v9  ;;  %v19704_v53 = vld [vmem:[#allocation171_spill] sm:$0xff]  ;;  %v11843_v9 = vpack.i.bf16 %v11831_v41, %v11828_v34  ;;  %v19712_v41 = vld [vmem:[#allocation174_spill] sm:$0xff] }
 0x112   :  { %8083 = vrot.lane.b32.xlu1 %v19698_v59, %s10141_s26  ;;  %8078 = vrot.lane.b32.xlu0 %v19701_v3, %s10141_s26  ;;  %v19713_v34 = vld [vmem:[#allocation172_spill] sm:$0xff] }
 0x113   :  { %19705 = vst [vmem:[#allocation247_spill] sm:$0xff] %v11843_v9 }
 0x114   :  { %v11835_v31 = vpop.permute.xlu1 %7803  ;;  %v11837_v13 = vpop.permute.xlu0 %7798 }
 0x115   :  { %19702 = vst [vmem:[#allocation151_spill] sm:$0xff] %v11835_v31  ;;  %19703 = vst [vmem:[#allocation246_spill] sm:$0xff] %v11837_v13 }
 0x116   :  { %8093 = vrot.lane.b32.xlu1 %v19704_v53, %s10141_s26  ;;  %8088 = vrot.lane.b32.xlu0 %v19706_v12, %s10141_s26  ;;  %v19717_v53 = vld [vmem:[#allocation173_spill] sm:$0xff]  ;;  %v19730_v12 = vld [vmem:[#allocation179_spill] sm:$0xff] }
 0x118   :  { %v11847_v59 = vpop.permute.xlu1 %7813  ;;  %v11849_v38 = vpop.permute.xlu0 %7808 }
 0x119   :  { %19707 = vst [vmem:[#allocation248_spill] sm:$0xff] %v11847_v59  ;;  %19708 = vst [vmem:[#allocation249_spill] sm:$0xff] %v11849_v38 }
 0x11a   :  { %8103 = vrot.lane.b32.xlu1 %v11843_v9, %s10141_s26  ;;  %8098 = vrot.lane.b32.xlu0 %v19709_v42, %s10141_s26  ;;  %v19716_v9 = vld [vmem:[#allocation176_spill] sm:$0xff]  ;;  %v19720_v42 = vld [vmem:[#allocation178_spill] sm:$0xff] }
 0x11c   :  { %v11855_v13 = vpop.permute.xlu1 %7823  ;;  %v11857_v31 = vpop.permute.xlu0 %7818 }
 0x11d   :  { %19710 = vst [vmem:[#allocation250_spill] sm:$0xff] %v11855_v13  ;;  %19711 = vst [vmem:[#allocation251_spill] sm:$0xff] %v11857_v31 }
 0x11e   :  { %8113 = vrot.lane.b32.xlu1 %v19712_v41, %s10142_s8  ;;  %8108 = vrot.lane.b32.xlu0 %v19713_v34, %s10142_s8  ;;  %v19721_v41 = vld [vmem:[#allocation175_spill] sm:$0xff] }
 0x120   :  { %v11863_v59 = vpop.permute.xlu1 %7833  ;;  %v11865_v38 = vpop.permute.xlu0 %7828 }
 0x121   :  { %19714 = vst [vmem:[#allocation172_spill] sm:$0xff] %v11863_v59  ;;  %19715 = vst [vmem:[#allocation252_spill] sm:$0xff] %v11865_v38  ;;  %v19724_v38 = vld [vmem:[#allocation180_spill] sm:$0xff] }
 0x122   :  { %8123 = vrot.lane.b32.xlu1 %v19716_v9, %s10142_s8  ;;  %8118 = vrot.lane.b32.xlu0 %v19717_v53, %s10142_s8  ;;  %v19725_v9 = vld [vmem:[#allocation177_spill] sm:$0xff] }
 0x124   :  { %v11871_v13 = vpop.permute.xlu1 %7843  ;;  %v11873_v31 = vpop.permute.xlu0 %7838 }
 0x125   :  { %19718 = vst [vmem:[#allocation253_spill] sm:$0xff] %v11871_v13  ;;  %19719 = vst [vmem:[#allocation254_spill] sm:$0xff] %v11873_v31  ;;  %v19728_v31 = vld [vmem:[#allocation62_spill] sm:$0xff] }
 0x126   :  { %8133 = vrot.lane.b32.xlu1 %v19720_v42, %s10142_s8  ;;  %8128 = vrot.lane.b32.xlu0 %v19721_v41, %s10142_s8  ;;  %v1445_v42 = vrot.slane %v11523_v18, 2  ;;  %v1446_v41 = vrot.slane %v11525_v26, 2  ;;  %v19734_v18 = vld [vmem:[#allocation181_spill] sm:$0xff] }
 0x128   :  { %v11879_v34 = vpop.permute.xlu1 %7853  ;;  %v11881_v59 = vpop.permute.xlu0 %7848 }
 0x129   :  { %19722 = vst [vmem:[#allocation255_spill] sm:$0xff] %v11879_v34  ;;  %19723 = vst [vmem:[#allocation256_spill] sm:$0xff] %v11881_v59  ;;  %v19729_v34 = vunpack.c.l.bf16 %v11716_v43 }
 0x12a   :  { %8143 = vrot.lane.b32.xlu1 %v19724_v38, %s10142_s8  ;;  %8138 = vrot.lane.b32.xlu0 %v19725_v9, %s10142_s8 }
 0x12b   :  { %v1448_v59 = vrot.slane %v19729_v34, 2  ;;  %v19737_v34 = vld [vmem:[#allocation86_spill] sm:$0xff] }
 0x12c   :  { %v11887_v53 = vpop.permute.xlu1 %7863  ;;  %v11889_v13 = vpop.permute.xlu0 %7858 }
 0x12d   :  { %19726 = vst [vmem:[#allocation257_spill] sm:$0xff] %v11887_v53  ;;  %19727 = vst [vmem:[#allocation258_spill] sm:$0xff] %v11889_v13  ;;  %v19733_v53 = vld [vmem:[#allocation182_spill] sm:$0xff]  ;;  %v1447_v13 = vsel %vm692_vm1, %v1445_v42, %v1446_v41 }
 0x12e   :  { %8153 = vrot.lane.b32.xlu1 %v19728_v31, %s10142_s8  ;;  %8148 = vrot.lane.b32.xlu0 %v19730_v12, %s10142_s8  ;;  %v1449_v31 = vsel %vm692_vm1, %v1446_v41, %v1448_v59  ;;  %v19742_v59 = vld [vmem:[#allocation79_spill] sm:$0xff] }
 0x130   :  { %v11899_v38 = vpop.permute.xlu1 %7873  ;;  %v11901_v9 = vpop.permute.xlu0 %7868 }
 0x131   :  { %19731 = vst [vmem:[#allocation179_spill] sm:$0xff] %v11899_v38  ;;  %19732 = vst [vmem:[#allocation259_spill] sm:$0xff] %v11901_v9  ;;  %v11915_v38 = vpack.i.bf16 %v1449_v31, %v1447_v13  ;;  %v19739_v9 = vld [vmem:[#allocation74_spill] sm:$0xff]  ;;  %v19745_v13 = vld [vmem:[#allocation96_spill] sm:$0xff] }
 0x132   :  { %8163 = vrot.lane.b32.xlu1 %v19733_v53, %s10142_s8  ;;  %8158 = vrot.lane.b32.xlu0 %v19734_v18, %s10142_s8  ;;  %v19746_v31 = vld [vmem:[#allocation68_spill] sm:$0xff] }
 0x133   :  { %19738 = vst [vmem:[#allocation262_spill] sm:$0xff] %v11915_v38 }
 0x134   :  { %v11909_v26 = vpop.permute.xlu1 %7883  ;;  %v11911_v43 = vpop.permute.xlu0 %7878 }
 0x135   :  { %19735 = vst [vmem:[#allocation260_spill] sm:$0xff] %v11909_v26  ;;  %19736 = vst [vmem:[#allocation261_spill] sm:$0xff] %v11911_v43 }
 0x136   :  { %8173 = vrot.lane.b32.xlu1 %v19737_v34, %s10142_s8  ;;  %8168 = vrot.lane.b32.xlu0 %v19739_v9, %s10142_s8 }
 0x138   :  { %v11919_v53 = vpop.permute.xlu1 %7893  ;;  %v11921_v42 = vpop.permute.xlu0 %7888 }
 0x139   :  { %19740 = vst [vmem:[#allocation263_spill] sm:$0xff] %v11919_v53  ;;  %19741 = vst [vmem:[#allocation264_spill] sm:$0xff] %v11921_v42  ;;  %v19749_v42 = vld [vmem:[#allocation107_spill] sm:$0xff] }
 0x13a   :  { %8183 = vrot.lane.b32.xlu1 %v11915_v38, %s10142_s8  ;;  %8178 = vrot.lane.b32.xlu0 %v19742_v59, %s10142_s8  ;;  %v19750_v38 = vld [vmem:[#allocation92_spill] sm:$0xff] }
 0x13c   :  { %v11927_v41 = vpop.permute.xlu1 %7903  ;;  %v11929_v43 = vpop.permute.xlu0 %7898 }
 0x13d   :  { %19743 = vst [vmem:[#allocation265_spill] sm:$0xff] %v11927_v41  ;;  %19744 = vst [vmem:[#allocation266_spill] sm:$0xff] %v11929_v43  ;;  %v19753_v43 = vld [vmem:[#allocation119_spill] sm:$0xff] }
 0x13e   :  { %8193 = vrot.lane.b32.xlu1 %v19745_v13, %s10142_s8  ;;  %8188 = vrot.lane.b32.xlu0 %v19746_v31, %s10142_s8  ;;  %v19754_v13 = vld [vmem:[#allocation100_spill] sm:$0xff] }
 0x140   :  { %v11935_v26 = vpop.permute.xlu1 %7913  ;;  %v11937_v53 = vpop.permute.xlu0 %7908 }
 0x141   :  { %19747 = vst [vmem:[#allocation68_spill] sm:$0xff] %v11935_v26  ;;  %19748 = vst [vmem:[#allocation267_spill] sm:$0xff] %v11937_v53  ;;  %v19757_v53 = vld [vmem:[#allocation113_spill] sm:$0xff] }
 0x142   :  { %8203 = vrot.lane.b32.xlu1 %v19749_v42, %s10142_s8  ;;  %8198 = vrot.lane.b32.xlu0 %v19750_v38, %s10142_s8  ;;  %v19902_v38 = vld [vmem:[#allocation207_spill] sm:$0xff] }
 0x143   :  { %v7571_v59 = vunpack.i.h.bf16 %v19902_v38 }
 0x144   :  { %v11943_v34 = vpop.permute.xlu1 %7923  ;;  %v11945_v41 = vpop.permute.xlu0 %7918 }
 0x145   :  { %19751 = vst [vmem:[#allocation268_spill] sm:$0xff] %v11943_v34  ;;  %19752 = vst [vmem:[#allocation269_spill] sm:$0xff] %v11945_v41  ;;  %v1450_v41 = vrot.slane %v11653_v19, 2 }
 0x146   :  { %8213 = vrot.lane.b32.xlu1 %v19753_v43, %s10142_s8  ;;  %8208 = vrot.lane.b32.xlu0 %v19754_v13, %s10142_s8  ;;  %v1451_v43 = vrot.slane %v11655_v47, 2  ;;  %v19761_v13 = vld [vmem:[#allocation131_spill] sm:$0xff] }
 0x148   :  { %v11951_v31 = vpop.permute.xlu1 %7933  ;;  %v11953_v26 = vpop.permute.xlu0 %7928 }
 0x149   :  { %19755 = vst [vmem:[#allocation270_spill] sm:$0xff] %v11951_v31  ;;  %19756 = vst [vmem:[#allocation271_spill] sm:$0xff] %v11953_v26  ;;  %v19760_v31 = vunpack.c.l.bf16 %v11800_v51 }
 0x14a   :  { %8223 = vrot.lane.b32.xlu1 %v11363_v14, %s10142_s8  ;;  %8218 = vrot.lane.b32.xlu0 %v19757_v53, %s10142_s8 }
 0x14b   :  { %v1453_v26 = vrot.slane %v19760_v31, 2 }
 0x14c   :  { %v11959_v42 = vpop.permute.xlu1 %7943  ;;  %v11961_v34 = vpop.permute.xlu0 %7938 }
 0x14d   :  { %19758 = vst [vmem:[#allocation272_spill] sm:$0xff] %v11959_v42  ;;  %19759 = vst [vmem:[#allocation273_spill] sm:$0xff] %v11961_v34  ;;  %v1452_v42 = vsel %vm692_vm1, %v1450_v41, %v1451_v43  ;;  %v1454_v34 = vsel %vm692_vm1, %v1451_v43, %v1453_v26 }
 0x14e   :  { %8233 = vrot.lane.b32.xlu1 %v11387_v24, %s10142_s8  ;;  %8228 = vrot.lane.b32.xlu0 %v19761_v13, %s10142_s8  ;;  %v11987_v19 = vpack.i.bf16 %v1454_v34, %v1452_v42 }
 0x150   :  { %v11971_v14 = vpop.permute.xlu1 %7953  ;;  %v11973_v53 = vpop.permute.xlu0 %7948  ;;  %19766 = vst [vmem:[#allocation278_spill] sm:$0xff] %v11987_v19 }
 0x151   :  { %19762 = vst [vmem:[#allocation274_spill] sm:$0xff] %v11971_v14  ;;  %19763 = vst [vmem:[#allocation275_spill] sm:$0xff] %v11973_v53  ;;  %v19876_v53 = vld [vmem:[#allocation203_spill] sm:$0xff] }
 0x152   :  { %8243 = vrot.lane.b32.xlu1 %v11407_v17, %s10142_s8  ;;  %8238 = vrot.lane.b32.xlu0 %v11375_v22, %s10142_s8  ;;  %v7551_v14 = vunpack.i.h.bf16 %v19876_v53  ;;  %v19883_v17 = vld [vmem:[#allocation73_spill] sm:$0xff] }
 0x154   :  { %v11981_v47 = vpop.permute.xlu1 %7963  ;;  %v11983_v51 = vpop.permute.xlu0 %7958 }
 0x155   :  { %19764 = vst [vmem:[#allocation276_spill] sm:$0xff] %v11981_v47  ;;  %19765 = vst [vmem:[#allocation277_spill] sm:$0xff] %v11983_v51  ;;  %v19871_v51 = vld [vmem:[#allocation54_spill] sm:$0xff] }
 0x156   :  { %8253 = vrot.lane.b32.xlu1 %v11419_v10, %s10142_s8  ;;  %8248 = vrot.lane.b32.xlu0 %v11399_v40, %s10142_s8 }
 0x158   :  { %v11991_v31 = vpop.permute.xlu1 %7973  ;;  %v11993_v41 = vpop.permute.xlu0 %7968 }
 0x159   :  { %19767 = vst [vmem:[#allocation279_spill] sm:$0xff] %v11991_v31  ;;  %19768 = vst [vmem:[#allocation280_spill] sm:$0xff] %v11993_v41 }
 0x15a   :  { %8263 = vrot.lane.b32.xlu1 %v11987_v19, %s10142_s8  ;;  %8258 = vrot.lane.b32.xlu0 %v11413_v20, %s10142_s8  ;;  %v19878_v19 = vld [vmem:[#allocation204_spill] sm:$0xff] }
 0x15b   :  { %v7566_v10 = vunpack.i.h.bf16 %v19878_v19 }
 0x15c   :  { %v11999_v26 = vpop.permute.xlu1 %7983  ;;  %v12001_v43 = vpop.permute.xlu0 %7978 }
 0x15d   :  { %19769 = vst [vmem:[#allocation281_spill] sm:$0xff] %v11999_v26  ;;  %19770 = vst [vmem:[#allocation282_spill] sm:$0xff] %v12001_v43 }
 0x15e   :  { %8273 = vrot.lane.b32.xlu1 %v11448_v7, %s10143_s9  ;;  %8268 = vrot.lane.b32.xlu0 %v11427_v32, %s10143_s9 }
 0x160   :  { %v12007_v34 = vpop.permute.xlu1 %7993  ;;  %v12009_v42 = vpop.permute.xlu0 %7988 }
 0x161   :  { %19771 = vst [vmem:[#allocation283_spill] sm:$0xff] %v12007_v34  ;;  %19772 = vst [vmem:[#allocation284_spill] sm:$0xff] %v12009_v42  ;;  %v19864_v34 = vld [vmem:[#allocation51_spill] sm:$0xff] }
 0x162   :  { %8283 = vrot.lane.b32.xlu1 %v11464_v25, %s10143_s9  ;;  %8278 = vrot.lane.b32.xlu0 %v11441_v6, %s10143_s9 }
 0x164   :  { %v12015_v26 = vpop.permute.xlu1 %8003  ;;  %v12017_v43 = vpop.permute.xlu0 %7998 }
 0x165   :  { %19773 = vst [vmem:[#allocation285_spill] sm:$0xff] %v12015_v26  ;;  %19774 = vst [vmem:[#allocation286_spill] sm:$0xff] %v12017_v43 }
 0x166   :  { %8293 = vrot.lane.b32.xlu1 %v11478_v57, %s10143_s9  ;;  %8288 = vrot.lane.b32.xlu0 %v11456_v33, %s10143_s9  ;;  %v78_v33 = vld [vmem:[%s18399_s0 + $0xcc] sm:$0xff]  }
 0x168   :  { %v12023_v32 = vpop.permute.xlu1 %8013  ;;  %v12025_v7 = vpop.permute.xlu0 %8008 }
 0x169   :  { %19775 = vst [vmem:[#allocation287_spill] sm:$0xff] %v12023_v32  ;;  %19776 = vst [vmem:[#allocation288_spill] sm:$0xff] %v12025_v7  ;;  %v19850_v32 = vld [vmem:[#allocation197_spill] sm:$0xff] }
 0x16a   :  { %8303 = vrot.lane.b32.xlu1 %v11494_v62, %s10143_s9  ;;  %8298 = vrot.lane.b32.xlu0 %v11472_v29, %s10143_s9  ;;  %v12048_v29 = vunpack.c.l.bf16 %v78_v33  ;;  %v7520_v43 = vunpack.i.l.bf16 %v19850_v32 }
 0x16c   :  { %v12031_v6 = vpop.permute.xlu1 %8023  ;;  %v12033_v25 = vpop.permute.xlu0 %8018  ;;  %19781 = vst [vmem:[#allocation293_spill] sm:$0xff] %v12048_v29 }
 0x16d   :  { %19777 = vst [vmem:[#allocation289_spill] sm:$0xff] %v12031_v6  ;;  %19778 = vst [vmem:[#allocation290_spill] sm:$0xff] %v12033_v25  ;;  %v12050_v25 = vunpack.c.h.bf16 %v78_v33 }
 0x16e   :  { %8313 = vrot.lane.b32.xlu1 %v11513_v21, %s10143_s9  ;;  %8308 = vrot.lane.b32.xlu0 %v11488_v28, %s10143_s9 }
 0x16f   :  { %19782 = vst [vmem:[#allocation294_spill] sm:$0xff] %v12050_v25  ;;  %v8342_v28 = vpack.i.bf16 %v12050_v25, %v12048_v29 }
 0x170   :  { %v12042_v57 = vpop.permute.xlu1 %8033  ;;  %v12044_v62 = vpop.permute.xlu0 %8028 }
 0x171   :  { %19779 = vst [vmem:[#allocation291_spill] sm:$0xff] %v12042_v57  ;;  %19780 = vst [vmem:[#allocation292_spill] sm:$0xff] %v12044_v62  ;;  %v19848_v57 = vld [vmem:[#allocation196_spill] sm:$0xff] }
 0x172   :  { %8323 = vrot.lane.b32.xlu1 %v11533_v61, %s10143_s9  ;;  %8318 = vrot.lane.b32.xlu0 %v11504_v37, %s10143_s9  ;;  %v7526_v7 = vunpack.i.h.bf16 %v19848_v57 }
 0x174   :  { %v12054_v21 = vpop.permute.xlu1 %8043  ;;  %v12056_v6 = vpop.permute.xlu0 %8038 }
 0x175   :  { %19783 = vst [vmem:[#allocation295_spill] sm:$0xff] %v12054_v21  ;;  %19784 = vst [vmem:[#allocation296_spill] sm:$0xff] %v12056_v6 }
 0x176   :  { %8333 = vrot.lane.b32.xlu1 %v11549_v48, %s10143_s9  ;;  %8328 = vrot.lane.b32.xlu0 %v11521_v54, %s10143_s9 }
 0x178   :  { %v12064_v61 = vpop.permute.xlu1 %8053  ;;  %v12066_v33 = vpop.permute.xlu0 %8048 }
 0x179   :  { %19785 = vst [vmem:[#allocation297_spill] sm:$0xff] %v12064_v61  ;;  %19786 = vst [vmem:[#allocation298_spill] sm:$0xff] %v12066_v33  ;;  %v19843_v61 = vld [vmem:[#allocation18_spill] sm:$0xff] }
 0x17a   :  { %8343 = vrot.lane.b32.xlu1 %v8342_v28, %s10143_s9  ;;  %8338 = vrot.lane.b32.xlu0 %v11541_v60, %s10143_s9 }
 0x17c   :  { %v12071_v37 = vpop.permute.xlu1 %8063  ;;  %v12073_v6 = vpop.permute.xlu0 %8058 }
 0x17d   :  { %19787 = vst [vmem:[#allocation299_spill] sm:$0xff] %v12071_v37  ;;  %19788 = vst [vmem:[#allocation300_spill] sm:$0xff] %v12073_v6  ;;  %v19836_v37 = vld [vmem:[#allocation16_spill] sm:$0xff] }
 0x17e   :  { %8353 = vrot.lane.b32.xlu1 %v11578_v2, %s10143_s9  ;;  %8348 = vrot.lane.b32.xlu0 %v11557_v1, %s10143_s9 }
 0x180   :  { %v12079_v54 = vpop.permute.xlu1 %8073  ;;  %v12081_v48 = vpop.permute.xlu0 %8068 }
 0x181   :  { %19789 = vst [vmem:[#allocation301_spill] sm:$0xff] %v12079_v54  ;;  %19790 = vst [vmem:[#allocation302_spill] sm:$0xff] %v12081_v48 }
 0x182   :  { %8363 = vrot.lane.b32.xlu1 %v11592_v55, %s10143_s9  ;;  %8358 = vrot.lane.b32.xlu0 %v11571_v56, %s10143_s9 }
 0x184   :  { %v12087_v60 = vpop.permute.xlu1 %8083  ;;  %v12089_v28 = vpop.permute.xlu0 %8078 }
 0x185   :  { %19791 = vst [vmem:[#allocation303_spill] sm:$0xff] %v12087_v60  ;;  %19792 = vst [vmem:[#allocation304_spill] sm:$0xff] %v12089_v28  ;;  %v19827_v28 = vld [vmem:[#allocation4_spill] sm:$0xff]  ;;  %v19828_v60 = vld [vmem:[#allocation7_spill] sm:$0xff] }
 0x186   :  { %8373 = vrot.lane.b32.xlu1 %v11608_v8, %s10143_s9  ;;  %8368 = vrot.lane.b32.xlu0 %v11584_v35, %s10143_s9  ;;  %v132_v35 = vld [vmem:[%s18399_s0 + $0x1a4] sm:$0xff]  }
 0x188   :  { %v12095_v2 = vpop.permute.xlu1 %8093  ;;  %v12097_v1 = vpop.permute.xlu0 %8088 }
 0x189   :  { %19793 = vst [vmem:[#allocation305_spill] sm:$0xff] %v12095_v2  ;;  %19794 = vst [vmem:[#allocation306_spill] sm:$0xff] %v12097_v1  ;;  %v19824_v1 = vld [vmem:[#allocation63_spill] sm:$0xff] }
 0x18a   :  { %8383 = vrot.lane.b32.xlu1 %v11624_v16, %s10143_s9  ;;  %8378 = vrot.lane.b32.xlu0 %v11600_v30, %s10143_s9  ;;  %v12120_v30 = vunpack.c.l.bf16 %v132_v35 }
 0x18c   :  { %v12103_v56 = vpop.permute.xlu1 %8103  ;;  %v12105_v55 = vpop.permute.xlu0 %8098  ;;  %19799 = vst [vmem:[#allocation311_spill] sm:$0xff] %v12120_v30 }
 0x18d   :  { %19795 = vst [vmem:[#allocation307_spill] sm:$0xff] %v12103_v56  ;;  %19796 = vst [vmem:[#allocation308_spill] sm:$0xff] %v12105_v55  ;;  %v12122_v56 = vunpack.c.h.bf16 %v132_v35 }
 0x18e   :  { %8393 = vrot.lane.b32.xlu1 %v11643_v49, %s10143_s9  ;;  %8388 = vrot.lane.b32.xlu0 %v11616_v52, %s10143_s9 }
 0x18f   :  { %19800 = vst [vmem:[#allocation312_spill] sm:$0xff] %v12122_v56  ;;  %v8422_v52 = vpack.i.bf16 %v12122_v56, %v12120_v30 }
 0x190   :  { %v12114_v8 = vpop.permute.xlu1 %8113  ;;  %v12116_v16 = vpop.permute.xlu0 %8108 }
 0x191   :  { %19797 = vst [vmem:[#allocation309_spill] sm:$0xff] %v12114_v8  ;;  %19798 = vst [vmem:[#allocation310_spill] sm:$0xff] %v12116_v16 }
 0x192   :  { %8403 = vrot.lane.b32.xlu1 %v11663_v45, %s10143_s9  ;;  %8398 = vrot.lane.b32.xlu0 %v11632_v44, %s10143_s9 }
 0x194   :  { %v12126_v49 = vpop.permute.xlu1 %8123  ;;  %v12128_v55 = vpop.permute.xlu0 %8118 }
 0x195   :  { %19801 = vst [vmem:[#allocation313_spill] sm:$0xff] %v12126_v49  ;;  %19802 = vst [vmem:[#allocation314_spill] sm:$0xff] %v12128_v55 }
 0x196   :  { %8413 = vrot.lane.b32.xlu1 %v11679_v15, %s10143_s9  ;;  %8408 = vrot.lane.b32.xlu0 %v11651_v0, %s10143_s9 }
 0x198   :  { %v12136_v45 = vpop.permute.xlu1 %8133  ;;  %v12138_v35 = vpop.permute.xlu0 %8128 }
 0x199   :  { %19803 = vst [vmem:[#allocation315_spill] sm:$0xff] %v12136_v45  ;;  %19804 = vst [vmem:[#allocation316_spill] sm:$0xff] %v12138_v35  ;;  %v1845_v45 = vrot.slane %v12048_v29, 1  ;;  %v19911_v29 = vld [vmem:[#allocation210_spill] sm:$0xff] }
 0x19a   :  { %8423 = vrot.lane.b32.xlu1 %v8422_v52, %s10143_s9  ;;  %8418 = vrot.lane.b32.xlu0 %v11671_v23, %s10143_s9  ;;  %v7596_v18 = vunpack.i.h.bf16 %v19911_v29 }
 0x19c   :  { %v12143_v44 = vpop.permute.xlu1 %8143  ;;  %v12145_v55 = vpop.permute.xlu0 %8138 }
 0x19d   :  { %19805 = vst [vmem:[#allocation317_spill] sm:$0xff] %v12143_v44  ;;  %19806 = vst [vmem:[#allocation318_spill] sm:$0xff] %v12145_v55  ;;  %v19817_v55 = vld [vmem:[#allocation183_spill] sm:$0xff] }
 0x19e   :  { %8433 = vrot.lane.b32.xlu1 %v19649_v39, %s10144_s14  ;;  %8428 = vrot.lane.b32.xlu0 %v19644_v63, %s10144_s14  ;;  %v12172_v63 = vld [vmem:[%s18399_s0 + $0xd4] sm:$0x1]  ;;  %v7486_v44 = vunpack.i.h.bf16 %v19817_v55 }
 0x19f   :  { %19812 = vst [vmem:[#allocation324_spill] sm:$0xff] %v12172_v63  ;;  %v19821_v49 = vunpack.c.l.bf16 %v12172_v63 }
 0x1a0   :  { %v12151_v0 = vpop.permute.xlu1 %8153  ;;  %v12153_v15 = vpop.permute.xlu0 %8148 }
 0x1a1   :  { %19807 = vst [vmem:[#allocation319_spill] sm:$0xff] %v12151_v0  ;;  %19808 = vst [vmem:[#allocation320_spill] sm:$0xff] %v12153_v15  ;;  %v1848_v16 = vrot.slane %v19821_v49, 1 }
 0x1a2   :  { %8443 = vrot.lane.b32.xlu1 %v19653_v5, %s10144_s14  ;;  %8438 = vrot.lane.b32.xlu0 %v19648_v11, %s10144_s14  ;;  %v19813_v5 = vld [vmem:[#allocation124_spill] sm:$0xff] }
 0x1a3   :  { %v7481_v15 = vunpack.i.h.bf16 %v19813_v5 }
 0x1a4   :  { %v12159_v23 = vpop.permute.xlu1 %8163  ;;  %v12161_v52 = vpop.permute.xlu0 %8158 }
 0x1a5   :  { %19809 = vst [vmem:[#allocation321_spill] sm:$0xff] %v12159_v23  ;;  %19810 = vst [vmem:[#allocation322_spill] sm:$0xff] %v12161_v52  ;;  %v7480_v52 = vunpack.i.l.bf16 %v19813_v5 }
 0x1a6   :  { %8453 = vrot.lane.b32.xlu1 %v19657_v46, %s10144_s14  ;;  %8448 = vrot.lane.b32.xlu0 %v19652_v50, %s10144_s14  ;;  %v19818_v46 = vld [vmem:[#allocation184_spill] sm:$0xff] }
 0x1a7   :  { %v7476_v35 = vunpack.i.h.bf16 %v19818_v46 }
 0x1a8   :  { %v12167_v39 = vpop.permute.xlu1 %8173  ;;  %v12175_v11 = vpop.permute.xlu0 %8168 }
 0x1a9   :  { %19811 = vst [vmem:[#allocation323_spill] sm:$0xff] %v12167_v39  ;;  %19814 = vst [vmem:[#allocation124_spill] sm:$0xff] %v12175_v11  ;;  %v19816_v39 = vld [vmem:[#allocation137_spill] sm:$0xff]  ;;  %v12190_v11 = vsel %vm2249_vm2, %v10200_v4, %v7481_v15  ;;  %v19822_v4 = vld [vmem:[#allocation3_spill] sm:$0xff] }
 0x1aa   :  { %8463 = vrot.lane.b32.xlu1 %v19661_v27, %s10144_s14  ;;  %8458 = vrot.lane.b32.xlu0 %v19656_v36, %s10144_s14  ;;  %v7471_v23 = vunpack.i.h.bf16 %v19816_v39  ;;  %v7470_v0 = vunpack.i.l.bf16 %v19816_v39  ;;  %v7485_v27 = vunpack.i.l.bf16 %v19817_v55  ;;  %v19820_v36 = vld [vmem:[#allocation58_spill] sm:$0xff]  ;;  %v1846_v39 = vrot.slane %v12050_v25, 1 }
 0x1ab   :  { %v12205_v15 = vsel %vm2249_vm2, %v19822_v4, %v7480_v52  ;;  %v19823_v55 = vld [vmem:[#allocation186_spill] sm:$0xff]  ;;  %v12223_v52 = vsel %vm2249_vm2, %v19828_v60, %v7486_v44  ;;  %v19829_v4 = vld [vmem:[#allocation188_spill] sm:$0xff]  ;;  %v19835_v44 = vld [vmem:[#allocation191_spill] sm:$0xff] }
 0x1ac   :  { %v12183_v50 = vpop.permute.xlu1 %8183  ;;  %v12194_v5 = vpop.permute.xlu0 %8178  ;;  %v7496_v8 = vunpack.i.h.bf16 %v19823_v55  ;;  %v12219_v49 = vsel %vm2249_vm2, %v19827_v28, %v7470_v0  ;;  %v7491_v48 = vunpack.i.h.bf16 %v19829_v4  ;;  %v19833_v28 = vld [vmem:[#allocation69_spill] sm:$0xff]  ;;  %v19834_v0 = vld [vmem:[#allocation10_spill] sm:$0xff]  ;;  %v7506_v6 = vunpack.i.h.bf16 %v19835_v44 }
 0x1ad   :  { %19815 = vst [vmem:[#allocation325_spill] sm:$0xff] %v12183_v50  ;;  %19819 = vst [vmem:[#allocation137_spill] sm:$0xff] %v12194_v5  ;;  %v7475_v50 = vunpack.i.l.bf16 %v19818_v46  ;;  %v7495_v5 = vunpack.i.l.bf16 %v19823_v55  ;;  %v19826_v46 = vld [vmem:[#allocation5_spill] sm:$0xff]  ;;  %v19830_v55 = vld [vmem:[#allocation6_spill] sm:$0xff] }
 0x1ae   :  { %8473 = vrot.lane.b32.xlu1 %v19820_v36, %s10144_s14  ;;  %8468 = vrot.lane.b32.xlu0 %v19824_v1, %s10144_s14  ;;  %v12215_v2 = vsel %vm2249_vm2, %v19826_v46, %v7471_v23  ;;  %v12228_v54 = vsel %vm2249_vm2, %v19830_v55, %v7485_v27  ;;  %v19831_v1 = vld [vmem:[#allocation13_spill] sm:$0xff]  ;;  %v7490_v23 = vunpack.i.l.bf16 %v19829_v4  ;;  %v1847_v27 = vsel %vm339_vm0, %v1845_v45, %v1846_v39  ;;  %v19837_v4 = vld [vmem:[#allocation15_spill] sm:$0xff] }
 0x1af   :  { %v12241_v60 = vsel %vm2249_vm2, %v19834_v0, %v7475_v50  ;;  %v1849_v55 = vsel %vm339_vm0, %v1846_v39, %v1848_v16  ;;  %v19840_v0 = vld [vmem:[#allocation19_spill] sm:$0xff]  ;;  %v19841_v16 = vld [vmem:[#allocation193_spill] sm:$0xff] }
 0x1b0   :  { %v12211_v36 = vpop.permute.xlu1 %8193  ;;  %v12235_v46 = vpop.permute.xlu0 %8188  ;;  %v12261_v45 = vsel %vm2249_vm2, %v19840_v0, %v7491_v48  ;;  %v7501_v39 = vunpack.i.h.bf16 %v19841_v16  ;;  %v8502_v48 = vpack.i.bf16 %v1849_v55, %v1847_v27  ;;  %v19847_v0 = vld [vmem:[#allocation26_spill] sm:$0xff]  ;;  %v19851_v27 = vld [vmem:[#allocation87_spill] sm:$0xff] }
 0x1b1   :  { %19825 = vst [vmem:[#allocation183_spill] sm:$0xff] %v12211_v36  ;;  %v12232_v36 = vsel %vm2249_vm2, %v19831_v1, %v7476_v35  ;;  %19832 = vst [vmem:[#allocation184_spill] sm:$0xff] %v12235_v46  ;;  %v12248_v35 = vsel %vm2249_vm2, %v19836_v37, %v7496_v8  ;;  %v12252_v1 = vsel %vm2249_vm2, %v19837_v4, %v7495_v5  ;;  %v19838_v46 = vld [vmem:[#allocation75_spill] sm:$0xff]  ;;  %v7500_v37 = vunpack.i.l.bf16 %v19841_v16  ;;  %v19842_v8 = vld [vmem:[#allocation194_spill] sm:$0xff] }
 0x1b2   :  { %8483 = vrot.lane.b32.xlu1 %v19833_v28, %s10144_s14  ;;  %v7505_v28 = vunpack.i.l.bf16 %v19835_v44  ;;  %8478 = vrot.lane.b32.xlu0 %v19838_v46, %s10144_s14  ;;  %v7516_v33 = vunpack.i.h.bf16 %v19842_v8  ;;  %v12268_v5 = vsel %vm2249_vm2, %v19843_v61, %v7490_v23  ;;  %v7515_v44 = vunpack.i.l.bf16 %v19842_v8  ;;  %v19844_v4 = vld [vmem:[#allocation195_spill] sm:$0xff]  ;;  %v19849_v23 = vld [vmem:[#allocation25_spill] sm:$0xff] }
 0x1b3   :  { %v7511_v46 = vunpack.i.h.bf16 %v19844_v4  ;;  %v12278_v62 = vsel %vm2249_vm2, %v19847_v0, %v7506_v6  ;;  %v7510_v16 = vunpack.i.l.bf16 %v19844_v4  ;;  %v7525_v61 = vunpack.i.l.bf16 %v19848_v57  ;;  %v19853_v6 = vld [vmem:[#allocation31_spill] sm:$0xff]  ;;  %v19854_v4 = vld [vmem:[#allocation29_spill] sm:$0xff] }
 0x1b4   :  { %v12257_v50 = vpop.permute.xlu1 %8203  ;;  %v12272_v21 = vpop.permute.xlu0 %8198  ;;  %v12285_v8 = vsel %vm2249_vm2, %v19849_v23, %v7505_v28  ;;  %v12299_v57 = vsel %vm2249_vm2, %v19854_v4, %v7500_v37  ;;  %v19855_v0 = vld [vmem:[#allocation35_spill] sm:$0xff]  ;;  %v19856_v23 = vld [vmem:[#allocation198_spill] sm:$0xff]  ;;  %v19860_v37 = vld [vmem:[#allocation37_spill] sm:$0xff] }
 0x1b5   :  { %19839 = vst [vmem:[#allocation58_spill] sm:$0xff] %v12257_v50  ;;  %19845 = vst [vmem:[#allocation3_spill] sm:$0xff] %v12272_v21  ;;  %v19846_v50 = vld [vmem:[#allocation82_spill] sm:$0xff]  ;;  %v7521_v21 = vunpack.i.h.bf16 %v19850_v32  ;;  %v12303_v28 = vsel %vm2249_vm2, %v19855_v0, %v7516_v33  ;;  %v7536_v26 = vunpack.i.h.bf16 %v19856_v23  ;;  %v12320_v33 = vsel %vm2249_vm2, %v19860_v37, %v7510_v16  ;;  %v19866_v37 = vld [vmem:[#allocation231_spill] sm:$0xff] }
 0x1b6   :  { %8493 = vrot.lane.b32.xlu1 %v19846_v50, %s10144_s14  ;;  %8488 = vrot.lane.b32.xlu0 %v19851_v27, %s10144_s14  ;;  %v12295_v50 = vsel %vm2249_vm2, %v19853_v6, %v7501_v39  ;;  %v19857_v32 = vld [vmem:[#allocation34_spill] sm:$0xff]  ;;  %v19858_v27 = vld [vmem:[#allocation41_spill] sm:$0xff]  ;;  %v7535_v39 = vunpack.i.l.bf16 %v19856_v23 }
 0x1b7   :  { %v12308_v42 = vsel %vm2249_vm2, %v19857_v32, %v7515_v44  ;;  %v19861_v4 = vld [vmem:[#allocation46_spill] sm:$0xff]  ;;  %v19862_v44 = vld [vmem:[#allocation44_spill] sm:$0xff]  ;;  %v12333_v23 = vsel %vm2249_vm2, %v19864_v34, %v7521_v21  ;;  %v19870_v21 = vld [vmem:[#allocation201_spill] sm:$0xff] }
 0x1b8   :  { %v12291_v55 = vpop.permute.xlu1 %8213  ;;  %v12315_v6 = vpop.permute.xlu0 %8208  ;;  %v12324_v0 = vsel %vm2249_vm2, %v19861_v4, %v7526_v7  ;;  %v12328_v32 = vsel %vm2249_vm2, %v19862_v44, %v7525_v61  ;;  %v19868_v4 = vld [vmem:[#allocation55_spill] sm:$0xff]  ;;  %v19869_v44 = vld [vmem:[#allocation200_spill] sm:$0xff]  ;;  %v7541_v31 = vunpack.i.h.bf16 %v19870_v21 }
 0x1b9   :  { %19852 = vst [vmem:[#allocation186_spill] sm:$0xff] %v12291_v55  ;;  %v12312_v55 = vsel %vm2249_vm2, %v19858_v27, %v7511_v46  ;;  %19859 = vst [vmem:[#allocation63_spill] sm:$0xff] %v12315_v6  ;;  %v19863_v46 = vld [vmem:[#allocation199_spill] sm:$0xff]  ;;  %v19865_v6 = vld [vmem:[#allocation48_spill] sm:$0xff]  ;;  %v12346_v61 = vsel %vm2249_vm2, %v19868_v4, %v7536_v26  ;;  %v7546_v41 = vunpack.i.h.bf16 %v19869_v44  ;;  %v7545_v34 = vunpack.i.l.bf16 %v19869_v44 }
 0x1ba   :  { %8503 = vrot.lane.b32.xlu1 %v8502_v48, %s10144_s14  ;;  %v7531_v27 = vunpack.i.h.bf16 %v19863_v46  ;;  %v12337_v48 = vsel %vm2249_vm2, %v19865_v6, %v7520_v43  ;;  %v7530_v16 = vunpack.i.l.bf16 %v19863_v46  ;;  %8498 = vrot.lane.b32.xlu0 %v19866_v37, %s10144_s14  ;;  %v12353_v43 = vsel %vm2249_vm2, %v19871_v51, %v7535_v39  ;;  %v19872_v46 = vld [vmem:[#allocation202_spill] sm:$0xff]  ;;  %v19875_v26 = vld [vmem:[#allocation61_spill] sm:$0xff] }
 0x1bb   :  { %v7540_v6 = vunpack.i.l.bf16 %v19870_v21  ;;  %v7556_v37 = vunpack.i.h.bf16 %v19872_v46  ;;  %v7555_v44 = vunpack.i.l.bf16 %v19872_v46  ;;  %v7550_v51 = vunpack.i.l.bf16 %v19876_v53  ;;  %v19877_v39 = vld [vmem:[#allocation57_spill] sm:$0xff] }
 0x1bc   :  { %v12342_v7 = vpop.permute.xlu1 %8223  ;;  %v12357_v47 = vpop.permute.xlu0 %8218  ;;  %v12363_v4 = vsel %vm2249_vm2, %v19875_v26, %v7531_v27  ;;  %v12370_v21 = vsel %vm2249_vm2, %v19877_v39, %v7530_v16  ;;  %v19881_v27 = vld [vmem:[#allocation67_spill] sm:$0xff]  ;;  %v19882_v26 = vld [vmem:[#allocation65_spill] sm:$0xff]  ;;  %v12388_v16 = vsel %vm2249_vm2, %v19883_v17, %v7541_v31 }
 0x1bd   :  { %19867 = vst [vmem:[#allocation5_spill] sm:$0xff] %v12342_v7  ;;  %19873 = vst [vmem:[#allocation4_spill] sm:$0xff] %v12357_v47  ;;  %v19874_v7 = vld [vmem:[#allocation103_spill] sm:$0xff]  ;;  %v7565_v47 = vunpack.i.l.bf16 %v19878_v19  ;;  %v12380_v46 = vsel %vm2249_vm2, %v19881_v27, %v7546_v41  ;;  %v12384_v53 = vsel %vm2249_vm2, %v19882_v26, %v7545_v34  ;;  %v19884_v39 = vld [vmem:[#allocation205_spill] sm:$0xff] }
 0x1be   :  { %8513 = vrot.lane.b32.xlu1 %v19874_v7, %s10144_s14  ;;  %v19879_v7 = vld [vmem:[#allocation108_spill] sm:$0xff]  ;;  %v7561_v40 = vunpack.i.h.bf16 %v19884_v39  ;;  %v19885_v19 = vld [vmem:[#allocation70_spill] sm:$0xff]  ;;  %v7560_v41 = vunpack.i.l.bf16 %v19884_v39  ;;  %v19889_v26 = vld [vmem:[#allocation77_spill] sm:$0xff] }
 0x1bf   :  { %8508 = vrot.lane.b32.xlu0 %v19879_v7, %s10144_s14  ;;  %v12393_v24 = vsel %vm2249_vm2, %v19885_v19, %v7540_v6  ;;  %v19886_v7 = vld [vmem:[#allocation78_spill] sm:$0xff]  ;;  %v12406_v17 = vsel %vm2249_vm2, %v19889_v26, %v7555_v44  ;;  %v19890_v31 = vld [vmem:[#allocation85_spill] sm:$0xff]  ;;  %v10027_v39 = vld [vmem:[%s18400_s1] sm:$0xff]  }
 0x1c0   :  { %v12376_v20 = vpop.permute.xlu1 %8233  ;;  %v12400_v27 = vpop.permute.xlu0 %8228  ;;  %v19888_v34 = vld [vmem:[#allocation114_spill] sm:$0xff]  ;;  %v12410_v22 = vsel %vm2249_vm2, %v19890_v31, %v7551_v14  ;;  %v19892_v6 = vld [vmem:[#allocation81_spill] sm:$0xff]  ;;  %v19898_v31 = vld [vmem:[#allocation120_spill] sm:$0xff]  ;;  %7308 = vmatprep.subr.bf16.mxu0 %v10027_v39 }
 0x1c1   :  { %19880 = vst [vmem:[#allocation7_spill] sm:$0xff] %v12376_v20  ;;  %v12397_v20 = vsel %vm2249_vm2, %v19886_v7, %v7556_v37  ;;  %19887 = vst [vmem:[#allocation188_spill] sm:$0xff] %v12400_v27  ;;  %v12414_v19 = vsel %vm2249_vm2, %v19892_v6, %v7550_v51  ;;  %v19893_v37 = vld [vmem:[#allocation206_spill] sm:$0xff]  ;;  %v19894_v27 = vld [vmem:[#allocation91_spill] sm:$0xff]  ;;  %7309 = vmatpush3.bf16.msra.mxu0 %v10027_v39 }
 0x1c2   :  { %8523 = vrot.lane.b32.xlu1 %v19888_v34, %s10144_s14  ;;  %19891 = vst [vmem:[#allocation6_spill] sm:$0xff] %v12410_v22  ;;  %v7576_v7 = vunpack.i.h.bf16 %v19893_v37  ;;  %v12422_v34 = vsel %vm2249_vm2, %v19894_v27, %v7566_v10  ;;  %v19896_v44 = vld [vmem:[#allocation89_spill] sm:$0xff]  ;;  %v7575_v14 = vunpack.i.l.bf16 %v19893_v37  ;;  %v19900_v6 = vld [vmem:[#allocation95_spill] sm:$0xff]  ;;  %v7570_v10 = vunpack.i.l.bf16 %v19902_v38  ;;  %v19903_v27 = vld [vmem:[#allocation208_spill] sm:$0xff] }
 0x1c3   :  { %19895 = vst [vmem:[#allocation13_spill] sm:$0xff] %v12422_v34  ;;  %v12426_v26 = vsel %vm2249_vm2, %v19896_v44, %v7565_v47  ;;  %8518 = vrot.lane.b32.xlu0 %v19898_v31, %s10144_s14  ;;  %v12435_v13 = vsel %vm2249_vm2, %v19900_v6, %v7561_v40  ;;  %v7586_v9 = vunpack.i.h.bf16 %v19903_v27  ;;  %v19904_v47 = vld [vmem:[#allocation94_spill] sm:$0xff]  ;;  %v7585_v37 = vunpack.i.l.bf16 %v19903_v27  ;;  %v19906_v31 = vld [vmem:[#allocation209_spill] sm:$0xff]  ;;  %v19908_v40 = vld [vmem:[#allocation127_spill] sm:$0xff] }
 0x1c4   :  { %19897 = vst [vmem:[#allocation69_spill] sm:$0xff] %v12426_v26  ;;  %v12431_v51 = vpop.permute.xlu1 %8243  ;;  %19901 = vst [vmem:[#allocation191_spill] sm:$0xff] %v12435_v13  ;;  %v12442_v44 = vsel %vm2249_vm2, %v19904_v47, %v7560_v41  ;;  %v7581_v63 = vunpack.i.h.bf16 %v19906_v31  ;;  %v19909_v6 = vld [vmem:[#allocation99_spill] sm:$0xff]  ;;  %v7580_v25 = vunpack.i.l.bf16 %v19906_v31  ;;  %v7595_v41 = vunpack.i.l.bf16 %v19911_v29  ;;  %v10028_v27 = vld [vmem:[%s18400_s1 + $0x8] sm:$0xff]  }
 0x1c5   :  { %19899 = vst [vmem:[#allocation10_spill] sm:$0xff] %v12431_v51  ;;  %19905 = vst [vmem:[#allocation16_spill] sm:$0xff] %v12442_v44  ;;  %v12446_v51 = vpop.permute.xlu0 %8238  ;;  %v12452_v38 = vsel %vm2249_vm2, %v19909_v6, %v7576_v7  ;;  %v19912_v47 = vld [vmem:[#allocation98_spill] sm:$0xff]  ;;  %v19915_v7 = vld [vmem:[#allocation132_spill] sm:$0xff]  ;;  %7310 = vmatprep.subr.bf16.mxu0 %v10028_v27 }
 0x1c6   :  { %19907 = vst [vmem:[#allocation15_spill] sm:$0xff] %v12446_v51  ;;  %8533 = vrot.lane.b32.xlu1 %v19908_v40, %s10144_s14  ;;  %19910 = vst [vmem:[#allocation75_spill] sm:$0xff] %v12452_v38  ;;  %v12462_v51 = vsel %vm2249_vm2, %v19912_v47, %v7575_v14  ;;  %v19914_v40 = vld [vmem:[#allocation211_spill] sm:$0xff]  ;;  %v12473_v29 = vld [vmem:[%s18399_s0 + $0x1ac] sm:$0x1]  ;;  %7311 = vmatpush3.bf16.msra.mxu0 %v10028_v27 }
 0x1c7   :  { %19913 = vst [vmem:[#allocation19_spill] sm:$0xff] %v12462_v51  ;;  %v7591_v39 = vunpack.i.h.bf16 %v19914_v40  ;;  %v7590_v13 = vunpack.i.l.bf16 %v19914_v40  ;;  %8528 = vrot.lane.b32.xlu0 %v19915_v7, %s10144_s14  ;;  %19917 = vst [vmem:[#allocation194_spill] sm:$0xff] %v12473_v29  ;;  %v19918_v6 = vld [vmem:[#allocation106_spill] sm:$0xff]  ;;  %v19920_v51 = vld [vmem:[#allocation112_spill] sm:$0xff] }
 0x1c8   :  { %v12468_v31 = vpop.permute.xlu1 %8253  ;;  %v12477_v38 = vsel %vm2249_vm2, %v19918_v6, %v7571_v59  ;;  %v19919_v14 = vld [vmem:[#allocation102_spill] sm:$0xff]  ;;  %v12485_v40 = vsel %vm2249_vm2, %v19920_v51, %v7586_v9  ;;  %v19921_v7 = vld [vmem:[#allocation212_spill] sm:$0xff]  ;;  %v19929_v51 = vld [vmem:[#allocation123_spill] sm:$0xff] }
 0x1c9   :  { %19916 = vst [vmem:[#allocation193_spill] sm:$0xff] %v12468_v31  ;;  %v12481_v47 = vsel %vm2249_vm2, %v19919_v14, %v7570_v10  ;;  %v7606_v44 = vunpack.i.h.bf16 %v19921_v7  ;;  %v19922_v31 = vld [vmem:[#allocation110_spill] sm:$0xff]  ;;  %v12496_v59 = vpop.permute.xlu0 %8248  ;;  %v19927_v10 = vld [vmem:[#allocation115_spill] sm:$0xff]  ;;  %v12506_v6 = vsel %vm2249_vm2, %v19929_v51, %v7596_v18  ;;  %v7605_v18 = vunpack.i.l.bf16 %v19921_v7  ;;  %v19939_v51 = vld [vmem:[#allocation136_spill] sm:$0xff] }
 0x1ca   :  { %v12490_v26 = vsel %vm2249_vm2, %v19922_v31, %v7585_v37  ;;  %v19924_v34 = vld [vmem:[#allocation118_spill] sm:$0xff]  ;;  %19926 = vst [vmem:[#allocation82_spill] sm:$0xff] %v12496_v59  ;;  %8543 = vrot.lane.b32.xlu1 %v19695_v58, %s10144_s14  ;;  %v12502_v9 = vsel %vm2249_vm2, %v19927_v10, %v7580_v25  ;;  %19930 = vst [vmem:[#allocation196_spill] sm:$0xff] %v12506_v6  ;;  %v19937_v10 = vld [vmem:[#allocation144_spill] sm:$0xff] }
 0x1cb   :  { %19923 = vst [vmem:[#allocation18_spill] sm:$0xff] %v12490_v26  ;;  %v12494_v22 = vsel %vm2249_vm2, %v19924_v34, %v7581_v63  ;;  %19928 = vst [vmem:[#allocation26_spill] sm:$0xff] %v12502_v9  ;;  %v19931_v37 = vld [vmem:[#allocation122_spill] sm:$0xff]  ;;  %v10029_v34 = vld [vmem:[%s18400_s1 + $0x10] sm:$0xff]   ;;  %8538 = vrot.lane.b32.xlu0 %v19937_v10, %s10144_s14 }
 0x1cc   :  { %19925 = vst [vmem:[#allocation195_spill] sm:$0xff] %v12494_v22  ;;  %v12510_v31 = vsel %vm2249_vm2, %v19931_v37, %v7595_v41  ;;  %v19933_v58 = vld [vmem:[#allocation130_spill] sm:$0xff]  ;;  %v12527_v41 = vpop.permute.xlu1 %8263  ;;  %v12531_v37 = vsel %vm2249_vm2, %v19939_v51, %v7606_v44  ;;  %v19941_v63 = vld [vmem:[#allocation213_spill] sm:$0xff]  ;;  %7312 = vmatprep.subr.bf16.mxu0 %v10029_v34  ;;  %v19945_v44 = vld [vmem:[#allocation216_spill] sm:$0xff] }
 0x1cd   :  { %19932 = vst [vmem:[#allocation25_spill] sm:$0xff] %v12510_v31  ;;  %v12518_v27 = vsel %vm2249_vm2, %v19933_v58, %v7591_v39  ;;  %v19935_v25 = vld [vmem:[#allocation126_spill] sm:$0xff]  ;;  %19938 = vst [vmem:[#allocation31_spill] sm:$0xff] %v12527_v41  ;;  %v7601_v59 = vunpack.i.h.bf16 %v19941_v63  ;;  %v7600_v39 = vunpack.i.l.bf16 %v19941_v63  ;;  %v12539_v10 = vpop.permute.xlu0 %8258  ;;  %7313 = vmatpush3.bf16.msra.mxu0 %v10029_v34  ;;  %v7626_v51 = vunpack.i.h.bf16 %v19945_v44  ;;  %v19949_v34 = vld [vmem:[#allocation217_spill] sm:$0xff] }
 0x1ce   :  { %19934 = vst [vmem:[#allocation197_spill] sm:$0xff] %v12518_v27  ;;  %v12522_v14 = vsel %vm2249_vm2, %v19935_v25, %v7590_v13  ;;  %19940 = vst [vmem:[#allocation29_spill] sm:$0xff] %v12531_v37  ;;  %v19942_v58 = vld [vmem:[#allocation214_spill] sm:$0xff]  ;;  %v19943_v25 = vld [vmem:[#allocation215_spill] sm:$0xff]  ;;  %8553 = vrot.lane.b32.xlu1 %v19701_v3, %s10144_s14  ;;  %v1850_v41 = vrot.slane %v12120_v30, 1  ;;  %v1851_v63 = vrot.slane %v12122_v56, 1  ;;  %v19946_v37 = vunpack.c.l.bf16 %v12473_v29 }
 0x1cf   :  { %19936 = vst [vmem:[#allocation87_spill] sm:$0xff] %v12522_v14  ;;  %v7616_v27 = vunpack.i.h.bf16 %v19942_v58  ;;  %v7615_v13 = vunpack.i.l.bf16 %v19942_v58  ;;  %v7611_v7 = vunpack.i.h.bf16 %v19943_v25  ;;  %v7610_v14 = vunpack.i.l.bf16 %v19943_v25  ;;  %19944 = vst [vmem:[#allocation35_spill] sm:$0xff] %v12539_v10  ;;  %v10030_v58 = vld [vmem:[%s18400_s1 + $0x18] sm:$0xff]   ;;  %v19950_v22 = vld [vmem:[#allocation155_spill] sm:$0xff] }
 0x1d0   :  { %v1853_v31 = vrot.slane %v19946_v37, 1  ;;  %v19947_v25 = vld [vmem:[#allocation134_spill] sm:$0xff]  ;;  %v7625_v3 = vunpack.i.l.bf16 %v19945_v44  ;;  %v7621_v6 = vunpack.i.h.bf16 %v19949_v34  ;;  %8548 = vrot.lane.b32.xlu0 %v19950_v22, %s10144_s14  ;;  %v12559_v30 = vpop.permute.xlu1 %8273  ;;  %v19953_v29 = vld [vmem:[#allocation139_spill] sm:$0xff]  ;;  %v7620_v44 = vunpack.i.l.bf16 %v19949_v34  ;;  %7314 = vmatprep.subr.bf16.mxu0 %v10030_v58  ;;  %v19965_v34 = vld [vmem:[#allocation157_spill] sm:$0xff] }
 0x1d1   :  { %v12553_v10 = vsel %vm2249_vm2, %v19947_v25, %v7605_v18  ;;  %19951 = vst [vmem:[#allocation34_spill] sm:$0xff] %v12559_v30  ;;  %v19952_v56 = vld [vmem:[#allocation142_spill] sm:$0xff]  ;;  %v12567_v9 = vsel %vm2249_vm2, %v19953_v29, %v7600_v39  ;;  %v19954_v26 = vld [vmem:[#allocation147_spill] sm:$0xff]  ;;  %v19960_v29 = vld [vmem:[#allocation160_spill] sm:$0xff]  ;;  %7315 = vmatpush3.bf16.msra.mxu0 %v10030_v58 }
 0x1d2   :  { %19948 = vst [vmem:[#allocation198_spill] sm:$0xff] %v12553_v10  ;;  %v12563_v37 = vsel %vm2249_vm2, %v19952_v56, %v7601_v59  ;;  %v12571_v18 = vsel %vm2249_vm2, %v19954_v26, %v7616_v27  ;;  %v19955_v25 = vld [vmem:[#allocation146_spill] sm:$0xff]  ;;  %v12582_v56 = vpop.permute.xlu0 %8268  ;;  %8563 = vrot.lane.b32.xlu1 %v19960_v29, %s10144_s14  ;;  %v19963_v27 = vld [vmem:[#allocation159_spill] sm:$0xff]  ;;  %v19967_v58 = vld [vmem:[#allocation164_spill] sm:$0xff] }
 0x1d3   :  { %v12576_v22 = vsel %vm2249_vm2, %v19955_v25, %v7615_v13  ;;  %v19957_v30 = vld [vmem:[#allocation154_spill] sm:$0xff]  ;;  %19959 = vst [vmem:[#allocation46_spill] sm:$0xff] %v12582_v56  ;;  %v12592_v39 = vsel %vm2249_vm2, %v19963_v27, %v7626_v51  ;;  %v1852_v13 = vsel %vm339_vm0, %v1850_v41, %v1851_v63  ;;  %v12601_v25 = vsel %vm2249_vm2, %v19965_v34, %v7625_v3  ;;  %v19969_v29 = vld [vmem:[#allocation165_spill] sm:$0xff] }
 0x1d4   :  { %19956 = vst [vmem:[#allocation41_spill] sm:$0xff] %v12576_v22  ;;  %v12580_v10 = vsel %vm2249_vm2, %v19957_v30, %v7611_v7  ;;  %v19961_v26 = vld [vmem:[#allocation150_spill] sm:$0xff]  ;;  %19964 = vst [vmem:[#allocation199_spill] sm:$0xff] %v12592_v39  ;;  %v1854_v30 = vsel %vm339_vm0, %v1851_v63, %v1853_v31  ;;  %v10031_v7 = vld [vmem:[%s18400_s1 + $0x20] ss:$0 sps:$4 sm:$0xff]   ;;  %8558 = vrot.lane.b32.xlu0 %v19969_v29, %s10144_s14  ;;  %v12609_v51 = vpop.permute.xlu1 %8283  ;;  %s10145_s1 = smov 64  }
 0x1d5   :  { %19958 = vst [vmem:[#allocation37_spill] sm:$0xff] %v12580_v10  ;;  %v12588_v59 = vsel %vm2249_vm2, %v19961_v26, %v7610_v14  ;;  %19966 = vst [vmem:[#allocation51_spill] sm:$0xff] %v12601_v25  ;;  %v12605_v14 = vsel %vm2249_vm2, %v19967_v58, %v7621_v6  ;;  %v19971_v41 = vld [vmem:[#allocation161_spill] sm:$0xff]  ;;  %v19973_v63 = vld [vmem:[#allocation218_spill] sm:$0xff]  ;;  %7456 = vmatprep.subr.msk.bf16.mxu0 %vm2934_vm4, %v10031_v7  ;;  %v2936_v3 = vsel %vm2934_vm4, %v10031_v7, 0 }
 0x1d6   :  { %19962 = vst [vmem:[#allocation44_spill] sm:$0xff] %v12588_v59  ;;  %19968 = vst [vmem:[#allocation48_spill] sm:$0xff] %v12605_v14  ;;  %v12613_v31 = vsel %vm2249_vm2, %v19971_v41, %v7620_v44  ;;  %v7636_v26 = vunpack.i.h.bf16 %v19973_v63  ;;  %v7635_v27 = vunpack.i.l.bf16 %v19973_v63  ;;  %v19974_v6 = vld [vmem:[#allocation219_spill] sm:$0xff]  ;;  %v19975_v29 = vld [vmem:[#allocation220_spill] sm:$0xff]  ;;  %v8582_v44 = vpack.i.bf16 %v1854_v30, %v1852_v13  ;;  %7317 = vmatpush3.bf16.msra.mxu0 %v2936_v3 }
 0x1d7   :  { %19970 = vst [vmem:[#allocation231_spill] sm:$0xff] %v12609_v51  ;;  %19972 = vst [vmem:[#allocation55_spill] sm:$0xff] %v12613_v31  ;;  %v7631_v34 = vunpack.i.h.bf16 %v19974_v6  ;;  %v7630_v58 = vunpack.i.l.bf16 %v19974_v6  ;;  %v7646_v56 = vunpack.i.h.bf16 %v19975_v29  ;;  %v12622_v51 = vpop.permute.xlu0 %8278  ;;  %v19977_v14 = vld [vmem:[#allocation168_spill] sm:$0xff]  ;;  %v7645_v41 = vunpack.i.l.bf16 %v19975_v29  ;;  %v19978_v63 = vld [vmem:[#allocation221_spill] sm:$0xff] }
 0x1d8   :  { %19976 = vst [vmem:[#allocation200_spill] sm:$0xff] %v12622_v51  ;;  %8573 = vrot.lane.b32.xlu1 %v19977_v14, %s10144_s14  ;;  %v7641_v31 = vunpack.i.h.bf16 %v19978_v63  ;;  %v7640_v25 = vunpack.i.l.bf16 %v19978_v63  ;;  %v19979_v7 = vld [vmem:[#allocation222_spill] sm:$0xff]  ;;  %v19980_v6 = vld [vmem:[#allocation223_spill] sm:$0xff]  ;;  %v12635_v14 = vpop.permute.xlu1 %8293  ;;  %v12639_v13 = vsel %vm2314_vm3, %v12241_v60, %v7635_v27  ;;  %v12643_v30 = vsel %vm2314_vm3, %v12232_v36, %v7636_v26  ;;  %v19983_v3 = vld [vmem:[#allocation224_spill] sm:$0xff] }
 0x1d9   :  { %v7656_v39 = vunpack.i.h.bf16 %v19979_v7  ;;  %v7655_v10 = vunpack.i.l.bf16 %v19979_v7  ;;  %v7651_v59 = vunpack.i.h.bf16 %v19980_v6  ;;  %v7650_v22 = vunpack.i.l.bf16 %v19980_v6  ;;  %v19981_v51 = vld [vmem:[#allocation171_spill] sm:$0xff]  ;;  %19982 = vst [vmem:[#allocation201_spill] sm:$0xff] %v12635_v14  ;;  %v19993_v6 = vld [vmem:[#allocation17_spill] sm:$0xff] }
 0x1da   :  { %8568 = vrot.lane.b32.xlu0 %v19981_v51, %s10144_s14  ;;  %v7666_v29 = vunpack.i.h.bf16 %v19983_v3  ;;  %v7665_v63 = vunpack.i.l.bf16 %v19983_v3  ;;  %v12649_v7 = vsel %vm2314_vm3, %v12219_v49, %v7630_v58  ;;  %v12653_v51 = vsel %vm2314_vm3, %v12215_v2, %v7631_v34 }
 0x1db   :  { %v12657_v60 = vsel %vm2314_vm3, %v12223_v52, %v7646_v56  ;;  %v12659_v27 = vpop.permute.xlu0 %8288  ;;  %v12664_v36 = vsel %vm2314_vm3, %v12228_v54, %v7645_v41  ;;  %v12668_v49 = vsel %vm2314_vm3, %v12190_v11, %v7641_v31  ;;  %v12672_v2 = vsel %vm2314_vm3, %v12205_v15, %v7640_v25  ;;  %v19985_v31 = vld [vmem:[#allocation247_spill] sm:$0xff]  ;;  %v19989_v25 = vld [vmem:[#allocation22_spill] sm:$0xff] }
 0x1dc   :  { %19984 = vst [vmem:[#allocation54_spill] sm:$0xff] %v12659_v27  ;;  %8583 = vrot.lane.b32.xlu1 %v8582_v44, %s10144_s14  ;;  %v12676_v52 = vsel %vm2314_vm3, %v12248_v35, %v7656_v39  ;;  %v12680_v56 = vsel %vm2314_vm3, %v12252_v1, %v7655_v10  ;;  %v12684_v54 = vsel %vm2314_vm3, %v12268_v5, %v7650_v22  ;;  %v12692_v15 = vpop.permute.xlu1 %8303  ;;  %v19987_v10 = vld [vmem:[#allocation225_spill] sm:$0xff]  ;;  %v19988_v39 = vld [vmem:[#allocation11_spill] sm:$0xff]  ;;  %v7670_v26 = vunpack.i.l.bf16 %v19989_v25  ;;  %v20036_v27 = vld [vmem:[#allocation324_spill] sm:$0xff] }
 0x1dd   :  { %v12688_v11 = vsel %vm2314_vm3, %v12261_v45, %v7651_v59  ;;  %19986 = vst [vmem:[#allocation202_spill] sm:$0xff] %v12692_v15  ;;  %v12696_v35 = vsel %vm2314_vm3, %v12278_v62, %v7666_v29  ;;  %v12700_v1 = vsel %vm2314_vm3, %v12285_v8, %v7665_v63  ;;  %v7661_v5 = vunpack.i.h.bf16 %v19987_v10  ;;  %v19991_v62 = vld [vmem:[#allocation173_spill] sm:$0xff]  ;;  %v19992_v8 = vld [vmem:[#allocation32_spill] sm:$0xff]  ;;  %v19994_v63 = vld [vmem:[#allocation42_spill] sm:$0xff] }
 0x1de   :  { %8578 = vrot.lane.b32.xlu0 %v19985_v31, %s10144_s14  ;;  %v7660_v22 = vunpack.i.l.bf16 %v19987_v10  ;;  %v7676_v45 = vunpack.i.h.bf16 %v19988_v39  ;;  %v7675_v59 = vunpack.i.l.bf16 %v19988_v39  ;;  %v7671_v58 = vunpack.i.h.bf16 %v19989_v25  ;;  %v19995_v39 = vld [vmem:[#allocation174_spill] sm:$0xff] }
 0x1df   :  { %v12707_v34 = vpop.permute.xlu0 %8298  ;;  %v7686_v44 = vunpack.i.h.bf16 %v19992_v8  ;;  %v7685_v41 = vunpack.i.l.bf16 %v19992_v8  ;;  %v7680_v3 = vunpack.i.l.bf16 %v19993_v6  ;;  %v7681_v29 = vunpack.i.h.bf16 %v19993_v6  ;;  %v19997_v8 = vld [vmem:[#allocation27_spill] sm:$0xff] }
 0x1e0   :  { %19990 = vst [vmem:[#allocation103_spill] sm:$0xff] %v12707_v34  ;;  %8593 = vrot.lane.b32.xlu1 %v19991_v62, %s10145_s1  ;;  %v7696_v31 = vunpack.i.h.bf16 %v19994_v63  ;;  %v7695_v10 = vunpack.i.l.bf16 %v19994_v63  ;;  %v12720_v15 = vpop.permute.xlu1 %8313  ;;  %v12724_v25 = vsel %vm2314_vm3, %v12299_v57, %v7660_v22  ;;  %v12728_v62 = vsel %vm2314_vm3, %v12295_v50, %v7661_v5  ;;  %v19999_v50 = vld [vmem:[#allocation175_spill] sm:$0xff] }
 0x1e1   :  { %19996 = vst [vmem:[#allocation61_spill] sm:$0xff] %v12720_v15  ;;  %v7691_v34 = vunpack.i.h.bf16 %v19997_v8  ;;  %v7690_v6 = vunpack.i.l.bf16 %v19997_v8  ;;  %v12734_v63 = vsel %vm2314_vm3, %v12303_v28, %v7676_v45  ;;  %v12742_v57 = vsel %vm2314_vm3, %v12320_v33, %v7670_v26  ;;  %v20002_v26 = vld [vmem:[#allocation52_spill] sm:$0xff]  ;;  %v20007_v8 = vld [vmem:[#allocation226_spill] sm:$0xff] }
 0x1e2   :  { %8588 = vrot.lane.b32.xlu0 %v19995_v39, %s10145_s1  ;;  %v12738_v39 = vsel %vm2314_vm3, %v12308_v42, %v7675_v59  ;;  %v12750_v5 = vsel %vm2314_vm3, %v12312_v55, %v7671_v58  ;;  %v12754_v28 = vsel %vm2314_vm3, %v12324_v0, %v7686_v44  ;;  %v12758_v42 = vsel %vm2314_vm3, %v12328_v32, %v7685_v41  ;;  %v20000_v59 = vld [vmem:[#allocation176_spill] sm:$0xff]  ;;  %v20003_v44 = vld [vmem:[#allocation38_spill] sm:$0xff] }
 0x1e3   :  { %v12744_v22 = vpop.permute.xlu0 %8308  ;;  %v12762_v33 = vsel %vm2314_vm3, %v12337_v48, %v7680_v3  ;;  %v12766_v45 = vsel %vm2314_vm3, %v12333_v23, %v7681_v29  ;;  %v12770_v55 = vsel %vm2314_vm3, %v12346_v61, %v7696_v31  ;;  %v12774_v0 = vsel %vm2314_vm3, %v12353_v43, %v7695_v10  ;;  %v20004_v3 = vld [vmem:[#allocation47_spill] sm:$0xff]  ;;  %v20006_v10 = vld [vmem:[#allocation177_spill] sm:$0xff]  ;;  %v20010_v15 = vld [vmem:[#allocation178_spill] sm:$0xff] }
 0x1e4   :  { %19998 = vst [vmem:[#allocation203_spill] sm:$0xff] %v12744_v22  ;;  %8603 = vrot.lane.b32.xlu1 %v19999_v50, %s10145_s1  ;;  %v12778_v32 = vpop.permute.xlu1 %8323  ;;  %v12782_v48 = vsel %vm2314_vm3, %v12370_v21, %v7690_v6  ;;  %v12786_v23 = vsel %vm2314_vm3, %v12363_v4, %v7691_v34  ;;  %v7706_v61 = vunpack.i.h.bf16 %v20002_v26  ;;  %v7705_v58 = vunpack.i.l.bf16 %v20002_v26  ;;  %v20008_v6 = vld [vmem:[#allocation229_spill] sm:$0xff]  ;;  %v20009_v26 = vld [vmem:[#allocation230_spill] sm:$0xff] }
 0x1e5   :  { %20001 = vst [vmem:[#allocation57_spill] sm:$0xff] %v12778_v32  ;;  %v7701_v43 = vunpack.i.h.bf16 %v20003_v44  ;;  %v7700_v41 = vunpack.i.l.bf16 %v20003_v44  ;;  %v7716_v29 = vunpack.i.h.bf16 %v20004_v3  ;;  %v7715_v21 = vunpack.i.l.bf16 %v20004_v3 }
 0x1e6   :  { %8598 = vrot.lane.b32.xlu0 %v20000_v59, %s10145_s1  ;;  %v7711_v4 = vunpack.i.h.bf16 %v20007_v8  ;;  %v7710_v34 = vunpack.i.l.bf16 %v20007_v8  ;;  %v7726_v50 = vunpack.i.h.bf16 %v20008_v6  ;;  %v7725_v59 = vunpack.i.l.bf16 %v20008_v6  ;;  %v20012_v8 = vld [vmem:[#allocation232_spill] sm:$0xff] }
 0x1e7   :  { %v12793_v31 = vpop.permute.xlu0 %8318  ;;  %v7721_v32 = vunpack.i.h.bf16 %v20009_v26  ;;  %v7720_v44 = vunpack.i.l.bf16 %v20009_v26  ;;  %v12810_v3 = vsel %vm2314_vm3, %v12380_v46, %v7706_v61  ;;  %v7736_v22 = vunpack.i.h.bf16 %v20012_v8 }
 0x1e8   :  { %20005 = vst [vmem:[#allocation204_spill] sm:$0xff] %v12793_v31  ;;  %8613 = vrot.lane.b32.xlu1 %v20006_v10, %s10145_s1  ;;  %v12806_v31 = vpop.permute.xlu1 %8333  ;;  %v12814_v10 = vsel %vm2314_vm3, %v12384_v53, %v7705_v58  ;;  %v7735_v6 = vunpack.i.l.bf16 %v20012_v8  ;;  %v12820_v26 = vsel %vm2314_vm3, %v12393_v24, %v7700_v41  ;;  %v12828_v46 = vsel %vm2314_vm3, %v12397_v20, %v7716_v29  ;;  %v20014_v58 = vld [vmem:[#allocation6_spill] sm:$0xff]  ;;  %v20017_v41 = vld [vmem:[#allocation69_spill] sm:$0xff]  ;;  %v20025_v8 = vld [vmem:[#allocation75_spill] sm:$0xff] }
 0x1e9   :  { %20011 = vst [vmem:[#allocation108_spill] sm:$0xff] %v12806_v31  ;;  %v12836_v53 = vsel %vm2314_vm3, %v12406_v17, %v7715_v21  ;;  %v12840_v24 = vsel %vm2314_vm3, %v12414_v19, %v7710_v34  ;;  %v12852_v29 = vsel %vm2314_vm3, %v20017_v41, %v7725_v59  ;;  %v20021_v21 = vld [vmem:[#allocation191_spill] sm:$0xff]  ;;  %v20023_v34 = vld [vmem:[#allocation180_spill] sm:$0xff] }
 0x1ea   :  { %8608 = vrot.lane.b32.xlu0 %v20010_v15, %s10145_s1  ;;  %v12824_v15 = vsel %vm2314_vm3, %v12388_v16, %v7701_v43  ;;  %v12844_v16 = vsel %vm2314_vm3, %v20014_v58, %v7711_v4  ;;  %v20015_v43 = vld [vmem:[#allocation13_spill] sm:$0xff]  ;;  %20018 = vst [vmem:[#allocation73_spill] sm:$0xff] %v12852_v29  ;;  %v12860_v19 = vsel %vm2314_vm3, %v20021_v21, %v7721_v32  ;;  %v20027_v58 = vld [vmem:[#allocation19_spill] sm:$0xff] }
 0x1eb   :  { %v12830_v61 = vpop.permute.xlu0 %8328  ;;  %v12848_v20 = vsel %vm2314_vm3, %v20015_v43, %v7726_v50  ;;  %20022 = vst [vmem:[#allocation70_spill] sm:$0xff] %v12860_v19  ;;  %v12868_v50 = vsel %vm2314_vm3, %v20025_v8, %v7736_v22  ;;  %v12872_v59 = vsel %vm2314_vm3, %v20027_v58, %v7735_v6  ;;  %v20029_v43 = vld [vmem:[#allocation233_spill] sm:$0xff]  ;;  %v20031_v31 = vld [vmem:[#allocation235_spill] sm:$0xff]  ;;  %v20035_v58 = vld [vmem:[#allocation294_spill] sm:$0xff] }
 0x1ec   :  { %20013 = vst [vmem:[#allocation67_spill] sm:$0xff] %v12830_v61  ;;  %8623 = vrot.lane.b32.xlu1 %v19730_v12, %s10145_s1  ;;  %20016 = vst [vmem:[#allocation65_spill] sm:$0xff] %v12848_v20  ;;  %v20019_v12 = vld [vmem:[#allocation16_spill] sm:$0xff]  ;;  %v12864_v4 = vpop.permute.xlu1 %8343  ;;  %v7730_v41 = vunpack.i.l.bf16 %v20029_v43  ;;  %v7740_v22 = vunpack.i.l.bf16 %v20031_v31  ;;  %v20034_v8 = vld [vmem:[#allocation293_spill] sm:$0xff]  ;;  %v2048_v14 = vrot.slane %v20035_v58, 2 }
 0x1ed   :  { %v12856_v17 = vsel %vm2314_vm3, %v20019_v12, %v7720_v44  ;;  %20024 = vst [vmem:[#allocation78_spill] sm:$0xff] %v12864_v4  ;;  %20026 = vst [vmem:[#allocation114_spill] sm:$0xff] %v12868_v50  ;;  %v7731_v44 = vunpack.i.h.bf16 %v20029_v43  ;;  %v20030_v12 = vld [vmem:[#allocation234_spill] sm:$0xff]  ;;  %v20033_v4 = vld [vmem:[#allocation181_spill] sm:$0xff]  ;;  %v2047_v6 = vrot.slane %v20034_v8, 2  ;;  %v20037_v50 = vunpack.c.l.bf16 %v20036_v27 }
 0x1ee   :  { %20020 = vst [vmem:[#allocation205_spill] sm:$0xff] %v12856_v17  ;;  %8618 = vrot.lane.b32.xlu0 %v20023_v34, %s10145_s1  ;;  %20028 = vst [vmem:[#allocation77_spill] sm:$0xff] %v12872_v59  ;;  %v7746_v32 = vunpack.i.h.bf16 %v20030_v12  ;;  %v7745_v21 = vunpack.i.l.bf16 %v20030_v12  ;;  %v7741_v34 = vunpack.i.h.bf16 %v20031_v31  ;;  %v20038_v59 = vld [vmem:[#allocation93_spill] sm:$0xff]  ;;  %v20039_v17 = vld [vmem:[#allocation236_spill] sm:$0xff]  ;;  %v12897_v31 = vsel %vm2314_vm3, %v12481_v47, %v7730_v41 }
 0x1ef   :  { %v12879_v61 = vpop.permute.xlu0 %8338  ;;  %v2050_v43 = vrot.slane %v20037_v50, 2  ;;  %v7756_v19 = vunpack.i.h.bf16 %v20038_v59  ;;  %v7755_v12 = vunpack.i.l.bf16 %v20038_v59  ;;  %v7750_v20 = vunpack.i.l.bf16 %v20039_v17  ;;  %20042 = vst [vmem:[#allocation206_spill] sm:$0xff] %v12897_v31  ;;  %v20043_v8 = vld [vmem:[#allocation237_spill] sm:$0xff]  ;;  %v20044_v58 = vld [vmem:[#allocation18_spill] sm:$0xff]  ;;  %v20049_v31 = vld [vmem:[#allocation195_spill] sm:$0xff] }
 0x1f0   :  { %20032 = vst [vmem:[#allocation85_spill] sm:$0xff] %v12879_v61  ;;  %8633 = vrot.lane.b32.xlu1 %v20033_v4, %s10145_s1  ;;  %v20040_v61 = vld [vmem:[#allocation62_spill] sm:$0xff]  ;;  %v12893_v29 = vpop.permute.xlu1 %8353  ;;  %v7751_v4 = vunpack.i.h.bf16 %v20039_v17  ;;  %v7766_v27 = vunpack.i.h.bf16 %v20043_v8  ;;  %v7765_v50 = vunpack.i.l.bf16 %v20043_v8  ;;  %v12904_v59 = vsel %vm2314_vm3, %v12477_v38, %v7731_v44 }
 0x1f1   :  { %20041 = vst [vmem:[#allocation81_spill] sm:$0xff] %v12893_v29  ;;  %v12912_v29 = vsel %vm2314_vm3, %v20044_v58, %v7745_v21  ;;  %v20046_v17 = vld [vmem:[#allocation74_spill] sm:$0xff]  ;;  %v12924_v38 = vsel %vm2314_vm3, %v20049_v31, %v7741_v34  ;;  %v2051_v44 = vsel %vm692_vm1, %v2048_v14, %v2050_v43  ;;  %v20053_v58 = vld [vmem:[#allocation25_spill] sm:$0xff] }
 0x1f2   :  { %8628 = vrot.lane.b32.xlu0 %v20040_v61, %s10145_s1  ;;  %v12908_v61 = vsel %vm2314_vm3, %v12485_v40, %v7746_v32  ;;  %v20047_v41 = vld [vmem:[#allocation26_spill] sm:$0xff]  ;;  %20050 = vst [vmem:[#allocation120_spill] sm:$0xff] %v12924_v38  ;;  %v2049_v40 = vsel %vm692_vm1, %v2047_v6, %v2048_v14  ;;  %v20051_v32 = vld [vmem:[#allocation196_spill] sm:$0xff]  ;;  %v20059_v6 = vld [vmem:[#allocation197_spill] sm:$0xff] }
 0x1f3   :  { %v12914_v47 = vpop.permute.xlu0 %8348  ;;  %v12920_v8 = vsel %vm2314_vm3, %v20047_v41, %v7740_v22  ;;  %v12930_v21 = vsel %vm2314_vm3, %v20051_v32, %v7756_v19  ;;  %v20057_v41 = vld [vmem:[#allocation182_spill] sm:$0xff]  ;;  %v12946_v14 = vsel %vm2314_vm3, %v20059_v6, %v7751_v4  ;;  %v20061_v43 = vld [vmem:[#allocation29_spill] sm:$0xff]  ;;  %v20068_v4 = vld [vmem:[#allocation79_spill] sm:$0xff]  ;;  %v8662_v6 = vpack.i.bf16 %v2051_v44, %v2049_v40 }
 0x1f4   :  { %20045 = vst [vmem:[#allocation91_spill] sm:$0xff] %v12914_v47  ;;  %8643 = vrot.lane.b32.xlu1 %v20046_v17, %s10145_s1  ;;  %20048 = vst [vmem:[#allocation89_spill] sm:$0xff] %v12920_v8  ;;  %v12934_v47 = vsel %vm2314_vm3, %v20053_v58, %v7755_v12  ;;  %v20055_v17 = vld [vmem:[#allocation87_spill] sm:$0xff]  ;;  %v12942_v34 = vpop.permute.xlu1 %8363  ;;  %v12950_v19 = vsel %vm2314_vm3, %v20061_v43, %v7766_v27  ;;  %v20063_v31 = vld [vmem:[#allocation198_spill] sm:$0xff] }
 0x1f5   :  { %20052 = vst [vmem:[#allocation95_spill] sm:$0xff] %v12930_v21  ;;  %20054 = vst [vmem:[#allocation207_spill] sm:$0xff] %v12934_v47  ;;  %v12938_v22 = vsel %vm2314_vm3, %v20055_v17, %v7750_v20  ;;  %v12954_v12 = vsel %vm2314_vm3, %v20063_v31, %v7765_v50  ;;  %v20065_v32 = vld [vmem:[#allocation238_spill] sm:$0xff]  ;;  %v20066_v17 = vld [vmem:[#allocation239_spill] sm:$0xff] }
 0x1f6   :  { %20056 = vst [vmem:[#allocation208_spill] sm:$0xff] %v12938_v22  ;;  %8638 = vrot.lane.b32.xlu0 %v20057_v41, %s10145_s1  ;;  %20058 = vst [vmem:[#allocation94_spill] sm:$0xff] %v12942_v34  ;;  %v7760_v20 = vunpack.i.l.bf16 %v20065_v32  ;;  %v7761_v58 = vunpack.i.h.bf16 %v20065_v32  ;;  %v7776_v41 = vunpack.i.h.bf16 %v20066_v17  ;;  %v7775_v34 = vunpack.i.l.bf16 %v20066_v17  ;;  %v20069_v27 = vld [vmem:[#allocation240_spill] sm:$0xff]  ;;  %v20070_v50 = vld [vmem:[#allocation241_spill] sm:$0xff] }
 0x1f7   :  { %20060 = vst [vmem:[#allocation209_spill] sm:$0xff] %v12946_v14  ;;  %20062 = vst [vmem:[#allocation127_spill] sm:$0xff] %v12950_v19  ;;  %v12960_v22 = vpop.permute.xlu0 %8358  ;;  %v7771_v43 = vunpack.i.h.bf16 %v20069_v27  ;;  %v7770_v19 = vunpack.i.l.bf16 %v20069_v27  ;;  %v7786_v31 = vunpack.i.h.bf16 %v20070_v50  ;;  %v20071_v14 = vld [vmem:[#allocation242_spill] sm:$0xff] }
 0x1f8   :  { %20064 = vst [vmem:[#allocation99_spill] sm:$0xff] %v12954_v12  ;;  %20067 = vst [vmem:[#allocation210_spill] sm:$0xff] %v12960_v22  ;;  %8653 = vrot.lane.b32.xlu1 %v20068_v4, %s10145_s1  ;;  %v7785_v12 = vunpack.i.l.bf16 %v20070_v50  ;;  %v7781_v32 = vunpack.i.h.bf16 %v20071_v14  ;;  %v7780_v21 = vunpack.i.l.bf16 %v20071_v14  ;;  %v20072_v47 = vld [vmem:[#allocation138_spill] sm:$0xff]  ;;  %v12973_v38 = vpop.permute.xlu1 %8373  ;;  %v12977_v40 = vsel %vm2314_vm3, %v12567_v9, %v7760_v20  ;;  %v20075_v4 = vld [vmem:[#allocation243_spill] sm:$0xff] }
 0x1f9   :  { %v7795_v17 = vunpack.i.l.bf16 %v20072_v47  ;;  %v20073_v22 = vld [vmem:[#allocation86_spill] sm:$0xff]  ;;  %20074 = vst [vmem:[#allocation98_spill] sm:$0xff] %v12973_v38  ;;  %v7796_v44 = vunpack.i.h.bf16 %v20072_v47  ;;  %v7791_v27 = vunpack.i.h.bf16 %v20075_v4  ;;  %v7790_v50 = vunpack.i.l.bf16 %v20075_v4  ;;  %v20078_v47 = vld [vmem:[#allocation44_spill] sm:$0xff]  ;;  %v20079_v4 = vld [vmem:[#allocation37_spill] sm:$0xff] }
 0x1fa   :  { %8648 = vrot.lane.b32.xlu0 %v20073_v22, %s10145_s1  ;;  %v12984_v14 = vsel %vm2314_vm3, %v12563_v37, %v7761_v58  ;;  %v12988_v8 = vsel %vm2314_vm3, %v12571_v18, %v7776_v41  ;;  %v20076_v22 = vld [vmem:[#allocation41_spill] sm:$0xff]  ;;  %v12999_v20 = vsel %vm2314_vm3, %v20078_v47, %v7770_v19  ;;  %v13003_v37 = vsel %vm2314_vm3, %v20079_v4, %v7771_v43  ;;  %v20080_v58 = vld [vmem:[#allocation199_spill] sm:$0xff]  ;;  %v20087_v47 = vld [vmem:[#allocation262_spill] sm:$0xff] }
 0x1fb   :  { %v12992_v38 = vsel %vm2314_vm3, %v20076_v22, %v7775_v34  ;;  %v12994_v9 = vpop.permute.xlu0 %8368  ;;  %v13007_v18 = vsel %vm2314_vm3, %v20080_v58, %v7786_v31  ;;  %v20082_v41 = vld [vmem:[#allocation51_spill] sm:$0xff]  ;;  %v13023_v43 = vsel %vm2379_vm5, %v12639_v13, %v7795_v17  ;;  %v20093_v58 = vld [vmem:[#allocation246_spill] sm:$0xff] }
 0x1fc   :  { %20077 = vst [vmem:[#allocation211_spill] sm:$0xff] %v12994_v9  ;;  %8663 = vrot.lane.b32.xlu1 %v8662_v6, %s10145_s1  ;;  %20081 = vst [vmem:[#allocation132_spill] sm:$0xff] %v13007_v18  ;;  %v13011_v34 = vsel %vm2314_vm3, %v20082_v41, %v7785_v12  ;;  %v20084_v22 = vld [vmem:[#allocation55_spill] sm:$0xff]  ;;  %v20085_v6 = vld [vmem:[#allocation48_spill] sm:$0xff]  ;;  %v13027_v31 = vpop.permute.xlu1 %8383  ;;  %v13031_v12 = vsel %vm2379_vm5, %v12643_v30, %v7796_v44  ;;  %v7801_v41 = vunpack.i.h.bf16 %v20093_v58 }
 0x1fd   :  { %20083 = vst [vmem:[#allocation106_spill] sm:$0xff] %v13011_v34  ;;  %v13015_v9 = vsel %vm2314_vm3, %v20084_v22, %v7780_v21  ;;  %v13019_v19 = vsel %vm2314_vm3, %v20085_v6, %v7781_v32  ;;  %20086 = vst [vmem:[#allocation102_spill] sm:$0xff] %v13023_v43  ;;  %v13035_v21 = vsel %vm2379_vm5, %v12649_v7, %v7790_v50  ;;  %v20092_v4 = vld [vmem:[#allocation151_spill] sm:$0xff]  ;;  %v7800_v22 = vunpack.i.l.bf16 %v20093_v58  ;;  %v20095_v30 = vld [vmem:[#allocation92_spill] sm:$0xff] }
 0x1fe   :  { %8658 = vrot.lane.b32.xlu0 %v20087_v47, %s10145_s1  ;;  %20088 = vst [vmem:[#allocation112_spill] sm:$0xff] %v13027_v31  ;;  %20089 = vst [vmem:[#allocation212_spill] sm:$0xff] %v13031_v12  ;;  %v13039_v32 = vsel %vm2379_vm5, %v12653_v51, %v7791_v27  ;;  %v7805_v13 = vunpack.i.l.bf16 %v20092_v4  ;;  %v7806_v17 = vunpack.i.h.bf16 %v20092_v4  ;;  %v20096_v44 = vld [vmem:[#allocation248_spill] sm:$0xff]  ;;  %v20097_v47 = vld [vmem:[#allocation249_spill] sm:$0xff] }
 0x1ff   :  { %20090 = vst [vmem:[#allocation110_spill] sm:$0xff] %v13035_v21  ;;  %20091 = vst [vmem:[#allocation118_spill] sm:$0xff] %v13039_v32  ;;  %v13045_v6 = vpop.permute.xlu0 %8378  ;;  %v7816_v7 = vunpack.i.h.bf16 %v20096_v44  ;;  %v7815_v50 = vunpack.i.l.bf16 %v20096_v44  ;;  %v7811_v51 = vunpack.i.h.bf16 %v20097_v47  ;;  %v7810_v27 = vunpack.i.l.bf16 %v20097_v47  ;;  %v20098_v18 = vld [vmem:[#allocation250_spill] sm:$0xff]  ;;  %v20099_v31 = vld [vmem:[#allocation251_spill] sm:$0xff] }
 0x200   :  { %20094 = vst [vmem:[#allocation115_spill] sm:$0xff] %v13045_v6  ;;  %8673 = vrot.lane.b32.xlu1 %v20095_v30, %s10145_s1  ;;  %v7826_v34 = vunpack.i.h.bf16 %v20098_v18  ;;  %v7825_v4 = vunpack.i.l.bf16 %v20098_v18  ;;  %v7820_v32 = vunpack.i.l.bf16 %v20099_v31  ;;  %v20100_v58 = vld [vmem:[#allocation96_spill] sm:$0xff]  ;;  %v13058_v6 = vpop.permute.xlu1 %8393  ;;  %v13062_v30 = vsel %vm2379_vm5, %v12664_v36, %v7805_v13 }
 0x201   :  { %20101 = vst [vmem:[#allocation123_spill] sm:$0xff] %v13058_v6  ;;  %v7821_v44 = vunpack.i.h.bf16 %v20099_v31  ;;  %v20102_v21 = vld [vmem:[#allocation172_spill] sm:$0xff]  ;;  %v13069_v18 = vsel %vm2379_vm5, %v12657_v60, %v7806_v17  ;;  %v13073_v43 = vsel %vm2379_vm5, %v12672_v2, %v7800_v22  ;;  %v13089_v60 = vsel %vm2379_vm5, %v12676_v52, %v7816_v7  ;;  %v20105_v17 = vld [vmem:[#allocation107_spill] sm:$0xff] }
 0x202   :  { %8668 = vrot.lane.b32.xlu0 %v20100_v58, %s10145_s1  ;;  %v7836_v12 = vunpack.i.h.bf16 %v20102_v21  ;;  %v7835_v47 = vunpack.i.l.bf16 %v20102_v21  ;;  %v13077_v58 = vsel %vm2379_vm5, %v12668_v49, %v7801_v41  ;;  %v20104_v31 = vld [vmem:[#allocation100_spill] sm:$0xff]  ;;  %v13085_v21 = vsel %vm2379_vm5, %v12680_v56, %v7815_v50  ;;  %v20108_v41 = vld [vmem:[#allocation253_spill] sm:$0xff] }
 0x203   :  { %v13079_v36 = vpop.permute.xlu0 %8388  ;;  %v13093_v2 = vsel %vm2379_vm5, %v12684_v54, %v7810_v27  ;;  %v13097_v49 = vsel %vm2379_vm5, %v12688_v11, %v7811_v51  ;;  %v13101_v13 = vsel %vm2379_vm5, %v12700_v1, %v7825_v4  ;;  %v13105_v56 = vsel %vm2379_vm5, %v12696_v35, %v7826_v34  ;;  %v20107_v34 = vld [vmem:[#allocation252_spill] sm:$0xff]  ;;  %v20111_v51 = vld [vmem:[#allocation254_spill] sm:$0xff]  ;;  %v20112_v4 = vld [vmem:[#allocation255_spill] sm:$0xff] }
 0x204   :  { %20103 = vst [vmem:[#allocation122_spill] sm:$0xff] %v13079_v36  ;;  %8683 = vrot.lane.b32.xlu1 %v20104_v31, %s10145_s1  ;;  %v13109_v52 = vsel %vm2379_vm5, %v12724_v25, %v7820_v32  ;;  %v13113_v54 = vpop.permute.xlu1 %8403  ;;  %v13117_v11 = vsel %vm2379_vm5, %v12728_v62, %v7821_v44  ;;  %v13121_v1 = vsel %vm2379_vm5, %v12738_v39, %v7835_v47  ;;  %v7830_v25 = vunpack.i.l.bf16 %v20107_v34  ;;  %v20110_v62 = vld [vmem:[#allocation113_spill] sm:$0xff]  ;;  %v20113_v44 = vld [vmem:[#allocation256_spill] sm:$0xff] }
 0x205   :  { %20106 = vst [vmem:[#allocation130_spill] sm:$0xff] %v13113_v54  ;;  %v13125_v35 = vsel %vm2379_vm5, %v12734_v63, %v7836_v12  ;;  %v7831_v32 = vunpack.i.h.bf16 %v20107_v34  ;;  %v7846_v22 = vunpack.i.h.bf16 %v20108_v41  ;;  %v7845_v7 = vunpack.i.l.bf16 %v20108_v41  ;;  %v20115_v41 = vld [vmem:[#allocation119_spill] sm:$0xff] }
 0x206   :  { %8678 = vrot.lane.b32.xlu0 %v20105_v17, %s10145_s1  ;;  %v7841_v39 = vunpack.i.h.bf16 %v20111_v51  ;;  %v7840_v27 = vunpack.i.l.bf16 %v20111_v51  ;;  %v7856_v63 = vunpack.i.h.bf16 %v20112_v4  ;;  %v7855_v12 = vunpack.i.l.bf16 %v20112_v4  ;;  %v20114_v17 = vld [vmem:[#allocation257_spill] sm:$0xff] }
 0x207   :  { %v13131_v50 = vpop.permute.xlu0 %8398  ;;  %v7851_v47 = vunpack.i.h.bf16 %v20113_v44  ;;  %v7850_v31 = vunpack.i.l.bf16 %v20113_v44  ;;  %v7865_v34 = vunpack.i.l.bf16 %v20114_v17  ;;  %v7866_v51 = vunpack.i.h.bf16 %v20114_v17  ;;  %v20128_v17 = vld [vmem:[#allocation311_spill] sm:$0xff] }
 0x208   :  { %20109 = vst [vmem:[#allocation126_spill] sm:$0xff] %v13131_v50  ;;  %8693 = vrot.lane.b32.xlu1 %v20110_v62, %s10145_s1  ;;  %v13144_v54 = vpop.permute.xlu1 %8413  ;;  %v13148_v62 = vsel %vm2379_vm5, %v12742_v57, %v7830_v25  ;;  %v20117_v50 = vld [vmem:[#allocation258_spill] sm:$0xff]  ;;  %v13155_v44 = vsel %vm2379_vm5, %v12750_v5, %v7831_v32  ;;  %v13159_v36 = vsel %vm2379_vm5, %v12758_v42, %v7845_v7  ;;  %v20119_v25 = vld [vmem:[#allocation131_spill] sm:$0xff] }
 0x209   :  { %20116 = vst [vmem:[#allocation144_spill] sm:$0xff] %v13144_v54  ;;  %v7861_v6 = vunpack.i.h.bf16 %v20117_v50  ;;  %v7860_v4 = vunpack.i.l.bf16 %v20117_v50  ;;  %v13171_v50 = vsel %vm2379_vm5, %v12762_v33, %v7840_v27  ;;  %v13175_v5 = vsel %vm2379_vm5, %v12766_v45, %v7841_v39  ;;  %v20123_v7 = vld [vmem:[#allocation179_spill] sm:$0xff] }
 0x20a   :  { %8688 = vrot.lane.b32.xlu0 %v20115_v41, %s10145_s1  ;;  %v13163_v41 = vsel %vm2379_vm5, %v12754_v28, %v7846_v22  ;;  %v13179_v42 = vsel %vm2379_vm5, %v12774_v0, %v7855_v12  ;;  %v13183_v28 = vsel %vm2379_vm5, %v12770_v55, %v7856_v63  ;;  %v13187_v32 = vsel %vm2379_vm5, %v12782_v48, %v7850_v31  ;;  %v20120_v22 = vld [vmem:[#allocation143_spill] sm:$0xff]  ;;  %v20127_v31 = vld [vmem:[#allocation260_spill] sm:$0xff] }
 0x20b   :  { %v13165_v57 = vpop.permute.xlu0 %8408  ;;  %v13191_v33 = vsel %vm2379_vm5, %v12786_v23, %v7851_v47  ;;  %v13195_v45 = vsel %vm2379_vm5, %v12814_v10, %v7865_v34  ;;  %v13203_v55 = vsel %vm2379_vm5, %v12810_v3, %v7866_v51  ;;  %v13207_v48 = vsel %vm2379_vm5, %v12820_v26, %v7860_v4  ;;  %v20124_v27 = vld [vmem:[#allocation259_spill] sm:$0xff]  ;;  %v20126_v3 = vld [vmem:[#allocation148_spill] sm:$0xff] }
 0x20c   :  { %20118 = vst [vmem:[#allocation136_spill] sm:$0xff] %v13165_v57  ;;  %8703 = vrot.lane.b32.xlu1 %v20119_v25, %s10145_s1  ;;  %v13199_v0 = vpop.permute.xlu1 %8423  ;;  %v13211_v23 = vsel %vm2379_vm5, %v12824_v15, %v7861_v6  ;;  %v7876_v10 = vunpack.i.h.bf16 %v20123_v7  ;;  %v7875_v39 = vunpack.i.l.bf16 %v20123_v7  ;;  %v7871_v63 = vunpack.i.h.bf16 %v20124_v27  ;;  %v20129_v51 = vld [vmem:[#allocation312_spill] sm:$0xff]  ;;  %v20130_v6 = vld [vmem:[#allocation194_spill] sm:$0xff]  ;;  %v20132_v7 = vld [vmem:[#allocation261_spill] sm:$0xff] }
 0x20d   :  { %20121 = vst [vmem:[#allocation213_spill] sm:$0xff] %v13199_v0  ;;  %20122 = vst [vmem:[#allocation214_spill] sm:$0xff] %v13211_v23  ;;  %v7870_v12 = vunpack.i.l.bf16 %v20124_v27  ;;  %v7885_v26 = vunpack.i.l.bf16 %v20127_v31  ;;  %v2052_v34 = vrot.slane %v20128_v17, 2  ;;  %v2053_v15 = vrot.slane %v20129_v51, 2  ;;  %v20136_v23 = vld [vmem:[#allocation264_spill] sm:$0xff] }
 0x20e   :  { %8698 = vrot.lane.b32.xlu0 %v20120_v22, %s10145_s1  ;;  %v20131_v4 = vunpack.c.l.bf16 %v20130_v6  ;;  %v7886_v22 = vunpack.i.h.bf16 %v20127_v31  ;;  %v7881_v0 = vunpack.i.h.bf16 %v20132_v7  ;;  %v7880_v27 = vunpack.i.l.bf16 %v20132_v7 }
 0x20f   :  { %v13217_v47 = vpop.permute.xlu0 %8418  ;;  %v7891_v51 = vunpack.i.h.bf16 %v20136_v23  ;;  %v7890_v6 = vunpack.i.l.bf16 %v20136_v23  ;;  %v13239_v31 = vsel %vm2379_vm5, %v12836_v53, %v7875_v39  ;;  %v13255_v23 = vsel %vm2379_vm5, %v12844_v16, %v7871_v63  ;;  %v20142_v39 = vld [vmem:[#allocation65_spill] sm:$0xff] }
 0x210   :  { %20125 = vst [vmem:[#allocation215_spill] sm:$0xff] %v13217_v47  ;;  %8713 = vrot.lane.b32.xlu1 %v20126_v3, %s10145_s1  ;;  %v2055_v25 = vrot.slane %v20131_v4, 2  ;;  %v20133_v47 = vld [vmem:[#allocation185_spill] sm:$0xff]  ;;  %v13231_v54 = vpop.permute.xlu1 %8433  ;;  %v20135_v3 = vld [vmem:[#allocation263_spill] sm:$0xff]  ;;  %v13243_v4 = vsel %vm2379_vm5, %v12828_v46, %v7876_v10  ;;  %20139 = vst [vmem:[#allocation217_spill] sm:$0xff] %v13255_v23  ;;  %v2054_v46 = vsel %vm692_vm1, %v2052_v34, %v2053_v15 }
 0x211   :  { %20134 = vst [vmem:[#allocation216_spill] sm:$0xff] %v13231_v54  ;;  %v7896_v57 = vunpack.i.h.bf16 %v20135_v3  ;;  %v7895_v17 = vunpack.i.l.bf16 %v20135_v3  ;;  %v20138_v3 = vld [vmem:[#allocation187_spill] sm:$0xff]  ;;  %v20140_v54 = vld [vmem:[#allocation73_spill] sm:$0xff] }
 0x212   :  { %8708 = vrot.lane.b32.xlu0 %v20133_v47, %s10145_s1  ;;  %v13247_v47 = vsel %vm2379_vm5, %v12840_v24, %v7870_v12  ;;  %v13259_v53 = vsel %vm2379_vm5, %v20140_v54, %v7885_v26  ;;  %v2056_v10 = vsel %vm692_vm1, %v2053_v15, %v2055_v25  ;;  %v13265_v24 = vsel %vm2379_vm5, %v20142_v39, %v7886_v22  ;;  %v20144_v12 = vld [vmem:[#allocation205_spill] sm:$0xff]  ;;  %v20152_v15 = vld [vmem:[#allocation114_spill] sm:$0xff] }
 0x213   :  { %v13249_v7 = vpop.permute.xlu0 %8428  ;;  %20141 = vst [vmem:[#allocation155_spill] sm:$0xff] %v13259_v53  ;;  %20143 = vst [vmem:[#allocation142_spill] sm:$0xff] %v13265_v24  ;;  %v20148_v63 = vld [vmem:[#allocation189_spill] sm:$0xff]  ;;  %v13285_v25 = vsel %vm2379_vm5, %v20152_v15, %v7896_v57  ;;  %v20154_v22 = vld [vmem:[#allocation206_spill] sm:$0xff]  ;;  %v8742_v57 = vpack.i.bf16 %v2056_v10, %v2054_v46 }
 0x214   :  { %20137 = vst [vmem:[#allocation134_spill] sm:$0xff] %v13249_v7  ;;  %8723 = vrot.lane.b32.xlu1 %v20138_v3, %s10145_s1  ;;  %v13269_v7 = vsel %vm2379_vm5, %v20144_v12, %v7880_v27  ;;  %v20146_v3 = vld [vmem:[#allocation70_spill] sm:$0xff]  ;;  %v13277_v54 = vpop.permute.xlu1 %8443  ;;  %v20150_v26 = vld [vmem:[#allocation77_spill] sm:$0xff]  ;;  %20153 = vst [vmem:[#allocation160_spill] sm:$0xff] %v13285_v25  ;;  %v13289_v27 = vsel %vm2379_vm5, %v20154_v22, %v7890_v6 }
 0x215   :  { %20145 = vst [vmem:[#allocation139_spill] sm:$0xff] %v13269_v7  ;;  %v13273_v16 = vsel %vm2379_vm5, %v20146_v3, %v7881_v0  ;;  %20149 = vst [vmem:[#allocation146_spill] sm:$0xff] %v13277_v54  ;;  %v13281_v34 = vsel %vm2379_vm5, %v20150_v26, %v7895_v17  ;;  %v13293_v0 = vsel %vm2379_vm5, %v12904_v59, %v7891_v51  ;;  %v20157_v39 = vld [vmem:[#allocation265_spill] sm:$0xff]  ;;  %v20160_v26 = vld [vmem:[#allocation190_spill] sm:$0xff] }
 0x216   :  { %20147 = vst [vmem:[#allocation147_spill] sm:$0xff] %v13273_v16  ;;  %8718 = vrot.lane.b32.xlu0 %v20148_v63, %s10145_s1  ;;  %20151 = vst [vmem:[#allocation154_spill] sm:$0xff] %v13281_v34  ;;  %v7906_v12 = vunpack.i.h.bf16 %v20157_v39  ;;  %v7905_v3 = vunpack.i.l.bf16 %v20157_v39  ;;  %v20158_v63 = vld [vmem:[#allocation266_spill] sm:$0xff]  ;;  %v20161_v6 = vld [vmem:[#allocation68_spill] sm:$0xff] }
 0x217   :  { %20155 = vst [vmem:[#allocation150_spill] sm:$0xff] %v13289_v27  ;;  %20156 = vst [vmem:[#allocation159_spill] sm:$0xff] %v13293_v0  ;;  %v7900_v54 = vunpack.i.l.bf16 %v20158_v63  ;;  %v13298_v17 = vpop.permute.xlu0 %8438  ;;  %v7901_v15 = vunpack.i.h.bf16 %v20158_v63  ;;  %v7916_v22 = vunpack.i.h.bf16 %v20161_v6  ;;  %v7915_v27 = vunpack.i.l.bf16 %v20161_v6  ;;  %v20162_v59 = vld [vmem:[#allocation267_spill] sm:$0xff]  ;;  %v20163_v39 = vld [vmem:[#allocation268_spill] sm:$0xff] }
 0x218   :  { %20159 = vst [vmem:[#allocation157_spill] sm:$0xff] %v13298_v17  ;;  %8733 = vrot.lane.b32.xlu1 %v20160_v26, %s10145_s1  ;;  %v7911_v51 = vunpack.i.h.bf16 %v20162_v59  ;;  %v7910_v0 = vunpack.i.l.bf16 %v20162_v59  ;;  %v7926_v25 = vunpack.i.h.bf16 %v20163_v39  ;;  %v7925_v34 = vunpack.i.l.bf16 %v20163_v39  ;;  %v20164_v17 = vld [vmem:[#allocation192_spill] sm:$0xff]  ;;  %v13311_v26 = vpop.permute.xlu1 %8453  ;;  %v20166_v46 = vld [vmem:[#allocation269_spill] sm:$0xff]  ;;  %v20167_v16 = vld [vmem:[#allocation270_spill] sm:$0xff] }
 0x219   :  { %20165 = vst [vmem:[#allocation164_spill] sm:$0xff] %v13311_v26  ;;  %v7921_v10 = vunpack.i.h.bf16 %v20166_v46  ;;  %v7920_v63 = vunpack.i.l.bf16 %v20166_v46  ;;  %v7936_v6 = vunpack.i.h.bf16 %v20167_v16  ;;  %v7935_v7 = vunpack.i.l.bf16 %v20167_v16  ;;  %v20168_v24 = vld [vmem:[#allocation89_spill] sm:$0xff]  ;;  %v20170_v26 = vld [vmem:[#allocation271_spill] sm:$0xff]  ;;  %v20172_v46 = vld [vmem:[#allocation120_spill] sm:$0xff] }
 0x21a   :  { %8728 = vrot.lane.b32.xlu0 %v20164_v17, %s10145_s1  ;;  %v13319_v59 = vsel %vm2379_vm5, %v12912_v29, %v7905_v3  ;;  %v13323_v39 = vsel %vm2379_vm5, %v12908_v61, %v7906_v12  ;;  %v13327_v17 = vsel %vm2379_vm5, %v20168_v24, %v7900_v54  ;;  %v7930_v53 = vunpack.i.l.bf16 %v20170_v26  ;;  %v20173_v29 = vld [vmem:[#allocation207_spill] sm:$0xff]  ;;  %v20175_v54 = vld [vmem:[#allocation208_spill] sm:$0xff] }
 0x21b   :  { %20169 = vst [vmem:[#allocation165_spill] sm:$0xff] %v13327_v17  ;;  %v13330_v23 = vpop.permute.xlu0 %8448  ;;  %v13335_v16 = vsel %vm2379_vm5, %v20172_v46, %v7901_v15  ;;  %v13339_v3 = vsel %vm2379_vm5, %v20173_v29, %v7915_v27  ;;  %v20174_v61 = vld [vmem:[#allocation95_spill] sm:$0xff]  ;;  %v7931_v24 = vunpack.i.h.bf16 %v20170_v26  ;;  %v13348_v17 = vsel %vm2379_vm5, %v20175_v54, %v7910_v0 }
 0x21c   :  { %20171 = vst [vmem:[#allocation161_spill] sm:$0xff] %v13330_v23  ;;  %8743 = vrot.lane.b32.xlu1 %v8742_v57, %s10145_s1  ;;  %v13343_v12 = vsel %vm2379_vm5, %v20174_v61, %v7916_v22  ;;  %v20176_v23 = vld [vmem:[#allocation209_spill] sm:$0xff]  ;;  %v20177_v15 = vld [vmem:[#allocation99_spill] sm:$0xff]  ;;  %v20179_v22 = vld [vmem:[#allocation278_spill] sm:$0xff]  ;;  %v13364_v26 = vpop.permute.xlu1 %8463  ;;  %v13368_v0 = vsel %vm2379_vm5, %v12977_v40, %v7920_v63 }
 0x21d   :  { %v13352_v57 = vsel %vm2379_vm5, %v20176_v23, %v7911_v51  ;;  %v13356_v46 = vsel %vm2379_vm5, %v20177_v15, %v7925_v34  ;;  %v20178_v27 = vld [vmem:[#allocation127_spill] sm:$0xff]  ;;  %20180 = vst [vmem:[#allocation218_spill] sm:$0xff] %v13364_v26  ;;  %v13372_v23 = vsel %vm2379_vm5, %v12984_v14, %v7921_v10  ;;  %v13376_v34 = vsel %vm2379_vm5, %v12992_v38, %v7935_v7  ;;  %v20185_v61 = vld [vmem:[#allocation273_spill] sm:$0xff]  ;;  %v20186_v63 = vld [vmem:[#allocation274_spill] sm:$0xff] }
 0x21e   :  { %v13360_v29 = vsel %vm2379_vm5, %v20178_v27, %v7926_v25  ;;  %8738 = vrot.lane.b32.xlu0 %v20179_v22, %s10145_s1  ;;  %20181 = vst [vmem:[#allocation219_spill] sm:$0xff] %v13372_v23  ;;  %20182 = vst [vmem:[#allocation220_spill] sm:$0xff] %v13376_v34  ;;  %v13380_v25 = vsel %vm2379_vm5, %v12988_v8, %v7936_v6  ;;  %v13384_v51 = vsel %vm2379_vm5, %v12999_v20, %v7930_v53  ;;  %v20189_v8 = vld [vmem:[#allocation275_spill] sm:$0xff]  ;;  %v20190_v20 = vld [vmem:[#allocation276_spill] sm:$0xff] }
 0x21f   :  { %20183 = vst [vmem:[#allocation168_spill] sm:$0xff] %v13380_v25  ;;  %20184 = vst [vmem:[#allocation221_spill] sm:$0xff] %v13384_v51  ;;  %v7941_v54 = vunpack.i.h.bf16 %v20185_v61  ;;  %v7940_v40 = vunpack.i.l.bf16 %v20185_v61  ;;  %v7955_v15 = vunpack.i.l.bf16 %v20186_v63  ;;  %v13389_v14 = vpop.permute.xlu0 %8458  ;;  %v13393_v38 = vsel %vm2379_vm5, %v13003_v37, %v7931_v24  ;;  %v20191_v22 = vld [vmem:[#allocation277_spill] sm:$0xff]  ;;  %v20194_v24 = vld [vmem:[#allocation279_spill] sm:$0xff] }
 0x220   :  { %20187 = vst [vmem:[#allocation222_spill] sm:$0xff] %v13389_v14  ;;  %20188 = vst [vmem:[#allocation223_spill] sm:$0xff] %v13393_v38  ;;  %v7956_v7 = vunpack.i.h.bf16 %v20186_v63  ;;  %v7951_v10 = vunpack.i.h.bf16 %v20189_v8  ;;  %v7950_v6 = vunpack.i.l.bf16 %v20189_v8  ;;  %v7966_v53 = vunpack.i.h.bf16 %v20190_v20  ;;  %v13402_v51 = vpop.permute.xlu1 %8473  ;;  %v20195_v34 = vld [vmem:[#allocation102_spill] sm:$0xff]  ;;  %v20198_v37 = vld [vmem:[#allocation212_spill] sm:$0xff] }
 0x221   :  { %v7965_v27 = vunpack.i.l.bf16 %v20190_v20  ;;  %v7961_v61 = vunpack.i.h.bf16 %v20191_v22  ;;  %v7960_v26 = vunpack.i.l.bf16 %v20191_v22  ;;  %20192 = vst [vmem:[#allocation171_spill] sm:$0xff] %v13402_v51  ;;  %v7976_v63 = vunpack.i.h.bf16 %v20194_v24  ;;  %v20196_v51 = vld [vmem:[#allocation280_spill] sm:$0xff] }
 0x222   :  { %v7975_v38 = vunpack.i.l.bf16 %v20194_v24  ;;  %v13410_v8 = vsel %vm2379_vm5, %v13015_v9, %v7940_v40  ;;  %v13414_v20 = vsel %vm2379_vm5, %v13019_v19, %v7941_v54  ;;  %v13418_v22 = vsel %vm2444_vm6, %v20195_v34, %v7955_v15  ;;  %v20199_v24 = vld [vmem:[#allocation110_spill] sm:$0xff] }
 0x223   :  { %v7970_v25 = vunpack.i.l.bf16 %v20196_v51  ;;  %v13421_v23 = vpop.permute.xlu0 %8468  ;;  %v13425_v14 = vsel %vm2444_vm6, %v20198_v37, %v7956_v7  ;;  %v13429_v9 = vsel %vm2444_vm6, %v20199_v24, %v7950_v6  ;;  %v20200_v40 = vld [vmem:[#allocation118_spill] sm:$0xff]  ;;  %v7971_v54 = vunpack.i.h.bf16 %v20196_v51  ;;  %v20206_v37 = vld [vmem:[#allocation283_spill] sm:$0xff] }
 0x224   :  { %20197 = vst [vmem:[#allocation224_spill] sm:$0xff] %v13421_v23  ;;  %v13433_v19 = vsel %vm2444_vm6, %v20200_v40, %v7951_v10  ;;  %v13438_v34 = vsel %vm2444_vm6, %v13062_v30, %v7965_v27  ;;  %v13442_v15 = vsel %vm2444_vm6, %v13069_v18, %v7966_v53  ;;  %v13446_v7 = vsel %vm2444_vm6, %v13073_v43, %v7960_v26  ;;  %v13452_v10 = vpop.permute.xlu1 %8483  ;;  %v20203_v18 = vld [vmem:[#allocation281_spill] sm:$0xff]  ;;  %v20210_v23 = vld [vmem:[#allocation286_spill] sm:$0xff] }
 0x225   :  { %v13450_v6 = vsel %vm2444_vm6, %v13077_v58, %v7961_v61  ;;  %20201 = vst [vmem:[#allocation247_spill] sm:$0xff] %v13452_v10  ;;  %v13456_v51 = vsel %vm2444_vm6, %v13085_v21, %v7975_v38  ;;  %v13460_v30 = vsel %vm2444_vm6, %v13089_v60, %v7976_v63  ;;  %v7986_v53 = vunpack.i.h.bf16 %v20203_v18  ;;  %v20205_v58 = vld [vmem:[#allocation282_spill] sm:$0xff]  ;;  %v20208_v63 = vld [vmem:[#allocation284_spill] sm:$0xff] }
 0x226   :  { %20202 = vst [vmem:[#allocation225_spill] sm:$0xff] %v13460_v30  ;;  %v7985_v27 = vunpack.i.l.bf16 %v20203_v18  ;;  %v13466_v43 = vsel %vm2444_vm6, %v13093_v2, %v7970_v25  ;;  %v7981_v26 = vunpack.i.h.bf16 %v20205_v58  ;;  %v7980_v61 = vunpack.i.l.bf16 %v20205_v58  ;;  %v20209_v2 = vld [vmem:[#allocation285_spill] sm:$0xff] }
 0x227   :  { %20204 = vst [vmem:[#allocation11_spill] sm:$0xff] %v13466_v43  ;;  %v7995_v24 = vunpack.i.l.bf16 %v20206_v37  ;;  %v13471_v21 = vpop.permute.xlu0 %8478  ;;  %v13475_v60 = vsel %vm2444_vm6, %v13097_v49, %v7971_v54  ;;  %v7996_v38 = vunpack.i.h.bf16 %v20206_v37  ;;  %v7991_v40 = vunpack.i.h.bf16 %v20208_v63  ;;  %v20212_v37 = vld [vmem:[#allocation287_spill] sm:$0xff] }
 0x228   :  { %20207 = vst [vmem:[#allocation22_spill] sm:$0xff] %v13471_v21  ;;  %v7990_v18 = vunpack.i.l.bf16 %v20208_v63  ;;  %v8006_v25 = vunpack.i.h.bf16 %v20209_v2  ;;  %v8005_v10 = vunpack.i.l.bf16 %v20209_v2  ;;  %v8001_v58 = vunpack.i.h.bf16 %v20210_v23  ;;  %v13484_v30 = vpop.permute.xlu1 %8493 }
 0x229   :  { %v8000_v43 = vunpack.i.l.bf16 %v20210_v23  ;;  %20211 = vst [vmem:[#allocation173_spill] sm:$0xff] %v13484_v30  ;;  %v13488_v49 = vsel %vm2444_vm6, %v13101_v13, %v7985_v27  ;;  %v13492_v54 = vsel %vm2444_vm6, %v13105_v56, %v7986_v53  ;;  %v8016_v63 = vunpack.i.h.bf16 %v20212_v37  ;;  %v20213_v27 = vld [vmem:[#allocation288_spill] sm:$0xff] }
 0x22a   :  { %v8015_v21 = vunpack.i.l.bf16 %v20212_v37  ;;  %v13498_v2 = vsel %vm2444_vm6, %v13109_v52, %v7980_v61  ;;  %v13502_v23 = vsel %vm2444_vm6, %v13117_v11, %v7981_v26  ;;  %v13506_v13 = vsel %vm2444_vm6, %v13121_v1, %v7995_v24 }
 0x22b   :  { %v8010_v30 = vunpack.i.l.bf16 %v20213_v27  ;;  %v13509_v56 = vpop.permute.xlu0 %8488  ;;  %v13513_v53 = vsel %vm2444_vm6, %v13125_v35, %v7996_v38  ;;  %v13517_v52 = vsel %vm2444_vm6, %v13148_v62, %v7990_v18  ;;  %v13521_v11 = vsel %vm2444_vm6, %v13155_v44, %v7991_v40  ;;  %v20218_v18 = vld [vmem:[#allocation291_spill] sm:$0xff] }
 0x22c   :  { %20214 = vst [vmem:[#allocation32_spill] sm:$0xff] %v13509_v56  ;;  %v8011_v26 = vunpack.i.h.bf16 %v20213_v27  ;;  %v13526_v1 = vsel %vm2444_vm6, %v13159_v36, %v8005_v10  ;;  %v13530_v61 = vsel %vm2444_vm6, %v13163_v41, %v8006_v25  ;;  %v13534_v35 = vsel %vm2444_vm6, %v13171_v50, %v8000_v43  ;;  %v13540_v44 = vpop.permute.xlu1 %8503  ;;  %v20216_v41 = vld [vmem:[#allocation289_spill] sm:$0xff] }
 0x22d   :  { %v13538_v62 = vsel %vm2444_vm6, %v13175_v5, %v8001_v58  ;;  %20215 = vst [vmem:[#allocation17_spill] sm:$0xff] %v13540_v44  ;;  %v13544_v24 = vsel %vm2444_vm6, %v13179_v42, %v8015_v21  ;;  %v13548_v36 = vsel %vm2444_vm6, %v13183_v28, %v8016_v63  ;;  %v8026_v10 = vunpack.i.h.bf16 %v20216_v41  ;;  %v20217_v5 = vld [vmem:[#allocation290_spill] sm:$0xff]  ;;  %v20221_v58 = vld [vmem:[#allocation292_spill] sm:$0xff] }
 0x22e   :  { %v8025_v38 = vunpack.i.l.bf16 %v20216_v41  ;;  %v13554_v50 = vsel %vm2444_vm6, %v13187_v32, %v8010_v30  ;;  %v8021_v43 = vunpack.i.h.bf16 %v20217_v5  ;;  %v8020_v40 = vunpack.i.l.bf16 %v20217_v5  ;;  %v20222_v32 = vld [vmem:[#allocation295_spill] sm:$0xff]  ;;  %v20223_v41 = vld [vmem:[#allocation296_spill] sm:$0xff] }
 0x22f   :  { %v8035_v25 = vunpack.i.l.bf16 %v20218_v18  ;;  %v13559_v42 = vpop.permute.xlu0 %8498  ;;  %v13563_v28 = vsel %vm2444_vm6, %v13191_v33, %v8011_v26  ;;  %v8036_v21 = vunpack.i.h.bf16 %v20218_v18  ;;  %v8031_v37 = vunpack.i.h.bf16 %v20221_v58  ;;  %v20225_v18 = vld [vmem:[#allocation297_spill] sm:$0xff] }
 0x230   :  { %20219 = vst [vmem:[#allocation42_spill] sm:$0xff] %v13559_v42  ;;  %20220 = vst [vmem:[#allocation174_spill] sm:$0xff] %v13563_v28  ;;  %v8030_v63 = vunpack.i.l.bf16 %v20221_v58  ;;  %v8046_v30 = vunpack.i.h.bf16 %v20222_v32  ;;  %v8045_v27 = vunpack.i.l.bf16 %v20222_v32  ;;  %v8041_v5 = vunpack.i.h.bf16 %v20223_v41  ;;  %v13572_v56 = vpop.permute.xlu1 %8513  ;;  %v20226_v28 = vld [vmem:[#allocation214_spill] sm:$0xff] }
 0x231   :  { %v8040_v44 = vunpack.i.l.bf16 %v20223_v41  ;;  %20224 = vst [vmem:[#allocation27_spill] sm:$0xff] %v13572_v56  ;;  %v13576_v33 = vsel %vm2444_vm6, %v13195_v45, %v8025_v38  ;;  %v13580_v26 = vsel %vm2444_vm6, %v13203_v55, %v8026_v10  ;;  %v8056_v58 = vunpack.i.h.bf16 %v20225_v18  ;;  %v20227_v38 = vld [vmem:[#allocation298_spill] sm:$0xff] }
 0x232   :  { %v8055_v42 = vunpack.i.l.bf16 %v20225_v18  ;;  %v13586_v32 = vsel %vm2444_vm6, %v13207_v48, %v8020_v40  ;;  %v13590_v41 = vsel %vm2444_vm6, %v20226_v28, %v8021_v43  ;;  %v13594_v45 = vsel %vm2444_vm6, %v13239_v31, %v8035_v25  ;;  %v20230_v40 = vld [vmem:[#allocation217_spill] sm:$0xff]  ;;  %v20232_v31 = vld [vmem:[#allocation155_spill] sm:$0xff]  ;;  %v20234_v18 = vld [vmem:[#allocation142_spill] sm:$0xff] }
 0x233   :  { %v8050_v56 = vunpack.i.l.bf16 %v20227_v38  ;;  %v13597_v55 = vpop.permute.xlu0 %8508  ;;  %v13601_v10 = vsel %vm2444_vm6, %v13243_v4, %v8036_v21  ;;  %v13605_v48 = vsel %vm2444_vm6, %v13247_v47, %v8030_v63  ;;  %v13609_v43 = vsel %vm2444_vm6, %v20230_v40, %v8031_v37  ;;  %v20236_v4 = vld [vmem:[#allocation139_spill] sm:$0xff]  ;;  %v20241_v40 = vld [vmem:[#allocation154_spill] sm:$0xff] }
 0x234   :  { %20228 = vst [vmem:[#allocation175_spill] sm:$0xff] %v13597_v55  ;;  %20229 = vst [vmem:[#allocation176_spill] sm:$0xff] %v13605_v48  ;;  %v8051_v28 = vunpack.i.h.bf16 %v20227_v38  ;;  %v13614_v25 = vsel %vm2444_vm6, %v20232_v31, %v8045_v27  ;;  %v13618_v55 = vsel %vm2444_vm6, %v20234_v18, %v8046_v30  ;;  %v13622_v21 = vsel %vm2444_vm6, %v20236_v4, %v8040_v44  ;;  %v20238_v47 = vld [vmem:[#allocation147_spill] sm:$0xff]  ;;  %v13628_v37 = vpop.permute.xlu1 %8523  ;;  %v20243_v27 = vld [vmem:[#allocation160_spill] sm:$0xff] }
 0x235   :  { %20231 = vst [vmem:[#allocation52_spill] sm:$0xff] %v13609_v43  ;;  %20233 = vst [vmem:[#allocation38_spill] sm:$0xff] %v13614_v25  ;;  %v13626_v63 = vsel %vm2444_vm6, %v20238_v47, %v8041_v5  ;;  %v13632_v38 = vsel %vm2444_vm6, %v20241_v40, %v8055_v42  ;;  %v13636_v31 = vsel %vm2444_vm6, %v20243_v27, %v8056_v58  ;;  %v20245_v30 = vld [vmem:[#allocation299_spill] sm:$0xff]  ;;  %v20246_v44 = vld [vmem:[#allocation150_spill] sm:$0xff] }
 0x236   :  { %20235 = vst [vmem:[#allocation47_spill] sm:$0xff] %v13618_v55  ;;  %20237 = vst [vmem:[#allocation177_spill] sm:$0xff] %v13622_v21  ;;  %v8066_v18 = vunpack.i.h.bf16 %v20245_v30  ;;  %v8065_v55 = vunpack.i.l.bf16 %v20245_v30  ;;  %v13642_v4 = vsel %vm2444_vm6, %v20246_v44, %v8050_v56  ;;  %v20248_v5 = vld [vmem:[#allocation300_spill] sm:$0xff]  ;;  %v20251_v40 = vld [vmem:[#allocation159_spill] sm:$0xff] }
 0x237   :  { %20239 = vst [vmem:[#allocation226_spill] sm:$0xff] %v13626_v63  ;;  %20240 = vst [vmem:[#allocation229_spill] sm:$0xff] %v13628_v37  ;;  %v8061_v47 = vunpack.i.h.bf16 %v20248_v5  ;;  %v8060_v37 = vunpack.i.l.bf16 %v20248_v5  ;;  %v20249_v63 = vld [vmem:[#allocation301_spill] sm:$0xff]  ;;  %v13647_v42 = vpop.permute.xlu0 %8518  ;;  %v13651_v58 = vsel %vm2444_vm6, %v20251_v40, %v8051_v28  ;;  %v20254_v56 = vld [vmem:[#allocation303_spill] sm:$0xff] }
 0x238   :  { %20242 = vst [vmem:[#allocation230_spill] sm:$0xff] %v13632_v38  ;;  %20244 = vst [vmem:[#allocation178_spill] sm:$0xff] %v13636_v31  ;;  %v8075_v21 = vunpack.i.l.bf16 %v20249_v63  ;;  %v8076_v27 = vunpack.i.h.bf16 %v20249_v63  ;;  %v20253_v31 = vld [vmem:[#allocation302_spill] sm:$0xff]  ;;  %v8086_v44 = vunpack.i.h.bf16 %v20254_v56  ;;  %v20255_v5 = vld [vmem:[#allocation304_spill] sm:$0xff]  ;;  %v13664_v28 = vsel %vm2444_vm6, %v13319_v59, %v8065_v55 }
 0x239   :  { %20247 = vst [vmem:[#allocation232_spill] sm:$0xff] %v13642_v4  ;;  %20250 = vst [vmem:[#allocation6_spill] sm:$0xff] %v13647_v42  ;;  %v8071_v30 = vunpack.i.h.bf16 %v20253_v31  ;;  %v8070_v38 = vunpack.i.l.bf16 %v20253_v31  ;;  %v8085_v4 = vunpack.i.l.bf16 %v20254_v56  ;;  %v8081_v25 = vunpack.i.h.bf16 %v20255_v5  ;;  %v13660_v42 = vpop.permute.xlu1 %8533  ;;  %v20257_v31 = vld [vmem:[#allocation305_spill] sm:$0xff]  ;;  %v20260_v55 = vld [vmem:[#allocation306_spill] sm:$0xff] }
 0x23a   :  { %20252 = vst [vmem:[#allocation13_spill] sm:$0xff] %v13651_v58  ;;  %v8080_v43 = vunpack.i.l.bf16 %v20255_v5  ;;  %20256 = vst [vmem:[#allocation69_spill] sm:$0xff] %v13660_v42  ;;  %v13668_v63 = vsel %vm2444_vm6, %v13323_v39, %v8066_v18  ;;  %v8096_v40 = vunpack.i.h.bf16 %v20257_v31  ;;  %v8095_v58 = vunpack.i.l.bf16 %v20257_v31  ;;  %v20258_v48 = vld [vmem:[#allocation165_spill] sm:$0xff] }
 0x23b   :  { %v13674_v56 = vsel %vm2444_vm6, %v20258_v48, %v8060_v37  ;;  %v13678_v5 = vsel %vm2444_vm6, %v13335_v16, %v8061_v47  ;;  %v13682_v59 = vsel %vm2444_vm6, %v13339_v3, %v8075_v21  ;;  %v8090_v42 = vunpack.i.l.bf16 %v20260_v55  ;;  %v13685_v39 = vpop.permute.xlu0 %8528  ;;  %v20270_v47 = vld [vmem:[#allocation220_spill] sm:$0xff] }
 0x23c   :  { %20259 = vst [vmem:[#allocation16_spill] sm:$0xff] %v13682_v59  ;;  %v13689_v18 = vsel %vm2444_vm6, %v13343_v12, %v8076_v27  ;;  %v13693_v48 = vsel %vm2444_vm6, %v13348_v17, %v8070_v38  ;;  %v13697_v16 = vsel %vm2444_vm6, %v13352_v57, %v8071_v30  ;;  %v8091_v37 = vunpack.i.h.bf16 %v20260_v55  ;;  %v20267_v17 = vld [vmem:[#allocation219_spill] sm:$0xff] }
 0x23d   :  { %20261 = vst [vmem:[#allocation191_spill] sm:$0xff] %v13689_v18  ;;  %20262 = vst [vmem:[#allocation180_spill] sm:$0xff] %v13693_v48  ;;  %v13702_v3 = vsel %vm2444_vm6, %v13356_v46, %v8085_v4  ;;  %v13706_v21 = vsel %vm2444_vm6, %v13360_v29, %v8086_v44  ;;  %v13710_v12 = vsel %vm2444_vm6, %v13368_v0, %v8080_v43  ;;  %v13716_v57 = vpop.permute.xlu1 %8543  ;;  %v20272_v46 = vld [vmem:[#allocation168_spill] sm:$0xff]  ;;  %v20275_v0 = vld [vmem:[#allocation221_spill] sm:$0xff] }
 0x23e   :  { %20263 = vst [vmem:[#allocation75_spill] sm:$0xff] %v13697_v16  ;;  %20264 = vst [vmem:[#allocation19_spill] sm:$0xff] %v13702_v3  ;;  %v13714_v38 = vsel %vm2444_vm6, %v20267_v17, %v8081_v25  ;;  %v13720_v27 = vsel %vm2444_vm6, %v20270_v47, %v8095_v58  ;;  %v13724_v4 = vsel %vm2444_vm6, %v20272_v46, %v8096_v40  ;;  %v20274_v29 = vld [vmem:[#allocation308_spill] sm:$0xff]  ;;  %v20277_v25 = vld [vmem:[#allocation309_spill] sm:$0xff] }
 0x23f   :  { %20265 = vst [vmem:[#allocation233_spill] sm:$0xff] %v13706_v21  ;;  %20266 = vst [vmem:[#allocation234_spill] sm:$0xff] %v13710_v12  ;;  %v8101_v30 = vunpack.i.h.bf16 %v20274_v29  ;;  %v8100_v44 = vunpack.i.l.bf16 %v20274_v29  ;;  %v13730_v43 = vsel %vm2444_vm6, %v20275_v0, %v8090_v42  ;;  %v8116_v31 = vunpack.i.h.bf16 %v20277_v25  ;;  %v20278_v17 = vld [vmem:[#allocation310_spill] sm:$0xff]  ;;  %v13735_v58 = vpop.permute.xlu0 %8538  ;;  %v20280_v47 = vld [vmem:[#allocation223_spill] sm:$0xff] }
 0x240   :  { %20268 = vst [vmem:[#allocation235_spill] sm:$0xff] %v13714_v38  ;;  %20269 = vst [vmem:[#allocation181_spill] sm:$0xff] %v13716_v57  ;;  %v8115_v55 = vunpack.i.l.bf16 %v20277_v25  ;;  %v8110_v38 = vunpack.i.l.bf16 %v20278_v17  ;;  %v13739_v40 = vsel %vm2444_vm6, %v20280_v47, %v8091_v37  ;;  %v8111_v29 = vunpack.i.h.bf16 %v20278_v17  ;;  %v20284_v0 = vld [vmem:[#allocation314_spill] sm:$0xff]  ;;  %v20285_v12 = vld [vmem:[#allocation315_spill] sm:$0xff] }
 0x241   :  { %20271 = vst [vmem:[#allocation293_spill] sm:$0xff] %v13720_v27  ;;  %20273 = vst [vmem:[#allocation294_spill] sm:$0xff] %v13724_v4  ;;  %v20283_v27 = vld [vmem:[#allocation313_spill] sm:$0xff]  ;;  %v8120_v25 = vunpack.i.l.bf16 %v20284_v0  ;;  %v8135_v21 = vunpack.i.l.bf16 %v20285_v12  ;;  %v13748_v3 = vpop.permute.xlu1 %8553  ;;  %v13753_v37 = vsel %vm2444_vm6, %v13410_v8, %v8100_v44  ;;  %v13757_v17 = vsel %vm2444_vm6, %v13414_v20, %v8101_v30  ;;  %v20289_v16 = vld [vmem:[#allocation316_spill] sm:$0xff] }
 0x242   :  { %20276 = vst [vmem:[#allocation324_spill] sm:$0xff] %v13730_v43  ;;  %20279 = vst [vmem:[#allocation93_spill] sm:$0xff] %v13735_v58  ;;  %v8125_v57 = vunpack.i.l.bf16 %v20283_v27  ;;  %v8126_v42 = vunpack.i.h.bf16 %v20283_v27  ;;  %v8121_v43 = vunpack.i.h.bf16 %v20284_v0  ;;  %v8136_v27 = vunpack.i.h.bf16 %v20285_v12  ;;  %v20291_v30 = vld [vmem:[#allocation317_spill] sm:$0xff] }
 0x243   :  { %20281 = vst [vmem:[#allocation236_spill] sm:$0xff] %v13739_v40  ;;  %20286 = vst [vmem:[#allocation62_spill] sm:$0xff] %v13748_v3  ;;  %v2512_v47 = vsel %vm2509_vm7, %v13418_v22, %v8115_v55  ;;  %v2513_v0 = vsel %vm2509_vm7, %v13425_v14, %v8116_v31  ;;  %v13766_v4 = vsel %vm2509_vm7, %v13429_v9, %v8110_v38  ;;  %v8130_v46 = vunpack.i.l.bf16 %v20289_v16  ;;  %v13769_v8 = vpop.permute.xlu0 %8548  ;;  %v20294_v31 = vld [vmem:[#allocation318_spill] sm:$0xff]  ;;  %v20301_v40 = vld [vmem:[#allocation323_spill] sm:$0xff] }
 0x244   :  { %20287 = vst [vmem:[#allocation237_spill] sm:$0xff] %v13753_v37  ;;  %20288 = vst [vmem:[#allocation18_spill] sm:$0xff] %v13757_v17  ;;  %v13773_v20 = vsel %vm2509_vm7, %v13433_v19, %v8111_v29  ;;  %v13777_v12 = vsel %vm2509_vm7, %v13438_v34, %v8125_v57  ;;  %v8131_v22 = vunpack.i.h.bf16 %v20289_v16  ;;  %v8145_v14 = vunpack.i.l.bf16 %v20291_v30  ;;  %v20293_v57 = vld [vmem:[#allocation225_spill] sm:$0xff]  ;;  %v20295_v29 = vld [vmem:[#allocation11_spill] sm:$0xff] }
 0x245   :  { %20290 = vst [vmem:[#allocation74_spill] sm:$0xff] %v13769_v8  ;;  %v13783_v9 = vsel %vm2509_vm7, %v13442_v15, %v8126_v42  ;;  %v13787_v38 = vsel %vm2509_vm7, %v13446_v7, %v8120_v25  ;;  %v13791_v19 = vsel %vm2509_vm7, %v13450_v6, %v8121_v43  ;;  %v13795_v34 = vsel %vm2509_vm7, %v13456_v51, %v8135_v21  ;;  %v13797_v16 = vpop.permute.xlu1 %8563  ;;  %v20296_v43 = vld [vmem:[#allocation319_spill] sm:$0xff]  ;;  %v20297_v21 = vld [vmem:[#allocation320_spill] sm:$0xff] }
 0x246   :  { %20292 = vst [vmem:[#allocation26_spill] sm:$0xff] %v13797_v16  ;;  %v13801_v44 = vsel %vm2509_vm7, %v20293_v57, %v8136_v27  ;;  %v8146_v15 = vunpack.i.h.bf16 %v20291_v30  ;;  %v8141_v55 = vunpack.i.h.bf16 %v20294_v31  ;;  %v8140_v7 = vunpack.i.l.bf16 %v20294_v31 }
 0x247   :  { %v13808_v6 = vsel %vm2509_vm7, %v20295_v29, %v8130_v46  ;;  %v8156_v42 = vunpack.i.h.bf16 %v20296_v43  ;;  %v8155_v51 = vunpack.i.l.bf16 %v20296_v43  ;;  %v8150_v25 = vunpack.i.l.bf16 %v20297_v21  ;;  %v13813_v17 = vpop.permute.xlu0 %8558  ;;  %v20299_v46 = vld [vmem:[#allocation321_spill] sm:$0xff]  ;;  %v20300_v43 = vld [vmem:[#allocation322_spill] sm:$0xff] }
 0x248   :  { %20298 = vst [vmem:[#allocation195_spill] sm:$0xff] %v13813_v17  ;;  %v13817_v27 = vsel %vm2509_vm7, %v13475_v60, %v8131_v22  ;;  %v13821_v30 = vsel %vm2509_vm7, %v13488_v49, %v8145_v14  ;;  %v8151_v57 = vunpack.i.h.bf16 %v20297_v21  ;;  %v8165_v31 = vunpack.i.l.bf16 %v20299_v46 }
 0x249   :  { %v8166_v29 = vunpack.i.h.bf16 %v20299_v46  ;;  %v8161_v37 = vunpack.i.h.bf16 %v20300_v43  ;;  %v8160_v16 = vunpack.i.l.bf16 %v20300_v43  ;;  %v8175_v17 = vunpack.i.l.bf16 %v20301_v40  ;;  %v20310_v43 = vld [vmem:[#allocation231_spill] sm:$0xff] }
 0x24a   :  { %v13829_v3 = vpop.permute.xlu1 %8573  ;;  %v13833_v60 = vsel %vm2509_vm7, %v13492_v54, %v8146_v15  ;;  %v13837_v49 = vsel %vm2509_vm7, %v13498_v2, %v8140_v7  ;;  %v13841_v22 = vsel %vm2509_vm7, %v13502_v23, %v8141_v55  ;;  %v8176_v14 = vunpack.i.h.bf16 %v20301_v40  ;;  %v20303_v2 = vld [vmem:[#allocation34_spill] sm:$0xff] }
 0x24b   :  { %20302 = vst [vmem:[#allocation196_spill] sm:$0xff] %v13829_v3  ;;  %v13846_v21 = vsel %vm2509_vm7, %v13506_v13, %v8155_v51  ;;  %v13850_v46 = vsel %vm2509_vm7, %v13513_v53, %v8156_v42  ;;  %v13854_v54 = vsel %vm2509_vm7, %v13517_v52, %v8150_v25  ;;  %v8275_v15 = vunpack.i.l.bf16 %v20303_v2  ;;  %v20305_v53 = vld [vmem:[#allocation46_spill] sm:$0xff] }
 0x24c   :  { %v13857_v7 = vpop.permute.xlu0 %8568  ;;  %v13861_v23 = vsel %vm2509_vm7, %v13521_v11, %v8151_v57  ;;  %v13865_v13 = vsel %vm2509_vm7, %v13526_v1, %v8165_v31  ;;  %v8276_v40 = vunpack.i.h.bf16 %v20303_v2  ;;  %v8270_v55 = vunpack.i.l.bf16 %v20305_v53  ;;  %v20311_v57 = vld [vmem:[#allocation200_spill] sm:$0xff] }
 0x24d   :  { %20304 = vst [vmem:[#allocation25_spill] sm:$0xff] %v13857_v7  ;;  %v13871_v52 = vsel %vm2509_vm7, %v13530_v61, %v8166_v29  ;;  %v13875_v42 = vsel %vm2509_vm7, %v13534_v35, %v8160_v16  ;;  %v13879_v11 = vsel %vm2509_vm7, %v13538_v62, %v8161_v37  ;;  %v13883_v1 = vsel %vm2509_vm7, %v13544_v24, %v8175_v17  ;;  %v20307_v61 = vld [vmem:[#allocation124_spill] sm:$0xff] }
 0x24e   :  { %v13885_v51 = vpop.permute.xlu1 %8583  ;;  %v13889_v25 = vsel %vm2509_vm7, %v13548_v36, %v8176_v14  ;;  %v8170_v31 = vunpack.i.l.bf16 %v20307_v61  ;;  %v8271_v35 = vunpack.i.h.bf16 %v20305_v53  ;;  %v2577_v16 = vsel %vm2574_vm8, %v2512_v47, %v8275_v15  ;;  %v20308_v62 = vld [vmem:[#allocation216_spill] sm:$0xff]  ;;  %v20312_v15 = vld [vmem:[#allocation134_spill] sm:$0xff] }
 0x24f   :  { %20306 = vst [vmem:[#allocation87_spill] sm:$0xff] %v13885_v51  ;;  %v8436_v37 = vunpack.i.h.bf16 %v20308_v62  ;;  %v8435_v29 = vunpack.i.l.bf16 %v20308_v62  ;;  %v2578_v17 = vsel %vm2574_vm8, %v2513_v0, %v8276_v40  ;;  %v8286_v36 = vunpack.i.h.bf16 %v20310_v43 }
 0x250   :  { %v13897_v24 = vpop.permute.xlu0 %8578  ;;  %v8285_v14 = vunpack.i.l.bf16 %v20310_v43  ;;  %v2575_v2 = vsel %vm2574_vm8, %v13766_v4, %v8270_v55  ;;  %v8281_v53 = vunpack.i.h.bf16 %v20311_v57  ;;  %v8280_v47 = vunpack.i.l.bf16 %v20311_v57  ;;  %v20313_v4 = vld [vmem:[#allocation157_spill] sm:$0xff] }
 0x251   :  { %20309 = vst [vmem:[#allocation182_spill] sm:$0xff] %v13897_v24  ;;  %v8431_v51 = vunpack.i.h.bf16 %v20312_v15  ;;  %v8430_v62 = vunpack.i.l.bf16 %v20312_v15  ;;  %v2576_v0 = vsel %vm2574_vm8, %v13773_v20, %v8271_v35  ;;  %v2642_v40 = vsel %vm2639_vm9, %v2577_v16, %v8435_v29 }
 0x252   :  { %v8594_v3 = vpop.permute.xlu1 %8593  ;;  %v2643_v43 = vsel %vm2639_vm9, %v2578_v17, %v8436_v37  ;;  %v8441_v55 = vunpack.i.h.bf16 %v20313_v4  ;;  %v8440_v8 = vunpack.i.l.bf16 %v20313_v4  ;;  %v2580_v20 = vsel %vm2574_vm8, %v13791_v19, %v8281_v53  ;;  %v20314_v37 = vld [vmem:[#allocation54_spill] sm:$0xff] }
 0x253   :  { %v8596_v24 = vunpack.i.h.bf16 %v8594_v3  ;;  %v8595_v7 = vunpack.i.l.bf16 %v8594_v3  ;;  %v2579_v3 = vsel %vm2574_vm8, %v13787_v38, %v8280_v47  ;;  %v2640_v35 = vsel %vm2639_vm9, %v2575_v2, %v8430_v62 }
 0x254   :  { %v8589_v57 = vpop.permute.xlu0 %8588  ;;  %v2641_v16 = vsel %vm2639_vm9, %v2576_v0, %v8431_v51  ;;  %v8291_v29 = vunpack.i.h.bf16 %v20314_v37  ;;  %v2644_v2 = vsel %vm2639_vm9, %v2579_v3, %v8440_v8  ;;  %v2645_v51 = vsel %vm2639_vm9, %v2580_v20, %v8441_v55  ;;  %v20316_v0 = vld [vmem:[#allocation161_spill] sm:$0xff] }
 0x255   :  { %v2707_v58 = vsel %vm2704_vm10, %v2642_v40, %v8595_v7  ;;  %v2708_v15 = vsel %vm2704_vm10, %v2643_v43, %v8596_v24  ;;  %v8591_v48 = vunpack.i.h.bf16 %v8589_v57  ;;  %v8590_v18 = vunpack.i.l.bf16 %v8589_v57  ;;  %v20315_v43 = vld [vmem:[#allocation146_spill] sm:$0xff] }
 0x256   :  { %v8604_v17 = vpop.permute.xlu1 %8603  ;;  %v2770_v24 = vpack.c.bf16 %v2708_v15, %v2707_v58  ;;  %v8290_v40 = vunpack.i.l.bf16 %v20314_v37  ;;  %v8446_v57 = vunpack.i.h.bf16 %v20315_v43  ;;  %v8445_v38 = vunpack.i.l.bf16 %v20315_v43 }
 0x257   :  { %v2705_v4 = vsel %vm2704_vm10, %v2640_v35, %v8590_v18  ;;  %v2706_v7 = vsel %vm2704_vm10, %v2641_v16, %v8591_v48  ;;  %v8451_v59 = vunpack.i.h.bf16 %v20316_v0  ;;  %v8450_v18 = vunpack.i.l.bf16 %v20316_v0 }
 0x258   :  { %v8599_v47 = vpop.permute.xlu0 %8598  ;;  %v2769_v19 = vpack.c.bf16 %v2706_v7, %v2705_v4  ;;  %v8606_v48 = vunpack.i.h.bf16 %v8604_v17  ;;  %v8605_v58 = vunpack.i.l.bf16 %v8604_v17  ;;  %v13935_v15 = vsel %vm2509_vm7, %v13554_v50, %v8170_v31 }
 0x259   :  { %v8601_v53 = vunpack.i.h.bf16 %v8599_v47  ;;  %v8600_v62 = vunpack.i.l.bf16 %v8599_v47  ;;  %v2581_v35 = vsel %vm2574_vm8, %v13777_v12, %v8285_v14  ;;  %v2582_v3 = vsel %vm2574_vm8, %v13783_v9, %v8286_v36 }
 0x25a   :  { %7318 = vmatprep.mubr.msk.bf16.mxu0 %vm2837_vm11, %v2769_v19  ;;  %v2583_v20 = vsel %vm2574_vm8, %v13808_v6, %v8290_v40  ;;  %v2584_v16 = vsel %vm2574_vm8, %v13817_v27, %v8291_v29  ;;  %v2646_v37 = vsel %vm2639_vm9, %v2581_v35, %v8445_v38  ;;  %v2647_v12 = vsel %vm2639_vm9, %v2582_v3, %v8446_v57  ;;  %v20317_v6 = vld [vmem:[#allocation325_spill] sm:$0xff] }
 0x25b   :  { %v2709_v8 = vsel %vm2704_vm10, %v2644_v2, %v8600_v62  ;;  %v2710_v55 = vsel %vm2704_vm10, %v2645_v51, %v8601_v53  ;;  %7319 = vmatmul.mubr.msk.bf16.vlgmr.msra.gmra.mrb[0].mxu0 %vm2837_vm11, %v2770_v24  ;;  %v2648_v4 = vsel %vm2639_vm9, %v2583_v20, %v8450_v18  ;;  %v2649_v7 = vsel %vm2639_vm9, %v2584_v16, %v8451_v59  ;;  %v8614_v24 = vpop.permute.xlu1 %8613  ;;  %v20318_v57 = vld [vmem:[#allocation201_spill] sm:$0xff]  ;;  %v20319_v59 = vld [vmem:[#allocation103_spill] sm:$0xff]  ;;  %v20320_v53 = vld [vmem:[#allocation164_spill] sm:$0xff] }
 0x25c   :  { %v8609_v50 = vpop.permute.xlu0 %8608  ;;  %v2771_v31 = vpack.c.bf16 %v2710_v55, %v2709_v8  ;;  %v2711_v9 = vsel %vm2704_vm10, %v2646_v37, %v8605_v58  ;;  %v2712_v36 = vsel %vm2704_vm10, %v2647_v12, %v8606_v48  ;;  %v8186_v27 = vunpack.i.h.bf16 %v20317_v6  ;;  %v20321_v18 = vld [vmem:[#allocation222_spill] sm:$0xff] }
 0x25d   :  { %v8611_v14 = vunpack.i.h.bf16 %v8609_v50  ;;  %v8610_v17 = vunpack.i.l.bf16 %v8609_v50  ;;  %v8185_v29 = vunpack.i.l.bf16 %v20317_v6  ;;  %v8296_v38 = vunpack.i.h.bf16 %v20318_v57  ;;  %v20323_v16 = vld [vmem:[#allocation174_spill] sm:$0xff] }
 0x25e   :  { %7322 = vmatprep.mubr.msk.bf16.mxu0 %vm2837_vm11, %v2771_v31  ;;  %v8295_v47 = vunpack.i.l.bf16 %v20318_v57  ;;  %v8301_v19 = vunpack.i.h.bf16 %v20319_v59  ;;  %v8300_v2 = vunpack.i.l.bf16 %v20319_v59  ;;  %v8456_v62 = vunpack.i.h.bf16 %v20320_v53  ;;  %v20326_v57 = vld [vmem:[#allocation202_spill] sm:$0xff]  ;;  %v20327_v59 = vld [vmem:[#allocation203_spill] sm:$0xff] }
 0x25f   :  { %v2713_v40 = vsel %vm2704_vm10, %v2648_v4, %v8610_v17  ;;  %v2714_v43 = vsel %vm2704_vm10, %v2649_v7, %v8611_v14  ;;  %v8455_v0 = vunpack.i.l.bf16 %v20320_v53  ;;  %v8461_v48 = vunpack.i.h.bf16 %v20321_v18  ;;  %v20324_v17 = vld [vmem:[#allocation137_spill] sm:$0xff]  ;;  %v20328_v53 = vld [vmem:[#allocation218_spill] sm:$0xff] }
 0x260   :  { %v8619_v51 = vpop.permute.xlu0 %8618  ;;  %v2772_v58 = vpack.c.bf16 %v2712_v36, %v2711_v9  ;;  %v8460_v35 = vunpack.i.l.bf16 %v20321_v18  ;;  %v8616_v8 = vunpack.i.h.bf16 %v8614_v24  ;;  %v8615_v55 = vunpack.i.l.bf16 %v8614_v24  ;;  %v20325_v24 = vld [vmem:[#allocation183_spill] sm:$0xff]  ;;  %v20329_v18 = vld [vmem:[#allocation224_spill] sm:$0xff] }
 0x261   :  { %v2773_v3 = vpack.c.bf16 %v2714_v43, %v2713_v40  ;;  %v20322_v20 = vunpack.i.h.bf16 %v20307_v61  ;;  %v13975_v31 = vsel %vm2509_vm7, %v13576_v33, %v8185_v29  ;;  %v8621_v37 = vunpack.i.h.bf16 %v8619_v51 }
 0x262   :  { %v8620_v12 = vunpack.i.l.bf16 %v8619_v51  ;;  %v13980_v14 = vsel %vm2509_vm7, %v13580_v26, %v8186_v27  ;;  %v8181_v4 = vunpack.i.h.bf16 %v20324_v17  ;;  %v2585_v61 = vsel %vm2574_vm8, %v13795_v34, %v8295_v47 }
 0x263   :  { %v13971_v50 = vsel %vm2509_vm7, %v20323_v16, %v20322_v20  ;;  %7323 = vmatmul.mubr.msk.bf16.gmra.mrb[4].mxu0 %vm2837_vm11, %v2772_v58  ;;  %v2586_v7 = vsel %vm2574_vm8, %v13801_v44, %v8296_v38  ;;  %v2587_v33 = vsel %vm2574_vm8, %v13837_v49, %v8300_v2  ;;  %v2588_v9 = vsel %vm2574_vm8, %v13841_v22, %v8301_v19  ;;  %v8624_v49 = vpop.permute.xlu1 %8623 }
 0x264   :  { %7326 = vmatprep.mubr.msk.bf16.mxu0 %vm2837_vm11, %v2773_v3  ;;  %v2650_v36 = vsel %vm2639_vm9, %v2585_v61, %v8455_v0  ;;  %v2651_v26 = vsel %vm2639_vm9, %v2586_v7, %v8456_v62  ;;  %v2652_v6 = vsel %vm2639_vm9, %v2587_v33, %v8460_v35  ;;  %v2653_v27 = vsel %vm2639_vm9, %v2588_v9, %v8461_v48  ;;  %v8629_v51 = vpop.permute.xlu0 %8628 }
 0x265   :  { %v2715_v34 = vsel %vm2704_vm10, %v2650_v36, %v8615_v55  ;;  %v2716_v44 = vsel %vm2704_vm10, %v2651_v26, %v8616_v8  ;;  %v8180_v29 = vunpack.i.l.bf16 %v20324_v17  ;;  %v8195_v40 = vunpack.i.l.bf16 %v20325_v24  ;;  %v20330_v26 = vld [vmem:[#allocation184_spill] sm:$0xff] }
 0x266   :  { %v2717_v43 = vsel %vm2704_vm10, %v2652_v6, %v8620_v12  ;;  %v2718_v22 = vsel %vm2704_vm10, %v2653_v27, %v8621_v37  ;;  %v8306_v38 = vunpack.i.h.bf16 %v20326_v57  ;;  %v8305_v47 = vunpack.i.l.bf16 %v20326_v57  ;;  %v20333_v57 = vld [vmem:[#allocation171_spill] sm:$0xff] }
 0x267   :  { %v8311_v19 = vunpack.i.h.bf16 %v20327_v59  ;;  %v8310_v2 = vunpack.i.l.bf16 %v20327_v59  ;;  %v8466_v62 = vunpack.i.h.bf16 %v20328_v53  ;;  %v8465_v0 = vunpack.i.l.bf16 %v20328_v53  ;;  %v20334_v59 = vld [vmem:[#allocation22_spill] sm:$0xff] }
 0x268   :  { %v8471_v48 = vunpack.i.h.bf16 %v20329_v18  ;;  %v2774_v58 = vpack.c.bf16 %v2716_v44, %v2715_v34  ;;  %v8470_v35 = vunpack.i.l.bf16 %v20329_v18  ;;  %v8626_v8 = vunpack.i.h.bf16 %v8624_v49  ;;  %v20331_v44 = vld [vmem:[#allocation61_spill] sm:$0xff] }
 0x269   :  { %v8625_v55 = vunpack.i.l.bf16 %v8624_v49  ;;  %v2775_v3 = vpack.c.bf16 %v2718_v22, %v2717_v43  ;;  %v14012_v20 = vsel %vm2509_vm7, %v13586_v32, %v8180_v29  ;;  %v14016_v16 = vsel %vm2509_vm7, %v13590_v41, %v8181_v4  ;;  %v8639_v22 = vpop.permute.xlu0 %8638 }
 0x26a   :  { %v8631_v37 = vunpack.i.h.bf16 %v8629_v51  ;;  %v8630_v12 = vunpack.i.l.bf16 %v8629_v51  ;;  %v8196_v17 = vunpack.i.h.bf16 %v20325_v24  ;;  %v14022_v61 = vsel %vm2509_vm7, %v13594_v45, %v8195_v40  ;;  %v20332_v40 = vld [vmem:[#allocation204_spill] sm:$0xff] }
 0x26b   :  { %7327 = vmatmul.mubr.msk.bf16.gmra.mrb[8].mxu0 %vm2837_vm11, %v2774_v58  ;;  %v2589_v7 = vsel %vm2574_vm8, %v13821_v30, %v8305_v47  ;;  %v2590_v32 = vsel %vm2574_vm8, %v13833_v60, %v8306_v38  ;;  %v2591_v41 = vsel %vm2574_vm8, %v13854_v54, %v8310_v2  ;;  %v2592_v4 = vsel %vm2574_vm8, %v13861_v23, %v8311_v19  ;;  %v8634_v54 = vpop.permute.xlu1 %8633 }
 0x26c   :  { %7330 = vmatprep.mubr.msk.bf16.mxu0 %vm2837_vm11, %v2775_v3  ;;  %v2654_v33 = vsel %vm2639_vm9, %v2589_v7, %v8465_v0  ;;  %v2655_v9 = vsel %vm2639_vm9, %v2590_v32, %v8466_v62  ;;  %v2656_v45 = vsel %vm2639_vm9, %v2591_v41, %v8470_v35  ;;  %v2657_v36 = vsel %vm2639_vm9, %v2592_v4, %v8471_v48  ;;  %v20335_v48 = vld [vmem:[#allocation176_spill] sm:$0xff] }
 0x26d   :  { %v2719_v30 = vsel %vm2704_vm10, %v2654_v33, %v8625_v55  ;;  %v2720_v60 = vsel %vm2704_vm10, %v2655_v9, %v8626_v8  ;;  %v8191_v6 = vunpack.i.h.bf16 %v20330_v26  ;;  %v8190_v27 = vunpack.i.l.bf16 %v20330_v26  ;;  %v20336_v55 = vld [vmem:[#allocation52_spill] sm:$0xff]  ;;  %v20339_v26 = vld [vmem:[#allocation57_spill] sm:$0xff] }
 0x26e   :  { %v2721_v34 = vsel %vm2704_vm10, %v2656_v45, %v8630_v12  ;;  %v2722_v23 = vsel %vm2704_vm10, %v2657_v36, %v8631_v37  ;;  %v8316_v29 = vunpack.i.h.bf16 %v20331_v44  ;;  %v8315_v24 = vunpack.i.l.bf16 %v20331_v44  ;;  %v20337_v37 = vld [vmem:[#allocation58_spill] sm:$0xff]  ;;  %v20338_v36 = vld [vmem:[#allocation3_spill] sm:$0xff]  ;;  %v8649_v44 = vpop.permute.xlu0 %8648 }
 0x26f   :  { %v8321_v49 = vunpack.i.h.bf16 %v20332_v40  ;;  %v8320_v43 = vunpack.i.l.bf16 %v20332_v40  ;;  %v8476_v38 = vunpack.i.h.bf16 %v20333_v57  ;;  %v8475_v47 = vunpack.i.l.bf16 %v20333_v57 }
 0x270   :  { %v8481_v19 = vunpack.i.h.bf16 %v20334_v59  ;;  %v2776_v2 = vpack.c.bf16 %v2720_v60, %v2719_v30  ;;  %v8480_v51 = vunpack.i.l.bf16 %v20334_v59  ;;  %v8636_v53 = vunpack.i.h.bf16 %v8634_v54 }
 0x271   :  { %v8635_v62 = vunpack.i.l.bf16 %v8634_v54  ;;  %v2777_v0 = vpack.c.bf16 %v2722_v23, %v2721_v34  ;;  %v14053_v18 = vsel %vm2509_vm7, %v13601_v10, %v8196_v17  ;;  %v14057_v58 = vsel %vm2509_vm7, %v20335_v48, %v8190_v27  ;;  %v20340_v54 = vld [vmem:[#allocation67_spill] sm:$0xff] }
 0x272   :  { %v8641_v35 = vunpack.i.h.bf16 %v8639_v22  ;;  %v8640_v8 = vunpack.i.l.bf16 %v8639_v22  ;;  %v14062_v3 = vsel %vm2509_vm7, %v20336_v55, %v8191_v6  ;;  %v8206_v12 = vunpack.i.h.bf16 %v20337_v37 }
 0x273   :  { %7331 = vmatmul.mubr.msk.bf16.gmra.mrb[12].mxu0 %vm2837_vm11, %v2776_v2  ;;  %v2593_v7 = vsel %vm2574_vm8, %v13846_v21, %v8315_v24  ;;  %v2594_v10 = vsel %vm2574_vm8, %v13850_v46, %v8316_v29  ;;  %v2595_v17 = vsel %vm2574_vm8, %v13875_v42, %v8320_v43  ;;  %v2596_v32 = vsel %vm2574_vm8, %v13879_v11, %v8321_v49  ;;  %v8644_v42 = vpop.permute.xlu1 %8643  ;;  %v20341_v29 = vld [vmem:[#allocation247_spill] sm:$0xff]  ;;  %v20342_v49 = vld [vmem:[#allocation32_spill] sm:$0xff] }
 0x274   :  { %7334 = vmatprep.mubr.msk.bf16.mxu0 %vm2837_vm11, %v2777_v0  ;;  %v2658_v41 = vsel %vm2639_vm9, %v2593_v7, %v8475_v47  ;;  %v2659_v4 = vsel %vm2639_vm9, %v2594_v10, %v8476_v38  ;;  %v2660_v33 = vsel %vm2639_vm9, %v2595_v17, %v8480_v51  ;;  %v2661_v9 = vsel %vm2639_vm9, %v2596_v32, %v8481_v19  ;;  %v20343_v19 = vld [vmem:[#allocation38_spill] sm:$0xff]  ;;  %v20344_v51 = vld [vmem:[#allocation47_spill] sm:$0xff] }
 0x275   :  { %v2723_v21 = vsel %vm2704_vm10, %v2658_v41, %v8635_v62  ;;  %v2724_v46 = vsel %vm2704_vm10, %v2659_v4, %v8636_v53  ;;  %v8205_v45 = vunpack.i.l.bf16 %v20337_v37  ;;  %v8200_v30 = vunpack.i.l.bf16 %v20338_v36  ;;  %v20346_v4 = vld [vmem:[#allocation186_spill] sm:$0xff] }
 0x276   :  { %v2725_v60 = vsel %vm2704_vm10, %v2660_v33, %v8640_v8  ;;  %v2726_v11 = vsel %vm2704_vm10, %v2661_v9, %v8641_v35  ;;  %v8326_v6 = vunpack.i.h.bf16 %v20339_v26  ;;  %v8325_v27 = vunpack.i.l.bf16 %v20339_v26  ;;  %v20345_v35 = vld [vmem:[#allocation177_spill] sm:$0xff] }
 0x277   :  { %v8331_v34 = vunpack.i.h.bf16 %v20340_v54  ;;  %v8330_v23 = vunpack.i.l.bf16 %v20340_v54  ;;  %v8486_v24 = vunpack.i.h.bf16 %v20341_v29  ;;  %v8485_v40 = vunpack.i.l.bf16 %v20341_v29  ;;  %v20349_v26 = vld [vmem:[#allocation173_spill] sm:$0xff]  ;;  %v20350_v54 = vld [vmem:[#allocation42_spill] sm:$0xff] }
 0x278   :  { %v8491_v43 = vunpack.i.h.bf16 %v20342_v49  ;;  %v2778_v22 = vpack.c.bf16 %v2724_v46, %v2723_v21  ;;  %v8490_v57 = vunpack.i.l.bf16 %v20342_v49  ;;  %v8646_v38 = vunpack.i.h.bf16 %v8644_v42  ;;  %v20347_v46 = vld [vmem:[#allocation108_spill] sm:$0xff]  ;;  %v20351_v49 = vld [vmem:[#allocation226_spill] sm:$0xff] }
 0x279   :  { %v8645_v47 = vunpack.i.l.bf16 %v8644_v42  ;;  %v2779_v59 = vpack.c.bf16 %v2726_v11, %v2725_v60  ;;  %v14094_v2 = vsel %vm2509_vm7, %v20343_v19, %v8205_v45  ;;  %v14098_v53 = vsel %vm2509_vm7, %v20344_v51, %v8206_v12  ;;  %v8659_v11 = vpop.permute.xlu0 %8658  ;;  %v20354_v51 = vld [vmem:[#allocation63_spill] sm:$0xff] }
 0x27a   :  { %v8651_v62 = vunpack.i.h.bf16 %v8649_v44  ;;  %v8650_v0 = vunpack.i.l.bf16 %v8649_v44  ;;  %v8201_v48 = vunpack.i.h.bf16 %v20338_v36  ;;  %v14104_v8 = vsel %vm2509_vm7, %v20345_v35, %v8200_v30  ;;  %v20348_v30 = vld [vmem:[#allocation85_spill] sm:$0xff] }
 0x27b   :  { %7335 = vmatmul.mubr.msk.bf16.gmra.mrb[16].mxu0 %vm2837_vm11, %v2778_v22  ;;  %v2597_v55 = vsel %vm2574_vm8, %v13865_v13, %v8325_v27  ;;  %v2598_v37 = vsel %vm2574_vm8, %v13871_v52, %v8326_v6  ;;  %v2599_v12 = vsel %vm2574_vm8, %v13935_v15, %v8330_v23  ;;  %v2600_v7 = vsel %vm2574_vm8, %v13971_v50, %v8331_v34  ;;  %v8654_v15 = vpop.permute.xlu1 %8653  ;;  %v20352_v22 = vld [vmem:[#allocation230_spill] sm:$0xff] }
 0x27c   :  { %7338 = vmatprep.mubr.msk.bf16.mxu0 %vm2837_vm11, %v2779_v59  ;;  %v2662_v10 = vsel %vm2639_vm9, %v2597_v55, %v8485_v40  ;;  %v2663_v17 = vsel %vm2639_vm9, %v2598_v37, %v8486_v24  ;;  %v2664_v32 = vsel %vm2639_vm9, %v2599_v12, %v8490_v57  ;;  %v2665_v41 = vsel %vm2639_vm9, %v2600_v7, %v8491_v43  ;;  %v20353_v59 = vld [vmem:[#allocation178_spill] sm:$0xff] }
 0x27d   :  { %v2727_v13 = vsel %vm2704_vm10, %v2662_v10, %v8645_v47  ;;  %v2728_v52 = vsel %vm2704_vm10, %v2663_v17, %v8646_v38  ;;  %v8216_v33 = vunpack.i.h.bf16 %v20346_v4  ;;  %v8215_v9 = vunpack.i.l.bf16 %v20346_v4 }
 0x27e   :  { %v2729_v21 = vsel %vm2704_vm10, %v2664_v32, %v8650_v0  ;;  %v2730_v50 = vsel %vm2704_vm10, %v2665_v41, %v8651_v62  ;;  %v8336_v45 = vunpack.i.h.bf16 %v20347_v46  ;;  %v8335_v36 = vunpack.i.l.bf16 %v20347_v46  ;;  %v20355_v32 = vld [vmem:[#allocation5_spill] sm:$0xff] }
 0x27f   :  { %v8341_v42 = vunpack.i.h.bf16 %v20348_v30  ;;  %v8340_v60 = vunpack.i.l.bf16 %v20348_v30  ;;  %v8496_v6 = vunpack.i.h.bf16 %v20349_v26  ;;  %v8495_v27 = vunpack.i.l.bf16 %v20349_v26  ;;  %v20358_v46 = vld [vmem:[#allocation17_spill] sm:$0xff]  ;;  %v20359_v30 = vld [vmem:[#allocation175_spill] sm:$0xff] }
 0x280   :  { %v8501_v34 = vunpack.i.h.bf16 %v20350_v54  ;;  %v2780_v23 = vpack.c.bf16 %v2728_v52, %v2727_v13  ;;  %v8500_v44 = vunpack.i.l.bf16 %v20350_v54  ;;  %v8656_v29 = vunpack.i.h.bf16 %v8654_v15  ;;  %v20356_v52 = vld [vmem:[#allocation78_spill] sm:$0xff]  ;;  %v20360_v54 = vld [vmem:[#allocation232_spill] sm:$0xff] }
 0x281   :  { %v8655_v24 = vunpack.i.l.bf16 %v8654_v15  ;;  %v2781_v40 = vpack.c.bf16 %v2730_v50, %v2729_v21  ;;  %v14135_v43 = vsel %vm2509_vm7, %v20351_v49, %v8201_v48  ;;  %v14139_v57 = vsel %vm2509_vm7, %v20352_v22, %v8215_v9  ;;  %v20357_v9 = vld [vmem:[#allocation91_spill] sm:$0xff]  ;;  %v8669_v50 = vpop.permute.xlu0 %8668 }
 0x282   :  { %v8661_v38 = vunpack.i.h.bf16 %v8659_v11  ;;  %v8660_v47 = vunpack.i.l.bf16 %v8659_v11  ;;  %v14144_v19 = vsel %vm2509_vm7, %v20353_v59, %v8216_v33  ;;  %v8211_v62 = vunpack.i.h.bf16 %v20354_v51 }
 0x283   :  { %7339 = vmatmul.mubr.msk.bf16.gmra.mrb[20].mxu0 %vm2837_vm11, %v2780_v23  ;;  %v2601_v0 = vsel %vm2574_vm8, %v13883_v1, %v8335_v36  ;;  %v2602_v48 = vsel %vm2574_vm8, %v13889_v25, %v8336_v45  ;;  %v2603_v35 = vsel %vm2574_vm8, %v14012_v20, %v8340_v60  ;;  %v2604_v55 = vsel %vm2574_vm8, %v14016_v16, %v8341_v42  ;;  %v8664_v20 = vpop.permute.xlu1 %8663  ;;  %v20361_v23 = vld [vmem:[#allocation13_spill] sm:$0xff] }
 0x284   :  { %7342 = vmatprep.mubr.msk.bf16.mxu0 %vm2837_vm11, %v2781_v40  ;;  %v2666_v37 = vsel %vm2639_vm9, %v2601_v0, %v8495_v27  ;;  %v2667_v12 = vsel %vm2639_vm9, %v2602_v48, %v8496_v6  ;;  %v2668_v7 = vsel %vm2639_vm9, %v2603_v35, %v8500_v44  ;;  %v2669_v10 = vsel %vm2639_vm9, %v2604_v55, %v8501_v34  ;;  %v20362_v48 = vld [vmem:[#allocation4_spill] sm:$0xff] }
 0x285   :  { %v2731_v1 = vsel %vm2704_vm10, %v2666_v37, %v8655_v24  ;;  %v2732_v25 = vsel %vm2704_vm10, %v2667_v12, %v8656_v29  ;;  %v8210_v17 = vunpack.i.l.bf16 %v20354_v51  ;;  %v8225_v41 = vunpack.i.l.bf16 %v20355_v32  ;;  %v20363_v12 = vld [vmem:[#allocation81_spill] sm:$0xff] }
 0x286   :  { %v2733_v13 = vsel %vm2704_vm10, %v2668_v7, %v8660_v47  ;;  %v2734_v16 = vsel %vm2704_vm10, %v2669_v10, %v8661_v38  ;;  %v8346_v4 = vunpack.i.h.bf16 %v20356_v52  ;;  %v8345_v33 = vunpack.i.l.bf16 %v20356_v52 }
 0x287   :  { %v8351_v15 = vunpack.i.h.bf16 %v20357_v9  ;;  %v8350_v21 = vunpack.i.l.bf16 %v20357_v9  ;;  %v8506_v45 = vunpack.i.h.bf16 %v20358_v46  ;;  %v8505_v36 = vunpack.i.l.bf16 %v20358_v46 }
 0x288   :  { %v8511_v42 = vunpack.i.h.bf16 %v20359_v30  ;;  %v2782_v60 = vpack.c.bf16 %v2732_v25, %v2731_v1  ;;  %v8510_v11 = vunpack.i.l.bf16 %v20359_v30  ;;  %v8666_v26 = vunpack.i.h.bf16 %v8664_v20  ;;  %v20364_v1 = vld [vmem:[#allocation210_spill] sm:$0xff] }
 0x289   :  { %v8665_v6 = vunpack.i.l.bf16 %v8664_v20  ;;  %v2783_v27 = vpack.c.bf16 %v2734_v16, %v2733_v13  ;;  %v14176_v34 = vsel %vm2509_vm7, %v20360_v54, %v8210_v17  ;;  %v14180_v44 = vsel %vm2509_vm7, %v20361_v23, %v8211_v62  ;;  %v20366_v16 = vld [vmem:[#allocation6_spill] sm:$0xff] }
 0x28a   :  { %v8671_v29 = vunpack.i.h.bf16 %v8669_v50  ;;  %v8670_v24 = vunpack.i.l.bf16 %v8669_v50  ;;  %v8226_v40 = vunpack.i.h.bf16 %v20355_v32  ;;  %v14186_v49 = vsel %vm2509_vm7, %v13664_v28, %v8225_v41  ;;  %v8679_v32 = vpop.permute.xlu0 %8678  ;;  %v20365_v41 = vld [vmem:[#allocation27_spill] sm:$0xff] }
 0x28b   :  { %7343 = vmatmul.mubr.msk.bf16.gmra.mrb[24].mxu0 %vm2837_vm11, %v2782_v60  ;;  %v2605_v22 = vsel %vm2574_vm8, %v13975_v31, %v8345_v33  ;;  %v2606_v38 = vsel %vm2574_vm8, %v13980_v14, %v8346_v4  ;;  %v2607_v47 = vsel %vm2574_vm8, %v14057_v58, %v8350_v21  ;;  %v2608_v59 = vsel %vm2574_vm8, %v14062_v3, %v8351_v15  ;;  %v8674_v58 = vpop.permute.xlu1 %8673 }
 0x28c   :  { %7346 = vmatprep.mubr.msk.bf16.mxu0 %vm2837_vm11, %v2783_v27  ;;  %v2670_v51 = vsel %vm2639_vm9, %v2605_v22, %v8505_v36  ;;  %v2671_v62 = vsel %vm2639_vm9, %v2606_v38, %v8506_v45  ;;  %v2672_v28 = vsel %vm2639_vm9, %v2607_v47, %v8510_v11  ;;  %v2673_v0 = vsel %vm2639_vm9, %v2608_v59, %v8511_v42  ;;  %v20367_v42 = vld [vmem:[#allocation7_spill] sm:$0xff]  ;;  %v20369_v22 = vld [vmem:[#allocation94_spill] sm:$0xff] }
 0x28d   :  { %v2735_v31 = vsel %vm2704_vm10, %v2670_v51, %v8665_v6  ;;  %v2736_v14 = vsel %vm2704_vm10, %v2671_v62, %v8666_v26  ;;  %v8221_v35 = vunpack.i.h.bf16 %v20362_v48  ;;  %v8220_v55 = vunpack.i.l.bf16 %v20362_v48  ;;  %v20370_v59 = vld [vmem:[#allocation211_spill] sm:$0xff] }
 0x28e   :  { %v2737_v37 = vsel %vm2704_vm10, %v2672_v28, %v8670_v24  ;;  %v2738_v3 = vsel %vm2704_vm10, %v2673_v0, %v8671_v29  ;;  %v8356_v7 = vunpack.i.h.bf16 %v20363_v12  ;;  %v8355_v10 = vunpack.i.l.bf16 %v20363_v12  ;;  %v20368_v29 = vld [vmem:[#allocation188_spill] sm:$0xff]  ;;  %v8689_v28 = vpop.permute.xlu0 %8688  ;;  %v20371_v0 = vld [vmem:[#allocation229_spill] sm:$0xff] }
 0x28f   :  { %v8361_v25 = vunpack.i.h.bf16 %v20364_v1  ;;  %v8360_v17 = vunpack.i.l.bf16 %v20364_v1  ;;  %v8516_v20 = vunpack.i.h.bf16 %v20365_v41  ;;  %v8515_v13 = vunpack.i.l.bf16 %v20365_v41  ;;  %v20372_v12 = vld [vmem:[#allocation16_spill] sm:$0xff] }
 0x290   :  { %v8521_v52 = vunpack.i.h.bf16 %v20366_v16  ;;  %v2784_v4 = vpack.c.bf16 %v2736_v14, %v2735_v31  ;;  %v8520_v33 = vunpack.i.l.bf16 %v20366_v16  ;;  %v8676_v9 = vunpack.i.h.bf16 %v8674_v58  ;;  %v20374_v41 = vld [vmem:[#allocation180_spill] sm:$0xff] }
 0x291   :  { %v8675_v15 = vunpack.i.l.bf16 %v8674_v58  ;;  %v2785_v21 = vpack.c.bf16 %v2738_v3, %v2737_v37  ;;  %v14217_v50 = vsel %vm2509_vm7, %v13668_v63, %v8226_v40  ;;  %v14221_v46 = vsel %vm2509_vm7, %v13674_v56, %v8220_v55 }
 0x292   :  { %v8681_v45 = vunpack.i.h.bf16 %v8679_v32  ;;  %v8680_v36 = vunpack.i.l.bf16 %v8679_v32  ;;  %v14226_v30 = vsel %vm2509_vm7, %v13678_v5, %v8221_v35  ;;  %v8236_v60 = vunpack.i.h.bf16 %v20367_v42 }
 0x293   :  { %7347 = vmatmul.mubr.msk.bf16.gmra.mrb[28].mxu0 %vm2837_vm11, %v2784_v4  ;;  %v2609_v11 = vsel %vm2574_vm8, %v14022_v61, %v8355_v10  ;;  %v2610_v63 = vsel %vm2574_vm8, %v14053_v18, %v8356_v7  ;;  %v2611_v56 = vsel %vm2574_vm8, %v14104_v8, %v8360_v17  ;;  %v2612_v26 = vsel %vm2574_vm8, %v14135_v43, %v8361_v25  ;;  %v8684_v8 = vpop.permute.xlu1 %8683  ;;  %v20373_v10 = vld [vmem:[#allocation191_spill] sm:$0xff] }
 0x294   :  { %7350 = vmatprep.mubr.msk.bf16.mxu0 %vm2837_vm11, %v2785_v21  ;;  %v2674_v6 = vsel %vm2639_vm9, %v2609_v11, %v8515_v13  ;;  %v2675_v5 = vsel %vm2639_vm9, %v2610_v63, %v8516_v20  ;;  %v2676_v27 = vsel %vm2639_vm9, %v2611_v56, %v8520_v33  ;;  %v2677_v54 = vsel %vm2639_vm9, %v2612_v26, %v8521_v52  ;;  %v20375_v21 = vld [vmem:[#allocation10_spill] sm:$0xff]  ;;  %v20377_v56 = vld [vmem:[#allocation115_spill] sm:$0xff] }
 0x295   :  { %v2739_v61 = vsel %vm2704_vm10, %v2674_v6, %v8675_v15  ;;  %v2740_v18 = vsel %vm2704_vm10, %v2675_v5, %v8676_v9  ;;  %v8235_v23 = vunpack.i.l.bf16 %v20367_v42  ;;  %v8230_v24 = vunpack.i.l.bf16 %v20368_v29  ;;  %v8699_v5 = vpop.permute.xlu0 %8698 }
 0x296   :  { %v2741_v40 = vsel %vm2704_vm10, %v2676_v27, %v8680_v36  ;;  %v2742_v43 = vsel %vm2704_vm10, %v2677_v54, %v8681_v45  ;;  %v8366_v38 = vunpack.i.h.bf16 %v20369_v22  ;;  %v8365_v47 = vunpack.i.l.bf16 %v20369_v22  ;;  %v20378_v27 = vld [vmem:[#allocation69_spill] sm:$0xff]  ;;  %v20380_v22 = vld [vmem:[#allocation75_spill] sm:$0xff] }
 0x297   :  { %v8371_v51 = vunpack.i.h.bf16 %v20370_v59  ;;  %v8370_v62 = vunpack.i.l.bf16 %v20370_v59  ;;  %v8526_v31 = vunpack.i.h.bf16 %v20371_v0  ;;  %v8525_v14 = vunpack.i.l.bf16 %v20371_v0 }
 0x298   :  { %v8531_v48 = vunpack.i.h.bf16 %v13685_v39  ;;  %v2786_v35 = vpack.c.bf16 %v2740_v18, %v2739_v61  ;;  %v8530_v55 = vunpack.i.l.bf16 %v13685_v39  ;;  %v8686_v58 = vunpack.i.h.bf16 %v8684_v8  ;;  %v20379_v18 = vld [vmem:[#allocation93_spill] sm:$0xff] }
 0x299   :  { %v8685_v37 = vunpack.i.l.bf16 %v8684_v8  ;;  %v2787_v3 = vpack.c.bf16 %v2742_v43, %v2741_v40  ;;  %v14258_v7 = vsel %vm2509_vm7, %v20372_v12, %v8235_v23  ;;  %v14262_v1 = vsel %vm2509_vm7, %v20373_v10, %v8236_v60  ;;  %v20376_v60 = vld [vmem:[#allocation98_spill] sm:$0xff] }
 0x29a   :  { %v8691_v25 = vunpack.i.h.bf16 %v8689_v28  ;;  %v8690_v17 = vunpack.i.l.bf16 %v8689_v28  ;;  %v8231_v32 = vunpack.i.h.bf16 %v20368_v29  ;;  %v14268_v39 = vsel %vm2509_vm7, %v20374_v41, %v8230_v24  ;;  %v20382_v28 = vld [vmem:[#allocation19_spill] sm:$0xff] }
 0x29b   :  { %7351 = vmatmul.mubr.msk.bf16.gmra.mrb[32].mxu0 %vm2837_vm11, %v2786_v35  ;;  %v2613_v20 = vsel %vm2574_vm8, %v14094_v2, %v8365_v47  ;;  %v2614_v13 = vsel %vm2574_vm8, %v14098_v53, %v8366_v38  ;;  %v2615_v16 = vsel %vm2574_vm8, %v14176_v34, %v8370_v62  ;;  %v2616_v52 = vsel %vm2574_vm8, %v14180_v44, %v8371_v51  ;;  %v8694_v34 = vpop.permute.xlu1 %8693  ;;  %v20381_v47 = vld [vmem:[#allocation15_spill] sm:$0xff] }
 0x29c   :  { %7354 = vmatprep.mubr.msk.bf16.mxu0 %vm2837_vm11, %v2787_v3  ;;  %v2678_v4 = vsel %vm2639_vm9, %v2613_v20, %v8525_v14  ;;  %v2679_v33 = vsel %vm2639_vm9, %v2614_v13, %v8526_v31  ;;  %v2680_v9 = vsel %vm2639_vm9, %v2615_v16, %v8530_v55  ;;  %v2681_v15 = vsel %vm2639_vm9, %v2616_v52, %v8531_v48  ;;  %v20383_v31 = vld [vmem:[#allocation233_spill] sm:$0xff]  ;;  %v20385_v20 = vld [vmem:[#allocation112_spill] sm:$0xff]  ;;  %v20386_v52 = vld [vmem:[#allocation122_spill] sm:$0xff] }
 0x29d   :  { %v2743_v2 = vsel %vm2704_vm10, %v2678_v4, %v8685_v37  ;;  %v2744_v53 = vsel %vm2704_vm10, %v2679_v33, %v8686_v58  ;;  %v8246_v45 = vunpack.i.h.bf16 %v20375_v21  ;;  %v8245_v36 = vunpack.i.l.bf16 %v20375_v21  ;;  %v20388_v21 = vld [vmem:[#allocation74_spill] sm:$0xff] }
 0x29e   :  { %v2745_v42 = vsel %vm2704_vm10, %v2680_v9, %v8690_v17  ;;  %v2746_v44 = vsel %vm2704_vm10, %v2681_v15, %v8691_v25  ;;  %v8376_v11 = vunpack.i.h.bf16 %v20376_v60  ;;  %v8375_v63 = vunpack.i.l.bf16 %v20376_v60  ;;  %v20384_v17 = vld [vmem:[#allocation234_spill] sm:$0xff]  ;;  %v8709_v9 = vpop.permute.xlu0 %8708  ;;  %v20387_v15 = vld [vmem:[#allocation181_spill] sm:$0xff] }
 0x29f   :  { %v8381_v26 = vunpack.i.h.bf16 %v20377_v56  ;;  %v8380_v6 = vunpack.i.l.bf16 %v20377_v56  ;;  %v8536_v54 = vunpack.i.h.bf16 %v20378_v27  ;;  %v8535_v61 = vunpack.i.l.bf16 %v20378_v27  ;;  %v20390_v56 = vld [vmem:[#allocation193_spill] sm:$0xff] }
 0x2a0   :  { %v8541_v23 = vunpack.i.h.bf16 %v20379_v18  ;;  %v2788_v29 = vpack.c.bf16 %v2744_v53, %v2743_v2  ;;  %v8540_v24 = vunpack.i.l.bf16 %v20379_v18  ;;  %v8696_v8 = vunpack.i.h.bf16 %v8694_v34 }
 0x2a1   :  { %v8695_v40 = vunpack.i.l.bf16 %v8694_v34  ;;  %v2789_v43 = vpack.c.bf16 %v2746_v44, %v2745_v42  ;;  %v2559_v38 = vsel %vm2509_vm7, %v20380_v22, %v8231_v32  ;;  %v8240_v59 = vunpack.i.l.bf16 %v20381_v47  ;;  %v8704_v32 = vpop.permute.xlu1 %8703 }
 0x2a2   :  { %v8701_v51 = vunpack.i.h.bf16 %v8699_v5  ;;  %v8700_v62 = vunpack.i.l.bf16 %v8699_v5  ;;  %v14303_v0 = vsel %vm2509_vm7, %v20382_v28, %v8245_v36  ;;  %v14307_v14 = vsel %vm2509_vm7, %v20383_v31, %v8246_v45  ;;  %v20393_v28 = vld [vmem:[#allocation126_spill] sm:$0xff] }
 0x2a3   :  { %7355 = vmatmul.mubr.msk.bf16.gmra.mrb[36].mxu0 %vm2837_vm11, %v2788_v29  ;;  %v2617_v48 = vsel %vm2574_vm8, %v14139_v57, %v8375_v63  ;;  %v2618_v35 = vsel %vm2574_vm8, %v14144_v19, %v8376_v11  ;;  %v2619_v55 = vsel %vm2574_vm8, %v14221_v46, %v8380_v6  ;;  %v2620_v58 = vsel %vm2574_vm8, %v14226_v30, %v8381_v26  ;;  %v20389_v11 = vld [vmem:[#allocation235_spill] sm:$0xff] }
 0x2a4   :  { %7358 = vmatprep.mubr.msk.bf16.mxu0 %vm2837_vm11, %v2789_v43  ;;  %v2682_v37 = vsel %vm2639_vm9, %v2617_v48, %v8535_v61  ;;  %v2683_v3 = vsel %vm2639_vm9, %v2618_v35, %v8536_v54  ;;  %v2684_v12 = vsel %vm2639_vm9, %v2619_v55, %v8540_v24  ;;  %v2685_v10 = vsel %vm2639_vm9, %v2620_v58, %v8541_v23  ;;  %v20391_v54 = vld [vmem:[#allocation82_spill] sm:$0xff] }
 0x2a5   :  { %v2747_v57 = vsel %vm2704_vm10, %v2682_v37, %v8695_v40  ;;  %v2748_v19 = vsel %vm2704_vm10, %v2683_v3, %v8696_v8  ;;  %v8241_v25 = vunpack.i.h.bf16 %v20381_v47  ;;  %v14327_v46 = vsel %vm2509_vm7, %v20384_v17, %v8240_v59  ;;  %v20392_v59 = vld [vmem:[#allocation123_spill] sm:$0xff]  ;;  %v20394_v35 = vld [vmem:[#allocation62_spill] sm:$0xff]  ;;  %v14371_v37 = vpop.permute.xlu0 %8718 }
 0x2a6   :  { %v2749_v30 = vsel %vm2704_vm10, %v2684_v12, %v8700_v62  ;;  %v2750_v41 = vsel %vm2704_vm10, %v2685_v10, %v8701_v51  ;;  %v8386_v13 = vunpack.i.h.bf16 %v20385_v20  ;;  %v8385_v16 = vunpack.i.l.bf16 %v20385_v20  ;;  %v20395_v3 = vld [vmem:[#allocation195_spill] sm:$0xff] }
 0x2a7   :  { %v8391_v4 = vunpack.i.h.bf16 %v20386_v52  ;;  %v8390_v33 = vunpack.i.l.bf16 %v20386_v52  ;;  %v8546_v2 = vunpack.i.h.bf16 %v20387_v15  ;;  %v8545_v53 = vunpack.i.l.bf16 %v20387_v15 }
 0x2a8   :  { %v8551_v45 = vunpack.i.h.bf16 %v20388_v21  ;;  %v2790_v36 = vpack.c.bf16 %v2748_v19, %v2747_v57  ;;  %v8550_v34 = vunpack.i.l.bf16 %v20388_v21  ;;  %v8706_v42 = vunpack.i.h.bf16 %v8704_v32 }
 0x2a9   :  { %v8705_v44 = vunpack.i.l.bf16 %v8704_v32  ;;  %v2791_v60 = vpack.c.bf16 %v2750_v41, %v2749_v30  ;;  %v14341_v63 = vsel %vm2509_vm7, %v20389_v11, %v8241_v25  ;;  %v8256_v26 = vunpack.i.h.bf16 %v20390_v56 }
 0x2aa   :  { %v8711_v6 = vunpack.i.h.bf16 %v8709_v9  ;;  %v8710_v5 = vunpack.i.l.bf16 %v8709_v9  ;;  %v8255_v27 = vunpack.i.l.bf16 %v20390_v56  ;;  %v8250_v61 = vunpack.i.l.bf16 %v20391_v54 }
 0x2ab   :  { %7359 = vmatmul.mubr.msk.bf16.gmra.mrb[40].mxu0 %vm2837_vm11, %v2790_v36  ;;  %v2621_v18 = vsel %vm2574_vm8, %v14186_v49, %v8385_v16  ;;  %v2622_v23 = vsel %vm2574_vm8, %v14217_v50, %v8386_v13  ;;  %v2623_v29 = vsel %vm2574_vm8, %v14268_v39, %v8390_v33  ;;  %v2624_v24 = vsel %vm2574_vm8, %v2559_v38, %v8391_v4  ;;  %v14361_v50 = vpop.permute.xlu1 %8713  ;;  %v20396_v13 = vld [vmem:[#allocation324_spill] sm:$0xff]  ;;  %v20397_v33 = vld [vmem:[#allocation130_spill] sm:$0xff] }
 0x2ac   :  { %7362 = vmatprep.mubr.msk.bf16.mxu0 %vm2837_vm11, %v2791_v60  ;;  %v2686_v8 = vsel %vm2639_vm9, %v2621_v18, %v8545_v53  ;;  %v2687_v40 = vsel %vm2639_vm9, %v2622_v23, %v8546_v2  ;;  %v2688_v43 = vsel %vm2639_vm9, %v2623_v29, %v8550_v34  ;;  %v2689_v22 = vsel %vm2639_vm9, %v2624_v24, %v8551_v45  ;;  %v20398_v34 = vld [vmem:[#allocation136_spill] sm:$0xff]  ;;  %v20401_v23 = vld [vmem:[#allocation26_spill] sm:$0xff]  ;;  %v8729_v24 = vpop.permute.xlu0 %8728 }
 0x2ad   :  { %v2751_v49 = vsel %vm2704_vm10, %v2686_v8, %v8705_v44  ;;  %v2752_v47 = vsel %vm2704_vm10, %v2687_v40, %v8706_v42  ;;  %v8396_v51 = vunpack.i.h.bf16 %v20392_v59  ;;  %v8395_v39 = vunpack.i.l.bf16 %v20392_v59  ;;  %v20402_v40 = vld [vmem:[#allocation25_spill] sm:$0xff] }
 0x2ae   :  { %v2753_v38 = vsel %vm2704_vm10, %v2688_v43, %v8710_v5  ;;  %v2754_v62 = vsel %vm2704_vm10, %v2689_v22, %v8711_v6  ;;  %v8401_v31 = vunpack.i.h.bf16 %v20393_v28  ;;  %v8400_v48 = vunpack.i.l.bf16 %v20393_v28  ;;  %v20400_v5 = vld [vmem:[#allocation35_spill] sm:$0xff] }
 0x2af   :  { %v8556_v55 = vunpack.i.h.bf16 %v20394_v35  ;;  %v8555_v58 = vunpack.i.l.bf16 %v20394_v35  ;;  %v8561_v12 = vunpack.i.h.bf16 %v20395_v3  ;;  %v8560_v10 = vunpack.i.l.bf16 %v20395_v3  ;;  %v8724_v44 = vpop.permute.xlu1 %8723 }
 0x2b0   :  { %v8716_v57 = vunpack.i.h.bf16 %v14361_v50  ;;  %v2792_v19 = vpack.c.bf16 %v2752_v47, %v2751_v49  ;;  %v8715_v25 = vunpack.i.l.bf16 %v14361_v50  ;;  %v2793_v17 = vpack.c.bf16 %v2754_v62, %v2753_v38 }
 0x2b1   :  { %v8251_v32 = vunpack.i.h.bf16 %v20391_v54  ;;  %v8721_v30 = vunpack.i.h.bf16 %v14371_v37  ;;  %v8720_v41 = vunpack.i.l.bf16 %v14371_v37  ;;  %v10146_v20 = vmov 0.0  }
 0x2b2   :  { %3433 = vst.msk [vmem:[#allocation2] sm:$0xff] %vm2249_vm2, %v10146_v20  ;;  %3434 = vst.msk [vmem:[#allocation2 + $0x8] sm:$0xff] %vm2249_vm2, %v10146_v20  ;;  %v14407_v16 = vsel %vm2509_vm7, %v20396_v13, %v8250_v61  ;;  %v14411_v52 = vsel %vm2574_vm8, %v14258_v7, %v8395_v39  ;;  %v14415_v4 = vsel %vm2574_vm8, %v14262_v1, %v8396_v51  ;;  %v8405_v9 = vunpack.i.l.bf16 %v20397_v33  ;;  %v20403_v13 = vld [vmem:[#allocation144_spill] sm:$0xff] }
 0x2b3   :  { %7363 = vmatmul.mubr.msk.bf16.gmra.mrb[44].mxu0 %vm2837_vm11, %v2792_v19  ;;  %3436 = vst.msk [vmem:[#allocation2 + $0x10] sm:$0x3] %vm3435_vm12, %v10146_v20  ;;  %3439 = vst.msk [vmem:[#allocation2 + $0x1c0] sm:$0x3] %vm3435_vm12, %v10146_v20  ;;  %v2627_v7 = vsel %vm2574_vm8, %v14327_v46, %v8400_v48  ;;  %v2628_v1 = vsel %vm2574_vm8, %v14341_v63, %v8401_v31  ;;  %v2690_v15 = vsel %vm2639_vm9, %v14411_v52, %v8555_v58  ;;  %v20399_v63 = vld [vmem:[#allocation236_spill] sm:$0xff] }
 0x2b4   :  { %3437 = vst.msk [vmem:[#allocation2 + $0x1b0] sm:$0xff] %vm2249_vm2, %v10146_v20  ;;  %3438 = vst.msk [vmem:[#allocation2 + $0x1b8] sm:$0xff] %vm2249_vm2, %v10146_v20  ;;  %7366 = vmatprep.mubr.msk.bf16.mxu0 %vm2837_vm11, %v2793_v17  ;;  %v2691_v2 = vsel %vm2639_vm9, %v14415_v4, %v8556_v55  ;;  %v2692_v53 = vsel %vm2639_vm9, %v2627_v7, %v8560_v10  ;;  %v2693_v46 = vsel %vm2639_vm9, %v2628_v1, %v8561_v12  ;;  %v20404_v4 = vld [vmem:[#allocation215_spill] sm:$0xff]  ;;  %v8739_v7 = vpop.permute.xlu0 %8738  ;;  %v20405_v1 = vld [vmem:[#allocation196_spill] sm:$0xff] }
 0x2b5   :  { %3441 = vst.msk [vmem:[#allocation2 + $0x198] sm:$0xff] %vm2249_vm2, %v10146_v20  ;;  %3442 = vst.msk [vmem:[#allocation2 + $0x1a0] sm:$0xff] %vm2249_vm2, %v10146_v20  ;;  %v2755_v21 = vsel %vm2704_vm10, %v2690_v15, %v8715_v25  ;;  %v2756_v45 = vsel %vm2704_vm10, %v2691_v2, %v8716_v57  ;;  %v8406_v36 = vunpack.i.h.bf16 %v20397_v33  ;;  %v8410_v42 = vunpack.i.l.bf16 %v20398_v34 }
 0x2b6   :  { %3443 = vst.msk [vmem:[#allocation2 + $0x1a8] sm:$0x3] %vm3435_vm12, %v10146_v20  ;;  %3446 = vst.msk [vmem:[#allocation2 + $0x358] sm:$0x3] %vm3435_vm12, %v10146_v20  ;;  %v2757_v60 = vsel %vm2704_vm10, %v2692_v53, %v8720_v41  ;;  %v2758_v11 = vsel %vm2704_vm10, %v2693_v46, %v8721_v30  ;;  %v2567_v6 = vsel %vm2509_vm7, %v20399_v63, %v8251_v32  ;;  %v8261_v61 = vunpack.i.h.bf16 %v20400_v5  ;;  %v8734_v32 = vpop.permute.xlu1 %8733  ;;  %v20406_v53 = vld [vmem:[#allocation182_spill] sm:$0xff] }
 0x2b7   :  { %3444 = vst.msk [vmem:[#allocation2 + $0x348] sm:$0xff] %vm2249_vm2, %v10146_v20  ;;  %3445 = vst.msk [vmem:[#allocation2 + $0x350] sm:$0xff] %vm2249_vm2, %v10146_v20  ;;  %v8411_v18 = vunpack.i.h.bf16 %v20398_v34  ;;  %v8566_v29 = vunpack.i.h.bf16 %v20401_v23  ;;  %v8565_v8 = vunpack.i.l.bf16 %v20401_v23  ;;  %v8571_v43 = vunpack.i.h.bf16 %v20402_v40 }
 0x2b8   :  { %3448 = vst.msk [vmem:[#allocation2] sm:$0x1] %vm3447_vm13, %v10146_v20  ;;  %3484 = vst.msk [vmem:[#allocation2 + $0x11] sm:$0x1] %vm3447_vm13, %v10146_v20  ;;  %v8570_v22 = vunpack.i.l.bf16 %v20402_v40  ;;  %v2794_v49 = vpack.c.bf16 %v2756_v45, %v2755_v21  ;;  %v2629_v54 = vsel %vm2574_vm8, %v14303_v0, %v8405_v9  ;;  %v8726_v47 = vunpack.i.h.bf16 %v8724_v44 }
 0x2b9   :  { %3449 = vst.msk [vmem:[#allocation2 + $0x18] sm:$0x1] %vm3447_vm13, %v10146_v20  ;;  %3450 = vst.msk [vmem:[#allocation2 + $0x30] sm:$0x1] %vm3447_vm13, %v10146_v20  ;;  %v8725_v50 = vunpack.i.l.bf16 %v8724_v44  ;;  %v2795_v59 = vpack.c.bf16 %v2758_v11, %v2757_v60  ;;  %v2630_v51 = vsel %vm2574_vm8, %v14307_v14, %v8406_v36  ;;  %v2631_v39 = vsel %vm2574_vm8, %v14407_v16, %v8410_v42  ;;  %v3586_v31 = vld [vmem:[#allocation2 + $0x8] sm:$0xff]  ;;  %v20407_v44 = vld [vmem:[#allocation293_spill] sm:$0xff] }
 0x2ba   :  { %3451 = vst.msk [vmem:[#allocation2 + $0x48] sm:$0x1] %vm3447_vm13, %v10146_v20  ;;  %3452 = vst.msk [vmem:[#allocation2 + $0x60] sm:$0x1] %vm3447_vm13, %v10146_v20  ;;  %v8731_v38 = vunpack.i.h.bf16 %v8729_v24  ;;  %v8730_v62 = vunpack.i.l.bf16 %v8729_v24  ;;  %v2632_v35 = vsel %vm2574_vm8, %v2567_v6, %v8411_v18  ;;  %v3790_v55 = vrot.slane %v3586_v31, 1  ;;  %v20408_v11 = vld [vmem:[#allocation294_spill] sm:$0xff] }
 0x2bb   :  { %3453 = vst.msk [vmem:[#allocation2 + $0x78] sm:$0x1] %vm3447_vm13, %v10146_v20  ;;  %3454 = vst.msk [vmem:[#allocation2 + $0x90] sm:$0x1] %vm3447_vm13, %v10146_v20  ;;  %7367 = vmatmul.mubr.msk.bf16.gmra.mrb[48].mxu0 %vm2837_vm11, %v2794_v49  ;;  %v2694_v37 = vsel %vm2639_vm9, %v2629_v54, %v8565_v8  ;;  %v2695_v14 = vsel %vm2639_vm9, %v2630_v51, %v8566_v29  ;;  %v2696_v3 = vsel %vm2639_vm9, %v2631_v39, %v8570_v22  ;;  %v20409_v18 = vld [vmem:[#allocation237_spill] sm:$0xff]  ;;  %v20410_v29 = vld [vmem:[#allocation18_spill] sm:$0xff]  ;;  %v8744_v51 = vpop.permute.xlu1 %8743 }
 0x2bc   :  { %3455 = vst.msk [vmem:[#allocation2 + $0xa8] sm:$0x1] %vm3447_vm13, %v10146_v20  ;;  %3456 = vst.msk [vmem:[#allocation2 + $0xc0] sm:$0x1] %vm3447_vm13, %v10146_v20  ;;  %7370 = vmatprep.mubr.msk.bf16.mxu0 %vm2837_vm11, %v2795_v59  ;;  %v2697_v12 = vsel %vm2639_vm9, %v2632_v35, %v8571_v43  ;;  %v2759_v10 = vsel %vm2704_vm10, %v2694_v37, %v8725_v50  ;;  %v2760_v57 = vsel %vm2704_vm10, %v2695_v14, %v8726_v47  ;;  %v20411_v47 = vld [vmem:[#allocation31_spill] sm:$0xff]  ;;  %v20414_v31 = vld [vmem:[#allocation106_spill] sm:$0xff] }
 0x2bd   :  { %3457 = vst.msk [vmem:[#allocation2 + $0xd8] sm:$0x1] %vm3447_vm13, %v10146_v20  ;;  %3458 = vst.msk [vmem:[#allocation2 + $0xf0] sm:$0x1] %vm3447_vm13, %v10146_v20  ;;  %v8260_v17 = vunpack.i.l.bf16 %v20400_v5  ;;  %v2761_v30 = vsel %vm2704_vm10, %v2696_v3, %v8730_v62  ;;  %v2762_v41 = vsel %vm2704_vm10, %v2697_v12, %v8731_v38  ;;  %v8416_v16 = vunpack.i.h.bf16 %v20403_v13  ;;  %v20412_v62 = vld [vmem:[#allocation272_spill] sm:$0xff]  ;;  %v20418_v3 = vld [vmem:[#allocation307_spill] sm:$0xff] }
 0x2be   :  { %3459 = vst.msk [vmem:[#allocation2 + $0x108] sm:$0x1] %vm3447_vm13, %v10146_v20  ;;  %3460 = vst.msk [vmem:[#allocation2 + $0x120] sm:$0x1] %vm3447_vm13, %v10146_v20  ;;  %v8415_v52 = vunpack.i.l.bf16 %v20403_v13  ;;  %v8421_v33 = vunpack.i.h.bf16 %v20404_v4  ;;  %v8420_v9 = vunpack.i.l.bf16 %v20404_v4  ;;  %v8576_v15 = vunpack.i.h.bf16 %v20405_v1 }
 0x2bf   :  { %3461 = vst.msk [vmem:[#allocation2 + $0x138] sm:$0x1] %vm3447_vm13, %v10146_v20  ;;  %3462 = vst.msk [vmem:[#allocation2 + $0x150] sm:$0x1] %vm3447_vm13, %v10146_v20  ;;  %v3585_v28 = vld [vmem:[#allocation2] sm:$0xff]  ;;  %v8575_v2 = vunpack.i.l.bf16 %v20405_v1  ;;  %v8581_v46 = vunpack.i.h.bf16 %v20406_v53  ;;  %v2796_v21 = vpack.c.bf16 %v2760_v57, %v2759_v10  ;;  %v8580_v45 = vunpack.i.l.bf16 %v20406_v53 }
 0x2c0   :  { %3463 = vst.msk [vmem:[#allocation2 + $0x168] sm:$0x1] %vm3447_vm13, %v10146_v20  ;;  %3464 = vst.msk [vmem:[#allocation2 + $0x180] sm:$0x1] %vm3447_vm13, %v10146_v20  ;;  %v3587_v48 = vld [vmem:[#allocation2 + $0x10] sm:$0x3]  ;;  %v8736_v36 = vunpack.i.h.bf16 %v8734_v32  ;;  %v8735_v34 = vunpack.i.l.bf16 %v8734_v32  ;;  %v2797_v42 = vpack.c.bf16 %v2762_v41, %v2761_v30  ;;  %v2568_v60 = vsel %vm2509_vm7, %v20407_v44, %v8255_v27 }
 0x2c1   :  { %3467 = vst.msk [vmem:[#allocation2 + $0x1c8] sm:$0x1] %vm3447_vm13, %v10146_v20  ;;  %3468 = vst.msk [vmem:[#allocation2 + $0x1e0] sm:$0x1] %vm3447_vm13, %v10146_v20  ;;  %v3789_v0 = vrot.slane %v3585_v28, 1  ;;  %v3792_v58 = vrot.slane %v3587_v48, 1  ;;  %v2569_v63 = vsel %vm2509_vm7, %v20408_v11, %v8256_v26  ;;  %v8741_v6 = vunpack.i.h.bf16 %v8739_v7 }
 0x2c2   :  { %3469 = vst.msk [vmem:[#allocation2 + $0x1f8] sm:$0x1] %vm3447_vm13, %v10146_v20  ;;  %3470 = vst.msk [vmem:[#allocation2 + $0x210] sm:$0x1] %vm3447_vm13, %v10146_v20  ;;  %v8740_v5 = vunpack.i.l.bf16 %v8739_v7  ;;  %v2570_v23 = vsel %vm2509_vm7, %v20409_v18, %v8260_v17  ;;  %v2571_v24 = vsel %vm2509_vm7, %v20410_v29, %v8261_v61  ;;  %v2633_v8 = vsel %vm2574_vm8, %v2568_v60, %v8415_v52  ;;  %v20420_v57 = vld [vmem:[#allocation87_spill] sm:$0xff] }
 0x2c3   :  { %3471 = vst.msk [vmem:[#allocation2 + $0x228] sm:$0x1] %vm3447_vm13, %v10146_v20  ;;  %3472 = vst.msk [vmem:[#allocation2 + $0x240] sm:$0x1] %vm3447_vm13, %v10146_v20  ;;  %v3791_v19 = vsel %vm339_vm0, %v3789_v0, %v3790_v55  ;;  %v3793_v25 = vsel %vm339_vm0, %v3790_v55, %v3792_v58  ;;  %7371 = vmatmul.mubr.msk.bf16.gmra.mrb[52].mxu0 %vm2837_vm11, %v2796_v21  ;;  %v2634_v40 = vsel %vm2574_vm8, %v2569_v63, %v8416_v16  ;;  %v20416_v0 = vld [vmem:[#allocation132_spill] sm:$0xff]  ;;  %v20417_v58 = vld [vmem:[#allocation213_spill] sm:$0xff] }
 0x2c4   :  { %3473 = vst.msk [vmem:[#allocation2 + $0x258] sm:$0x1] %vm3447_vm13, %v10146_v20  ;;  %3474 = vst.msk [vmem:[#allocation2 + $0x270] sm:$0x1] %vm3447_vm13, %v10146_v20  ;;  %7374 = vmatprep.mubr.msk.bf16.mxu0 %vm2837_vm11, %v2797_v42  ;;  %v2635_v56 = vsel %vm2574_vm8, %v2570_v23, %v8420_v9  ;;  %v2636_v26 = vsel %vm2574_vm8, %v2571_v24, %v8421_v33  ;;  %v2698_v27 = vsel %vm2639_vm9, %v2633_v8, %v8575_v2  ;;  %v14700_v53 = vld [vmem:[%s18401_s3] ss:$0 sm:$0xff] }
 0x2c5   :  { %3475 = vst.msk [vmem:[#allocation2 + $0x288] sm:$0x1] %vm3447_vm13, %v10146_v20  ;;  %3476 = vst.msk [vmem:[#allocation2 + $0x2a0] sm:$0x1] %vm3447_vm13, %v10146_v20  ;;  %v2699_v43 = vsel %vm2639_vm9, %v2634_v40, %v8576_v15  ;;  %v2700_v22 = vsel %vm2639_vm9, %v2635_v56, %v8580_v45  ;;  %v2701_v49 = vsel %vm2639_vm9, %v2636_v26, %v8581_v46  ;;  %v8266_v50 = vunpack.i.h.bf16 %v20411_v47  ;;  %v14705_v21 = vld [vmem:[%s18402_s4] ss:$0 sm:$0xff] }
 0x2c6   :  { %3477 = vst.msk [vmem:[#allocation2 + $0x2b8] sm:$0x1] %vm3447_vm13, %v10146_v20  ;;  %3478 = vst.msk [vmem:[#allocation2 + $0x2d0] sm:$0x1] %vm3447_vm13, %v10146_v20  ;;  %v2763_v61 = vsel %vm2704_vm10, %v2698_v27, %v8735_v34  ;;  %v2764_v54 = vsel %vm2704_vm10, %v2699_v43, %v8736_v36  ;;  %v8265_v59 = vunpack.i.l.bf16 %v20411_v47  ;;  %v2765_v39 = vsel %vm2704_vm10, %v2700_v22, %v8740_v5 }
 0x2c7   :  { %3479 = vst.msk [vmem:[#allocation2 + $0x2e8] sm:$0x1] %vm3447_vm13, %v10146_v20  ;;  %3480 = vst.msk [vmem:[#allocation2 + $0x300] sm:$0x1] %vm3447_vm13, %v10146_v20  ;;  %v2766_v38 = vsel %vm2704_vm10, %v2701_v49, %v8741_v6  ;;  %v20413_v28 = vunpack.i.l.bf16 %v20412_v62  ;;  %v20415_v35 = vunpack.i.h.bf16 %v20412_v62  ;;  %v8426_v37 = vunpack.i.h.bf16 %v20417_v58 }
 0x2c8   :  { %3481 = vst.msk [vmem:[#allocation2 + $0x318] sm:$0x1] %vm3447_vm13, %v10146_v20  ;;  %3482 = vst.msk [vmem:[#allocation2 + $0x330] sm:$0x1] %vm3447_vm13, %v10146_v20  ;;  %v8425_v14 = vunpack.i.l.bf16 %v20417_v58  ;;  %v20419_v12 = vunpack.i.l.bf16 %v20418_v3  ;;  %v2798_v17 = vpack.c.bf16 %v2764_v54, %v2763_v61  ;;  %v20421_v32 = vunpack.i.h.bf16 %v20418_v3 }
 0x2c9   :  { %3485 = vst.msk [vmem:[#allocation2 + $0x29] sm:$0x1] %vm3447_vm13, %v10146_v20  ;;  %3486 = vst.msk [vmem:[#allocation2 + $0x41] sm:$0x1] %vm3447_vm13, %v10146_v20  ;;  %v2442_v48 = vsel %vm2379_vm5, %v20414_v31, %v20413_v28  ;;  %v2443_v55 = vsel %vm2379_vm5, %v20416_v0, %v20415_v35  ;;  %v8746_v41 = vunpack.i.h.bf16 %v8744_v51  ;;  %v2799_v13 = vpack.c.bf16 %v2766_v38, %v2765_v39 }
 0x2ca   :  { %3487 = vst.msk [vmem:[#allocation2 + $0x59] sm:$0x1] %vm3447_vm13, %v10146_v20  ;;  %3488 = vst.msk [vmem:[#allocation2 + $0x71] sm:$0x1] %vm3447_vm13, %v10146_v20  ;;  %v2507_v10 = vsel %vm2444_vm6, %v2442_v48, %v20419_v12  ;;  %v2508_v30 = vsel %vm2444_vm6, %v2443_v55, %v20421_v32 }
 0x2cb   :  { %3489 = vst.msk [vmem:[#allocation2 + $0x89] sm:$0x1] %vm3447_vm13, %v10146_v20  ;;  %3490 = vst.msk [vmem:[#allocation2 + $0xa1] sm:$0x1] %vm3447_vm13, %v10146_v20  ;;  %v2572_v16 = vsel %vm2509_vm7, %v2507_v10, %v8265_v59  ;;  %v2573_v52 = vsel %vm2509_vm7, %v2508_v30, %v8266_v50  ;;  %7375 = vmatmul.mubr.msk.bf16.gmra.mrb[56].mxu0 %vm2837_vm11, %v2798_v17 }
 0x2cc   :  { %3491 = vst.msk [vmem:[#allocation2 + $0xb9] sm:$0x1] %vm3447_vm13, %v10146_v20  ;;  %3492 = vst.msk [vmem:[#allocation2 + $0xd1] sm:$0x1] %vm3447_vm13, %v10146_v20  ;;  %v2637_v4 = vsel %vm2574_vm8, %v2572_v16, %v8425_v14  ;;  %v2638_v33 = vsel %vm2574_vm8, %v2573_v52, %v8426_v37  ;;  %7378 = vmatprep.mubr.msk.bf16.mxu0 %vm2837_vm11, %v2799_v13 }
 0x2cd   :  { %3493 = vst.msk [vmem:[#allocation2 + $0xe9] sm:$0x1] %vm3447_vm13, %v10146_v20  ;;  %3494 = vst.msk [vmem:[#allocation2 + $0x101] sm:$0x1] %vm3447_vm13, %v10146_v20 }
 0x2ce   :  { %3495 = vst.msk [vmem:[#allocation2 + $0x119] sm:$0x1] %vm3447_vm13, %v10146_v20  ;;  %3496 = vst.msk [vmem:[#allocation2 + $0x131] sm:$0x1] %vm3447_vm13, %v10146_v20 }
 0x2cf   :  { %3497 = vst.msk [vmem:[#allocation2 + $0x149] sm:$0x1] %vm3447_vm13, %v10146_v20  ;;  %3498 = vst.msk [vmem:[#allocation2 + $0x161] sm:$0x1] %vm3447_vm13, %v10146_v20 }
 0x2d0   :  { %3499 = vst.msk [vmem:[#allocation2 + $0x179] sm:$0x1] %vm3447_vm13, %v10146_v20  ;;  %3500 = vst.msk [vmem:[#allocation2 + $0x191] sm:$0x1] %vm3447_vm13, %v10146_v20 }
 0x2d1   :  { %3503 = vst.msk [vmem:[#allocation2 + $0x1d9] sm:$0x1] %vm3447_vm13, %v10146_v20  ;;  %3504 = vst.msk [vmem:[#allocation2 + $0x1f1] sm:$0x1] %vm3447_vm13, %v10146_v20 }
 0x2d2   :  { %3505 = vst.msk [vmem:[#allocation2 + $0x209] sm:$0x1] %vm3447_vm13, %v10146_v20  ;;  %3506 = vst.msk [vmem:[#allocation2 + $0x221] sm:$0x1] %vm3447_vm13, %v10146_v20 }
 0x2d3   :  { %3507 = vst.msk [vmem:[#allocation2 + $0x239] sm:$0x1] %vm3447_vm13, %v10146_v20  ;;  %3508 = vst.msk [vmem:[#allocation2 + $0x251] sm:$0x1] %vm3447_vm13, %v10146_v20 }
 0x2d4   :  { %3509 = vst.msk [vmem:[#allocation2 + $0x269] sm:$0x1] %vm3447_vm13, %v10146_v20  ;;  %3510 = vst.msk [vmem:[#allocation2 + $0x281] sm:$0x1] %vm3447_vm13, %v10146_v20 }
 0x2d5   :  { %3511 = vst.msk [vmem:[#allocation2 + $0x299] sm:$0x1] %vm3447_vm13, %v10146_v20  ;;  %3512 = vst.msk [vmem:[#allocation2 + $0x2b1] sm:$0x1] %vm3447_vm13, %v10146_v20 }
 0x2d6   :  { %3513 = vst.msk [vmem:[#allocation2 + $0x2c9] sm:$0x1] %vm3447_vm13, %v10146_v20  ;;  %3514 = vst.msk [vmem:[#allocation2 + $0x2e1] sm:$0x1] %vm3447_vm13, %v10146_v20 }
 0x2d7   :  { %3515 = vst.msk [vmem:[#allocation2 + $0x2f9] sm:$0x1] %vm3447_vm13, %v10146_v20  ;;  %3516 = vst.msk [vmem:[#allocation2 + $0x311] sm:$0x1] %vm3447_vm13, %v10146_v20 }
 0x2d8   :  { %3517 = vst.msk [vmem:[#allocation2 + $0x329] sm:$0x1] %vm3447_vm13, %v10146_v20  ;;  %3518 = vst.msk [vmem:[#allocation2 + $0x341] sm:$0x1] %vm3447_vm13, %v10146_v20 }
 0x2d9   :  { %3465 = vst.msk [vmem:[#allocation2 + $0x198] sm:$0x1] %vm3447_vm13, %v10146_v20  ;;  %3466 = vst.msk [vmem:[#allocation2 + $0x1b0] sm:$0x1] %vm3447_vm13, %v10146_v20 }
 0x2da   :  { %3483 = vst.msk [vmem:[#allocation2 + $0x348] sm:$0x1] %vm3447_vm13, %v10146_v20  ;;  %3501 = vst.msk [vmem:[#allocation2 + $0x1a9] sm:$0x1] %vm3447_vm13, %v10146_v20 }
 0x2db   :  { %3502 = vst.msk [vmem:[#allocation2 + $0x1c1] sm:$0x1] %vm3447_vm13, %v10146_v20  ;;  %3519 = vst.msk [vmem:[#allocation2 + $0x359] sm:$0x1] %vm3447_vm13, %v10146_v20  ;;  %v8747_v20 = vpack.i.bf16 %v3793_v25, %v3791_v19  ;;  %v8586_v19 = vunpack.i.h.bf16 %v20420_v57  ;;  %v8585_v25 = vunpack.i.l.bf16 %v20420_v57 }
 0x2dd   :  { %8748 = vrot.lane.b32.xlu0 %v8747_v20, %s10138_s23  ;;  %v8745_v20 = vunpack.i.l.bf16 %v8744_v51  ;;  %v2702_v9 = vsel %vm2639_vm9, %v2637_v4, %v8585_v25  ;;  %v2703_v7 = vsel %vm2639_vm9, %v2638_v33, %v8586_v19 }
 0x2de   :  { %v2768_v15 = vsel %vm2704_vm10, %v2703_v7, %v8746_v41 }
 0x2df   :  { %v2767_v1 = vsel %vm2704_vm10, %v2702_v9, %v8745_v20 }
 0x2e0   :  { %v2800_v2 = vpack.c.bf16 %v2768_v15, %v2767_v1 }
 0x2e2   :  { %7379 = vmatmul.mubr.msk.bf16.gmra.mrb[60].mxu0 %vm2837_vm11, %v2800_v2 }
 0x32e   :  { %v7320_v46 = vpop.f32.mrb[0].mxu0 }
 0x32f   :  { %v3236_v45 = vmul.f32 %v7320_v46, %v14700_v53  ;;  %v2972_v36 = vpop.f32.mrb[1].mxu0 }
 0x330   :  { %v3234_v34 = vmul.f32 %v14700_v53, %v2972_v36  ;;  %v7321_v42 = vpop.f32.mrb[2].mxu0 }
 0x331   :  { %v3307_v44 = vadd.f32 %v14705_v21, %v3236_v45  ;;  %v3237_v60 = vmul.f32 %v7321_v42, %v14700_v53  ;;  %v2975_v11 = vpop.f32.mrb[3].mxu0 }
 0x332   :  { %v3305_v63 = vadd.f32 %v14705_v21, %v3234_v34  ;;  %v3235_v6 = vmul.f32 %v14700_v53, %v2975_v11 }
 0x333   :  { %v3371_v5 = vmax.f32 %v3307_v44, 0.0  ;;  %v3308_v18 = vadd.f32 %v14705_v21, %v3237_v60 }
 0x334   :  { %v3369_v23 = vmax.f32 %v3305_v63, 0.0  ;;  %v3306_v29 = vadd.f32 %v14705_v21, %v3235_v6 }
 0x335   :  { %3523 = vst.msk [vmem:[#allocation2 + $0x31] sm:$0xff] %vm2249_vm2, %v3371_v5  ;;  %v3372_v24 = vmax.f32 %v3308_v18, 0.0 }
 0x336   :  { %3521 = vst.msk [vmem:[#allocation2 + $0x19] sm:$0xff] %vm2249_vm2, %v3369_v23  ;;  %v3370_v8 = vmax.f32 %v3306_v29, 0.0  ;;  %v7324_v40 = vpop.f32.mrb[4].mxu0 }
 0x337   :  { %3524 = vst.msk [vmem:[#allocation2 + $0x39] sm:$0xff] %vm2249_vm2, %v3372_v24  ;;  %v3240_v56 = vmul.f32 %v7324_v40, %v14700_v53  ;;  %v2988_v26 = vpop.f32.mrb[5].mxu0 }
 0x338   :  { %3522 = vst.msk [vmem:[#allocation2 + $0x21] sm:$0xff] %vm2249_vm2, %v3370_v8  ;;  %v3238_v27 = vmul.f32 %v14700_v53, %v2988_v26  ;;  %v7325_v43 = vpop.f32.mrb[6].mxu0 }
 0x339   :  { %v3311_v22 = vadd.f32 %v14705_v21, %v3240_v56  ;;  %v3241_v49 = vmul.f32 %v7325_v43, %v14700_v53  ;;  %v2991_v61 = vpop.f32.mrb[7].mxu0 }
 0x33a   :  { %v3309_v54 = vadd.f32 %v14705_v21, %v3238_v27  ;;  %v3239_v47 = vmul.f32 %v14700_v53, %v2991_v61 }
 0x33b   :  { %v3375_v50 = vmax.f32 %v3311_v22, 0.0  ;;  %v3312_v59 = vadd.f32 %v14705_v21, %v3241_v49 }
 0x33c   :  { %v3373_v51 = vmax.f32 %v3309_v54, 0.0  ;;  %v3310_v39 = vadd.f32 %v14705_v21, %v3239_v47  ;;  %v3591_v38 = vld [vmem:[#allocation2 + $0x30] sm:$0xff] }
 0x33d   :  { %3527 = vst.msk [vmem:[#allocation2 + $0x61] sm:$0xff] %vm2249_vm2, %v3375_v50  ;;  %v3376_v62 = vmax.f32 %v3312_v59, 0.0  ;;  %v3588_v28 = vld [vmem:[#allocation2 + $0x18] sm:$0xff]  ;;  %v3799_v55 = vrot.slane %v3591_v38, 1 }
 0x33e   :  { %3525 = vst.msk [vmem:[#allocation2 + $0x49] sm:$0xff] %vm2249_vm2, %v3373_v51  ;;  %v3374_v31 = vmax.f32 %v3310_v39, 0.0  ;;  %v7328_v48 = vpop.f32.mrb[8].mxu0  ;;  %v3592_v35 = vld [vmem:[#allocation2 + $0x38] sm:$0xff]  ;;  %v3593_v0 = vld [vmem:[#allocation2 + $0x40] sm:$0x3] }
 0x33f   :  { %3528 = vst.msk [vmem:[#allocation2 + $0x69] sm:$0xff] %vm2249_vm2, %v3376_v62  ;;  %v3244_v58 = vmul.f32 %v7328_v48, %v14700_v53  ;;  %v3004_v37 = vpop.f32.mrb[9].mxu0  ;;  %v3800_v14 = vrot.slane %v3592_v35, 1  ;;  %v3802_v3 = vrot.slane %v3593_v0, 1  ;;  %v3589_v12 = vld [vmem:[#allocation2 + $0x20] sm:$0xff]  ;;  %v3794_v25 = vrot.slane %v3588_v28, 1 }
 0x340   :  { %v3590_v10 = vld [vmem:[#allocation2 + $0x28] sm:$0x3]  ;;  %3526 = vst.msk [vmem:[#allocation2 + $0x51] sm:$0xff] %vm2249_vm2, %v3374_v31  ;;  %v3242_v57 = vmul.f32 %v14700_v53, %v3004_v37  ;;  %v7329_v19 = vpop.f32.mrb[10].mxu0  ;;  %v3795_v17 = vrot.slane %v3589_v12, 1 }
 0x341   :  { %v3797_v32 = vrot.slane %v3590_v10, 1  ;;  %v3315_v30 = vadd.f32 %v14705_v21, %v3244_v58  ;;  %v3245_v41 = vmul.f32 %v7329_v19, %v14700_v53  ;;  %v3007_v20 = vpop.f32.mrb[11].mxu0  ;;  %v3801_v13 = vsel %vm339_vm0, %v3799_v55, %v3800_v14 }
 0x342   :  { %v3803_v16 = vsel %vm339_vm0, %v3800_v14, %v3802_v3  ;;  %v3313_v52 = vadd.f32 %v14705_v21, %v3242_v57  ;;  %v3243_v4 = vmul.f32 %v14700_v53, %v3007_v20  ;;  %v3796_v9 = vsel %vm339_vm0, %v3794_v25, %v3795_v17 }
 0x343   :  { %v14739_v33 = vpack.i.bf16 %v3803_v16, %v3801_v13  ;;  %v3379_v7 = vmax.f32 %v3315_v30, 0.0  ;;  %v3316_v1 = vadd.f32 %v14705_v21, %v3245_v41  ;;  %v3798_v15 = vsel %vm339_vm0, %v3795_v17, %v3797_v32 }
 0x344   :  { %v3377_v2 = vmax.f32 %v3313_v52, 0.0  ;;  %v3314_v46 = vadd.f32 %v14705_v21, %v3243_v4  ;;  %v14747_v45 = vpack.i.bf16 %v3798_v15, %v3796_v9  ;;  %v3597_v36 = vld [vmem:[#allocation2 + $0x60] sm:$0xff] }
 0x345   :  { %20422 = vst [vmem:[#allocation197_spill] sm:$0xff] %v14739_v33  ;;  %8758 = vrot.lane.b32.xlu0 %v14739_v33, %s10138_s23  ;;  %3531 = vst.msk [vmem:[#allocation2 + $0x91] sm:$0xff] %vm2249_vm2, %v3379_v7  ;;  %v3380_v34 = vmax.f32 %v3316_v1, 0.0  ;;  %v3594_v42 = vld [vmem:[#allocation2 + $0x48] sm:$0xff]  ;;  %v3809_v6 = vrot.slane %v3597_v36, 1 }
 0x346   :  { %20423 = vst [vmem:[#allocation29_spill] sm:$0xff] %v14747_v45  ;;  %3529 = vst.msk [vmem:[#allocation2 + $0x79] sm:$0xff] %vm2249_vm2, %v3377_v2  ;;  %v3378_v44 = vmax.f32 %v3314_v46, 0.0  ;;  %8753 = vrot.lane.b32.xlu1 %v14747_v45, %s10138_s23  ;;  %v7332_v60 = vpop.f32.mrb[12].mxu0  ;;  %v3598_v11 = vld [vmem:[#allocation2 + $0x68] sm:$0xff]  ;;  %v3804_v26 = vrot.slane %v3594_v42, 1 }
 0x347   :  { %v3599_v63 = vld [vmem:[#allocation2 + $0x70] sm:$0x3]  ;;  %3532 = vst.msk [vmem:[#allocation2 + $0x99] sm:$0xff] %vm2249_vm2, %v3380_v34  ;;  %v3248_v5 = vmul.f32 %v7332_v60, %v14700_v53  ;;  %v3020_v18 = vpop.f32.mrb[13].mxu0  ;;  %v3810_v23 = vrot.slane %v3598_v11, 1 }
 0x348   :  { %v3812_v29 = vrot.slane %v3599_v63, 1  ;;  %v3595_v24 = vld [vmem:[#allocation2 + $0x50] sm:$0xff]  ;;  %v3596_v8 = vld [vmem:[#allocation2 + $0x58] sm:$0x3]  ;;  %3530 = vst.msk [vmem:[#allocation2 + $0x81] sm:$0xff] %vm2249_vm2, %v3378_v44  ;;  %v3246_v40 = vmul.f32 %v14700_v53, %v3020_v18  ;;  %v7333_v56 = vpop.f32.mrb[14].mxu0 }
 0x349   :  { %v3805_v27 = vrot.slane %v3595_v24, 1  ;;  %v3807_v43 = vrot.slane %v3596_v8, 1  ;;  %v3319_v22 = vadd.f32 %v14705_v21, %v3248_v5  ;;  %v3249_v49 = vmul.f32 %v7333_v56, %v14700_v53  ;;  %v3023_v61 = vpop.f32.mrb[15].mxu0 }
 0x34a   :  { %v3811_v54 = vsel %vm339_vm0, %v3809_v6, %v3810_v23  ;;  %v3813_v47 = vsel %vm339_vm0, %v3810_v23, %v3812_v29  ;;  %v3317_v50 = vadd.f32 %v14705_v21, %v3246_v40  ;;  %v3247_v59 = vmul.f32 %v14700_v53, %v3023_v61 }
 0x34b   :  { %v14763_v51 = vpack.i.bf16 %v3813_v47, %v3811_v54  ;;  %v3806_v39 = vsel %vm339_vm0, %v3804_v26, %v3805_v27  ;;  %v3383_v38 = vmax.f32 %v3319_v22, 0.0  ;;  %v3320_v62 = vadd.f32 %v14705_v21, %v3249_v49 }
 0x34c   :  { %v3808_v28 = vsel %vm339_vm0, %v3805_v27, %v3807_v43  ;;  %v3381_v31 = vmax.f32 %v3317_v50, 0.0  ;;  %v3318_v48 = vadd.f32 %v14705_v21, %v3247_v59  ;;  %v3603_v0 = vld [vmem:[#allocation2 + $0x90] sm:$0xff] }
 0x34d   :  { %20424 = vst [vmem:[#allocation198_spill] sm:$0xff] %v14763_v51  ;;  %8768 = vrot.lane.b32.xlu0 %v14763_v51, %s10138_s23  ;;  %v14771_v35 = vpack.i.bf16 %v3808_v28, %v3806_v39  ;;  %3535 = vst.msk [vmem:[#allocation2 + $0xc1] sm:$0xff] %vm2249_vm2, %v3383_v38  ;;  %v3384_v55 = vmax.f32 %v3320_v62, 0.0  ;;  %v3600_v58 = vld [vmem:[#allocation2 + $0x78] sm:$0xff]  ;;  %v3819_v10 = vrot.slane %v3603_v0, 1 }
 0x34e   :  { %3533 = vst.msk [vmem:[#allocation2 + $0xa9] sm:$0xff] %vm2249_vm2, %v3381_v31  ;;  %v3382_v37 = vmax.f32 %v3318_v48, 0.0  ;;  %v7336_v14 = vpop.f32.mrb[16].mxu0  ;;  %v3604_v3 = vld [vmem:[#allocation2 + $0x98] sm:$0xff]  ;;  %v3605_v12 = vld [vmem:[#allocation2 + $0xa0] sm:$0x3] }
 0x34f   :  { %20425 = vst [vmem:[#allocation238_spill] sm:$0xff] %v14771_v35  ;;  %8763 = vrot.lane.b32.xlu1 %v14771_v35, %s10138_s23  ;;  %3536 = vst.msk [vmem:[#allocation2 + $0xc9] sm:$0xff] %vm2249_vm2, %v3384_v55  ;;  %v3252_v57 = vmul.f32 %v7336_v14, %v14700_v53  ;;  %v3036_v19 = vpop.f32.mrb[17].mxu0  ;;  %v3820_v25 = vrot.slane %v3604_v3, 1  ;;  %v3822_v17 = vrot.slane %v3605_v12, 1  ;;  %v3601_v32 = vld [vmem:[#allocation2 + $0x80] sm:$0xff] }
 0x350   :  { %v3602_v30 = vld [vmem:[#allocation2 + $0x88] sm:$0x3]  ;;  %3534 = vst.msk [vmem:[#allocation2 + $0xb1] sm:$0xff] %vm2249_vm2, %v3382_v37  ;;  %v3250_v41 = vmul.f32 %v14700_v53, %v3036_v19  ;;  %v7337_v20 = vpop.f32.mrb[18].mxu0  ;;  %v3814_v13 = vrot.slane %v3600_v58, 1  ;;  %v3815_v16 = vrot.slane %v3601_v32, 1 }
 0x351   :  { %v3817_v52 = vrot.slane %v3602_v30, 1  ;;  %v3323_v4 = vadd.f32 %v14705_v21, %v3252_v57  ;;  %v3253_v9 = vmul.f32 %v7337_v20, %v14700_v53  ;;  %v3039_v7 = vpop.f32.mrb[19].mxu0  ;;  %v3821_v1 = vsel %vm339_vm0, %v3819_v10, %v3820_v25 }
 0x352   :  { %v3823_v15 = vsel %vm339_vm0, %v3820_v25, %v3822_v17  ;;  %v3321_v2 = vadd.f32 %v14705_v21, %v3250_v41  ;;  %v3251_v46 = vmul.f32 %v14700_v53, %v3039_v7  ;;  %v3816_v34 = vsel %vm339_vm0, %v3814_v13, %v3815_v16 }
 0x353   :  { %v14787_v36 = vpack.i.bf16 %v3823_v15, %v3821_v1  ;;  %v3387_v42 = vmax.f32 %v3323_v4, 0.0  ;;  %v3324_v44 = vadd.f32 %v14705_v21, %v3253_v9  ;;  %v3818_v60 = vsel %vm339_vm0, %v3815_v16, %v3817_v52 }
 0x354   :  { %v3385_v11 = vmax.f32 %v3321_v2, 0.0  ;;  %v3322_v63 = vadd.f32 %v14705_v21, %v3251_v46  ;;  %v14795_v6 = vpack.i.bf16 %v3818_v60, %v3816_v34  ;;  %v3609_v5 = vld [vmem:[#allocation2 + $0xc0] sm:$0xff] }
 0x355   :  { %20426 = vst [vmem:[#allocation239_spill] sm:$0xff] %v14787_v36  ;;  %8778 = vrot.lane.b32.xlu0 %v14787_v36, %s10138_s23  ;;  %3539 = vst.msk [vmem:[#allocation2 + $0xf1] sm:$0xff] %vm2249_vm2, %v3387_v42  ;;  %v3388_v18 = vmax.f32 %v3324_v44, 0.0  ;;  %v3606_v23 = vld [vmem:[#allocation2 + $0xa8] sm:$0xff]  ;;  %v3829_v56 = vrot.slane %v3609_v5, 1 }
 0x356   :  { %20427 = vst [vmem:[#allocation79_spill] sm:$0xff] %v14795_v6  ;;  %3537 = vst.msk [vmem:[#allocation2 + $0xd9] sm:$0xff] %vm2249_vm2, %v3385_v11  ;;  %v3386_v29 = vmax.f32 %v3322_v63, 0.0  ;;  %8773 = vrot.lane.b32.xlu1 %v14795_v6, %s10138_s23  ;;  %v7340_v24 = vpop.f32.mrb[20].mxu0  ;;  %v14801_v8 = vld [vmem:[#allocation2 + $0xc8] sm:$0xff]  ;;  %v3824_v50 = vrot.slane %v3606_v23, 1 }
 0x357   :  { %v14803_v40 = vld [vmem:[#allocation2 + $0xd0] sm:$0x3]  ;;  %3540 = vst.msk [vmem:[#allocation2 + $0xf9] sm:$0xff] %vm2249_vm2, %v3388_v18  ;;  %v3256_v26 = vmul.f32 %v7340_v24, %v14700_v53  ;;  %v3052_v27 = vpop.f32.mrb[21].mxu0  ;;  %v3830_v43 = vrot.slane %v14801_v8, 1 }
 0x358   :  { %v3832_v22 = vrot.slane %v14803_v40, 1  ;;  %v14809_v49 = vld [vmem:[#allocation2 + $0xb0] sm:$0xff]  ;;  %v14811_v61 = vld [vmem:[#allocation2 + $0xb8] sm:$0x3]  ;;  %3538 = vst.msk [vmem:[#allocation2 + $0xe1] sm:$0xff] %vm2249_vm2, %v3386_v29  ;;  %v3254_v54 = vmul.f32 %v14700_v53, %v3052_v27  ;;  %v7341_v47 = vpop.f32.mrb[22].mxu0 }
 0x359   :  { %v3825_v59 = vrot.slane %v14809_v49, 1  ;;  %v3827_v39 = vrot.slane %v14811_v61, 1  ;;  %v3327_v38 = vadd.f32 %v14705_v21, %v3256_v26  ;;  %v3257_v62 = vmul.f32 %v7341_v47, %v14700_v53  ;;  %v3055_v28 = vpop.f32.mrb[23].mxu0  ;;  %v14868_v26 = vld [vmem:[#allocation2 + $0x1b0] sm:$0xff]  ;;  %v14870_v27 = vld [vmem:[#allocation2 + $0x1b8] sm:$0xff] }
 0x35a   :  { %v3831_v31 = vsel %vm339_vm0, %v3829_v56, %v3830_v43  ;;  %v3833_v48 = vsel %vm339_vm0, %v3830_v43, %v3832_v22  ;;  %v3325_v0 = vadd.f32 %v14705_v21, %v3254_v54  ;;  %v3255_v55 = vmul.f32 %v14700_v53, %v3055_v28 }
 0x35b   :  { %v14823_v58 = vpack.i.bf16 %v3833_v48, %v3831_v31  ;;  %v3826_v37 = vsel %vm339_vm0, %v3824_v50, %v3825_v59  ;;  %v3391_v14 = vmax.f32 %v3327_v38, 0.0  ;;  %v3328_v3 = vadd.f32 %v14705_v21, %v3257_v62 }
 0x35c   :  { %v3828_v12 = vsel %vm339_vm0, %v3825_v59, %v3827_v39  ;;  %v3389_v10 = vmax.f32 %v3325_v0, 0.0  ;;  %v3326_v57 = vadd.f32 %v14705_v21, %v3255_v55  ;;  %v14833_v25 = vld [vmem:[#allocation2 + $0xf0] sm:$0xff]  ;;  %v3869_v28 = vrot.slane %v14868_v26, 1 }
 0x35d   :  { %20428 = vst [vmem:[#allocation240_spill] sm:$0xff] %v14823_v58  ;;  %8788 = vrot.lane.b32.xlu0 %v14823_v58, %s10138_s23  ;;  %v14831_v19 = vpack.i.bf16 %v3828_v12, %v3826_v37  ;;  %3543 = vst.msk [vmem:[#allocation2 + $0x121] sm:$0xff] %vm2249_vm2, %v3391_v14  ;;  %v3392_v17 = vmax.f32 %v3328_v3, 0.0  ;;  %v14836_v32 = vld [vmem:[#allocation2 + $0xd8] sm:$0xff]  ;;  %v3839_v16 = vrot.slane %v14833_v25, 1  ;;  %v3870_v31 = vrot.slane %v14870_v27, 1 }
 0x35e   :  { %3541 = vst.msk [vmem:[#allocation2 + $0x109] sm:$0xff] %vm2249_vm2, %v3389_v10  ;;  %v3390_v30 = vmax.f32 %v3326_v57, 0.0  ;;  %v7344_v41 = vpop.f32.mrb[24].mxu0  ;;  %v14841_v20 = vld [vmem:[#allocation2 + $0xf8] sm:$0xff]  ;;  %v14843_v13 = vld [vmem:[#allocation2 + $0x100] sm:$0x3] }
 0x35f   :  { %20429 = vst [vmem:[#allocation241_spill] sm:$0xff] %v14831_v19  ;;  %8783 = vrot.lane.b32.xlu1 %v14831_v19, %s10138_s23  ;;  %3544 = vst.msk [vmem:[#allocation2 + $0x129] sm:$0xff] %vm2249_vm2, %v3392_v17  ;;  %v3260_v52 = vmul.f32 %v7344_v41, %v14700_v53  ;;  %v3068_v4 = vpop.f32.mrb[25].mxu0  ;;  %v3840_v9 = vrot.slane %v14841_v20, 1  ;;  %v3842_v7 = vrot.slane %v14843_v13, 1  ;;  %v14850_v1 = vld [vmem:[#allocation2 + $0xe0] sm:$0xff] }
 0x360   :  { %v14852_v15 = vld [vmem:[#allocation2 + $0xe8] sm:$0x3]  ;;  %3542 = vst.msk [vmem:[#allocation2 + $0x111] sm:$0xff] %vm2249_vm2, %v3390_v30  ;;  %v3258_v2 = vmul.f32 %v14700_v53, %v3068_v4  ;;  %v7345_v46 = vpop.f32.mrb[26].mxu0  ;;  %v3834_v34 = vrot.slane %v14836_v32, 1  ;;  %v3835_v42 = vrot.slane %v14850_v1, 1 }
 0x361   :  { %v3837_v44 = vrot.slane %v14852_v15, 1  ;;  %v3331_v60 = vadd.f32 %v14705_v21, %v3260_v52  ;;  %v3261_v11 = vmul.f32 %v7345_v46, %v14700_v53  ;;  %v3071_v63 = vpop.f32.mrb[27].mxu0  ;;  %v3841_v5 = vsel %vm339_vm0, %v3839_v16, %v3840_v9 }
 0x362   :  { %v3843_v18 = vsel %vm339_vm0, %v3840_v9, %v3842_v7  ;;  %v3329_v23 = vadd.f32 %v14705_v21, %v3258_v2  ;;  %v3259_v29 = vmul.f32 %v14700_v53, %v3071_v63  ;;  %v3836_v56 = vsel %vm339_vm0, %v3834_v34, %v3835_v42  ;;  %v14907_v7 = vld [vmem:[#allocation2 + $0x1c0] sm:$0x3] }
 0x363   :  { %v14865_v24 = vpack.i.bf16 %v3843_v18, %v3841_v5  ;;  %v3395_v43 = vmax.f32 %v3331_v60, 0.0  ;;  %v3332_v22 = vadd.f32 %v14705_v21, %v3261_v11  ;;  %v3838_v54 = vsel %vm339_vm0, %v3835_v42, %v3837_v44 }
 0x364   :  { %v3393_v47 = vmax.f32 %v3329_v23, 0.0  ;;  %v3330_v50 = vadd.f32 %v14705_v21, %v3259_v29  ;;  %v14877_v59 = vpack.i.bf16 %v3838_v54, %v3836_v56  ;;  %v14879_v39 = vld [vmem:[#allocation2 + $0x120] sm:$0xff]  ;;  %v3872_v56 = vrot.slane %v14907_v7, 1 }
 0x365   :  { %20430 = vst [vmem:[#allocation242_spill] sm:$0xff] %v14865_v24  ;;  %8798 = vrot.lane.b32.xlu0 %v14865_v24, %s10138_s23  ;;  %3547 = vst.msk [vmem:[#allocation2 + $0x151] sm:$0xff] %vm2249_vm2, %v3395_v43  ;;  %v3396_v38 = vmax.f32 %v3332_v22, 0.0  ;;  %v14882_v62 = vld [vmem:[#allocation2 + $0x108] sm:$0xff]  ;;  %v3849_v14 = vrot.slane %v14879_v39, 1 }
 0x366   :  { %20431 = vst [vmem:[#allocation138_spill] sm:$0xff] %v14877_v59  ;;  %3545 = vst.msk [vmem:[#allocation2 + $0x139] sm:$0xff] %vm2249_vm2, %v3393_v47  ;;  %v3394_v48 = vmax.f32 %v3330_v50, 0.0  ;;  %8793 = vrot.lane.b32.xlu1 %v14877_v59, %s10138_s23  ;;  %v7348_v0 = vpop.f32.mrb[28].mxu0  ;;  %v14889_v55 = vld [vmem:[#allocation2 + $0x128] sm:$0xff]  ;;  %v3844_v52 = vrot.slane %v14882_v62, 1 }
 0x367   :  { %v14891_v37 = vld [vmem:[#allocation2 + $0x130] sm:$0x3]  ;;  %3548 = vst.msk [vmem:[#allocation2 + $0x159] sm:$0xff] %vm2249_vm2, %v3396_v38  ;;  %v3264_v3 = vmul.f32 %v7348_v0, %v14700_v53  ;;  %v3084_v12 = vpop.f32.mrb[29].mxu0  ;;  %v3850_v10 = vrot.slane %v14889_v55, 1 }
 0x368   :  { %v3852_v57 = vrot.slane %v14891_v37, 1  ;;  %v14898_v17 = vld [vmem:[#allocation2 + $0x110] sm:$0xff]  ;;  %v14900_v30 = vld [vmem:[#allocation2 + $0x118] sm:$0x3]  ;;  %3546 = vst.msk [vmem:[#allocation2 + $0x141] sm:$0xff] %vm2249_vm2, %v3394_v48  ;;  %v3262_v41 = vmul.f32 %v14700_v53, %v3084_v12  ;;  %v7349_v16 = vpop.f32.mrb[30].mxu0 }
 0x369   :  { %v3845_v4 = vrot.slane %v14898_v17, 1  ;;  %v3847_v9 = vrot.slane %v14900_v30, 1  ;;  %v3335_v2 = vadd.f32 %v14705_v21, %v3264_v3  ;;  %v3265_v46 = vmul.f32 %v7349_v16, %v14700_v53  ;;  %v3087_v34 = vpop.f32.mrb[31].mxu0 }
 0x36a   :  { %v3851_v42 = vsel %vm339_vm0, %v3849_v14, %v3850_v10  ;;  %v3853_v44 = vsel %vm339_vm0, %v3850_v10, %v3852_v57  ;;  %v3333_v60 = vadd.f32 %v14705_v21, %v3262_v41  ;;  %v3263_v11 = vmul.f32 %v14700_v53, %v3087_v34 }
 0x36b   :  { %v14915_v63 = vpack.i.bf16 %v3853_v44, %v3851_v42  ;;  %v3846_v5 = vsel %vm339_vm0, %v3844_v52, %v3845_v4  ;;  %v3399_v18 = vmax.f32 %v3335_v2, 0.0  ;;  %v3336_v23 = vadd.f32 %v14705_v21, %v3265_v46 }
 0x36c   :  { %v3848_v29 = vsel %vm339_vm0, %v3845_v4, %v3847_v9  ;;  %v3397_v43 = vmax.f32 %v3333_v60, 0.0  ;;  %v3334_v22 = vadd.f32 %v14705_v21, %v3263_v11  ;;  %v14926_v47 = vld [vmem:[#allocation2 + $0x150] sm:$0xff]  ;;  %v3871_v10 = vsel %vm339_vm0, %v3869_v28, %v3870_v31 }
 0x36d   :  { %20432 = vst [vmem:[#allocation86_spill] sm:$0xff] %v14915_v63  ;;  %8808 = vrot.lane.b32.xlu0 %v14915_v63, %s10138_s23  ;;  %v14924_v54 = vpack.i.bf16 %v3848_v29, %v3846_v5  ;;  %3551 = vst.msk [vmem:[#allocation2 + $0x181] sm:$0xff] %vm2249_vm2, %v3399_v18  ;;  %v3400_v50 = vmax.f32 %v3336_v23, 0.0  ;;  %v14929_v38 = vld [vmem:[#allocation2 + $0x138] sm:$0xff]  ;;  %v3859_v12 = vrot.slane %v14926_v47, 1  ;;  %v3873_v2 = vsel %vm339_vm0, %v3870_v31, %v3872_v56 }
 0x36e   :  { %3549 = vst.msk [vmem:[#allocation2 + $0x169] sm:$0xff] %vm2249_vm2, %v3397_v43  ;;  %v3398_v48 = vmax.f32 %v3334_v22, 0.0  ;;  %v7352_v0 = vpop.f32.mrb[32].mxu0  ;;  %v14934_v14 = vld [vmem:[#allocation2 + $0x158] sm:$0xff]  ;;  %v14936_v3 = vld [vmem:[#allocation2 + $0x160] sm:$0x3] }
 0x36f   :  { %20433 = vst [vmem:[#allocation243_spill] sm:$0xff] %v14924_v54  ;;  %8803 = vrot.lane.b32.xlu1 %v14924_v54, %s10138_s23  ;;  %3552 = vst.msk [vmem:[#allocation2 + $0x189] sm:$0xff] %vm2249_vm2, %v3400_v50  ;;  %v3268_v57 = vmul.f32 %v7352_v0, %v14700_v53  ;;  %v3100_v41 = vpop.f32.mrb[33].mxu0  ;;  %v3860_v16 = vrot.slane %v14934_v14, 1  ;;  %v3862_v52 = vrot.slane %v14936_v3, 1  ;;  %v14944_v4 = vld [vmem:[#allocation2 + $0x140] sm:$0xff] }
 0x370   :  { %v14946_v9 = vld [vmem:[#allocation2 + $0x148] sm:$0x3]  ;;  %3550 = vst.msk [vmem:[#allocation2 + $0x171] sm:$0xff] %vm2249_vm2, %v3398_v48  ;;  %v3266_v46 = vmul.f32 %v14700_v53, %v3100_v41  ;;  %v7353_v28 = vpop.f32.mrb[34].mxu0  ;;  %v3854_v34 = vrot.slane %v14929_v38, 1  ;;  %v3855_v42 = vrot.slane %v14944_v4, 1  ;;  %v8827_v41 = vpack.i.bf16 %v3873_v2, %v3871_v10 }
 0x371   :  { %v3857_v44 = vrot.slane %v14946_v9, 1  ;;  %v3339_v60 = vadd.f32 %v14705_v21, %v3268_v57  ;;  %v3269_v11 = vmul.f32 %v7353_v28, %v14700_v53  ;;  %v3103_v5 = vpop.f32.mrb[35].mxu0  ;;  %v3861_v18 = vsel %vm339_vm0, %v3859_v12, %v3860_v16 }
 0x372   :  { %v3863_v31 = vsel %vm339_vm0, %v3860_v16, %v3862_v52  ;;  %v3337_v23 = vadd.f32 %v14705_v21, %v3266_v46  ;;  %v3267_v29 = vmul.f32 %v14700_v53, %v3103_v5  ;;  %v3856_v43 = vsel %vm339_vm0, %v3854_v34, %v3855_v42 }
 0x373   :  { %v14960_v56 = vpack.i.bf16 %v3863_v31, %v3861_v18  ;;  %v3403_v22 = vmax.f32 %v3339_v60, 0.0  ;;  %v3340_v50 = vadd.f32 %v14705_v21, %v3269_v11  ;;  %v3858_v48 = vsel %vm339_vm0, %v3855_v42, %v3857_v44 }
 0x374   :  { %v3401_v0 = vmax.f32 %v3337_v23, 0.0  ;;  %v3338_v57 = vadd.f32 %v14705_v21, %v3267_v29  ;;  %v14968_v12 = vpack.i.bf16 %v3858_v48, %v3856_v43 }
 0x375   :  { %20434 = vst [vmem:[#allocation41_spill] sm:$0xff] %v14960_v56  ;;  %8818 = vrot.lane.b32.xlu0 %v14960_v56, %s10138_s23  ;;  %3555 = vst.msk [vmem:[#allocation2 + $0x1e1] sm:$0xff] %vm2249_vm2, %v3403_v22  ;;  %v3404_v16 = vmax.f32 %v3340_v50, 0.0  ;;  %v14971_v52 = vld [vmem:[#allocation2 + $0x168] sm:$0xff] }
 0x376   :  { %20435 = vst [vmem:[#allocation44_spill] sm:$0xff] %v14968_v12  ;;  %3553 = vst.msk [vmem:[#allocation2 + $0x1c9] sm:$0xff] %vm2249_vm2, %v3401_v0  ;;  %v3402_v46 = vmax.f32 %v3338_v57, 0.0  ;;  %8813 = vrot.lane.b32.xlu1 %v14968_v12, %s10138_s23  ;;  %v7356_v28 = vpop.f32.mrb[36].mxu0  ;;  %v3864_v11 = vrot.slane %v14971_v52, 1 }
 0x377   :  { %3556 = vst.msk [vmem:[#allocation2 + $0x1e9] sm:$0xff] %vm2249_vm2, %v3404_v16  ;;  %v3272_v34 = vmul.f32 %v7356_v28, %v14700_v53  ;;  %v3116_v42 = vpop.f32.mrb[37].mxu0  ;;  %v14978_v44 = vld [vmem:[#allocation2 + $0x170] sm:$0xff]  ;;  %v14980_v10 = vld [vmem:[#allocation2 + $0x178] sm:$0x3] }
 0x378   :  { %3554 = vst.msk [vmem:[#allocation2 + $0x1d1] sm:$0xff] %vm2249_vm2, %v3402_v46  ;;  %v3270_v2 = vmul.f32 %v14700_v53, %v3116_v42  ;;  %v7357_v60 = vpop.f32.mrb[38].mxu0  ;;  %v3865_v5 = vrot.slane %v14978_v44, 1  ;;  %v3867_v18 = vrot.slane %v14980_v10, 1 }
 0x379   :  { %8828 = vrot.lane.b32.xlu0 %v8827_v41, %s10138_s23  ;;  %v3343_v31 = vadd.f32 %v14705_v21, %v3272_v34  ;;  %v3273_v23 = vmul.f32 %v7357_v60, %v14700_v53  ;;  %v3119_v29 = vpop.f32.mrb[39].mxu0 }
 0x37a   :  { %v3341_v43 = vadd.f32 %v14705_v21, %v3270_v2  ;;  %v3271_v22 = vmul.f32 %v14700_v53, %v3119_v29  ;;  %v3866_v50 = vsel %vm339_vm0, %v3864_v11, %v3865_v5  ;;  %v3868_v48 = vsel %vm339_vm0, %v3865_v5, %v3867_v18 }
 0x37b   :  { %v3407_v0 = vmax.f32 %v3343_v31, 0.0  ;;  %v3344_v57 = vadd.f32 %v14705_v21, %v3273_v23  ;;  %v14995_v16 = vpack.i.bf16 %v3868_v48, %v3866_v50 }
 0x37c   :  { %v3405_v46 = vmax.f32 %v3341_v43, 0.0  ;;  %v3342_v41 = vadd.f32 %v14705_v21, %v3271_v22  ;;  %v14998_v28 = vld [vmem:[#allocation2 + $0x1e0] sm:$0xff] }
 0x37d   :  { %20436 = vst [vmem:[#allocation37_spill] sm:$0xff] %v14995_v16  ;;  %3559 = vst.msk [vmem:[#allocation2 + $0x211] sm:$0xff] %vm2249_vm2, %v3407_v0  ;;  %v3408_v34 = vmax.f32 %v3344_v57, 0.0  ;;  %8823 = vrot.lane.b32.xlu1 %v14995_v16, %s10138_s23  ;;  %v15003_v42 = vld [vmem:[#allocation2 + $0x1c8] sm:$0xff]  ;;  %v3879_v18 = vrot.slane %v14998_v28, 1 }
 0x37e   :  { %3557 = vst.msk [vmem:[#allocation2 + $0x1f9] sm:$0xff] %vm2249_vm2, %v3405_v46  ;;  %v3406_v2 = vmax.f32 %v3342_v41, 0.0  ;;  %v7360_v60 = vpop.f32.mrb[40].mxu0  ;;  %v15006_v11 = vld [vmem:[#allocation2 + $0x1e8] sm:$0xff]  ;;  %v15008_v5 = vld [vmem:[#allocation2 + $0x1f0] sm:$0x3] }
 0x37f   :  { %3560 = vst.msk [vmem:[#allocation2 + $0x219] sm:$0xff] %vm2249_vm2, %v3408_v34  ;;  %v3276_v31 = vmul.f32 %v7360_v60, %v14700_v53  ;;  %v3132_v23 = vpop.f32.mrb[41].mxu0  ;;  %v3880_v29 = vrot.slane %v15006_v11, 1  ;;  %v3882_v43 = vrot.slane %v15008_v5, 1  ;;  %v15015_v22 = vld [vmem:[#allocation2 + $0x1d0] sm:$0xff]  ;;  %v3874_v57 = vrot.slane %v15003_v42, 1 }
 0x380   :  { %v15017_v50 = vld [vmem:[#allocation2 + $0x1d8] sm:$0x3]  ;;  %3558 = vst.msk [vmem:[#allocation2 + $0x201] sm:$0xff] %vm2249_vm2, %v3406_v2  ;;  %v3274_v48 = vmul.f32 %v14700_v53, %v3132_v23  ;;  %v7361_v0 = vpop.f32.mrb[42].mxu0  ;;  %v3875_v46 = vrot.slane %v15015_v22, 1 }
 0x381   :  { %v3877_v41 = vrot.slane %v15017_v50, 1  ;;  %v3347_v34 = vadd.f32 %v14705_v21, %v3276_v31  ;;  %v3277_v60 = vmul.f32 %v7361_v0, %v14700_v53  ;;  %v3135_v56 = vpop.f32.mrb[43].mxu0  ;;  %v3881_v63 = vsel %vm339_vm0, %v3879_v18, %v3880_v29 }
 0x382   :  { %v3883_v16 = vsel %vm339_vm0, %v3880_v29, %v3882_v43  ;;  %v3345_v2 = vadd.f32 %v14705_v21, %v3274_v48  ;;  %v3275_v23 = vmul.f32 %v14700_v53, %v3135_v56  ;;  %v3876_v12 = vsel %vm339_vm0, %v3874_v57, %v3875_v46 }
 0x383   :  { %v15030_v24 = vpack.i.bf16 %v3883_v16, %v3881_v63  ;;  %v3411_v58 = vmax.f32 %v3347_v34, 0.0  ;;  %v3348_v54 = vadd.f32 %v14705_v21, %v3277_v60  ;;  %v3878_v31 = vsel %vm339_vm0, %v3875_v46, %v3877_v41 }
 0x384   :  { %v3409_v36 = vmax.f32 %v3345_v2, 0.0  ;;  %v3346_v0 = vadd.f32 %v14705_v21, %v3275_v23  ;;  %v15038_v18 = vpack.i.bf16 %v3878_v31, %v3876_v12  ;;  %v15040_v29 = vld [vmem:[#allocation2 + $0x210] sm:$0xff] }
 0x385   :  { %20437 = vst [vmem:[#allocation199_spill] sm:$0xff] %v15030_v24  ;;  %8838 = vrot.lane.b32.xlu0 %v15030_v24, %s10138_s23  ;;  %3563 = vst.msk [vmem:[#allocation2 + $0x241] sm:$0xff] %vm2249_vm2, %v3411_v58  ;;  %v3412_v63 = vmax.f32 %v3348_v54, 0.0  ;;  %v15043_v56 = vld [vmem:[#allocation2 + $0x1f8] sm:$0xff]  ;;  %v3889_v12 = vrot.slane %v15040_v29, 1 }
 0x386   :  { %20438 = vst [vmem:[#allocation51_spill] sm:$0xff] %v15038_v18  ;;  %20439 = vst [vmem:[#allocation55_spill] sm:$0xff] %v15043_v56  ;;  %v3410_v16 = vmax.f32 %v3346_v0, 0.0  ;;  %8833 = vrot.lane.b32.xlu1 %v15038_v18, %s10138_s23  ;;  %v7364_v43 = vpop.f32.mrb[44].mxu0  ;;  %v15048_v48 = vld [vmem:[#allocation2 + $0x218] sm:$0xff]  ;;  %v3884_v23 = vrot.slane %v15043_v56, 1 }
 0x387   :  { %3561 = vst.msk [vmem:[#allocation2 + $0x229] sm:$0xff] %vm2249_vm2, %v3409_v36  ;;  %v15050_v57 = vld [vmem:[#allocation2 + $0x220] sm:$0x3]  ;;  %3564 = vst.msk [vmem:[#allocation2 + $0x249] sm:$0xff] %vm2249_vm2, %v3412_v63  ;;  %v3280_v58 = vmul.f32 %v7364_v43, %v14700_v53  ;;  %v3148_v54 = vpop.f32.mrb[45].mxu0  ;;  %v3890_v46 = vrot.slane %v15048_v48, 1 }
 0x388   :  { %v3892_v36 = vrot.slane %v15050_v57, 1  ;;  %v15057_v41 = vld [vmem:[#allocation2 + $0x200] sm:$0xff]  ;;  %v15059_v34 = vld [vmem:[#allocation2 + $0x208] sm:$0x3]  ;;  %3562 = vst.msk [vmem:[#allocation2 + $0x231] sm:$0xff] %vm2249_vm2, %v3410_v16  ;;  %v3278_v60 = vmul.f32 %v14700_v53, %v3148_v54  ;;  %v7365_v2 = vpop.f32.mrb[46].mxu0 }
 0x389   :  { %20440 = vst [vmem:[#allocation48_spill] sm:$0xff] %v15057_v41  ;;  %20441 = vst [vmem:[#allocation262_spill] sm:$0xff] %v15059_v34  ;;  %v3885_v31 = vrot.slane %v15057_v41, 1  ;;  %v3887_v0 = vrot.slane %v15059_v34, 1  ;;  %v3351_v63 = vadd.f32 %v14705_v21, %v3280_v58  ;;  %v3281_v43 = vmul.f32 %v7365_v2, %v14700_v53  ;;  %v3151_v24 = vpop.f32.mrb[47].mxu0 }
 0x38a   :  { %v3891_v18 = vsel %vm339_vm0, %v3889_v12, %v3890_v46  ;;  %v3893_v59 = vsel %vm339_vm0, %v3890_v46, %v3892_v36  ;;  %v3349_v16 = vadd.f32 %v14705_v21, %v3278_v60  ;;  %v3279_v54 = vmul.f32 %v14700_v53, %v3151_v24 }
 0x38b   :  { %v15072_v51 = vpack.i.bf16 %v3893_v59, %v3891_v18  ;;  %v3886_v19 = vsel %vm339_vm0, %v3884_v23, %v3885_v31  ;;  %v3415_v33 = vmax.f32 %v3351_v63, 0.0  ;;  %v3352_v6 = vadd.f32 %v14705_v21, %v3281_v43 }
 0x38c   :  { %v3888_v58 = vsel %vm339_vm0, %v3885_v31, %v3887_v0  ;;  %v3413_v35 = vmax.f32 %v3349_v16, 0.0  ;;  %v3350_v2 = vadd.f32 %v14705_v21, %v3279_v54  ;;  %v15082_v46 = vld [vmem:[#allocation2 + $0x240] sm:$0xff] }
 0x38d   :  { %20442 = vst [vmem:[#allocation151_spill] sm:$0xff] %v15072_v51  ;;  %8848 = vrot.lane.b32.xlu0 %v15072_v51, %s10138_s23  ;;  %v15080_v12 = vpack.i.bf16 %v3888_v58, %v3886_v19  ;;  %20444 = vst [vmem:[#allocation92_spill] sm:$0xff] %v15082_v46  ;;  %v3416_v24 = vmax.f32 %v3352_v6, 0.0  ;;  %v3899_v19 = vrot.slane %v15082_v46, 1 }
 0x38e   :  { %3567 = vst.msk [vmem:[#allocation2 + $0x271] sm:$0xff] %vm2249_vm2, %v3415_v33  ;;  %v15085_v59 = vld [vmem:[#allocation2 + $0x228] sm:$0xff]  ;;  %3565 = vst.msk [vmem:[#allocation2 + $0x259] sm:$0xff] %vm2249_vm2, %v3413_v35  ;;  %v3414_v18 = vmax.f32 %v3350_v2, 0.0  ;;  %v7368_v36 = vpop.f32.mrb[48].mxu0 }
 0x38f   :  { %20443 = vst [vmem:[#allocation246_spill] sm:$0xff] %v15080_v12  ;;  %20445 = vst [vmem:[#allocation248_spill] sm:$0xff] %v15085_v59  ;;  %8843 = vrot.lane.b32.xlu1 %v15080_v12, %s10138_s23  ;;  %v15090_v60 = vld [vmem:[#allocation2 + $0x248] sm:$0xff]  ;;  %v15092_v23 = vld [vmem:[#allocation2 + $0x250] sm:$0x3]  ;;  %v3284_v33 = vmul.f32 %v7368_v36, %v14700_v53  ;;  %v3164_v6 = vpop.f32.mrb[49].mxu0 }
 0x390   :  { %20446 = vst [vmem:[#allocation249_spill] sm:$0xff] %v15092_v23  ;;  %3568 = vst.msk [vmem:[#allocation2 + $0x279] sm:$0xff] %vm2249_vm2, %v3416_v24  ;;  %v3900_v31 = vrot.slane %v15090_v60, 1  ;;  %v3902_v35 = vrot.slane %v15092_v23, 1  ;;  %v15099_v0 = vld [vmem:[#allocation2 + $0x230] sm:$0xff]  ;;  %v3282_v43 = vmul.f32 %v14700_v53, %v3164_v6  ;;  %v7369_v16 = vpop.f32.mrb[50].mxu0 }
 0x391   :  { %20447 = vst [vmem:[#allocation250_spill] sm:$0xff] %v15099_v0  ;;  %v15101_v63 = vld [vmem:[#allocation2 + $0x238] sm:$0x3]  ;;  %3566 = vst.msk [vmem:[#allocation2 + $0x261] sm:$0xff] %vm2249_vm2, %v3414_v18  ;;  %v3894_v54 = vrot.slane %v15085_v59, 1  ;;  %v3895_v58 = vrot.slane %v15099_v0, 1  ;;  %v3355_v24 = vadd.f32 %v14705_v21, %v3284_v33  ;;  %v3285_v36 = vmul.f32 %v7369_v16, %v14700_v53 }
 0x392   :  { %20448 = vst [vmem:[#allocation251_spill] sm:$0xff] %v15101_v63  ;;  %v3897_v2 = vrot.slane %v15101_v63, 1  ;;  %v3167_v51 = vpop.f32.mrb[51].mxu0  ;;  %v3901_v12 = vsel %vm339_vm0, %v3899_v19, %v3900_v31  ;;  %v3903_v45 = vsel %vm339_vm0, %v3900_v31, %v3902_v35  ;;  %v3353_v18 = vadd.f32 %v14705_v21, %v3282_v43 }
 0x393   :  { %v3283_v6 = vmul.f32 %v14700_v53, %v3167_v51  ;;  %v15114_v56 = vpack.i.bf16 %v3903_v45, %v3901_v12  ;;  %v3896_v59 = vsel %vm339_vm0, %v3894_v54, %v3895_v58  ;;  %v3419_v0 = vmax.f32 %v3355_v24, 0.0 }
 0x394   :  { %v3356_v63 = vadd.f32 %v14705_v21, %v3285_v36  ;;  %v3898_v33 = vsel %vm339_vm0, %v3895_v58, %v3897_v2  ;;  %v3417_v34 = vmax.f32 %v3353_v18, 0.0 }
 0x395   :  { %20449 = vst [vmem:[#allocation96_spill] sm:$0xff] %v15114_v56  ;;  %v3354_v16 = vadd.f32 %v14705_v21, %v3283_v6  ;;  %8858 = vrot.lane.b32.xlu0 %v15114_v56, %s10138_s23  ;;  %v15122_v19 = vpack.i.bf16 %v3898_v33, %v3896_v59  ;;  %v15124_v31 = vld [vmem:[#allocation2 + $0x270] sm:$0xff]  ;;  %3571 = vst.msk [vmem:[#allocation2 + $0x2a1] sm:$0xff] %vm2249_vm2, %v3419_v0  ;;  %v15127_v51 = vld [vmem:[#allocation2 + $0x258] sm:$0xff] }
 0x396   :  { %20451 = vst [vmem:[#allocation100_spill] sm:$0xff] %v15124_v31  ;;  %v3420_v45 = vmax.f32 %v3356_v63, 0.0  ;;  %20452 = vst [vmem:[#allocation107_spill] sm:$0xff] %v15127_v51  ;;  %v7372_v35 = vpop.f32.mrb[52].mxu0  ;;  %v3909_v59 = vrot.slane %v15124_v31, 1  ;;  %v3904_v6 = vrot.slane %v15127_v51, 1 }
 0x397   :  { %20450 = vst [vmem:[#allocation172_spill] sm:$0xff] %v15122_v19  ;;  %3569 = vst.msk [vmem:[#allocation2 + $0x289] sm:$0xff] %vm2249_vm2, %v3417_v34  ;;  %v3418_v12 = vmax.f32 %v3354_v16, 0.0  ;;  %8853 = vrot.lane.b32.xlu1 %v15122_v19, %s10138_s23  ;;  %v15132_v43 = vld [vmem:[#allocation2 + $0x278] sm:$0xff]  ;;  %v15134_v54 = vld [vmem:[#allocation2 + $0x280] sm:$0x3]  ;;  %v3288_v0 = vmul.f32 %v7372_v35, %v14700_v53 }
 0x398   :  { %20453 = vst [vmem:[#allocation252_spill] sm:$0xff] %v15132_v43  ;;  %20454 = vst [vmem:[#allocation253_spill] sm:$0xff] %v15134_v54  ;;  %v3180_v63 = vpop.f32.mrb[53].mxu0  ;;  %v3910_v58 = vrot.slane %v15132_v43, 1  ;;  %v3912_v34 = vrot.slane %v15134_v54, 1  ;;  %v15141_v2 = vld [vmem:[#allocation2 + $0x260] sm:$0xff] }
 0x399   :  { %3572 = vst.msk [vmem:[#allocation2 + $0x2a9] sm:$0xff] %vm2249_vm2, %v3420_v45  ;;  %20455 = vst [vmem:[#allocation113_spill] sm:$0xff] %v15141_v2  ;;  %v15143_v24 = vld [vmem:[#allocation2 + $0x268] sm:$0x3]  ;;  %v3286_v36 = vmul.f32 %v14700_v53, %v3180_v63  ;;  %v7373_v18 = vpop.f32.mrb[54].mxu0  ;;  %v3905_v33 = vrot.slane %v15141_v2, 1  ;;  %v3359_v45 = vadd.f32 %v14705_v21, %v3288_v0 }
 0x39a   :  { %20456 = vst [vmem:[#allocation254_spill] sm:$0xff] %v15143_v24  ;;  %3570 = vst.msk [vmem:[#allocation2 + $0x291] sm:$0xff] %vm2249_vm2, %v3418_v12  ;;  %v3907_v16 = vrot.slane %v15143_v24, 1  ;;  %v3289_v35 = vmul.f32 %v7373_v18, %v14700_v53  ;;  %v3183_v56 = vpop.f32.mrb[55].mxu0  ;;  %v3911_v19 = vsel %vm339_vm0, %v3909_v59, %v3910_v58  ;;  %v3913_v31 = vsel %vm339_vm0, %v3910_v58, %v3912_v34 }
 0x39b   :  { %v3357_v12 = vadd.f32 %v14705_v21, %v3286_v36  ;;  %v3287_v63 = vmul.f32 %v14700_v53, %v3183_v56  ;;  %v15156_v54 = vpack.i.bf16 %v3913_v31, %v3911_v19  ;;  %v3906_v51 = vsel %vm339_vm0, %v3904_v6, %v3905_v33 }
 0x39c   :  { %v3423_v2 = vmax.f32 %v3359_v45, 0.0  ;;  %v3360_v24 = vadd.f32 %v14705_v21, %v3289_v35  ;;  %v3908_v0 = vsel %vm339_vm0, %v3905_v33, %v3907_v16  ;;  %v15166_v58 = vld [vmem:[#allocation2 + $0x2a0] sm:$0xff] }
 0x39d   :  { %20457 = vst [vmem:[#allocation255_spill] sm:$0xff] %v15156_v54  ;;  %v3421_v43 = vmax.f32 %v3357_v12, 0.0  ;;  %v3358_v18 = vadd.f32 %v14705_v21, %v3287_v63  ;;  %8868 = vrot.lane.b32.xlu0 %v15156_v54, %s10138_s23  ;;  %v15164_v59 = vpack.i.bf16 %v3908_v0, %v3906_v51  ;;  %20459 = vst [vmem:[#allocation257_spill] sm:$0xff] %v15166_v58  ;;  %v3919_v51 = vrot.slane %v15166_v58, 1 }
 0x39e   :  { %3575 = vst.msk [vmem:[#allocation2 + $0x2d1] sm:$0xff] %vm2249_vm2, %v3423_v2  ;;  %v3424_v53 = vmax.f32 %v3360_v24, 0.0  ;;  %v15169_v56 = vld [vmem:[#allocation2 + $0x288] sm:$0xff]  ;;  %v7376_v31 = vpop.f32.mrb[56].mxu0  ;;  %v10037_v2 = vld [vmem:[%s18401_s3] ss:$0 sm:$0xff] }
 0x39f   :  { %20458 = vst [vmem:[#allocation256_spill] sm:$0xff] %v15164_v59  ;;  %20460 = vst [vmem:[#allocation119_spill] sm:$0xff] %v15169_v56  ;;  %v3422_v19 = vmax.f32 %v3358_v18, 0.0  ;;  %8863 = vrot.lane.b32.xlu1 %v15164_v59, %s10138_s23  ;;  %v3292_v24 = vmul.f32 %v10037_v2, %v7376_v31  ;;  %v3196_v36 = vpop.f32.mrb[57].mxu0  ;;  %v3914_v12 = vrot.slane %v15169_v56, 1 }
 0x3a0   :  { %3573 = vst.msk [vmem:[#allocation2 + $0x2b9] sm:$0xff] %vm2249_vm2, %v3421_v43  ;;  %v15174_v21 = vld [vmem:[#allocation2 + $0x2a8] sm:$0xff]  ;;  %v15176_v34 = vld [vmem:[#allocation2 + $0x2b0] sm:$0x3]  ;;  %3576 = vst.msk [vmem:[#allocation2 + $0x2d9] sm:$0xff] %vm2249_vm2, %v3424_v53  ;;  %v3290_v45 = vmul.f32 %v10037_v2, %v3196_v36  ;;  %v7377_v35 = vpop.f32.mrb[58].mxu0 }
 0x3a1   :  { %20461 = vst [vmem:[#allocation258_spill] sm:$0xff] %v15174_v21  ;;  %20462 = vst [vmem:[#allocation131_spill] sm:$0xff] %v15176_v34  ;;  %v3920_v43 = vrot.slane %v15174_v21, 1  ;;  %v3922_v6 = vrot.slane %v15176_v34, 1  ;;  %v15185_v33 = vld [vmem:[#allocation2 + $0x290] sm:$0xff]  ;;  %v3293_v31 = vmul.f32 %v10037_v2, %v7377_v35  ;;  %v3199_v54 = vpop.f32.mrb[59].mxu0 }
 0x3a2   :  { %20463 = vst [vmem:[#allocation143_spill] sm:$0xff] %v15185_v33  ;;  %v15187_v16 = vld [vmem:[#allocation2 + $0x298] sm:$0x3]  ;;  %3574 = vst.msk [vmem:[#allocation2 + $0x2c1] sm:$0xff] %vm2249_vm2, %v3422_v19  ;;  %v3915_v63 = vrot.slane %v15185_v33, 1  ;;  %v3291_v36 = vmul.f32 %v10037_v2, %v3199_v54 }
 0x3a3   :  { %20464 = vst [vmem:[#allocation179_spill] sm:$0xff] %v15187_v16  ;;  %v3917_v0 = vrot.slane %v15187_v16, 1  ;;  %v10038_v18 = vld [vmem:[%s18402_s4] ss:$0 sm:$0xff]  ;;  %v3921_v59 = vsel %vm339_vm0, %v3919_v51, %v3920_v43  ;;  %v3923_v34 = vsel %vm339_vm0, %v3920_v43, %v3922_v6 }
 0x3a4   :  { %v3363_v53 = vadd.f32 %v10038_v18, %v3292_v24  ;;  %v3361_v19 = vadd.f32 %v10038_v18, %v3290_v45  ;;  %v15198_v58 = vpack.i.bf16 %v3923_v34, %v3921_v59  ;;  %v3916_v56 = vsel %vm339_vm0, %v3914_v12, %v3915_v63 }
 0x3a5   :  { %v3364_v21 = vadd.f32 %v10038_v18, %v3293_v31  ;;  %v3918_v16 = vsel %vm339_vm0, %v3915_v63, %v3917_v0  ;;  %v3362_v46 = vadd.f32 %v10038_v18, %v3291_v36  ;;  %v15206_v51 = vld [vmem:[#allocation2 + $0x2d0] sm:$0xff] }
 0x3a6   :  { %20465 = vst [vmem:[#allocation259_spill] sm:$0xff] %v15198_v58  ;;  %v3427_v33 = vmax.f32 %v3363_v53, 0.0  ;;  %v3425_v41 = vmax.f32 %v3361_v19, 0.0  ;;  %8878 = vrot.lane.b32.xlu0 %v15198_v58, %s10138_s23  ;;  %v15204_v24 = vpack.i.bf16 %v3918_v16, %v3916_v56  ;;  %20467 = vst [vmem:[#allocation260_spill] sm:$0xff] %v15206_v51  ;;  %v3929_v56 = vrot.slane %v15206_v51, 1 }
 0x3a7   :  { %v3428_v54 = vmax.f32 %v3364_v21, 0.0  ;;  %v15209_v59 = vld [vmem:[#allocation2 + $0x2b8] sm:$0xff]  ;;  %v3426_v34 = vmax.f32 %v3362_v46, 0.0  ;;  %v15216_v45 = vld [vmem:[#allocation2 + $0x2e0] sm:$0x3] }
 0x3a8   :  { %20466 = vst [vmem:[#allocation148_spill] sm:$0xff] %v15204_v24  ;;  %3579 = vst.msk [vmem:[#allocation2 + $0x301] sm:$0xff] %vm2249_vm2, %v3427_v33  ;;  %8873 = vrot.lane.b32.xlu1 %v15204_v24, %s10138_s23  ;;  %v15214_v6 = vld [vmem:[#allocation2 + $0x2d8] sm:$0xff]  ;;  %v3932_v35 = vrot.slane %v15216_v45, 1  ;;  %v3924_v0 = vrot.slane %v15209_v59, 1 }
 0x3a9   :  { %20468 = vst [vmem:[#allocation311_spill] sm:$0xff] %v15209_v59  ;;  %3577 = vst.msk [vmem:[#allocation2 + $0x2e9] sm:$0xff] %vm2249_vm2, %v3425_v41  ;;  %v3930_v21 = vrot.slane %v15214_v6, 1  ;;  %v15222_v41 = vld [vmem:[#allocation2 + $0x2c0] sm:$0xff]  ;;  %v15224_v46 = vld [vmem:[#allocation2 + $0x2c8] sm:$0x3] }
 0x3aa   :  { %20469 = vst [vmem:[#allocation312_spill] sm:$0xff] %v15214_v6  ;;  %20470 = vst [vmem:[#allocation194_spill] sm:$0xff] %v15216_v45  ;;  %v3925_v53 = vrot.slane %v15222_v41, 1  ;;  %v3927_v31 = vrot.slane %v15224_v46, 1 }
 0x3ab   :  { %3580 = vst.msk [vmem:[#allocation2 + $0x309] sm:$0xff] %vm2249_vm2, %v3428_v54  ;;  %20471 = vst [vmem:[#allocation261_spill] sm:$0xff] %v15222_v41  ;;  %v3933_v58 = vsel %vm339_vm0, %v3930_v21, %v3932_v35  ;;  %v10039_v41 = vld [vmem:[#allocation2] sm:$0xff] }
 0x3ac   :  { %20472 = vst [vmem:[#allocation185_spill] sm:$0xff] %v15224_v46  ;;  %3578 = vst.msk [vmem:[#allocation2 + $0x2f1] sm:$0xff] %vm2249_vm2, %v3426_v34  ;;  %v3926_v34 = vsel %vm339_vm0, %v3924_v0, %v3925_v53  ;;  %v3928_v59 = vsel %vm339_vm0, %v3925_v53, %v3927_v31  ;;  %v4141_v23 = vrot.slane %v10039_v41, 2 }
 0x3b3   :  { %v15256_v53 = vld [vmem:[#allocation2 + $0x2f0] sm:$0xff]  ;;  %v15258_v31 = vld [vmem:[#allocation2 + $0x2f8] sm:$0x3] }
 0x3b5   :  { %v7380_v43 = vpop.f32.mrb[60].mxu0 }
 0x3b6   :  { %v3296_v16 = vmul.f32 %v10037_v2, %v7380_v43  ;;  %v3212_v33 = vpop.f32.mrb[61].mxu0  ;;  %v3931_v43 = vsel %vm339_vm0, %v3929_v56, %v3930_v21  ;;  %v15238_v56 = vpack.i.bf16 %v3928_v59, %v3926_v34  ;;  %v15240_v21 = vld [vmem:[#allocation2 + $0x300] sm:$0xff] }
 0x3b7   :  { %v3294_v12 = vmul.f32 %v10037_v2, %v3212_v33  ;;  %v7381_v63 = vpop.f32.mrb[62].mxu0  ;;  %v15232_v45 = vpack.i.bf16 %v3933_v58, %v3931_v43  ;;  %v3939_v59 = vrot.slane %v15240_v21, 1 }
 0x3b8   :  { %v3367_v19 = vadd.f32 %v10038_v18, %v3296_v16  ;;  %v3297_v36 = vmul.f32 %v10037_v2, %v7381_v63  ;;  %v3215_v54 = vpop.f32.mrb[63].mxu0  ;;  %20474 = vst [vmem:[#allocation264_spill] sm:$0xff] %v15238_v56  ;;  %v10041_v63 = vld [vmem:[#allocation2 + $0x10] sm:$0x3]  ;;  %8883 = vrot.lane.b32.xlu1 %v15238_v56, %s10138_s23 }
 0x3b9   :  { %v3365_v24 = vadd.f32 %v10038_v18, %v3294_v12  ;;  %v3295_v51 = vmul.f32 %v10037_v2, %v3215_v54  ;;  %20473 = vst [vmem:[#allocation263_spill] sm:$0xff] %v15232_v45  ;;  %8888 = vrot.lane.b32.xlu0 %v15232_v45, %s10138_s23  ;;  %v10040_v2 = vld [vmem:[#allocation2 + $0x8] sm:$0xff]  ;;  %v4144_v0 = vrot.slane %v10041_v63, 2  ;;  %v10043_v45 = vld [vmem:[#allocation2 + $0x40] sm:$0x3] }
 0x3ba   :  { %v3431_v33 = vmax.f32 %v3367_v19, 0.0  ;;  %v3368_v6 = vadd.f32 %v10038_v18, %v3297_v36  ;;  %v4142_v58 = vrot.slane %v10040_v2, 2  ;;  %v15243_v12 = vld [vmem:[#allocation2 + $0x2e8] sm:$0xff]  ;;  %v3935_v19 = vrot.slane %v15256_v53, 1 }
 0x3bb   :  { %v3429_v46 = vmax.f32 %v3365_v24, 0.0  ;;  %v3366_v16 = vadd.f32 %v10038_v18, %v3295_v51  ;;  %20475 = vst [vmem:[#allocation187_spill] sm:$0xff] %v15243_v12  ;;  %v15248_v18 = vld [vmem:[#allocation2 + $0x308] sm:$0xff]  ;;  %v15250_v51 = vld [vmem:[#allocation2 + $0x310] sm:$0x3]  ;;  %v3937_v36 = vrot.slane %v15258_v31, 1 }
 0x3bc   :  { %3583 = vst.msk [vmem:[#allocation2 + $0x331] sm:$0xff] %vm2249_vm2, %v3431_v33  ;;  %v3432_v35 = vmax.f32 %v3368_v6, 0.0  ;;  %v3940_v6 = vrot.slane %v15248_v18, 1  ;;  %v3942_v41 = vrot.slane %v15250_v51, 1  ;;  %v4143_v54 = vsel %vm692_vm1, %v4141_v23, %v4142_v58 }
 0x3bd   :  { %3581 = vst.msk [vmem:[#allocation2 + $0x319] sm:$0xff] %vm2249_vm2, %v3429_v46  ;;  %v3430_v24 = vmax.f32 %v3366_v16, 0.0  ;;  %v3934_v46 = vrot.slane %v15243_v12, 1  ;;  %v4145_v33 = vsel %vm692_vm1, %v4142_v58, %v4144_v0  ;;  %v15268_v16 = vld [vmem:[#allocation2 + $0x38] sm:$0xff]  ;;  %v4154_v56 = vrot.slane %v10043_v45, 2 }
 0x3be   :  { %3584 = vst.msk [vmem:[#allocation2 + $0x339] sm:$0xff] %vm2249_vm2, %v3432_v35  ;;  %v3941_v43 = vsel %vm339_vm0, %v3939_v59, %v3940_v6  ;;  %v3943_v34 = vsel %vm339_vm0, %v3940_v6, %v3942_v41  ;;  %20476 = vst [vmem:[#allocation73_spill] sm:$0xff] %v15268_v16  ;;  %v4152_v2 = vrot.slane %v15268_v16, 2  ;;  %v8907_v23 = vpack.i.bf16 %v4145_v33, %v4143_v54  ;;  %v15279_v59 = vld [vmem:[#allocation2 + $0x30] sm:$0xff]  ;;  %v15286_v6 = vld [vmem:[#allocation2 + $0x68] sm:$0xff] }
 0x3bf   :  { %3582 = vst.msk [vmem:[#allocation2 + $0x321] sm:$0xff] %vm2249_vm2, %v3430_v24  ;;  %v15271_v35 = vpack.i.bf16 %v3943_v34, %v3941_v43  ;;  %v3936_v63 = vsel %vm339_vm0, %v3934_v46, %v3935_v19  ;;  %v3938_v24 = vsel %vm339_vm0, %v3935_v19, %v3937_v36  ;;  %20479 = vst [vmem:[#allocation70_spill] sm:$0xff] %v15279_v59  ;;  %v4151_v58 = vrot.slane %v15279_v59, 2  ;;  %v10046_v45 = vld [vmem:[#allocation2 + $0x70] sm:$0x3]  ;;  %v15295_v34 = vld [vmem:[#allocation2 + $0x60] sm:$0xff] }
 0x3c0   :  { %v15275_v12 = vpack.i.bf16 %v3938_v24, %v3936_v63  ;;  %20481 = vst [vmem:[#allocation77_spill] sm:$0xff] %v15286_v6  ;;  %v4162_v41 = vrot.slane %v15286_v6, 2  ;;  %v4164_v46 = vrot.slane %v10046_v45, 2  ;;  %v4155_v36 = vsel %vm692_vm1, %v4152_v2, %v4154_v56  ;;  %20484 = vst [vmem:[#allocation265_spill] sm:$0xff] %v15295_v34  ;;  %v15298_v63 = vld [vmem:[#allocation2 + $0x20] sm:$0xff]  ;;  %v15309_v16 = vld [vmem:[#allocation2 + $0x18] sm:$0xff] }
 0x3c1   :  { %20477 = vst [vmem:[#allocation65_spill] sm:$0xff] %v15271_v35  ;;  %8898 = vrot.lane.b32.xlu0 %v15271_v35, %s10138_s23  ;;  %v4153_v19 = vsel %vm692_vm1, %v4151_v58, %v4152_v2  ;;  %v4161_v33 = vrot.slane %v15295_v34, 2  ;;  %20485 = vst [vmem:[#allocation266_spill] sm:$0xff] %v15298_v63  ;;  %v4147_v24 = vrot.slane %v15298_v63, 2  ;;  %v10049_v2 = vld [vmem:[#allocation2 + $0x28] sm:$0x3] }
 0x3c2   :  { %20478 = vst [vmem:[#allocation205_spill] sm:$0xff] %v15275_v12  ;;  %8893 = vrot.lane.b32.xlu1 %v15275_v12, %s10138_s23  ;;  %v4149_v35 = vrot.slane %v10049_v2, 2  ;;  %v15305_v12 = vpack.i.bf16 %v4155_v36, %v4153_v19  ;;  %v4165_v34 = vsel %vm692_vm1, %v4162_v41, %v4164_v46  ;;  %v4146_v59 = vrot.slane %v15309_v16, 2  ;;  %v15314_v63 = vld [vmem:[#allocation2 + $0x98] sm:$0xff]  ;;  %v15319_v36 = vld [vmem:[#allocation2 + $0x50] sm:$0xff] }
 0x3c3   :  { %v4163_v6 = vsel %vm692_vm1, %v4161_v33, %v4162_v41  ;;  %20487 = vst [vmem:[#allocation68_spill] sm:$0xff] %v15314_v63  ;;  %v4157_v41 = vrot.slane %v15319_v36, 2 }
 0x3c4   :  { %v15284_v0 = vld [vmem:[#allocation2 + $0x318] sm:$0xff]  ;;  %20486 = vst [vmem:[#allocation190_spill] sm:$0xff] %v15305_v12  ;;  %v4148_v46 = vsel %vm692_vm1, %v4146_v59, %v4147_v24  ;;  %v4150_v33 = vsel %vm692_vm1, %v4147_v24, %v4149_v35  ;;  %v4182_v35 = vrot.slane %v14801_v8, 2  ;;  %v4184_v24 = vrot.slane %v14803_v40, 2  ;;  %v10059_v8 = vld [vmem:[#allocation2 + $0x88] sm:$0x3] }
 0x3c5   :  { %20480 = vst [vmem:[#allocation189_spill] sm:$0xff] %v15284_v0  ;;  %8908 = vrot.lane.b32.xlu0 %v8907_v23, %s10139_s19  ;;  %v3944_v45 = vrot.slane %v15284_v0, 1 }
 0x3c6   :  { %v15291_v54 = vld [vmem:[#allocation2 + $0x320] sm:$0xff]  ;;  %v15293_v43 = vld [vmem:[#allocation2 + $0x328] sm:$0x3] }
 0x3c7   :  { %20482 = vst [vmem:[#allocation114_spill] sm:$0xff] %v15291_v54  ;;  %20483 = vst [vmem:[#allocation206_spill] sm:$0xff] %v15293_v43  ;;  %v3945_v58 = vrot.slane %v15291_v54, 1  ;;  %v3947_v56 = vrot.slane %v15293_v43, 1  ;;  %v4172_v43 = vrot.slane %v15314_v63, 2 }
 0x3c8   :  { %v10052_v54 = vld [vmem:[#allocation2 + $0xa0] sm:$0x3] }
 0x3c9   :  { %v3946_v23 = vsel %vm339_vm0, %v3944_v45, %v3945_v58  ;;  %v3948_v0 = vsel %vm339_vm0, %v3945_v58, %v3947_v56  ;;  %v4174_v2 = vrot.slane %v10052_v54, 2  ;;  %8918 = vrot.lane.b32.xlu0 %v15305_v12, %s10139_s19  ;;  %v15326_v45 = vld [vmem:[#allocation2 + $0x90] sm:$0xff]  ;;  %v10055_v56 = vld [vmem:[#allocation2 + $0x58] sm:$0x3]  ;;  %v15333_v54 = vld [vmem:[#allocation2 + $0x48] sm:$0xff] }
 0x3ca   :  { %v15317_v19 = vpack.i.bf16 %v3948_v0, %v3946_v23  ;;  %20489 = vst [vmem:[#allocation268_spill] sm:$0xff] %v15326_v45  ;;  %v4171_v58 = vrot.slane %v15326_v45, 2  ;;  %v4159_v63 = vrot.slane %v10055_v56, 2  ;;  %v15331_v0 = vpack.i.bf16 %v4165_v34, %v4163_v6  ;;  %v15346_v34 = vld [vmem:[#allocation2 + $0xc0] sm:$0xff] }
 0x3cb   :  { %v4156_v23 = vrot.slane %v15333_v54, 2  ;;  %v4175_v59 = vsel %vm692_vm1, %v4172_v43, %v4174_v2  ;;  %v15340_v45 = vpack.i.bf16 %v4150_v33, %v4148_v46  ;;  %20491 = vst [vmem:[#allocation269_spill] sm:$0xff] %v15346_v34  ;;  %v4169_v2 = vrot.slane %v10059_v8, 2 }
 0x3cc   :  { %20488 = vst [vmem:[#allocation267_spill] sm:$0xff] %v15317_v19  ;;  %8903 = vrot.lane.b32.xlu1 %v15317_v19, %s10138_s23  ;;  %20490 = vst [vmem:[#allocation192_spill] sm:$0xff] %v15331_v0  ;;  %v4173_v12 = vsel %vm692_vm1, %v4171_v58, %v4172_v43  ;;  %v4160_v6 = vsel %vm692_vm1, %v4157_v41, %v4159_v63  ;;  %v4181_v19 = vrot.slane %v15346_v34, 2  ;;  %v15349_v58 = vld [vmem:[#allocation2 + $0x80] sm:$0xff]  ;;  %v4192_v46 = vrot.slane %v14841_v20, 2 }
 0x3cd   :  { %v4158_v56 = vsel %vm692_vm1, %v4156_v23, %v4157_v41  ;;  %8928 = vrot.lane.b32.xlu0 %v15331_v0, %s10139_s19  ;;  %20492 = vst [vmem:[#allocation270_spill] sm:$0xff] %v15349_v58  ;;  %v4167_v43 = vrot.slane %v15349_v58, 2  ;;  %v15354_v40 = vpack.i.bf16 %v4175_v59, %v4173_v12  ;;  %v4194_v33 = vrot.slane %v14843_v13, 2  ;;  %v15361_v0 = vld [vmem:[#allocation2 + $0x78] sm:$0xff]  ;;  %v15368_v59 = vld [vmem:[#allocation2 + $0xa8] sm:$0xff] }
 0x3ce   :  { %v4177_v63 = vrot.slane %v14809_v49, 2  ;;  %v4183_v41 = vsel %vm692_vm1, %v4181_v19, %v4182_v35  ;;  %v4185_v23 = vsel %vm692_vm1, %v4182_v35, %v4184_v24  ;;  %v4166_v34 = vrot.slane %v15361_v0, 2 }
 0x3cf   :  { %v4179_v8 = vrot.slane %v14811_v61, 2  ;;  %v15365_v58 = vpack.i.bf16 %v4160_v6, %v4158_v56  ;;  %v4191_v12 = vrot.slane %v14833_v25, 2  ;;  %v4176_v20 = vrot.slane %v15368_v59, 2 }
 0x3d0   :  { %8913 = vrot.lane.b32.xlu1 %v15340_v45, %s10139_s19  ;;  %v4168_v49 = vsel %vm692_vm1, %v4166_v34, %v4167_v43  ;;  %v4170_v13 = vsel %vm692_vm1, %v4167_v43, %v4169_v2  ;;  %v15377_v19 = vpack.i.bf16 %v4185_v23, %v4183_v41  ;;  %v4195_v25 = vsel %vm692_vm1, %v4192_v46, %v4194_v33 }
 0x3d1   :  { %8938 = vrot.lane.b32.xlu0 %v15354_v40, %s10139_s19  ;;  %v4193_v61 = vsel %vm692_vm1, %v4191_v12, %v4192_v46  ;;  %v4178_v35 = vsel %vm692_vm1, %v4176_v20, %v4177_v63  ;;  %v4180_v24 = vsel %vm692_vm1, %v4177_v63, %v4179_v8  ;;  %v4202_v56 = vrot.slane %v14889_v55, 2 }
 0x3d2   :  { %v4204_v6 = vrot.slane %v14891_v37, 2  ;;  %v4187_v34 = vrot.slane %v14850_v1, 2  ;;  %v15386_v43 = vpack.i.bf16 %v4170_v13, %v4168_v49  ;;  %v4189_v2 = vrot.slane %v14852_v15, 2 }
 0x3d3   :  { %v4201_v41 = vrot.slane %v14879_v39, 2  ;;  %v4186_v46 = vrot.slane %v14836_v32, 2  ;;  %v15395_v33 = vpack.i.bf16 %v4195_v25, %v4193_v61  ;;  %v15397_v55 = vpack.i.bf16 %v4180_v24, %v4178_v35 }
 0x3d4   :  { %8923 = vrot.lane.b32.xlu1 %v15365_v58, %s10139_s19  ;;  %v4205_v37 = vsel %vm692_vm1, %v4202_v56, %v4204_v6  ;;  %v4212_v63 = vrot.slane %v14934_v14, 2  ;;  %v4190_v23 = vsel %vm692_vm1, %v4187_v34, %v4189_v2  ;;  %v4214_v39 = vrot.slane %v14936_v3, 2 }
 0x3d5   :  { %8948 = vrot.lane.b32.xlu0 %v15377_v19, %s10139_s19  ;;  %v4203_v1 = vsel %vm692_vm1, %v4201_v41, %v4202_v56  ;;  %v4188_v15 = vsel %vm692_vm1, %v4186_v46, %v4187_v34  ;;  %v4197_v32 = vrot.slane %v14898_v17, 2  ;;  %v4199_v8 = vrot.slane %v14900_v30, 2 }
 0x3d6   :  { %v4211_v12 = vrot.slane %v14926_v47, 2  ;;  %v4196_v20 = vrot.slane %v14882_v62, 2  ;;  %v4221_v14 = vrot.slane %v14868_v26, 2  ;;  %v4222_v49 = vrot.slane %v14870_v27, 2 }
 0x3d7   :  { %v4224_v3 = vrot.slane %v14907_v7, 2  ;;  %v15416_v13 = vpack.i.bf16 %v4205_v37, %v4203_v1  ;;  %v15418_v17 = vpack.i.bf16 %v4190_v23, %v4188_v15  ;;  %v4207_v61 = vrot.slane %v14944_v4, 2 }
 0x3d8   :  { %8933 = vrot.lane.b32.xlu1 %v15386_v43, %s10139_s19  ;;  %v4213_v30 = vsel %vm692_vm1, %v4211_v12, %v4212_v63  ;;  %v4215_v47 = vsel %vm692_vm1, %v4212_v63, %v4214_v39  ;;  %v4198_v25 = vsel %vm692_vm1, %v4196_v20, %v4197_v32  ;;  %v4200_v62 = vsel %vm692_vm1, %v4197_v32, %v4199_v8  ;;  %v20494_v39 = vld [vmem:[#allocation249_spill] sm:$0xff] }
 0x3d9   :  { %8958 = vrot.lane.b32.xlu0 %v15395_v33, %s10139_s19  ;;  %v4209_v26 = vrot.slane %v14946_v9, 2  ;;  %v4206_v27 = vrot.slane %v14929_v38, 2  ;;  %v4223_v7 = vsel %vm692_vm1, %v4221_v14, %v4222_v49  ;;  %v4225_v4 = vsel %vm692_vm1, %v4222_v49, %v4224_v3  ;;  %v20497_v49 = vld [vmem:[#allocation48_spill] sm:$0xff] }
 0x3da   :  { %v15433_v35 = vpack.i.bf16 %v4215_v47, %v4213_v30  ;;  %v15435_v24 = vpack.i.bf16 %v4200_v62, %v4198_v25  ;;  %v4232_v9 = vrot.slane %v15006_v11, 2  ;;  %v4234_v34 = vrot.slane %v15008_v5, 2  ;;  %v20498_v30 = vld [vmem:[#allocation262_spill] sm:$0xff]  ;;  %v20500_v25 = vld [vmem:[#allocation252_spill] sm:$0xff] }
 0x3db   :  { %v4208_v56 = vsel %vm692_vm1, %v4206_v27, %v4207_v61  ;;  %v4210_v6 = vsel %vm692_vm1, %v4207_v61, %v4209_v26  ;;  %v4217_v38 = vrot.slane %v14978_v44, 2  ;;  %v4219_v2 = vrot.slane %v14980_v10, 2  ;;  %v20499_v61 = vld [vmem:[#allocation55_spill] sm:$0xff]  ;;  %v20501_v26 = vld [vmem:[#allocation253_spill] sm:$0xff] }
 0x3dc   :  { %8943 = vrot.lane.b32.xlu1 %v15397_v55, %s10139_s19  ;;  %20493 = vst [vmem:[#allocation89_spill] sm:$0xff] %v15433_v35  ;;  %v8987_v41 = vpack.i.bf16 %v4225_v4, %v4223_v7  ;;  %v4231_v46 = vrot.slane %v14998_v28, 2  ;;  %v4216_v1 = vrot.slane %v14971_v52, 2  ;;  %v15449_v11 = vpack.i.bf16 %v4210_v6, %v4208_v56  ;;  %v20502_v56 = vld [vmem:[#allocation250_spill] sm:$0xff]  ;;  %v20503_v6 = vld [vmem:[#allocation251_spill] sm:$0xff] }
 0x3dd   :  { %8968 = vrot.lane.b32.xlu0 %v15416_v13, %s10139_s19  ;;  %v4242_v5 = vrot.slane %v15048_v48, 2  ;;  %v4244_v44 = vrot.slane %v15050_v57, 2  ;;  %v4235_v10 = vsel %vm692_vm1, %v4232_v9, %v4234_v34  ;;  %v4220_v63 = vsel %vm692_vm1, %v4217_v38, %v4219_v2  ;;  %v20505_v2 = vld [vmem:[#allocation100_spill] sm:$0xff] }
 0x3de   :  { %v4233_v37 = vsel %vm692_vm1, %v4231_v46, %v4232_v9  ;;  %v4218_v15 = vsel %vm692_vm1, %v4216_v1, %v4217_v38  ;;  %v4227_v28 = vrot.slane %v15015_v22, 2  ;;  %v4241_v52 = vrot.slane %v15040_v29, 2 }
 0x3df   :  { %v4229_v23 = vrot.slane %v15017_v50, 2  ;;  %v4226_v48 = vrot.slane %v15003_v42, 2  ;;  %v4252_v57 = vrot.slane %v15090_v60, 2  ;;  %v4254_v32 = vrot.slane %v20494_v39, 2  ;;  %v20496_v50 = vld [vmem:[#allocation92_spill] sm:$0xff] }
 0x3e0   :  { %8953 = vrot.lane.b32.xlu1 %v15418_v17, %s10139_s19  ;;  %v15466_v8 = vpack.i.bf16 %v4235_v10, %v4233_v37  ;;  %v15468_v12 = vpack.i.bf16 %v4220_v63, %v4218_v15  ;;  %v4243_v22 = vsel %vm692_vm1, %v4241_v52, %v4242_v5  ;;  %v4245_v20 = vsel %vm692_vm1, %v4242_v5, %v4244_v44  ;;  %v20506_v5 = vld [vmem:[#allocation248_spill] sm:$0xff] }
 0x3e1   :  { %8978 = vrot.lane.b32.xlu0 %v15433_v35, %s10139_s19  ;;  %v4228_v29 = vsel %vm692_vm1, %v4226_v48, %v4227_v28  ;;  %v4251_v14 = vrot.slane %v20496_v50, 2  ;;  %v4237_v3 = vrot.slane %v20497_v49, 2  ;;  %v4239_v42 = vrot.slane %v20498_v30, 2 }
 0x3e2   :  { %20495 = vst [vmem:[#allocation271_spill] sm:$0xff] %v15466_v8  ;;  %v4230_v60 = vsel %vm692_vm1, %v4227_v28, %v4229_v23  ;;  %v4236_v47 = vrot.slane %v20499_v61, 2  ;;  %v4262_v62 = vrot.slane %v20500_v25, 2  ;;  %v4264_v27 = vrot.slane %v20501_v26, 2  ;;  %v20508_v28 = vld [vmem:[#allocation258_spill] sm:$0xff]  ;;  %v20516_v61 = vld [vmem:[#allocation179_spill] sm:$0xff] }
 0x3e3   :  { %v4253_v7 = vsel %vm692_vm1, %v4251_v14, %v4252_v57  ;;  %v4255_v4 = vsel %vm692_vm1, %v4252_v57, %v4254_v32  ;;  %v4247_v9 = vrot.slane %v20502_v56, 2  ;;  %v4249_v34 = vrot.slane %v20503_v6, 2  ;;  %v20509_v57 = vld [vmem:[#allocation113_spill] sm:$0xff]  ;;  %v20510_v32 = vld [vmem:[#allocation254_spill] sm:$0xff]  ;;  %v20513_v14 = vld [vmem:[#allocation131_spill] sm:$0xff] }
 0x3e4   :  { %8963 = vrot.lane.b32.xlu1 %v15435_v24, %s10139_s19  ;;  %v15488_v38 = vpack.i.bf16 %v4245_v20, %v4243_v22  ;;  %v15491_v46 = vpack.i.bf16 %v4230_v60, %v4228_v29  ;;  %v4238_v1 = vsel %vm692_vm1, %v4236_v47, %v4237_v3  ;;  %v4240_v37 = vsel %vm692_vm1, %v4237_v3, %v4239_v42  ;;  %v20512_v29 = vld [vmem:[#allocation257_spill] sm:$0xff]  ;;  %v20514_v3 = vld [vmem:[#allocation143_spill] sm:$0xff] }
 0x3e5   :  { %8988 = vrot.lane.b32.xlu0 %v8987_v41, %s10139_s19  ;;  %v4261_v41 = vrot.slane %v20505_v2, 2  ;;  %v4246_v44 = vrot.slane %v20506_v5, 2  ;;  %v15498_v10 = vpack.i.bf16 %v4255_v4, %v4253_v7  ;;  %v4265_v63 = vsel %vm692_vm1, %v4262_v62, %v4264_v27  ;;  %v20515_v42 = vld [vmem:[#allocation107_spill] sm:$0xff]  ;;  %v20518_v27 = vld [vmem:[#allocation185_spill] sm:$0xff] }
 0x3e6   :  { %20504 = vst [vmem:[#allocation120_spill] sm:$0xff] %v15488_v38  ;;  %v4272_v52 = vrot.slane %v20508_v28, 2  ;;  %v4250_v48 = vsel %vm692_vm1, %v4247_v9, %v4249_v34  ;;  %v4257_v39 = vrot.slane %v20509_v57, 2  ;;  %v4259_v22 = vrot.slane %v20510_v32, 2  ;;  %v20521_v6 = vld [vmem:[#allocation119_spill] sm:$0xff] }
 0x3e7   :  { %20507 = vst [vmem:[#allocation207_spill] sm:$0xff] %v15498_v10  ;;  %v4263_v15 = vsel %vm692_vm1, %v4261_v41, %v4262_v62  ;;  %v4248_v23 = vsel %vm692_vm1, %v4246_v44, %v4247_v9  ;;  %v15509_v20 = vpack.i.bf16 %v4240_v37, %v4238_v1  ;;  %v4271_v50 = vrot.slane %v20512_v29, 2  ;;  %v20517_v62 = vld [vmem:[#allocation261_spill] sm:$0xff]  ;;  %v20522_v37 = vld [vmem:[#allocation311_spill] sm:$0xff]  ;;  %v15531_v44 = vpop.permute.xlu0 %8748 }
 0x3e8   :  { %8973 = vrot.lane.b32.xlu1 %v15449_v11, %s10139_s19  ;;  %v4274_v49 = vrot.slane %v20513_v14, 2  ;;  %v4267_v30 = vrot.slane %v20514_v3, 2  ;;  %v4256_v60 = vrot.slane %v20515_v42, 2  ;;  %v4269_v47 = vrot.slane %v20516_v61, 2  ;;  %20523 = vst [vmem:[#allocation99_spill] sm:$0xff] %v15531_v44 }
 0x3e9   :  { %8998 = vrot.lane.b32.xlu0 %v15466_v8, %s10139_s19  ;;  %20511 = vst [vmem:[#allocation95_spill] sm:$0xff] %v15509_v20  ;;  %v4277_v26 = vrot.slane %v20517_v62, 2  ;;  %v4279_v7 = vrot.slane %v20518_v27, 2  ;;  %v15520_v4 = vpack.i.bf16 %v4265_v63, %v4263_v15  ;;  %v15522_v56 = vpack.i.bf16 %v4250_v48, %v4248_v23  ;;  %v20524_v63 = vld [vmem:[#allocation312_spill] sm:$0xff]  ;;  %v20525_v48 = vld [vmem:[#allocation194_spill] sm:$0xff] }
 0x3ea   :  { %v4273_v9 = vsel %vm692_vm1, %v4271_v50, %v4272_v52  ;;  %v4266_v34 = vrot.slane %v20521_v6, 2  ;;  %v4258_v41 = vsel %vm692_vm1, %v4256_v60, %v4257_v39  ;;  %v4260_v1 = vsel %vm692_vm1, %v4257_v39, %v4259_v22 }
 0x3eb   :  { %20519 = vst [vmem:[#allocation208_spill] sm:$0xff] %v15520_v4  ;;  %20520 = vst [vmem:[#allocation209_spill] sm:$0xff] %v15522_v56  ;;  %v4276_v5 = vrot.slane %v20522_v37, 2  ;;  %v4275_v15 = vsel %vm692_vm1, %v4272_v52, %v4274_v49  ;;  %v4282_v23 = vrot.slane %v20524_v63, 2  ;;  %v4284_v32 = vrot.slane %v20525_v48, 2  ;;  %v20527_v52 = vld [vmem:[#allocation260_spill] sm:$0xff] }
 0x3ec   :  { %8983 = vrot.lane.b32.xlu1 %v15468_v12, %s10139_s19  ;;  %v4268_v50 = vsel %vm692_vm1, %v4266_v34, %v4267_v30  ;;  %v4270_v14 = vsel %vm692_vm1, %v4267_v30, %v4269_v47  ;;  %v4280_v60 = vsel %vm692_vm1, %v4277_v26, %v4279_v7  ;;  %v15542_v39 = vpack.i.bf16 %v4260_v1, %v4258_v41  ;;  %v15557_v41 = vpop.permute.xlu0 %8758 }
 0x3ed   :  { %9008 = vrot.lane.b32.xlu0 %v15488_v38, %s10139_s19  ;;  %v4278_v61 = vsel %vm692_vm1, %v4276_v5, %v4277_v26  ;;  %v4281_v22 = vrot.slane %v20527_v52, 2  ;;  %v15547_v49 = vpack.i.bf16 %v4275_v15, %v4273_v9  ;;  %v15549_v27 = vpack.i.bf16 %v4270_v14, %v4268_v50  ;;  %20531 = vst [vmem:[#allocation275_spill] sm:$0xff] %v15557_v41  ;;  %v3635_v50 = vld [vmem:[#allocation2 + $0x190] sm:$0x3] }
 0x3ee   :  { %20526 = vst [vmem:[#allocation127_spill] sm:$0xff] %v15542_v39  ;;  %v15551_v34 = vpack.i.bf16 %v4280_v60, %v4278_v61  ;;  %v4285_v47 = vsel %vm692_vm1, %v4282_v23, %v4284_v32  ;;  %v4292_v26 = vrot.slane %v15248_v18, 2  ;;  %v4294_v7 = vrot.slane %v15250_v51, 2  ;;  %v15574_v32 = vld [vmem:[#allocation2 + $0x188] sm:$0xff]  ;;  %v20535_v61 = vld [vmem:[#allocation187_spill] sm:$0xff] }
 0x3ef   :  { %20528 = vst [vmem:[#allocation278_spill] sm:$0xff] %v15547_v49  ;;  %20529 = vst [vmem:[#allocation273_spill] sm:$0xff] %v15549_v27  ;;  %v4283_v30 = vsel %vm692_vm1, %v4281_v22, %v4282_v23  ;;  %v4291_v9 = vrot.slane %v15240_v21, 2  ;;  %v4287_v51 = vrot.slane %v15256_v53, 2  ;;  %v4289_v48 = vrot.slane %v15258_v31, 2  ;;  %v15581_v22 = vld [vmem:[#allocation2 + $0x180] sm:$0xff] }
 0x3f0   :  { %8993 = vrot.lane.b32.xlu1 %v15491_v46, %s10139_s19  ;;  %20530 = vst [vmem:[#allocation274_spill] sm:$0xff] %v15551_v34  ;;  %v15564_v1 = vpack.i.bf16 %v4285_v47, %v4283_v30  ;;  %v4295_v15 = vsel %vm692_vm1, %v4292_v26, %v4294_v7  ;;  %v15568_v23 = vpop.permute.xlu0 %8768  ;;  %v4286_v60 = vrot.slane %v20535_v61, 2  ;;  %v15583_v30 = vpop.permute.xlu1 %8753  ;;  %v20537_v47 = vld [vmem:[#allocation114_spill] sm:$0xff]  ;;  %v4692_v31 = vrot.slane %v15574_v32, 1 }
 0x3f1   :  { %9018 = vrot.lane.b32.xlu0 %v15498_v10, %s10139_s19  ;;  %v4293_v5 = vsel %vm692_vm1, %v4291_v9, %v4292_v26  ;;  %20533 = vst [vmem:[#allocation277_spill] sm:$0xff] %v15568_v23  ;;  %20536 = vst [vmem:[#allocation102_spill] sm:$0xff] %v15583_v30  ;;  %v4297_v26 = vrot.slane %v20537_v47, 2  ;;  %v20538_v7 = vld [vmem:[#allocation206_spill] sm:$0xff]  ;;  %v4894_v41 = vrot.slane %v15574_v32, 2  ;;  %v4896_v44 = vrot.slane %v3635_v50, 2 }
 0x3f2   :  { %20532 = vst [vmem:[#allocation276_spill] sm:$0xff] %v15564_v1  ;;  %v15578_v14 = vpack.i.bf16 %v4295_v15, %v4293_v5  ;;  %v4299_v9 = vrot.slane %v20538_v7, 2  ;;  %v4288_v5 = vsel %vm692_vm1, %v4286_v60, %v4287_v51  ;;  %v4290_v15 = vsel %vm692_vm1, %v4287_v51, %v4289_v48  ;;  %v20540_v30 = vld [vmem:[#allocation266_spill] sm:$0xff] }
 0x3f3   :  { %v4691_v7 = vrot.slane %v15581_v22, 1  ;;  %v4893_v10 = vrot.slane %v15581_v22, 2  ;;  %v15604_v60 = vpack.i.bf16 %v4290_v15, %v4288_v5  ;;  %v9077_v5 = vpack.i.bf16 %v15319_v36, %v15333_v54  ;;  %v20548_v36 = vld [vmem:[#allocation70_spill] sm:$0xff]  ;;  %v20549_v54 = vld [vmem:[#allocation73_spill] sm:$0xff] }
 0x3f4   :  { %9003 = vrot.lane.b32.xlu1 %v15509_v20, %s10139_s19  ;;  %20534 = vst [vmem:[#allocation279_spill] sm:$0xff] %v15578_v14  ;;  %v15588_v23 = vpop.permute.xlu0 %8778 }
 0x3f5   :  { %9028 = vrot.lane.b32.xlu0 %v15520_v4, %s10139_s19  ;;  %20539 = vst [vmem:[#allocation280_spill] sm:$0xff] %v15588_v23  ;;  %v20541_v4 = vld [vmem:[#allocation189_spill] sm:$0xff]  ;;  %20542 = vst [vmem:[#allocation212_spill] sm:$0xff] %v15604_v60  ;;  %v4693_v51 = vsel %vm339_vm0, %v4691_v7, %v4692_v31 }
 0x3f6   :  { %v4296_v23 = vrot.slane %v20541_v4, 2  ;;  %v15642_v7 = vld [vmem:[#allocation2 + $0xb0] sm:$0xff] }
 0x3f8   :  { %9013 = vrot.lane.b32.xlu1 %v15522_v56, %s10139_s19 }
 0x3f9   :  { %9038 = vrot.lane.b32.xlu0 %v15547_v49, %s10139_s19  ;;  %v9067_v49 = vpack.i.bf16 %v20540_v30, %v15309_v16  ;;  %v4300_v16 = vsel %vm692_vm1, %v4297_v26, %v4299_v9  ;;  %v4895_v30 = vsel %vm692_vm1, %v4893_v10, %v4894_v41  ;;  %v20547_v10 = vld [vmem:[#allocation270_spill] sm:$0xff] }
 0x3fc   :  { %9023 = vrot.lane.b32.xlu1 %v15542_v39, %s10139_s19 }
 0x3fd   :  { %9048 = vrot.lane.b32.xlu0 %v15564_v1, %s10139_s19  ;;  %v4694_v1 = vrot.slane %v3635_v50, 1  ;;  %v15608_v50 = vpop.permute.xlu0 %8788 }
 0x3ff   :  { %v4695_v48 = vsel %vm339_vm0, %v4692_v31, %v4694_v1 }
 0x400   :  { %9033 = vrot.lane.b32.xlu1 %v15549_v27, %s10139_s19  ;;  %v4897_v27 = vsel %vm692_vm1, %v4894_v41, %v4896_v44  ;;  %v15619_v15 = vpack.i.bf16 %v4695_v48, %v4693_v51  ;;  %v9087_v44 = vpack.i.bf16 %v20547_v10, %v15361_v0  ;;  %v9097_v51 = vpack.i.bf16 %v15642_v7, %v15368_v59  ;;  %v3687_v48 = vld [vmem:[#allocation2 + $0x330] sm:$0xff] }
 0x401   :  { %9058 = vrot.lane.b32.xlu0 %v15578_v14, %s10139_s19  ;;  %v15602_v14 = vpop.permute.xlu1 %8763 }
 0x402   :  { %20543 = vst [vmem:[#allocation110_spill] sm:$0xff] %v15619_v15 }
 0x404   :  { %9043 = vrot.lane.b32.xlu1 %v15551_v34, %s10139_s19  ;;  %v4298_v34 = vsel %vm692_vm1, %v4296_v23, %v4297_v26  ;;  %v15627_v23 = vpop.permute.xlu0 %8798  ;;  %v9072_v26 = vpack.i.bf16 %v20549_v54, %v20548_v36 }
 0x405   :  { %9068 = vrot.lane.b32.xlu0 %v9067_v49, %s10140_s20  ;;  %v15621_v1 = vpop.permute.xlu1 %8773  ;;  %v15623_v31 = vpack.i.bf16 %v4300_v16, %v4298_v34  ;;  %v15625_v49 = vpack.i.bf16 %v4897_v27, %v4895_v30  ;;  %20546 = vst [vmem:[#allocation282_spill] sm:$0xff] %v15627_v23  ;;  %v3688_v27 = vld [vmem:[#allocation2 + $0x338] sm:$0xff]  ;;  %v3689_v34 = vld [vmem:[#allocation2 + $0x340] sm:$0x3]  ;;  %v20552_v16 = vld [vmem:[#allocation265_spill] sm:$0xff] }
 0x406   :  { %v20553_v30 = vld [vmem:[#allocation77_spill] sm:$0xff]  ;;  %v4697_v10 = vrot.slane %v3688_v27, 1  ;;  %v4699_v36 = vrot.slane %v3689_v34, 1  ;;  %v4901_v23 = vrot.slane %v3689_v34, 2  ;;  %v15710_v34 = vld [vmem:[#allocation2 + $0xf8] sm:$0xff] }
 0x407   :  { %20544 = vst [vmem:[#allocation118_spill] sm:$0xff] %v15623_v31  ;;  %20545 = vst [vmem:[#allocation281_spill] sm:$0xff] %v15625_v49 }
 0x408   :  { %9053 = vrot.lane.b32.xlu1 %v15604_v60, %s10139_s19  ;;  %v15638_v9 = vpop.permute.xlu0 %8808 }
 0x409   :  { %9078 = vrot.lane.b32.xlu0 %v9077_v5, %s10140_s20  ;;  %v15634_v41 = vpop.permute.xlu1 %8783  ;;  %20550 = vst [vmem:[#allocation283_spill] sm:$0xff] %v15638_v9  ;;  %v9082_v5 = vpack.i.bf16 %v20553_v30, %v20552_v16  ;;  %v20558_v16 = vld [vmem:[#allocation268_spill] sm:$0xff] }
 0x40a   :  { %v20559_v30 = vld [vmem:[#allocation68_spill] sm:$0xff] }
 0x40b   :  { %v9092_v9 = vpack.i.bf16 %v20559_v30, %v20558_v16  ;;  %v15681_v16 = vpack.i.bf16 %v3688_v27, %v3687_v48  ;;  %v20566_v30 = vld [vmem:[#allocation269_spill] sm:$0xff] }
 0x40c   :  { %9063 = vrot.lane.b32.xlu1 %v15623_v31, %s10139_s19  ;;  %v15650_v54 = vpop.permute.xlu0 %8818  ;;  %v15656_v31 = vld [vmem:[#allocation2 + $0xe0] sm:$0xff] }
 0x40d   :  { %9088 = vrot.lane.b32.xlu0 %v9087_v44, %s10140_s20  ;;  %v15646_v0 = vpop.permute.xlu1 %8793  ;;  %20554 = vst [vmem:[#allocation285_spill] sm:$0xff] %v15650_v54  ;;  %v4696_v44 = vrot.slane %v3687_v48, 1  ;;  %20556 = vst [vmem:[#allocation287_spill] sm:$0xff] %v15656_v31 }
 0x40e   :  { %20551 = vst [vmem:[#allocation284_spill] sm:$0xff] %v15646_v0  ;;  %20563 = vst [vmem:[#allocation292_spill] sm:$0xff] %v15681_v16 }
 0x40f   :  { %v4698_v54 = vsel %vm339_vm0, %v4696_v44, %v4697_v10 }
 0x410   :  { %9073 = vrot.lane.b32.xlu1 %v9072_v26, %s10140_s20  ;;  %v15654_v26 = vld [vmem:[#allocation2 + $0xd8] sm:$0xff]  ;;  %v15668_v0 = vpop.permute.xlu0 %8828 }
 0x411   :  { %9098 = vrot.lane.b32.xlu0 %v9097_v51, %s10140_s20  ;;  %20555 = vst [vmem:[#allocation286_spill] sm:$0xff] %v15654_v26  ;;  %v15660_v59 = vpack.i.bf16 %v15656_v31, %v15654_v26  ;;  %v15662_v60 = vpop.permute.xlu1 %8803  ;;  %v4700_v51 = vsel %vm339_vm0, %v4697_v10, %v4699_v36  ;;  %20560 = vst [vmem:[#allocation289_spill] sm:$0xff] %v15668_v0  ;;  %v15675_v26 = vld [vmem:[#allocation2 + $0x110] sm:$0xff]  ;;  %v15687_v36 = vld [vmem:[#allocation2 + $0xc8] sm:$0xff] }
 0x412   :  { %20557 = vst [vmem:[#allocation288_spill] sm:$0xff] %v15662_v60  ;;  %20562 = vst [vmem:[#allocation291_spill] sm:$0xff] %v15675_v26  ;;  %v15683_v44 = vpack.i.bf16 %v4700_v51, %v4698_v54  ;;  %v9102_v0 = vpack.i.bf16 %v15687_v36, %v20566_v30  ;;  %v4899_v60 = vrot.slane %v3688_v27, 2  ;;  %v15697_v54 = vld [vmem:[#allocation2 + $0x138] sm:$0xff]  ;;  %v15699_v51 = vld [vmem:[#allocation2 + $0x140] sm:$0xff] }
 0x413   :  { %20568 = vst [vmem:[#allocation214_spill] sm:$0xff] %v15697_v54  ;;  %20569 = vst [vmem:[#allocation298_spill] sm:$0xff] %v15699_v51  ;;  %v15708_v30 = vld [vmem:[#allocation2 + $0xf0] sm:$0xff] }
 0x414   :  { %9083 = vrot.lane.b32.xlu1 %v9082_v5, %s10140_s20  ;;  %v15673_v5 = vld [vmem:[#allocation2 + $0x108] sm:$0xff]  ;;  %20564 = vst [vmem:[#allocation295_spill] sm:$0xff] %v15683_v44  ;;  %v4902_v27 = vsel %vm692_vm1, %v4899_v60, %v4901_v23  ;;  %v15726_v23 = vld [vmem:[#allocation2 + $0x170] sm:$0xff] }
 0x415   :  { %9108 = vrot.lane.b32.xlu0 %v15660_v59, %s10140_s20  ;;  %20561 = vst [vmem:[#allocation290_spill] sm:$0xff] %v15673_v5  ;;  %v15679_v31 = vpack.i.bf16 %v15675_v26, %v15673_v5  ;;  %v15685_v10 = vpop.permute.xlu1 %8813  ;;  %v15695_v26 = vpop.permute.xlu0 %8838  ;;  %20575 = vst [vmem:[#allocation154_spill] sm:$0xff] %v15726_v23 }
 0x416   :  { %20565 = vst [vmem:[#allocation296_spill] sm:$0xff] %v15685_v10  ;;  %20567 = vst [vmem:[#allocation297_spill] sm:$0xff] %v15695_v26  ;;  %v15703_v10 = vpack.i.bf16 %v15699_v51, %v15697_v54 }
 0x418   :  { %9093 = vrot.lane.b32.xlu1 %v9092_v9, %s10140_s20  ;;  %v4898_v9 = vrot.slane %v3687_v48, 2  ;;  %20570 = vst [vmem:[#allocation217_spill] sm:$0xff] %v15703_v10 }
 0x419   :  { %9118 = vrot.lane.b32.xlu0 %v15679_v31, %s10140_s20  ;;  %v15706_v48 = vpop.permute.xlu1 %8823  ;;  %v15722_v26 = vpop.permute.xlu0 %8848 }
 0x41a   :  { %v4900_v5 = vsel %vm692_vm1, %v4898_v9, %v4899_v60  ;;  %20573 = vst [vmem:[#allocation139_spill] sm:$0xff] %v15722_v26  ;;  %v15724_v60 = vld [vmem:[#allocation2 + $0x168] sm:$0xff] }
 0x41b   :  { %v15716_v9 = vpack.i.bf16 %v4902_v27, %v4900_v5  ;;  %20574 = vst [vmem:[#allocation147_spill] sm:$0xff] %v15724_v60  ;;  %v15730_v54 = vpack.i.bf16 %v15726_v23, %v15724_v60  ;;  %v15734_v5 = vld [vmem:[#allocation2 + $0x120] sm:$0xff]  ;;  %v15736_v27 = vld [vmem:[#allocation2 + $0x128] sm:$0xff]  ;;  %v15750_v60 = vld [vmem:[#allocation2 + $0x1d0] sm:$0xff] }
 0x41c   :  { %9103 = vrot.lane.b32.xlu1 %v9102_v0, %s10140_s20  ;;  %v15714_v0 = vpack.i.bf16 %v15710_v34, %v15708_v30  ;;  %20578 = vst [vmem:[#allocation150_spill] sm:$0xff] %v15734_v5  ;;  %20582 = vst [vmem:[#allocation302_spill] sm:$0xff] %v15750_v60 }
 0x41d   :  { %20572 = vst [vmem:[#allocation142_spill] sm:$0xff] %v15716_v9  ;;  %9128 = vrot.lane.b32.xlu0 %v15703_v10, %s10140_s20  ;;  %20576 = vst [vmem:[#allocation160_spill] sm:$0xff] %v15730_v54  ;;  %v15732_v51 = vpop.permute.xlu1 %8833  ;;  %v15740_v9 = vpack.i.bf16 %v15736_v27, %v15734_v5  ;;  %v15746_v26 = vpop.permute.xlu0 %8858  ;;  %v15748_v10 = vld [vmem:[#allocation2 + $0x1c8] sm:$0xff]  ;;  %v15758_v5 = vld [vmem:[#allocation2 + $0x158] sm:$0xff] }
 0x41e   :  { %20571 = vst [vmem:[#allocation155_spill] sm:$0xff] %v15714_v0  ;;  %20577 = vst [vmem:[#allocation299_spill] sm:$0xff] %v15732_v51  ;;  %v9147_v51 = vpack.i.bf16 %v15750_v60, %v15748_v10 }
 0x41f   :  { %20579 = vst [vmem:[#allocation300_spill] sm:$0xff] %v15740_v9  ;;  %20580 = vst [vmem:[#allocation301_spill] sm:$0xff] %v15746_v26 }
 0x420   :  { %9113 = vrot.lane.b32.xlu1 %v15714_v0, %s10140_s20  ;;  %20581 = vst [vmem:[#allocation159_spill] sm:$0xff] %v15748_v10  ;;  %v15756_v0 = vld [vmem:[#allocation2 + $0x150] sm:$0xff]  ;;  %v15771_v10 = vld [vmem:[#allocation2 + $0x200] sm:$0xff] }
 0x421   :  { %9138 = vrot.lane.b32.xlu0 %v15730_v54, %s10140_s20  ;;  %v15754_v23 = vpop.permute.xlu1 %8843  ;;  %20584 = vst [vmem:[#allocation304_spill] sm:$0xff] %v15756_v0  ;;  %v15762_v54 = vpack.i.bf16 %v15758_v5, %v15756_v0  ;;  %v15767_v26 = vpop.permute.xlu0 %8868  ;;  %20588 = vst [vmem:[#allocation219_spill] sm:$0xff] %v15771_v10  ;;  %v9142_v0 = vpack.i.bf16 %v15574_v32, %v15581_v22  ;;  %v15798_v32 = vld [vmem:[#allocation2 + $0x1e8] sm:$0xff] }
 0x422   :  { %20583 = vst [vmem:[#allocation303_spill] sm:$0xff] %v15754_v23  ;;  %20586 = vst [vmem:[#allocation165_spill] sm:$0xff] %v15767_v26  ;;  %v15788_v26 = vld [vmem:[#allocation2 + $0x230] sm:$0xff] }
 0x423   :  { %20585 = vst [vmem:[#allocation305_spill] sm:$0xff] %v15762_v54  ;;  %20593 = vst [vmem:[#allocation309_spill] sm:$0xff] %v15788_v26 }
 0x424   :  { %9123 = vrot.lane.b32.xlu1 %v15740_v9, %s10140_s20  ;;  %v15769_v9 = vld [vmem:[#allocation2 + $0x1f8] sm:$0xff] }
 0x425   :  { %9148 = vrot.lane.b32.xlu0 %v9147_v51, %s10140_s20  ;;  %20587 = vst [vmem:[#allocation306_spill] sm:$0xff] %v15769_v9  ;;  %v15775_v23 = vpack.i.bf16 %v15771_v10, %v15769_v9  ;;  %v15777_v60 = vpop.permute.xlu1 %8853  ;;  %v15784_v51 = vpop.permute.xlu0 %8878 }
 0x426   :  { %20590 = vst [vmem:[#allocation168_spill] sm:$0xff] %v15777_v60  ;;  %20591 = vst [vmem:[#allocation308_spill] sm:$0xff] %v15784_v51  ;;  %v15796_v60 = vld [vmem:[#allocation2 + $0x1e0] sm:$0xff]  ;;  %v15816_v51 = vld [vmem:[#allocation2 + $0x218] sm:$0xff] }
 0x427   :  { %20589 = vst [vmem:[#allocation220_spill] sm:$0xff] %v15775_v23  ;;  %v15802_v22 = vpack.i.bf16 %v15798_v32, %v15796_v60 }
 0x428   :  { %9133 = vrot.lane.b32.xlu1 %v15762_v54, %s10140_s20  ;;  %v15786_v54 = vld [vmem:[#allocation2 + $0x228] sm:$0xff] }
 0x429   :  { %9158 = vrot.lane.b32.xlu0 %v15775_v23, %s10140_s20  ;;  %20592 = vst [vmem:[#allocation221_spill] sm:$0xff] %v15786_v54  ;;  %v15792_v9 = vpack.i.bf16 %v15788_v26, %v15786_v54  ;;  %v15794_v10 = vpop.permute.xlu1 %8863  ;;  %20596 = vst [vmem:[#allocation313_spill] sm:$0xff] %v15802_v22  ;;  %v9177_v23 = vpack.i.bf16 %v20509_v57, %v20515_v42  ;;  %v15814_v26 = vld [vmem:[#allocation2 + $0x210] sm:$0xff]  ;;  %v9187_v57 = vpack.i.bf16 %v20514_v3, %v20521_v6 }
 0x42a   :  { %20595 = vst [vmem:[#allocation223_spill] sm:$0xff] %v15794_v10  ;;  %v15820_v10 = vpack.i.bf16 %v15816_v51, %v15814_v26  ;;  %v9197_v3 = vpack.i.bf16 %v20517_v62, %v20522_v37  ;;  %v9202_v37 = vpack.i.bf16 %v20524_v63, %v20527_v52  ;;  %v20612_v63 = vld [vmem:[#allocation238_spill] sm:$0xff] }
 0x42b   :  { %20594 = vst [vmem:[#allocation310_spill] sm:$0xff] %v15792_v9 }
 0x42c   :  { %9143 = vrot.lane.b32.xlu1 %v9142_v0, %s10140_s20  ;;  %v15808_v0 = vpop.permute.xlu0 %8888  ;;  %20599 = vst [vmem:[#allocation316_spill] sm:$0xff] %v15820_v10 }
 0x42d   :  { %9168 = vrot.lane.b32.xlu0 %v15792_v9, %s10140_s20  ;;  %20597 = vst [vmem:[#allocation314_spill] sm:$0xff] %v15808_v0  ;;  %v15812_v54 = vpop.permute.xlu1 %8873  ;;  %v15833_v0 = vld [vmem:[#allocation2 + $0x248] sm:$0xff] }
 0x42e   :  { %20598 = vst [vmem:[#allocation315_spill] sm:$0xff] %v15812_v54 }
 0x430   :  { %9153 = vrot.lane.b32.xlu1 %v15802_v22, %s10140_s20  ;;  %v15831_v22 = vld [vmem:[#allocation2 + $0x240] sm:$0xff] }
 0x431   :  { %9178 = vrot.lane.b32.xlu0 %v9177_v23, %s10140_s20  ;;  %v15829_v42 = vpop.permute.xlu1 %8883  ;;  %v15837_v54 = vpack.i.bf16 %v15833_v0, %v15831_v22 }
 0x432   :  { %20601 = vst [vmem:[#allocation225_spill] sm:$0xff] %v15829_v42  ;;  %v9192_v42 = vpack.i.bf16 %v20508_v28, %v20512_v29  ;;  %v9212_v29 = vpack.i.bf16 %v15248_v18, %v15240_v21  ;;  %v20615_v21 = vld [vmem:[#allocation79_spill] sm:$0xff]  ;;  %v20616_v18 = vld [vmem:[#allocation197_spill] sm:$0xff] }
 0x433   :  { %v15825_v9 = vpop.permute.xlu0 %8898  ;;  %20602 = vst [vmem:[#allocation318_spill] sm:$0xff] %v15837_v54 }
 0x434   :  { %9163 = vrot.lane.b32.xlu1 %v15820_v10, %s10140_s20  ;;  %20600 = vst [vmem:[#allocation317_spill] sm:$0xff] %v15825_v9  ;;  %v9182_v9 = vpack.i.bf16 %v20500_v25, %v20505_v2  ;;  %v9217_v25 = vpack.i.bf16 %v20537_v47, %v20541_v4 }
 0x435   :  { %9188 = vrot.lane.b32.xlu0 %v9187_v57, %s10140_s20  ;;  %v15846_v6 = vpop.permute.xlu1 %8893  ;;  %v9207_v57 = vpack.i.bf16 %v15256_v53, %v20535_v61  ;;  %v20609_v61 = vld [vmem:[#allocation29_spill] sm:$0xff] }
 0x436   :  { %20603 = vst [vmem:[#allocation11_spill] sm:$0xff] %v15846_v6 }
 0x437   :  { %v15842_v23 = vpop.permute.xlu0 %8908 }
 0x438   :  { %9173 = vrot.lane.b32.xlu1 %v15837_v54, %s10140_s20 }
 0x439   :  { %9198 = vrot.lane.b32.xlu0 %v9197_v3, %s10140_s20 }
 0x43b   :  { %v15852_v10 = vpop.permute.xlu0 %8918 }
 0x43c   :  { %9183 = vrot.lane.b32.xlu1 %v9182_v9, %s10140_s20 }
 0x43d   :  { %9208 = vrot.lane.b32.xlu0 %v9207_v57, %s10140_s20  ;;  %v20619_v57 = vld [vmem:[#allocation241_spill] sm:$0xff] }
 0x43e   :  { %v15856_v54 = vpop.permute.xlu1 %8903 }
 0x43f   :  { %20604 = vst [vmem:[#allocation319_spill] sm:$0xff] %v15856_v54  ;;  %v15862_v62 = vpop.permute.xlu0 %8928  ;;  %v20624_v54 = vld [vmem:[#allocation239_spill] sm:$0xff] }
 0x440   :  { %9193 = vrot.lane.b32.xlu1 %v9192_v42, %s10140_s20  ;;  %20605 = vst [vmem:[#allocation320_spill] sm:$0xff] %v15862_v62 }
 0x441   :  { %9218 = vrot.lane.b32.xlu0 %v9217_v25, %s10140_s20  ;;  %v20620_v25 = vld [vmem:[#allocation198_spill] sm:$0xff] }
 0x442   :  { %v15866_v2 = vpop.permute.xlu1 %8913 }
 0x443   :  { %20606 = vst [vmem:[#allocation321_spill] sm:$0xff] %v15866_v2  ;;  %v15872_v53 = vpop.permute.xlu0 %8938 }
 0x444   :  { %9203 = vrot.lane.b32.xlu1 %v9202_v37, %s10140_s20  ;;  %20607 = vst [vmem:[#allocation322_spill] sm:$0xff] %v15872_v53  ;;  %v20640_v53 = vld [vmem:[#allocation41_spill] sm:$0xff] }
 0x445   :  { %9228 = vrot.lane.b32.xlu0 %v20609_v61, %s10141_s26  ;;  %v20623_v61 = vld [vmem:[#allocation138_spill] sm:$0xff] }
 0x446   :  { %v15874_v28 = vpop.permute.xlu1 %8923 }
 0x447   :  { %20608 = vst [vmem:[#allocation323_spill] sm:$0xff] %v15874_v28  ;;  %v15881_v4 = vpop.permute.xlu0 %8948 }
 0x448   :  { %9213 = vrot.lane.b32.xlu1 %v9212_v29, %s10140_s20  ;;  %20610 = vst [vmem:[#allocation34_spill] sm:$0xff] %v15881_v4  ;;  %v20636_v4 = vld [vmem:[#allocation86_spill] sm:$0xff] }
 0x449   :  { %9238 = vrot.lane.b32.xlu0 %v20612_v63, %s10141_s26 }
 0x44a   :  { %v15883_v47 = vpop.permute.xlu1 %8933 }
 0x44b   :  { %20611 = vst [vmem:[#allocation46_spill] sm:$0xff] %v15883_v47  ;;  %v15889_v52 = vpop.permute.xlu0 %8958 }
 0x44c   :  { %9223 = vrot.lane.b32.xlu1 %v15681_v16, %s10140_s20  ;;  %20613 = vst [vmem:[#allocation124_spill] sm:$0xff] %v15889_v52  ;;  %v20632_v52 = vld [vmem:[#allocation242_spill] sm:$0xff] }
 0x44d   :  { %9248 = vrot.lane.b32.xlu0 %v20615_v21, %s10141_s26 }
 0x44e   :  { %v15891_v9 = vpop.permute.xlu1 %8943 }
 0x44f   :  { %20614 = vst [vmem:[#allocation216_spill] sm:$0xff] %v15891_v9  ;;  %v15897_v42 = vpop.permute.xlu0 %8968 }
 0x450   :  { %9233 = vrot.lane.b32.xlu1 %v20616_v18, %s10141_s26  ;;  %20617 = vst [vmem:[#allocation231_spill] sm:$0xff] %v15897_v42  ;;  %v20628_v42 = vld [vmem:[#allocation240_spill] sm:$0xff] }
 0x451   :  { %9258 = vrot.lane.b32.xlu0 %v20619_v57, %s10141_s26 }
 0x452   :  { %v15899_v3 = vpop.permute.xlu1 %8953 }
 0x453   :  { %20618 = vst [vmem:[#allocation200_spill] sm:$0xff] %v15899_v3  ;;  %v15905_v37 = vpop.permute.xlu0 %8978  ;;  %v20627_v3 = vld [vmem:[#allocation243_spill] sm:$0xff] }
 0x454   :  { %9243 = vrot.lane.b32.xlu1 %v20620_v25, %s10141_s26  ;;  %20621 = vst [vmem:[#allocation134_spill] sm:$0xff] %v15905_v37 }
 0x455   :  { %9268 = vrot.lane.b32.xlu0 %v20623_v61, %s10141_s26 }
 0x456   :  { %v15907_v29 = vpop.permute.xlu1 %8963 }
 0x457   :  { %20622 = vst [vmem:[#allocation157_spill] sm:$0xff] %v15907_v29  ;;  %v15913_v6 = vpop.permute.xlu0 %8988  ;;  %v20631_v29 = vld [vmem:[#allocation44_spill] sm:$0xff] }
 0x458   :  { %9253 = vrot.lane.b32.xlu1 %v20624_v54, %s10141_s26  ;;  %20625 = vst [vmem:[#allocation54_spill] sm:$0xff] %v15913_v6 }
 0x459   :  { %9278 = vrot.lane.b32.xlu0 %v20627_v3, %s10141_s26 }
 0x45a   :  { %v15915_v16 = vpop.permute.xlu1 %8973 }
 0x45b   :  { %20626 = vst [vmem:[#allocation146_spill] sm:$0xff] %v15915_v16  ;;  %v15921_v9 = vpop.permute.xlu0 %8998  ;;  %v20635_v16 = vld [vmem:[#allocation37_spill] sm:$0xff] }
 0x45c   :  { %9263 = vrot.lane.b32.xlu1 %v20628_v42, %s10141_s26  ;;  %20629 = vst [vmem:[#allocation161_spill] sm:$0xff] %v15921_v9 }
 0x45d   :  { %9288 = vrot.lane.b32.xlu0 %v20631_v29, %s10141_s26 }
 0x45e   :  { %v15923_v37 = vpop.permute.xlu1 %8983 }
 0x45f   :  { %20630 = vst [vmem:[#allocation325_spill] sm:$0xff] %v15923_v37  ;;  %v15929_v47 = vpop.permute.xlu0 %9008  ;;  %v20639_v37 = vld [vmem:[#allocation51_spill] sm:$0xff] }
 0x460   :  { %9273 = vrot.lane.b32.xlu1 %v20632_v52, %s10141_s26  ;;  %20633 = vst [vmem:[#allocation201_spill] sm:$0xff] %v15929_v47 }
 0x461   :  { %9298 = vrot.lane.b32.xlu0 %v20635_v16, %s10141_s26 }
 0x462   :  { %v15931_v6 = vpop.permute.xlu1 %8993 }
 0x463   :  { %20634 = vst [vmem:[#allocation103_spill] sm:$0xff] %v15931_v6  ;;  %v15937_v28 = vpop.permute.xlu0 %9018  ;;  %v20643_v6 = vld [vmem:[#allocation246_spill] sm:$0xff] }
 0x464   :  { %9283 = vrot.lane.b32.xlu1 %v20636_v4, %s10141_s26  ;;  %20637 = vst [vmem:[#allocation164_spill] sm:$0xff] %v15937_v28 }
 0x465   :  { %9308 = vrot.lane.b32.xlu0 %v20639_v37, %s10141_s26  ;;  %v20647_v37 = vld [vmem:[#allocation199_spill] sm:$0xff] }
 0x466   :  { %v15939_v9 = vpop.permute.xlu1 %9003 }
 0x467   :  { %20638 = vst [vmem:[#allocation222_spill] sm:$0xff] %v15939_v9  ;;  %v15945_v2 = vpop.permute.xlu0 %9028  ;;  %v20646_v9 = vld [vmem:[#allocation172_spill] sm:$0xff] }
 0x468   :  { %9293 = vrot.lane.b32.xlu1 %v20640_v53, %s10141_s26  ;;  %20641 = vst [vmem:[#allocation174_spill] sm:$0xff] %v15945_v2 }
 0x469   :  { %9318 = vrot.lane.b32.xlu0 %v20643_v6, %s10141_s26  ;;  %v20651_v6 = vld [vmem:[#allocation151_spill] sm:$0xff] }
 0x46a   :  { %v15947_v47 = vpop.permute.xlu1 %9013 }
 0x46b   :  { %20642 = vst [vmem:[#allocation137_spill] sm:$0xff] %v15947_v47  ;;  %v15953_v62 = vpop.permute.xlu0 %9038  ;;  %v20650_v47 = vld [vmem:[#allocation256_spill] sm:$0xff] }
 0x46c   :  { %9303 = vrot.lane.b32.xlu1 %v15619_v15, %s10141_s26  ;;  %20644 = vst [vmem:[#allocation183_spill] sm:$0xff] %v15953_v62 }
 0x46d   :  { %9328 = vrot.lane.b32.xlu0 %v20646_v9, %s10141_s26  ;;  %v20655_v9 = vld [vmem:[#allocation96_spill] sm:$0xff] }
 0x46e   :  { %v15955_v28 = vpop.permute.xlu1 %9023 }
 0x46f   :  { %20645 = vst [vmem:[#allocation202_spill] sm:$0xff] %v15955_v28  ;;  %v15961_v53 = vpop.permute.xlu0 %9048  ;;  %v20654_v28 = vld [vmem:[#allocation148_spill] sm:$0xff] }
 0x470   :  { %9313 = vrot.lane.b32.xlu1 %v20647_v37, %s10141_s26  ;;  %20648 = vst [vmem:[#allocation203_spill] sm:$0xff] %v15961_v53 }
 0x471   :  { %9338 = vrot.lane.b32.xlu0 %v20650_v47, %s10141_s26  ;;  %v20659_v47 = vld [vmem:[#allocation255_spill] sm:$0xff] }
 0x472   :  { %v15963_v2 = vpop.permute.xlu1 %9033 }
 0x473   :  { %20649 = vst [vmem:[#allocation218_spill] sm:$0xff] %v15963_v2  ;;  %v15969_v15 = vpop.permute.xlu0 %9058  ;;  %v20658_v2 = vld [vmem:[#allocation264_spill] sm:$0xff] }
 0x474   :  { %9323 = vrot.lane.b32.xlu1 %v20651_v6, %s10141_s26  ;;  %20652 = vst [vmem:[#allocation224_spill] sm:$0xff] %v15969_v15 }
 0x475   :  { %9348 = vrot.lane.b32.xlu0 %v20654_v28, %s10141_s26  ;;  %v20663_v28 = vld [vmem:[#allocation259_spill] sm:$0xff] }
 0x476   :  { %v15971_v62 = vpop.permute.xlu1 %9043 }
 0x477   :  { %20653 = vst [vmem:[#allocation184_spill] sm:$0xff] %v15971_v62  ;;  %v15977_v37 = vpop.permute.xlu0 %9068  ;;  %v20662_v62 = vld [vmem:[#allocation205_spill] sm:$0xff] }
 0x478   :  { %9333 = vrot.lane.b32.xlu1 %v20655_v9, %s10141_s26  ;;  %20656 = vst [vmem:[#allocation61_spill] sm:$0xff] %v15977_v37 }
 0x479   :  { %9358 = vrot.lane.b32.xlu0 %v20658_v2, %s10141_s26  ;;  %v20667_v2 = vld [vmem:[#allocation263_spill] sm:$0xff] }
 0x47a   :  { %v15979_v53 = vpop.permute.xlu1 %9053 }
 0x47b   :  { %20657 = vst [vmem:[#allocation204_spill] sm:$0xff] %v15979_v53  ;;  %v15985_v6 = vpop.permute.xlu0 %9078  ;;  %v20666_v53 = vld [vmem:[#allocation267_spill] sm:$0xff] }
 0x47c   :  { %9343 = vrot.lane.b32.xlu1 %v20659_v47, %s10141_s26  ;;  %20660 = vst [vmem:[#allocation171_spill] sm:$0xff] %v15985_v6 }
 0x47d   :  { %9368 = vrot.lane.b32.xlu0 %v20662_v62, %s10141_s26 }
 0x47e   :  { %v15987_v15 = vpop.permute.xlu1 %9063 }
 0x47f   :  { %20661 = vst [vmem:[#allocation22_spill] sm:$0xff] %v15987_v15  ;;  %v15993_v9 = vpop.permute.xlu0 %9088  ;;  %v20670_v15 = vld [vmem:[#allocation65_spill] sm:$0xff] }
 0x480   :  { %9353 = vrot.lane.b32.xlu1 %v20663_v28, %s10141_s26  ;;  %20664 = vst [vmem:[#allocation176_spill] sm:$0xff] %v15993_v9  ;;  %v10102_v9 = vld [vmem:[#allocation2] sm:$0xff] }
 0x481   :  { %9378 = vrot.lane.b32.xlu0 %v20666_v53, %s10141_s26 }
 0x482   :  { %v15995_v37 = vpop.permute.xlu1 %9073 }
 0x483   :  { %20665 = vst [vmem:[#allocation52_spill] sm:$0xff] %v15995_v37  ;;  %v16001_v47 = vpop.permute.xlu0 %9098 }
 0x484   :  { %9363 = vrot.lane.b32.xlu1 %v20667_v2, %s10141_s26  ;;  %20668 = vst [vmem:[#allocation58_spill] sm:$0xff] %v16001_v47  ;;  %v10093_v47 = vld [vmem:[#allocation2 + $0x38] sm:$0xff] }
 0x485   :  { %9388 = vrot.lane.b32.xlu0 %v15340_v45, %s10142_s8  ;;  %v20675_v45 = vld [vmem:[#allocation190_spill] sm:$0xff] }
 0x486   :  { %v16003_v6 = vpop.permute.xlu1 %9083 }
 0x487   :  { %20669 = vst [vmem:[#allocation3_spill] sm:$0xff] %v16003_v6  ;;  %v16009_v62 = vpop.permute.xlu0 %9108 }
 0x488   :  { %9373 = vrot.lane.b32.xlu1 %v20670_v15, %s10141_s26  ;;  %20671 = vst [vmem:[#allocation57_spill] sm:$0xff] %v16009_v62 }
 0x489   :  { %9398 = vrot.lane.b32.xlu0 %v15365_v58, %s10142_s8 }
 0x48a   :  { %v16011_v28 = vpop.permute.xlu1 %9093 }
 0x48b   :  { %20672 = vst [vmem:[#allocation67_spill] sm:$0xff] %v16011_v28  ;;  %v16017_v53 = vpop.permute.xlu0 %9118  ;;  %v20678_v28 = vld [vmem:[#allocation192_spill] sm:$0xff] }
 0x48c   :  { %9383 = vrot.lane.b32.xlu1 %v15683_v44, %s10141_s26  ;;  %20673 = vst [vmem:[#allocation247_spill] sm:$0xff] %v16017_v53 }
 0x48d   :  { %9408 = vrot.lane.b32.xlu0 %v15386_v43, %s10142_s8 }
 0x48e   :  { %v16019_v2 = vpop.permute.xlu1 %9103 }
 0x48f   :  { %20674 = vst [vmem:[#allocation32_spill] sm:$0xff] %v16019_v2  ;;  %v16025_v15 = vpop.permute.xlu0 %9128 }
 0x490   :  { %9393 = vrot.lane.b32.xlu1 %v20675_v45, %s10142_s8  ;;  %20676 = vst [vmem:[#allocation38_spill] sm:$0xff] %v16025_v15 }
 0x491   :  { %9418 = vrot.lane.b32.xlu0 %v15397_v55, %s10142_s8 }
 0x492   :  { %v16027_v62 = vpop.permute.xlu1 %9113 }
 0x493   :  { %20677 = vst [vmem:[#allocation47_spill] sm:$0xff] %v16027_v62  ;;  %v16033_v44 = vpop.permute.xlu0 %9138 }
 0x494   :  { %9403 = vrot.lane.b32.xlu1 %v20678_v28, %s10142_s8  ;;  %20679 = vst [vmem:[#allocation177_spill] sm:$0xff] %v16033_v44 }
 0x495   :  { %9428 = vrot.lane.b32.xlu0 %v15418_v17, %s10142_s8 }
 0x496   :  { %v16035_v53 = vpop.permute.xlu1 %9123 }
 0x497   :  { %20680 = vst [vmem:[#allocation186_spill] sm:$0xff] %v16035_v53  ;;  %v16041_v2 = vpop.permute.xlu0 %9148 }
 0x498   :  { %9413 = vrot.lane.b32.xlu1 %v15354_v40, %s10142_s8  ;;  %20681 = vst [vmem:[#allocation108_spill] sm:$0xff] %v16041_v2 }
 0x499   :  { %9438 = vrot.lane.b32.xlu0 %v15435_v24, %s10142_s8 }
 0x49a   :  { %v16043_v15 = vpop.permute.xlu1 %9133 }
 0x49b   :  { %20682 = vst [vmem:[#allocation85_spill] sm:$0xff] %v16043_v15  ;;  %v16049_v62 = vpop.permute.xlu0 %9158 }
 0x49c   :  { %9423 = vrot.lane.b32.xlu1 %v15377_v19, %s10142_s8  ;;  %20683 = vst [vmem:[#allocation173_spill] sm:$0xff] %v16049_v62 }
 0x49d   :  { %9448 = vrot.lane.b32.xlu0 %v15449_v11, %s10142_s8 }
 0x49e   :  { %v16051_v44 = vpop.permute.xlu1 %9143 }
 0x49f   :  { %20684 = vst [vmem:[#allocation42_spill] sm:$0xff] %v16051_v44  ;;  %v16057_v53 = vpop.permute.xlu0 %9168 }
 0x4a0   :  { %9433 = vrot.lane.b32.xlu1 %v15395_v33, %s10142_s8  ;;  %20685 = vst [vmem:[#allocation226_spill] sm:$0xff] %v16057_v53 }
 0x4a1   :  { %9458 = vrot.lane.b32.xlu0 %v15468_v12, %s10142_s8 }
 0x4a2   :  { %v16059_v2 = vpop.permute.xlu1 %9153 }
 0x4a3   :  { %20686 = vst [vmem:[#allocation230_spill] sm:$0xff] %v16059_v2  ;;  %v16065_v15 = vpop.permute.xlu0 %9178 }
 0x4a4   :  { %9443 = vrot.lane.b32.xlu1 %v15416_v13, %s10142_s8  ;;  %20687 = vst [vmem:[#allocation178_spill] sm:$0xff] %v16065_v15 }
 0x4a5   :  { %9468 = vrot.lane.b32.xlu0 %v15491_v46, %s10142_s8 }
 0x4a6   :  { %v16067_v62 = vpop.permute.xlu1 %9163 }
 0x4a7   :  { %20688 = vst [vmem:[#allocation63_spill] sm:$0xff] %v16067_v62  ;;  %v16073_v44 = vpop.permute.xlu0 %9188  ;;  %v20698_v62 = vld [vmem:[#allocation207_spill] sm:$0xff] }
 0x4a8   :  { %9453 = vrot.lane.b32.xlu1 %v15433_v35, %s10142_s8  ;;  %20689 = vst [vmem:[#allocation5_spill] sm:$0xff] %v16073_v44 }
 0x4a9   :  { %9478 = vrot.lane.b32.xlu0 %v15509_v20, %s10142_s8 }
 0x4aa   :  { %v16075_v53 = vpop.permute.xlu1 %9173 }
 0x4ab   :  { %20690 = vst [vmem:[#allocation78_spill] sm:$0xff] %v16075_v53  ;;  %v16081_v2 = vpop.permute.xlu0 %9198  ;;  %v10032_v53 = vld [vmem:[%s18403_s2] sm:$0xff]  }
 0x4ac   :  { %9463 = vrot.lane.b32.xlu1 %v15625_v49, %s10142_s8  ;;  %20691 = vst [vmem:[#allocation91_spill] sm:$0xff] %v16081_v2  ;;  %7382 = vmatprep.subr.bf16.mxu1 %v10032_v53  ;;  %v8775_v49 = vunpack.i.l.bf16 %v15621_v1 }
 0x4ad   :  { %9488 = vrot.lane.b32.xlu0 %v15522_v56, %s10142_s8  ;;  %7383 = vmatpush3.bf16.msra.mxu1 %v10032_v53  ;;  %v16124_v56 = vld [vmem:[#allocation2 + $0x48] sm:$0xff] }
 0x4ae   :  { %v16083_v15 = vpop.permute.xlu1 %9183 }
 0x4af   :  { %20692 = vst [vmem:[#allocation17_spill] sm:$0xff] %v16083_v15  ;;  %v16089_v46 = vpop.permute.xlu0 %9208 }
 0x4b0   :  { %9473 = vrot.lane.b32.xlu1 %v15466_v8, %s10142_s8  ;;  %20693 = vst [vmem:[#allocation175_spill] sm:$0xff] %v16089_v46  ;;  %v10033_v46 = vld [vmem:[%s18403_s2 + $0x8] sm:$0xff]  }
 0x4b1   :  { %9498 = vrot.lane.b32.xlu0 %v15542_v39, %s10142_s8  ;;  %7384 = vmatprep.subr.bf16.mxu1 %v10033_v46  ;;  %v10034_v39 = vld [vmem:[%s18403_s2 + $0x10] sm:$0xff]  }
 0x4b2   :  { %v16091_v44 = vpop.permute.xlu1 %9193  ;;  %7385 = vmatpush3.bf16.msra.mxu1 %v10033_v46  ;;  %v10035_v46 = vld [vmem:[%s18403_s2 + $0x18] sm:$0xff]  }
 0x4b3   :  { %20694 = vst [vmem:[#allocation232_spill] sm:$0xff] %v16091_v44  ;;  %v16100_v2 = vpop.permute.xlu0 %9218  ;;  %v20697_v44 = vld [vmem:[#allocation273_spill] sm:$0xff]  ;;  %7386 = vmatprep.subr.bf16.mxu1 %v10034_v39 }
 0x4b4   :  { %9483 = vrot.lane.b32.xlu1 %v15488_v38, %s10142_s8  ;;  %20695 = vst [vmem:[#allocation13_spill] sm:$0xff] %v16100_v2  ;;  %v20701_v2 = vld [vmem:[#allocation274_spill] sm:$0xff] }
 0x4b5   :  { %9508 = vrot.lane.b32.xlu0 %v20697_v44, %s10142_s8 }
 0x4b6   :  { %v16105_v15 = vpop.permute.xlu1 %9203  ;;  %7387 = vmatpush3.bf16.msra.mxu1 %v10034_v39 }
 0x4b7   :  { %20696 = vst [vmem:[#allocation4_spill] sm:$0xff] %v16105_v15  ;;  %v16114_v38 = vpop.permute.xlu0 %9228  ;;  %v20702_v15 = vld [vmem:[#allocation208_spill] sm:$0xff]  ;;  %7388 = vmatprep.subr.bf16.mxu1 %v10035_v46 }
 0x4b8   :  { %9493 = vrot.lane.b32.xlu1 %v20698_v62, %s10142_s8  ;;  %20699 = vst [vmem:[#allocation81_spill] sm:$0xff] %v16114_v38  ;;  %v16126_v62 = vld [vmem:[#allocation2 + $0x50] sm:$0xff] }
 0x4b9   :  { %9518 = vrot.lane.b32.xlu0 %v20701_v2, %s10142_s8  ;;  %v9527_v6 = vpack.i.bf16 %v16126_v62, %v16124_v56  ;;  %v20705_v2 = vld [vmem:[#allocation278_spill] sm:$0xff]  ;;  %v10092_v38 = vld [vmem:[#allocation2 + $0x30] sm:$0xff] }
 0x4ba   :  { %v16116_v53 = vpop.permute.xlu1 %9213  ;;  %7389 = vmatpush3.bf16.msra.mxu1 %v10035_v46  ;;  %v9522_v8 = vpack.i.bf16 %v10093_v47, %v10092_v38 }
 0x4bb   :  { %20700 = vst [vmem:[#allocation210_spill] sm:$0xff] %v16116_v53  ;;  %v16122_v44 = vpop.permute.xlu0 %9238 }
 0x4bc   :  { %9503 = vrot.lane.b32.xlu1 %v20702_v15, %s10142_s8  ;;  %20703 = vst [vmem:[#allocation27_spill] sm:$0xff] %v16122_v44  ;;  %v10036_v15 = vld [vmem:[%s18403_s2 + $0x20] ss:$0 sps:$4 sm:$0xff]  }
 0x4bd   :  { %9528 = vrot.lane.b32.xlu0 %v9527_v6, %s10143_s9  ;;  %7457 = vmatprep.subr.msk.bf16.mxu1 %vm2934_vm4, %v10036_v15  ;;  %v6374_v6 = vsel %vm2934_vm4, %v10036_v15, 0 }
 0x4be   :  { %v16133_v53 = vpop.permute.xlu1 %9223  ;;  %7391 = vmatpush3.bf16.msra.mxu1 %v6374_v6 }
 0x4bf   :  { %20704 = vst [vmem:[#allocation6_spill] sm:$0xff] %v16133_v53  ;;  %v16141_v44 = vpop.permute.xlu0 %9248 }
 0x4c0   :  { %9513 = vrot.lane.b32.xlu1 %v20705_v2, %s10142_s8  ;;  %20706 = vst [vmem:[#allocation7_spill] sm:$0xff] %v16141_v44  ;;  %v16160_v44 = vld [vmem:[#allocation2 + $0x78] sm:$0xff] }
 0x4c1   :  { %9538 = vrot.lane.b32.xlu0 %v20612_v63, %s10144_s14  ;;  %v16162_v63 = vld [vmem:[#allocation2 + $0x80] sm:$0xff] }
 0x4c2   :  { %v16143_v39 = vpop.permute.xlu1 %9233 }
 0x4c3   :  { %20707 = vst [vmem:[#allocation188_spill] sm:$0xff] %v16143_v39  ;;  %v16150_v53 = vpop.permute.xlu0 %9258 }
 0x4c4   :  { %9523 = vrot.lane.b32.xlu1 %v9522_v8, %s10143_s9  ;;  %20708 = vst [vmem:[#allocation94_spill] sm:$0xff] %v16150_v53  ;;  %v9557_v8 = vpack.i.bf16 %v16162_v63, %v16160_v44 }
 0x4c5   :  { %9548 = vrot.lane.b32.xlu0 %v15365_v58, %s10145_s1 }
 0x4c6   :  { %v16152_v2 = vpop.permute.xlu1 %9243 }
 0x4c7   :  { %20709 = vst [vmem:[#allocation211_spill] sm:$0xff] %v16152_v2  ;;  %v16158_v46 = vpop.permute.xlu0 %9268 }
 0x4c8   :  { %9533 = vrot.lane.b32.xlu1 %v20616_v18, %s10144_s14  ;;  %20710 = vst [vmem:[#allocation229_spill] sm:$0xff] %v16158_v46  ;;  %v16175_v18 = vld [vmem:[#allocation2 + $0x60] sm:$0xff]  ;;  %v16177_v46 = vld [vmem:[#allocation2 + $0x68] sm:$0xff] }
 0x4c9   :  { %9558 = vrot.lane.b32.xlu0 %v9557_v8, %s10143_s9  ;;  %v9552_v53 = vpack.i.bf16 %v16177_v46, %v16175_v18 }
 0x4ca   :  { %v16166_v15 = vpop.permute.xlu1 %9253 }
 0x4cb   :  { %20711 = vst [vmem:[#allocation16_spill] sm:$0xff] %v16166_v15  ;;  %v16171_v58 = vpop.permute.xlu0 %9278 }
 0x4cc   :  { %9543 = vrot.lane.b32.xlu1 %v20675_v45, %s10145_s1  ;;  %20712 = vst [vmem:[#allocation191_spill] sm:$0xff] %v16171_v58  ;;  %v16194_v58 = vld [vmem:[#allocation2 + $0xa8] sm:$0xff] }
 0x4cd   :  { %9568 = vrot.lane.b32.xlu0 %v20615_v21, %s10144_s14 }
 0x4ce   :  { %v16173_v6 = vpop.permute.xlu1 %9263 }
 0x4cf   :  { %20713 = vst [vmem:[#allocation180_spill] sm:$0xff] %v16173_v6  ;;  %v16184_v8 = vpop.permute.xlu0 %9288  ;;  %v9587_v6 = vpack.i.bf16 %v15642_v7, %v16194_v58 }
 0x4d0   :  { %9553 = vrot.lane.b32.xlu1 %v9552_v53, %s10143_s9  ;;  %20714 = vst [vmem:[#allocation10_spill] sm:$0xff] %v16184_v8  ;;  %v10099_v8 = vld [vmem:[#allocation2 + $0x90] sm:$0xff] }
 0x4d1   :  { %9578 = vrot.lane.b32.xlu0 %v15386_v43, %s10145_s1 }
 0x4d2   :  { %v16186_v15 = vpop.permute.xlu1 %9273 }
 0x4d3   :  { %20715 = vst [vmem:[#allocation98_spill] sm:$0xff] %v16186_v15  ;;  %v16192_v45 = vpop.permute.xlu0 %9298 }
 0x4d4   :  { %9563 = vrot.lane.b32.xlu1 %v20620_v25, %s10144_s14  ;;  %20716 = vst [vmem:[#allocation115_spill] sm:$0xff] %v16192_v45  ;;  %v10100_v25 = vld [vmem:[#allocation2 + $0x98] sm:$0xff] }
 0x4d5   :  { %9588 = vrot.lane.b32.xlu0 %v9587_v6, %s10143_s9  ;;  %v9582_v15 = vpack.i.bf16 %v10100_v25, %v10099_v8 }
 0x4d6   :  { %v16198_v21 = vpop.permute.xlu1 %9283 }
 0x4d7   :  { %20717 = vst [vmem:[#allocation69_spill] sm:$0xff] %v16198_v21  ;;  %v16203_v53 = vpop.permute.xlu0 %9308 }
 0x4d8   :  { %9573 = vrot.lane.b32.xlu1 %v20678_v28, %s10145_s1  ;;  %20718 = vst [vmem:[#allocation93_spill] sm:$0xff] %v16203_v53  ;;  %v20722_v28 = vld [vmem:[#allocation99_spill] sm:$0xff] }
 0x4d9   :  { %9598 = vrot.lane.b32.xlu0 %v20619_v57, %s10144_s14  ;;  %v8751_v6 = vunpack.i.h.bf16 %v20722_v28  ;;  %v8750_v53 = vunpack.i.l.bf16 %v20722_v28  ;;  %v20724_v57 = vld [vmem:[#allocation102_spill] sm:$0xff] }
 0x4da   :  { %v16205_v43 = vpop.permute.xlu1 %9293 }
 0x4db   :  { %20719 = vst [vmem:[#allocation75_spill] sm:$0xff] %v16205_v43  ;;  %v16210_v45 = vpop.permute.xlu0 %9318  ;;  %v20723_v43 = vld [vmem:[#allocation275_spill] sm:$0xff] }
 0x4dc   :  { %9583 = vrot.lane.b32.xlu1 %v9582_v15, %s10143_s9  ;;  %20720 = vst [vmem:[#allocation15_spill] sm:$0xff] %v16210_v45  ;;  %v8761_v2 = vunpack.i.h.bf16 %v20723_v43  ;;  %v8760_v39 = vunpack.i.l.bf16 %v20723_v43  ;;  %v8756_v15 = vunpack.i.h.bf16 %v20724_v57  ;;  %v8755_v45 = vunpack.i.l.bf16 %v20724_v57 }
 0x4dd   :  { %9608 = vrot.lane.b32.xlu0 %v15397_v55, %s10145_s1  ;;  %v10101_v55 = vld [vmem:[#allocation2 + $0x8] sm:$0xff]  ;;  %v16234_v43 = vsel %vm2249_vm2, %v10102_v9, %v8750_v53 }
 0x4de   :  { %v16212_v21 = vpop.permute.xlu1 %9303  ;;  %v16231_v28 = vsel %vm2249_vm2, %v10101_v55, %v8751_v6  ;;  %v16240_v57 = vsel %vm2249_vm2, %v10092_v38, %v8760_v39  ;;  %v20729_v55 = vld [vmem:[#allocation277_spill] sm:$0xff]  ;;  %v8766_v38 = vunpack.i.h.bf16 %v15602_v14 }
 0x4df   :  { %20721 = vst [vmem:[#allocation19_spill] sm:$0xff] %v16212_v21  ;;  %v16224_v37 = vpop.permute.xlu0 %9328  ;;  %v8771_v9 = vunpack.i.h.bf16 %v20729_v55 }
 0x4e0   :  { %9593 = vrot.lane.b32.xlu1 %v20624_v54, %s10144_s14  ;;  %20725 = vst [vmem:[#allocation233_spill] sm:$0xff] %v16224_v37  ;;  %v16237_v54 = vsel %vm2249_vm2, %v10093_v47, %v8761_v2  ;;  %v10103_v37 = vld [vmem:[#allocation2 + $0x20] sm:$0xff]  ;;  %v8770_v2 = vunpack.i.l.bf16 %v20729_v55  ;;  %v8765_v47 = vunpack.i.l.bf16 %v15602_v14  ;;  %v8791_v55 = vunpack.i.h.bf16 %v15608_v50 }
 0x4e1   :  { %9618 = vrot.lane.b32.xlu0 %v15660_v59, %s10143_s9  ;;  %v16245_v59 = vsel %vm2249_vm2, %v10103_v37, %v8756_v15  ;;  %v20732_v15 = vld [vmem:[#allocation280_spill] sm:$0xff]  ;;  %v8790_v14 = vunpack.i.l.bf16 %v15608_v50  ;;  %v16284_v50 = vsel %vm2249_vm2, %v16126_v62, %v8766_v38  ;;  %v16304_v62 = vsel %vm2249_vm2, %v16160_v44, %v8775_v49 }
 0x4e2   :  { %v16226_v21 = vpop.permute.xlu1 %9313  ;;  %20727 = vst [vmem:[#allocation112_spill] sm:$0xff] %v16245_v59  ;;  %v8781_v20 = vunpack.i.h.bf16 %v20732_v15  ;;  %v20736_v44 = vld [vmem:[#allocation284_spill] sm:$0xff] }
 0x4e3   :  { %20726 = vst [vmem:[#allocation234_spill] sm:$0xff] %v16226_v21  ;;  %v10104_v21 = vld [vmem:[#allocation2 + $0x18] sm:$0xff]  ;;  %v16251_v53 = vpop.permute.xlu0 %9338 }
 0x4e4   :  { %9603 = vrot.lane.b32.xlu1 %v15354_v40, %s10145_s1  ;;  %v16248_v6 = vsel %vm2249_vm2, %v10104_v21, %v8755_v45  ;;  %20730 = vst [vmem:[#allocation181_spill] sm:$0xff] %v16251_v53  ;;  %v10105_v40 = vld [vmem:[#allocation2 + $0xc0] sm:$0xff]  ;;  %v8780_v45 = vunpack.i.l.bf16 %v20732_v15  ;;  %v8776_v21 = vunpack.i.h.bf16 %v15621_v1  ;;  %v8786_v53 = vunpack.i.h.bf16 %v15634_v41 }
 0x4e5   :  { %20728 = vst [vmem:[#allocation122_spill] sm:$0xff] %v16248_v6  ;;  %v9612_v37 = vpack.i.bf16 %v15687_v36, %v10105_v40  ;;  %9628 = vrot.lane.b32.xlu0 %v20623_v61, %s10144_s14  ;;  %v16272_v15 = vsel %vm2249_vm2, %v16177_v46, %v8771_v9  ;;  %v20733_v6 = vld [vmem:[#allocation282_spill] sm:$0xff]  ;;  %v16280_v61 = vsel %vm2249_vm2, %v16175_v18, %v8770_v2 }
 0x4e6   :  { %v16256_v39 = vpop.permute.xlu1 %9323  ;;  %v8801_v59 = vunpack.i.h.bf16 %v20733_v6  ;;  %v8800_v1 = vunpack.i.l.bf16 %v20733_v6  ;;  %v16293_v9 = vsel %vm2249_vm2, %v10100_v25, %v8781_v20  ;;  %v16296_v6 = vsel %vm2249_vm2, %v10099_v8, %v8780_v45 }
 0x4e7   :  { %20731 = vst [vmem:[#allocation74_spill] sm:$0xff] %v16256_v39  ;;  %v8785_v39 = vunpack.i.l.bf16 %v15634_v41  ;;  %v16276_v35 = vpop.permute.xlu0 %9348  ;;  %v16288_v41 = vsel %vm2249_vm2, %v16124_v56, %v8765_v47  ;;  %v16300_v18 = vsel %vm2249_vm2, %v16162_v63, %v8776_v21  ;;  %v16310_v56 = vsel %vm2249_vm2, %v15687_v36, %v8791_v55  ;;  %v20743_v21 = vld [vmem:[#allocation289_spill] sm:$0xff] }
 0x4e8   :  { %9613 = vrot.lane.b32.xlu1 %v9612_v37, %s10143_s9  ;;  %20734 = vst [vmem:[#allocation235_spill] sm:$0xff] %v16276_v35  ;;  %v16313_v20 = vsel %vm2249_vm2, %v10105_v40, %v8790_v14  ;;  %v16317_v8 = vsel %vm2249_vm2, %v15642_v7, %v8786_v53  ;;  %v16331_v49 = vsel %vm2249_vm2, %v15708_v30, %v8800_v1  ;;  %v8796_v36 = vunpack.i.h.bf16 %v20736_v44  ;;  %v20738_v53 = vld [vmem:[#allocation283_spill] sm:$0xff]  ;;  %v20742_v40 = vld [vmem:[#allocation296_spill] sm:$0xff] }
 0x4e9   :  { %9638 = vrot.lane.b32.xlu0 %v15418_v17, %s10145_s1  ;;  %v16321_v63 = vsel %vm2249_vm2, %v16194_v58, %v8785_v39  ;;  %v16327_v17 = vsel %vm2249_vm2, %v15710_v34, %v8801_v59  ;;  %v8795_v7 = vunpack.i.l.bf16 %v20736_v44  ;;  %v8811_v58 = vunpack.i.h.bf16 %v20738_v53  ;;  %v20741_v59 = vld [vmem:[#allocation285_spill] sm:$0xff]  ;;  %v20744_v1 = vld [vmem:[#allocation287_spill] sm:$0xff] }
 0x4ea   :  { %v16290_v46 = vpop.permute.xlu1 %9333  ;;  %v8810_v2 = vunpack.i.l.bf16 %v20738_v53  ;;  %v8821_v39 = vunpack.i.h.bf16 %v20741_v59  ;;  %v8820_v30 = vunpack.i.l.bf16 %v20741_v59  ;;  %v8816_v37 = vunpack.i.h.bf16 %v20742_v40  ;;  %v20746_v59 = vld [vmem:[#allocation286_spill] sm:$0xff] }
 0x4eb   :  { %20735 = vst [vmem:[#allocation193_spill] sm:$0xff] %v16290_v46  ;;  %v16334_v25 = vpop.permute.xlu0 %9358  ;;  %v8815_v45 = vunpack.i.l.bf16 %v20742_v40  ;;  %v8831_v55 = vunpack.i.h.bf16 %v20743_v21  ;;  %v8830_v14 = vunpack.i.l.bf16 %v20743_v21  ;;  %v16355_v44 = vsel %vm2249_vm2, %v20744_v1, %v8796_v36  ;;  %v20749_v1 = vld [vmem:[#allocation291_spill] sm:$0xff]  ;;  %v16479_v46 = vld [vmem:[#allocation2 + $0x290] sm:$0xff] }
 0x4ec   :  { %9623 = vrot.lane.b32.xlu1 %v20628_v42, %s10144_s14  ;;  %20737 = vst [vmem:[#allocation82_spill] sm:$0xff] %v16334_v25  ;;  %v20740_v42 = vld [vmem:[#allocation288_spill] sm:$0xff]  ;;  %v8826_v53 = vunpack.i.h.bf16 %v15706_v48  ;;  %v16363_v40 = vsel %vm2249_vm2, %v20746_v59, %v8795_v7  ;;  %v16367_v21 = vsel %vm2249_vm2, %v15736_v27, %v8811_v58  ;;  %v20747_v25 = vld [vmem:[#allocation150_spill] sm:$0xff]  ;;  %v16385_v7 = vsel %vm2249_vm2, %v15758_v5, %v8821_v39  ;;  %v10107_v5 = vld [vmem:[#allocation2 + $0x1b0] sm:$0xff] }
 0x4ed   :  { %v8806_v47 = vunpack.i.h.bf16 %v20740_v42  ;;  %v8805_v34 = vunpack.i.l.bf16 %v20740_v42  ;;  %9648 = vrot.lane.b32.xlu0 %v15679_v31, %s10143_s9  ;;  %v8825_v42 = vunpack.i.l.bf16 %v15706_v48  ;;  %v20750_v48 = vld [vmem:[#allocation290_spill] sm:$0xff]  ;;  %v20751_v27 = vld [vmem:[#allocation304_spill] sm:$0xff]  ;;  %v16405_v39 = vsel %vm2249_vm2, %v10107_v5, %v8830_v14  ;;  %v20766_v14 = vld [vmem:[#allocation299_spill] sm:$0xff]  ;;  %20782 = vst [vmem:[#allocation272_spill] sm:$0xff] %v16479_v46 }
 0x4ee   :  { %v16339_v38 = vpop.permute.xlu1 %9343  ;;  %v16389_v58 = vsel %vm2249_vm2, %v20751_v27, %v8820_v30  ;;  %20757 = vst [vmem:[#allocation136_spill] sm:$0xff] %v16405_v39  ;;  %v20758_v30 = vld [vmem:[#allocation155_spill] sm:$0xff]  ;;  %v8836_v5 = vunpack.i.h.bf16 %v20766_v14 }
 0x4ef   :  { %20739 = vst [vmem:[#allocation123_spill] sm:$0xff] %v16339_v38  ;;  %v16359_v31 = vpop.permute.xlu0 %9368  ;;  %v16377_v35 = vsel %vm2249_vm2, %v20749_v1, %v8806_v47  ;;  %v20754_v47 = vld [vmem:[#allocation214_spill] sm:$0xff] }
 0x4f0   :  { %9633 = vrot.lane.b32.xlu1 %v15377_v19, %s10145_s1  ;;  %20745 = vst [vmem:[#allocation126_spill] sm:$0xff] %v16359_v31  ;;  %v16371_v19 = vsel %vm2249_vm2, %v20747_v25, %v8810_v2  ;;  %v16381_v31 = vsel %vm2249_vm2, %v20750_v48, %v8805_v34  ;;  %v20752_v25 = vld [vmem:[#allocation298_spill] sm:$0xff]  ;;  %v16399_v59 = vsel %vm2249_vm2, %v20754_v47, %v8815_v45 }
 0x4f1   :  { %9658 = vrot.lane.b32.xlu0 %v20627_v3, %s10144_s14  ;;  %v16395_v2 = vsel %vm2249_vm2, %v20752_v25, %v8816_v37  ;;  %20755 = vst [vmem:[#allocation324_spill] sm:$0xff] %v16399_v59  ;;  %v10106_v34 = vld [vmem:[#allocation2 + $0x1b8] sm:$0xff]  ;;  %v20761_v37 = vld [vmem:[#allocation147_spill] sm:$0xff]  ;;  %v20764_v25 = vld [vmem:[#allocation297_spill] sm:$0xff] }
 0x4f2   :  { %v16373_v36 = vpop.permute.xlu1 %9353  ;;  %20753 = vst [vmem:[#allocation195_spill] sm:$0xff] %v16395_v2  ;;  %v16402_v1 = vsel %vm2249_vm2, %v10106_v34, %v8831_v55  ;;  %v20759_v3 = vld [vmem:[#allocation154_spill] sm:$0xff]  ;;  %v16415_v27 = vsel %vm2249_vm2, %v20761_v37, %v8825_v42  ;;  %v8841_v55 = vunpack.i.h.bf16 %v20764_v25  ;;  %v8840_v47 = vunpack.i.l.bf16 %v20764_v25  ;;  %v16441_v25 = vld [vmem:[#allocation2 + $0x188] sm:$0xff] }
 0x4f3   :  { %20748 = vst [vmem:[#allocation62_spill] sm:$0xff] %v16373_v36  ;;  %20756 = vst [vmem:[#allocation130_spill] sm:$0xff] %v16402_v1  ;;  %v16411_v48 = vsel %vm2249_vm2, %v20759_v3, %v8826_v53  ;;  %v16417_v45 = vpop.permute.xlu0 %9378  ;;  %v16550_v59 = vld [vmem:[#allocation2 + $0x308] sm:$0xff] }
 0x4f4   :  { %9643 = vrot.lane.b32.xlu1 %v20758_v30, %s10143_s9  ;;  %20760 = vst [vmem:[#allocation236_spill] sm:$0xff] %v16411_v48  ;;  %20762 = vst [vmem:[#allocation35_spill] sm:$0xff] %v16415_v27  ;;  %v8835_v30 = vunpack.i.l.bf16 %v20766_v14  ;;  %v16433_v42 = vsel %vm2249_vm2, %v15798_v32, %v8841_v55  ;;  %v16437_v3 = vsel %vm2249_vm2, %v15796_v60, %v8840_v47  ;;  %v16443_v14 = vld [vmem:[#allocation2 + $0x180] sm:$0xff]  ;;  %v20775_v60 = vld [vmem:[#allocation217_spill] sm:$0xff] }
 0x4f5   :  { %20763 = vst [vmem:[#allocation26_spill] sm:$0xff] %v16417_v45  ;;  %9668 = vrot.lane.b32.xlu0 %v15435_v24, %s10145_s1  ;;  %20768 = vst [vmem:[#allocation215_spill] sm:$0xff] %v16433_v42  ;;  %v20776_v55 = vld [vmem:[#allocation139_spill] sm:$0xff]  ;;  %v3638_v1 = vld [vmem:[#allocation2 + $0x1a8] sm:$0x3] }
 0x4f6   :  { %v16421_v34 = vpop.permute.xlu1 %9363  ;;  %20769 = vst [vmem:[#allocation196_spill] sm:$0xff] %v16437_v3  ;;  %v8851_v47 = vunpack.i.h.bf16 %v20776_v55  ;;  %v20778_v24 = vld [vmem:[#allocation303_spill] sm:$0xff]  ;;  %20808 = vst [vmem:[#allocation257_spill] sm:$0xff] %v16550_v59  ;;  %v3636_v59 = vld [vmem:[#allocation2 + $0x198] sm:$0xff] }
 0x4f7   :  { %20765 = vst [vmem:[#allocation25_spill] sm:$0xff] %v16421_v34  ;;  %v16429_v53 = vpop.permute.xlu0 %9388  ;;  %v20773_v34 = vld [vmem:[#allocation159_spill] sm:$0xff]  ;;  %v8846_v38 = vunpack.i.h.bf16 %v20778_v24 }
 0x4f8   :  { %9653 = vrot.lane.b32.xlu1 %v20632_v52, %s10144_s14  ;;  %20767 = vst [vmem:[#allocation144_spill] sm:$0xff] %v16429_v53  ;;  %v20771_v52 = vld [vmem:[#allocation302_spill] sm:$0xff]  ;;  %v16453_v32 = vsel %vm2249_vm2, %v20773_v34, %v8835_v30  ;;  %v16471_v30 = vld [vmem:[#allocation2 + $0x260] sm:$0xff] }
 0x4f9   :  { %v16449_v45 = vsel %vm2249_vm2, %v20771_v52, %v8836_v5  ;;  %20774 = vst [vmem:[#allocation294_spill] sm:$0xff] %v16453_v32  ;;  %9678 = vrot.lane.b32.xlu0 %v20775_v60, %s10143_s9  ;;  %v8845_v5 = vunpack.i.l.bf16 %v20778_v24  ;;  %v16469_v34 = vld [vmem:[#allocation2 + $0x258] sm:$0xff]  ;;  %v20780_v60 = vld [vmem:[#allocation300_spill] sm:$0xff]  ;;  %v20788_v32 = vld [vmem:[#allocation219_spill] sm:$0xff] }
 0x4fa   :  { %v16439_v37 = vpop.permute.xlu1 %9373  ;;  %20772 = vst [vmem:[#allocation293_spill] sm:$0xff] %v16449_v45  ;;  %v16501_v24 = vsel %vm2249_vm2, %v20788_v32, %v8846_v38  ;;  %v20790_v45 = vld [vmem:[#allocation306_spill] sm:$0xff]  ;;  %v16517_v53 = vld [vmem:[#allocation2 + $0x2a0] sm:$0xff]  ;;  %v16519_v38 = vld [vmem:[#allocation2 + $0x2a8] sm:$0xff] }
 0x4fb   :  { %20770 = vst [vmem:[#allocation182_spill] sm:$0xff] %v16439_v37  ;;  %v8850_v37 = vunpack.i.l.bf16 %v20776_v55  ;;  %v16461_v36 = vpop.permute.xlu0 %9398  ;;  %v16477_v55 = vld [vmem:[#allocation2 + $0x288] sm:$0xff]  ;;  %20789 = vst [vmem:[#allocation249_spill] sm:$0xff] %v16501_v24  ;;  %v16523_v32 = vld [vmem:[#allocation2 + $0x2d0] sm:$0xff] }
 0x4fc   :  { %9663 = vrot.lane.b32.xlu1 %v15395_v33, %s10145_s1  ;;  %20777 = vst [vmem:[#allocation237_spill] sm:$0xff] %v16461_v36  ;;  %20781 = vst [vmem:[#allocation31_spill] sm:$0xff] %v16477_v55  ;;  %v16493_v33 = vld [vmem:[#allocation2 + $0x270] sm:$0xff]  ;;  %v16548_v42 = vld [vmem:[#allocation2 + $0x300] sm:$0xff] }
 0x4fd   :  { %9688 = vrot.lane.b32.xlu0 %v20631_v29, %s10144_s14  ;;  %v16485_v29 = vsel %vm2249_vm2, %v15816_v51, %v8851_v47  ;;  %20786 = vst [vmem:[#allocation307_spill] sm:$0xff] %v16493_v33  ;;  %v16505_v51 = vsel %vm2249_vm2, %v20790_v45, %v8845_v5  ;;  %20795 = vst [vmem:[#allocation252_spill] sm:$0xff] %v16517_v53  ;;  %v16525_v5 = vld [vmem:[#allocation2 + $0x2d8] sm:$0xff] }
 0x4fe   :  { %v16465_v52 = vpop.permute.xlu1 %9383  ;;  %20783 = vst [vmem:[#allocation106_spill] sm:$0xff] %v16485_v29  ;;  %20791 = vst [vmem:[#allocation92_spill] sm:$0xff] %v16505_v51  ;;  %v20799_v51 = vld [vmem:[#allocation301_spill] sm:$0xff] }
 0x4ff   :  { %20779 = vst [vmem:[#allocation18_spill] sm:$0xff] %v16465_v52  ;;  %v16489_v52 = vsel %vm2249_vm2, %v15814_v26, %v8850_v37  ;;  %v16491_v36 = vpop.permute.xlu0 %9408  ;;  %v16509_v26 = vld [vmem:[#allocation2 + $0x2b8] sm:$0xff]  ;;  %v16511_v37 = vld [vmem:[#allocation2 + $0x2c0] sm:$0xff]  ;;  %20796 = vst [vmem:[#allocation253_spill] sm:$0xff] %v16519_v38  ;;  %v8861_v24 = vunpack.i.h.bf16 %v20799_v51  ;;  %v8860_v45 = vunpack.i.l.bf16 %v20799_v51 }
 0x500   :  { %9673 = vrot.lane.b32.xlu1 %v20780_v60, %s10143_s9  ;;  %20784 = vst [vmem:[#allocation132_spill] sm:$0xff] %v16489_v52  ;;  %20785 = vst [vmem:[#allocation213_spill] sm:$0xff] %v16491_v36  ;;  %v16495_v60 = vld [vmem:[#allocation2 + $0x278] sm:$0xff]  ;;  %v16534_v36 = vld [vmem:[#allocation2 + $0x2f0] sm:$0xff] }
 0x501   :  { %20787 = vst [vmem:[#allocation87_spill] sm:$0xff] %v16495_v60  ;;  %20793 = vst [vmem:[#allocation262_spill] sm:$0xff] %v16509_v26  ;;  %9698 = vrot.lane.b32.xlu0 %v15449_v11, %s10145_s1  ;;  %v16532_v11 = vld [vmem:[#allocation2 + $0x2e8] sm:$0xff]  ;;  %v16567_v51 = vld [vmem:[#allocation2 + $0x318] sm:$0xff] }
 0x502   :  { %v16507_v47 = vpop.permute.xlu1 %9393  ;;  %20794 = vst [vmem:[#allocation55_spill] sm:$0xff] %v16511_v37  ;;  %20797 = vst [vmem:[#allocation250_spill] sm:$0xff] %v16523_v32  ;;  %v20802_v37 = vld [vmem:[#allocation168_spill] sm:$0xff] }
 0x503   :  { %20792 = vst [vmem:[#allocation48_spill] sm:$0xff] %v16507_v47  ;;  %20798 = vst [vmem:[#allocation251_spill] sm:$0xff] %v16525_v5  ;;  %v8856_v52 = vunpack.i.h.bf16 %v20802_v37  ;;  %v8855_v29 = vunpack.i.l.bf16 %v20802_v37  ;;  %v16541_v27 = vpop.permute.xlu0 %9418  ;;  %v20804_v47 = vld [vmem:[#allocation165_spill] sm:$0xff]  ;;  %v20809_v37 = vld [vmem:[#allocation308_spill] sm:$0xff] }
 0x504   :  { %9683 = vrot.lane.b32.xlu1 %v20636_v4, %s10144_s14  ;;  %20800 = vst [vmem:[#allocation100_spill] sm:$0xff] %v16532_v11  ;;  %20801 = vst [vmem:[#allocation248_spill] sm:$0xff] %v16534_v36  ;;  %v8871_v32 = vunpack.i.h.bf16 %v20804_v47  ;;  %v8870_v5 = vunpack.i.l.bf16 %v20804_v47  ;;  %v20805_v4 = vld [vmem:[#allocation223_spill] sm:$0xff]  ;;  %v8881_v11 = vunpack.i.h.bf16 %v20809_v37  ;;  %v8880_v36 = vunpack.i.l.bf16 %v20809_v37  ;;  %v20811_v47 = vld [vmem:[#allocation160_spill] sm:$0xff] }
 0x505   :  { %20803 = vst [vmem:[#allocation258_spill] sm:$0xff] %v16541_v27  ;;  %v8866_v48 = vunpack.i.h.bf16 %v20805_v4  ;;  %20807 = vst [vmem:[#allocation254_spill] sm:$0xff] %v16548_v42  ;;  %v8865_v26 = vunpack.i.l.bf16 %v20805_v4  ;;  %v20810_v27 = vld [vmem:[#allocation315_spill] sm:$0xff]  ;;  %9708 = vrot.lane.b32.xlu0 %v20811_v47, %s10143_s9  ;;  %v16575_v42 = vsel %vm2249_vm2, %v15831_v22, %v8860_v45  ;;  %v20815_v47 = vld [vmem:[#allocation309_spill] sm:$0xff] }
 0x506   :  { %v16546_v3 = vpop.permute.xlu1 %9403  ;;  %v8876_v2 = vunpack.i.h.bf16 %v20810_v27  ;;  %v8875_v39 = vunpack.i.l.bf16 %v20810_v27  ;;  %20813 = vst [vmem:[#allocation143_spill] sm:$0xff] %v16567_v51  ;;  %v16569_v4 = vld [vmem:[#allocation2 + $0x320] sm:$0xff]  ;;  %v16589_v37 = vsel %vm2249_vm2, %v16495_v60, %v8871_v32  ;;  %v16593_v22 = vsel %vm2249_vm2, %v16493_v33, %v8870_v5  ;;  %v20825_v33 = vld [vmem:[#allocation41_spill] sm:$0xff] }
 0x507   :  { %20806 = vst [vmem:[#allocation113_spill] sm:$0xff] %v16546_v3  ;;  %v16562_v3 = vsel %vm2249_vm2, %v15833_v0, %v8861_v24  ;;  %20814 = vst [vmem:[#allocation107_spill] sm:$0xff] %v16569_v4  ;;  %v16579_v0 = vsel %vm2249_vm2, %v20815_v47, %v8856_v52  ;;  %v20816_v24 = vld [vmem:[#allocation221_spill] sm:$0xff]  ;;  %v16597_v52 = vsel %vm2249_vm2, %v16471_v30, %v8866_v48  ;;  %v5293_v51 = vrot.slane %v3636_v59, 1 }
 0x508   :  { %20812 = vst [vmem:[#allocation131_spill] sm:$0xff] %v16562_v3  ;;  %9693 = vrot.lane.b32.xlu1 %v15416_v13, %s10145_s1  ;;  %v16583_v27 = vsel %vm2249_vm2, %v20816_v24, %v8855_v29  ;;  %v16585_v13 = vpop.permute.xlu0 %9428  ;;  %v3637_v3 = vld [vmem:[#allocation2 + $0x1a0] sm:$0xff]  ;;  %v8911_v29 = vunpack.i.h.bf16 %v15842_v23  ;;  %v16604_v47 = vsel %vm2249_vm2, %v16469_v34, %v8865_v26  ;;  %v16608_v32 = vsel %vm2249_vm2, %v16519_v38, %v8881_v11  ;;  %v20819_v26 = vld [vmem:[#allocation305_spill] sm:$0xff] }
 0x509   :  { %20817 = vst [vmem:[#allocation179_spill] sm:$0xff] %v16585_v13  ;;  %v16612_v5 = vsel %vm2249_vm2, %v16517_v53, %v8880_v36  ;;  %v16616_v48 = vsel %vm2249_vm2, %v16479_v46, %v8876_v2  ;;  %9718 = vrot.lane.b32.xlu0 %v20635_v16, %s10144_s14  ;;  %v16622_v24 = vsel %vm2249_vm2, %v16477_v55, %v8875_v39  ;;  %v5294_v11 = vrot.slane %v3637_v3, 1  ;;  %v20824_v36 = vld [vmem:[#allocation320_spill] sm:$0xff] }
 0x50a   :  { %v16600_v45 = vpop.permute.xlu1 %9413  ;;  %v5296_v4 = vrot.slane %v3638_v1, 1  ;;  %v8910_v2 = vunpack.i.l.bf16 %v15842_v23  ;;  %v8921_v38 = vunpack.i.h.bf16 %v15852_v10  ;;  %v8920_v60 = vunpack.i.l.bf16 %v15852_v10 }
 0x50b   :  { %20818 = vst [vmem:[#allocation261_spill] sm:$0xff] %v16600_v45  ;;  %v8931_v53 = vunpack.i.h.bf16 %v20824_v36  ;;  %v8930_v23 = vunpack.i.l.bf16 %v20824_v36  ;;  %v5496_v13 = vrot.slane %v3637_v3, 2  ;;  %v5495_v39 = vrot.slane %v3636_v59, 2 }
 0x50c   :  { %9703 = vrot.lane.b32.xlu1 %v20819_v26, %s10143_s9  ;;  %v16630_v45 = vpop.permute.xlu0 %9438  ;;  %v16636_v26 = vsel %vm2314_vm3, %v16231_v28, %v8911_v29  ;;  %v5295_v28 = vsel %vm339_vm0, %v5293_v51, %v5294_v11  ;;  %v5297_v29 = vsel %vm339_vm0, %v5294_v11, %v5296_v4  ;;  %v5498_v10 = vrot.slane %v3638_v1, 2 }
 0x50d   :  { %20821 = vst [vmem:[#allocation185_spill] sm:$0xff] %v16630_v45  ;;  %9728 = vrot.lane.b32.xlu0 %v15468_v12, %s10145_s1  ;;  %v9737_v45 = vpack.i.bf16 %v3637_v3, %v3636_v59  ;;  %v16651_v16 = vsel %vm2314_vm3, %v16234_v43, %v8910_v2  ;;  %v16655_v36 = vsel %vm2314_vm3, %v16237_v54, %v8921_v38  ;;  %v20826_v12 = vld [vmem:[#allocation321_spill] sm:$0xff]  ;;  %v20829_v43 = vld [vmem:[#allocation323_spill] sm:$0xff] }
 0x50e   :  { %v16639_v55 = vpop.permute.xlu1 %9423  ;;  %v8915_v3 = vunpack.i.l.bf16 %v20826_v12  ;;  %v16663_v59 = vsel %vm2314_vm3, %v16240_v57, %v8920_v60  ;;  %v8926_v4 = vunpack.i.h.bf16 %v20829_v43  ;;  %v16672_v54 = vsel %vm2314_vm3, %v16272_v15, %v8931_v53  ;;  %v20831_v60 = vld [vmem:[#allocation34_spill] sm:$0xff]  ;;  %v20833_v53 = vld [vmem:[#allocation112_spill] sm:$0xff] }
 0x50f   :  { %20823 = vst [vmem:[#allocation119_spill] sm:$0xff] %v16639_v55  ;;  %v8916_v55 = vunpack.i.h.bf16 %v20826_v12  ;;  %v16676_v38 = vsel %vm2314_vm3, %v16280_v61, %v8930_v23  ;;  %v8925_v2 = vunpack.i.l.bf16 %v20829_v43  ;;  %v9747_v57 = vpack.i.bf16 %v5297_v29, %v5295_v28  ;;  %v20834_v23 = vld [vmem:[#allocation122_spill] sm:$0xff] }
 0x510   :  { %9713 = vrot.lane.b32.xlu1 %v20825_v33, %s10144_s14  ;;  %v16659_v46 = vpop.permute.xlu0 %9448  ;;  %v20828_v33 = vld [vmem:[#allocation322_spill] sm:$0xff]  ;;  %v8951_v12 = vunpack.i.h.bf16 %v20831_v60  ;;  %v5499_v15 = vsel %vm692_vm1, %v5496_v13, %v5498_v10  ;;  %v16692_v43 = vsel %vm2314_vm3, %v20834_v23, %v8915_v3  ;;  %v20839_v23 = vld [vmem:[#allocation216_spill] sm:$0xff] }
 0x511   :  { %20827 = vst [vmem:[#allocation311_spill] sm:$0xff] %v16659_v46  ;;  %v8941_v1 = vunpack.i.h.bf16 %v20828_v33  ;;  %v8940_v51 = vunpack.i.l.bf16 %v20828_v33  ;;  %9738 = vrot.lane.b32.xlu0 %v9737_v45, %s10143_s9  ;;  %v8950_v33 = vunpack.i.l.bf16 %v20831_v60  ;;  %v20832_v46 = vld [vmem:[#allocation89_spill] sm:$0xff]  ;;  %v16688_v61 = vsel %vm2314_vm3, %v20833_v53, %v8916_v55  ;;  %v20835_v45 = vld [vmem:[#allocation46_spill] sm:$0xff] }
 0x512   :  { %v16668_v11 = vpop.permute.xlu1 %9433  ;;  %v8936_v28 = vunpack.i.h.bf16 %v20835_v45  ;;  %v8935_v29 = vunpack.i.l.bf16 %v20835_v45  ;;  %v16708_v55 = vsel %vm2314_vm3, %v16284_v50, %v8926_v4  ;;  %v8946_v45 = vunpack.i.h.bf16 %v20839_v23 }
 0x513   :  { %20830 = vst [vmem:[#allocation312_spill] sm:$0xff] %v16668_v11  ;;  %v5497_v11 = vsel %vm692_vm1, %v5495_v39, %v5496_v13  ;;  %v16704_v13 = vsel %vm2314_vm3, %v16296_v6, %v8940_v51  ;;  %v20837_v39 = vld [vmem:[#allocation124_spill] sm:$0xff]  ;;  %v16719_v6 = vsel %vm2314_vm3, %v16288_v41, %v8925_v2  ;;  %v16723_v50 = vsel %vm2314_vm3, %v16310_v56, %v8951_v12  ;;  %v20840_v51 = vld [vmem:[#allocation231_spill] sm:$0xff] }
 0x514   :  { %9723 = vrot.lane.b32.xlu1 %v20832_v46, %s10145_s1  ;;  %v16696_v60 = vpop.permute.xlu0 %9458  ;;  %v16700_v46 = vsel %vm2314_vm3, %v16293_v9, %v8941_v1  ;;  %v8961_v10 = vunpack.i.h.bf16 %v20837_v39  ;;  %v8960_v53 = vunpack.i.l.bf16 %v20837_v39  ;;  %v9757_v9 = vpack.i.bf16 %v5499_v15, %v5497_v11  ;;  %v20842_v2 = vld [vmem:[#allocation200_spill] sm:$0xff] }
 0x515   :  { %20836 = vst [vmem:[#allocation194_spill] sm:$0xff] %v16696_v60  ;;  %v8945_v60 = vunpack.i.l.bf16 %v20839_v23  ;;  %9748 = vrot.lane.b32.xlu0 %v9747_v57, %s10144_s14  ;;  %v16727_v1 = vsel %vm2314_vm3, %v16313_v20, %v8950_v33  ;;  %v8971_v4 = vunpack.i.h.bf16 %v20840_v51  ;;  %v20841_v39 = vpack.i.bf16 %v16441_v25, %v16443_v14  ;;  %v20844_v14 = vld [vmem:[#allocation134_spill] sm:$0xff] }
 0x516   :  { %v16711_v3 = vpop.permute.xlu1 %9443  ;;  %v16736_v11 = vsel %vm2314_vm3, %v16300_v18, %v8936_v28  ;;  %v16740_v41 = vsel %vm2314_vm3, %v16304_v62, %v8935_v29  ;;  %v8970_v56 = vunpack.i.l.bf16 %v20840_v51  ;;  %v8956_v20 = vunpack.i.h.bf16 %v20842_v2  ;;  %v20846_v29 = vld [vmem:[#allocation157_spill] sm:$0xff] }
 0x517   :  { %20838 = vst [vmem:[#allocation260_spill] sm:$0xff] %v16711_v3  ;;  %v16748_v12 = vsel %vm2314_vm3, %v16327_v17, %v8961_v10  ;;  %v8955_v25 = vunpack.i.l.bf16 %v20842_v2  ;;  %v8981_v33 = vunpack.i.h.bf16 %v20844_v14  ;;  %v8980_v18 = vunpack.i.l.bf16 %v20844_v14 }
 0x518   :  { %9733 = vrot.lane.b32.xlu1 %v20841_v39, %s10143_s9  ;;  %v16744_v57 = vpop.permute.xlu0 %9468  ;;  %v16757_v62 = vsel %vm2314_vm3, %v16331_v49, %v8960_v53  ;;  %v16761_v28 = vsel %vm2314_vm3, %v16317_v8, %v8946_v45  ;;  %v16765_v17 = vsel %vm2314_vm3, %v16321_v63, %v8945_v60  ;;  %v8966_v10 = vunpack.i.h.bf16 %v20846_v29  ;;  %v20847_v49 = vld [vmem:[#allocation54_spill] sm:$0xff] }
 0x519   :  { %20843 = vst [vmem:[#allocation187_spill] sm:$0xff] %v16744_v57  ;;  %9758 = vrot.lane.b32.xlu0 %v9757_v9, %s10145_s1  ;;  %v16771_v23 = vsel %vm2314_vm3, %v16367_v21, %v8971_v4  ;;  %v8965_v51 = vunpack.i.l.bf16 %v20846_v29  ;;  %v8991_v53 = vunpack.i.h.bf16 %v20847_v49  ;;  %v8990_v39 = vunpack.i.l.bf16 %v20847_v49  ;;  %v20848_v8 = vld [vmem:[#allocation110_spill] sm:$0xff]  ;;  %v20861_v57 = vld [vmem:[#allocation324_spill] sm:$0xff] }
 0x51a   :  { %v16753_v15 = vpop.permute.xlu1 %9453  ;;  %v16780_v63 = vsel %vm2314_vm3, %v16371_v19, %v8970_v56  ;;  %v16784_v60 = vsel %vm2314_vm3, %v16355_v44, %v8956_v20  ;;  %v20849_v45 = vld [vmem:[#allocation146_spill] sm:$0xff]  ;;  %v16792_v2 = vsel %vm2314_vm3, %v16363_v40, %v8955_v25  ;;  %v16796_v14 = vsel %vm2314_vm3, %v16385_v7, %v8981_v33  ;;  %v20851_v44 = vld [vmem:[#allocation161_spill] sm:$0xff]  ;;  %v20854_v7 = vld [vmem:[#allocation220_spill] sm:$0xff] }
 0x51b   :  { %20845 = vst [vmem:[#allocation114_spill] sm:$0xff] %v16753_v15  ;;  %v8976_v21 = vunpack.i.h.bf16 %v20849_v45  ;;  %v8975_v9 = vunpack.i.l.bf16 %v20849_v45  ;;  %v16800_v19 = vsel %vm2314_vm3, %v16389_v58, %v8980_v18  ;;  %v9001_v56 = vunpack.i.h.bf16 %v20851_v44  ;;  %v20853_v40 = vld [vmem:[#allocation325_spill] sm:$0xff]  ;;  %v20855_v33 = vld [vmem:[#allocation130_spill] sm:$0xff]  ;;  %v20856_v45 = vld [vmem:[#allocation136_spill] sm:$0xff] }
 0x51c   :  { %9743 = vrot.lane.b32.xlu1 %v20848_v8, %s10144_s14  ;;  %v16788_v4 = vpop.permute.xlu0 %9478  ;;  %v16807_v29 = vsel %vm2314_vm3, %v16377_v35, %v8966_v10  ;;  %v9000_v49 = vunpack.i.l.bf16 %v20851_v44  ;;  %v8986_v25 = vunpack.i.h.bf16 %v20853_v40  ;;  %v8985_v8 = vunpack.i.l.bf16 %v20853_v40  ;;  %v20857_v10 = vld [vmem:[#allocation201_spill] sm:$0xff]  ;;  %v20859_v40 = vld [vmem:[#allocation195_spill] sm:$0xff]  ;;  %v20867_v15 = vld [vmem:[#allocation164_spill] sm:$0xff] }
 0x51d   :  { %20850 = vst [vmem:[#allocation206_spill] sm:$0xff] %v16788_v4  ;;  %9768 = vrot.lane.b32.xlu0 %v20854_v7, %s10143_s9  ;;  %v16816_v58 = vsel %vm2314_vm3, %v16381_v31, %v8965_v51  ;;  %v16820_v18 = vsel %vm2314_vm3, %v20855_v33, %v8991_v53  ;;  %v16824_v35 = vsel %vm2314_vm3, %v20856_v45, %v8990_v39  ;;  %v9011_v44 = vunpack.i.h.bf16 %v20857_v10  ;;  %v20858_v4 = vld [vmem:[#allocation281_spill] sm:$0xff]  ;;  %v20863_v53 = vld [vmem:[#allocation103_spill] sm:$0xff] }
 0x51e   :  { %v16803_v20 = vpop.permute.xlu1 %9463  ;;  %v16831_v7 = vsel %vm2314_vm3, %v20859_v40, %v8976_v21  ;;  %v16835_v31 = vsel %vm2314_vm3, %v20861_v57, %v8975_v9  ;;  %v9010_v51 = vunpack.i.l.bf16 %v20857_v10  ;;  %v8996_v33 = vunpack.i.h.bf16 %v20863_v53  ;;  %v20865_v39 = vld [vmem:[#allocation215_spill] sm:$0xff]  ;;  %v20869_v57 = vld [vmem:[#allocation196_spill] sm:$0xff] }
 0x51f   :  { %20852 = vst [vmem:[#allocation266_spill] sm:$0xff] %v16803_v20  ;;  %20860 = vst [vmem:[#allocation189_spill] sm:$0xff] %v16831_v7  ;;  %v16843_v45 = vsel %vm2314_vm3, %v20865_v39, %v9001_v56  ;;  %v9021_v3 = vunpack.i.h.bf16 %v20867_v15  ;;  %v9020_v21 = vunpack.i.l.bf16 %v20867_v15  ;;  %v16852_v9 = vsel %vm2314_vm3, %v20869_v57, %v9000_v49  ;;  %v20871_v10 = vld [vmem:[#allocation236_spill] sm:$0xff]  ;;  %v20875_v39 = vld [vmem:[#allocation222_spill] sm:$0xff] }
 0x520   :  { %9753 = vrot.lane.b32.xlu1 %v20858_v4, %s10145_s1  ;;  %20862 = vst [vmem:[#allocation270_spill] sm:$0xff] %v16835_v31  ;;  %v16839_v20 = vpop.permute.xlu0 %9488  ;;  %20866 = vst [vmem:[#allocation73_spill] sm:$0xff] %v16843_v45  ;;  %v8995_v4 = vunpack.i.l.bf16 %v20863_v53  ;;  %v16856_v7 = vsel %vm2314_vm3, %v20871_v10, %v8986_v25  ;;  %v9006_v53 = vunpack.i.h.bf16 %v20875_v39  ;;  %v20876_v45 = vld [vmem:[#allocation246_spill] sm:$0xff]  ;;  %v9005_v49 = vunpack.i.l.bf16 %v20875_v39  ;;  %v20880_v10 = vld [vmem:[#allocation313_spill] sm:$0xff] }
 0x521   :  { %20864 = vst [vmem:[#allocation70_spill] sm:$0xff] %v16839_v20  ;;  %20870 = vst [vmem:[#allocation77_spill] sm:$0xff] %v16852_v9  ;;  %v20873_v20 = vld [vmem:[#allocation35_spill] sm:$0xff]  ;;  %9778 = vrot.lane.b32.xlu0 %v20876_v45, %s10144_s14  ;;  %v20877_v15 = vld [vmem:[#allocation106_spill] sm:$0xff] }
 0x522   :  { %v16848_v40 = vpop.permute.xlu1 %9473  ;;  %20872 = vst [vmem:[#allocation268_spill] sm:$0xff] %v16856_v7  ;;  %v16860_v56 = vsel %vm2314_vm3, %v20873_v20, %v8985_v8  ;;  %v20879_v57 = vld [vmem:[#allocation174_spill] sm:$0xff]  ;;  %v20881_v20 = vld [vmem:[#allocation132_spill] sm:$0xff]  ;;  %v20882_v7 = vld [vmem:[#allocation293_spill] sm:$0xff] }
 0x523   :  { %20868 = vst [vmem:[#allocation265_spill] sm:$0xff] %v16848_v40  ;;  %20874 = vst [vmem:[#allocation68_spill] sm:$0xff] %v16860_v56  ;;  %v16867_v40 = vsel %vm2314_vm3, %v20877_v15, %v9011_v44  ;;  %v9031_v9 = vunpack.i.h.bf16 %v20879_v57  ;;  %v9030_v25 = vunpack.i.l.bf16 %v20879_v57  ;;  %v16876_v8 = vsel %vm2314_vm3, %v20881_v20, %v9010_v51  ;;  %v20884_v56 = vld [vmem:[#allocation137_spill] sm:$0xff]  ;;  %v20888_v31 = vld [vmem:[#allocation131_spill] sm:$0xff] }
 0x524   :  { %20878 = vst [vmem:[#allocation269_spill] sm:$0xff] %v16867_v40  ;;  %9763 = vrot.lane.b32.xlu1 %v20880_v10, %s10143_s9  ;;  %v16880_v45 = vsel %vm2314_vm3, %v20882_v7, %v8996_v33  ;;  %v9016_v44 = vunpack.i.h.bf16 %v20884_v56  ;;  %v9015_v15 = vunpack.i.l.bf16 %v20884_v56  ;;  %v16884_v39 = vpop.permute.xlu0 %9498  ;;  %v20886_v40 = vld [vmem:[#allocation294_spill] sm:$0xff]  ;;  %v16892_v10 = vsel %vm2314_vm3, %v20888_v31, %v9021_v3  ;;  %v20891_v7 = vld [vmem:[#allocation183_spill] sm:$0xff]  ;;  %v20895_v31 = vld [vmem:[#allocation92_spill] sm:$0xff] }
 0x525   :  { %20883 = vst [vmem:[#allocation29_spill] sm:$0xff] %v16880_v45  ;;  %20885 = vst [vmem:[#allocation238_spill] sm:$0xff] %v16884_v39  ;;  %v16888_v57 = vsel %vm2314_vm3, %v20886_v40, %v8995_v4  ;;  %v16896_v51 = vsel %vm2314_vm3, %v16575_v42, %v9020_v21  ;;  %v9041_v33 = vunpack.i.h.bf16 %v20891_v7  ;;  %v20892_v45 = vld [vmem:[#allocation249_spill] sm:$0xff]  ;;  %v9040_v39 = vunpack.i.l.bf16 %v20891_v7  ;;  %v20893_v4 = vld [vmem:[#allocation202_spill] sm:$0xff] }
 0x526   :  { %20887 = vst [vmem:[#allocation79_spill] sm:$0xff] %v16888_v57  ;;  %20889 = vst [vmem:[#allocation197_spill] sm:$0xff] %v16892_v10  ;;  %v16899_v20 = vpop.permute.xlu1 %9483  ;;  %v16903_v56 = vsel %vm2314_vm3, %v20892_v45, %v9006_v53  ;;  %v9026_v40 = vunpack.i.h.bf16 %v20893_v4  ;;  %v9025_v57 = vunpack.i.l.bf16 %v20893_v4  ;;  %v20894_v3 = vld [vmem:[#allocation95_spill] sm:$0xff]  ;;  %v16912_v42 = vsel %vm2314_vm3, %v20895_v31, %v9005_v49  ;;  %v20898_v45 = vld [vmem:[#allocation218_spill] sm:$0xff] }
 0x527   :  { %20890 = vst [vmem:[#allocation241_spill] sm:$0xff] %v16896_v51  ;;  %9788 = vrot.lane.b32.xlu0 %v20894_v3, %s10145_s1  ;;  %v16916_v21 = vsel %vm2314_vm3, %v16589_v37, %v9031_v9  ;;  %v16920_v53 = vsel %vm2314_vm3, %v16593_v22, %v9030_v25  ;;  %v9036_v7 = vunpack.i.h.bf16 %v20898_v45  ;;  %v20899_v10 = vld [vmem:[#allocation199_spill] sm:$0xff]  ;;  %v16927_v4 = vsel %vm2314_vm3, %v16579_v0, %v9016_v44  ;;  %v20902_v9 = vld [vmem:[#allocation61_spill] sm:$0xff] }
 0x528   :  { %20896 = vst [vmem:[#allocation198_spill] sm:$0xff] %v16916_v21  ;;  %20897 = vst [vmem:[#allocation138_spill] sm:$0xff] %v16920_v53  ;;  %9773 = vrot.lane.b32.xlu1 %v20899_v10, %s10144_s14  ;;  %v16931_v49 = vsel %vm2314_vm3, %v16583_v27, %v9015_v15  ;;  %v9035_v37 = vunpack.i.l.bf16 %v20898_v45  ;;  %v9070_v3 = vunpack.i.l.bf16 %v20902_v9  ;;  %v16935_v31 = vpop.permute.xlu0 %9508  ;;  %v16939_v22 = vsel %vm2314_vm3, %v16608_v32, %v9041_v33  ;;  %v20905_v10 = vld [vmem:[#allocation171_spill] sm:$0xff]  ;;  %v20910_v33 = vld [vmem:[#allocation176_spill] sm:$0xff] }
 0x529   :  { %20900 = vst [vmem:[#allocation239_spill] sm:$0xff] %v16927_v4  ;;  %20901 = vst [vmem:[#allocation243_spill] sm:$0xff] %v16931_v49  ;;  %v9071_v25 = vunpack.i.h.bf16 %v20902_v9  ;;  %v9081_v21 = vunpack.i.h.bf16 %v20905_v10  ;;  %v9080_v0 = vunpack.i.l.bf16 %v20905_v10  ;;  %v16948_v27 = vsel %vm2314_vm3, %v16612_v5, %v9040_v39  ;;  %v20911_v9 = vld [vmem:[#allocation310_spill] sm:$0xff]  ;;  %v20913_v39 = vld [vmem:[#allocation52_spill] sm:$0xff] }
 0x52a   :  { %20903 = vst [vmem:[#allocation240_spill] sm:$0xff] %v16935_v31  ;;  %20904 = vst [vmem:[#allocation44_spill] sm:$0xff] %v16939_v22  ;;  %v16944_v44 = vpop.permute.xlu1 %9493  ;;  %v16952_v15 = vsel %vm2314_vm3, %v16597_v52, %v9026_v40  ;;  %v16956_v32 = vsel %vm2314_vm3, %v16604_v47, %v9025_v57  ;;  %v9090_v45 = vunpack.i.l.bf16 %v20910_v33  ;;  %v16963_v10 = vsel %vm2314_vm3, %v16616_v48, %v9036_v7  ;;  %v20914_v40 = vld [vmem:[#allocation271_spill] sm:$0xff] }
 0x52b   :  { %20906 = vst [vmem:[#allocation242_spill] sm:$0xff] %v16944_v44  ;;  %20907 = vst [vmem:[#allocation37_spill] sm:$0xff] %v16948_v27  ;;  %9798 = vrot.lane.b32.xlu0 %v20911_v9, %s10143_s9  ;;  %v9091_v5 = vunpack.i.h.bf16 %v20910_v33  ;;  %v9076_v22 = vunpack.i.h.bf16 %v20913_v39  ;;  %v9075_v52 = vunpack.i.l.bf16 %v20913_v39  ;;  %v16972_v47 = vsel %vm2314_vm3, %v16622_v24, %v9035_v37  ;;  %v20916_v9 = vld [vmem:[#allocation58_spill] sm:$0xff]  ;;  %v20918_v37 = vld [vmem:[#allocation3_spill] sm:$0xff] }
 0x52c   :  { %20908 = vst [vmem:[#allocation86_spill] sm:$0xff] %v16952_v15  ;;  %20909 = vst [vmem:[#allocation51_spill] sm:$0xff] %v16956_v32  ;;  %9783 = vrot.lane.b32.xlu1 %v20914_v40, %s10145_s1  ;;  %v5825_v57 = vsel %vm2379_vm5, %v16651_v16, %v9070_v3  ;;  %v9101_v27 = vunpack.i.h.bf16 %v20916_v9  ;;  %v9100_v48 = vunpack.i.l.bf16 %v20916_v9  ;;  %v16978_v7 = vpop.permute.xlu0 %9518  ;;  %v5826_v33 = vsel %vm2379_vm5, %v16636_v26, %v9071_v25  ;;  %v20941_v51 = vld [vmem:[#allocation127_spill] sm:$0xff] }
 0x52d   :  { %20912 = vst [vmem:[#allocation190_spill] sm:$0xff] %v16963_v10  ;;  %20915 = vst [vmem:[#allocation192_spill] sm:$0xff] %v16972_v47  ;;  %v16984_v39 = vsel %vm2379_vm5, %v16663_v59, %v9080_v0  ;;  %v16988_v24 = vsel %vm2379_vm5, %v16655_v36, %v9081_v21  ;;  %v9085_v40 = vunpack.i.l.bf16 %v20918_v37  ;;  %v16995_v3 = vsel %vm2379_vm5, %v16676_v38, %v9090_v45  ;;  %v20921_v59 = vld [vmem:[#allocation172_spill] sm:$0xff]  ;;  %v20922_v0 = vld [vmem:[#allocation67_spill] sm:$0xff] }
 0x52e   :  { %20917 = vst [vmem:[#allocation99_spill] sm:$0xff] %v16978_v7  ;;  %v16991_v16 = vpop.permute.xlu1 %9503  ;;  %v9086_v9 = vunpack.i.h.bf16 %v20918_v37  ;;  %v20920_v7 = vld [vmem:[#allocation57_spill] sm:$0xff]  ;;  %v17004_v36 = vsel %vm2379_vm5, %v16672_v54, %v9091_v5  ;;  %v5827_v21 = vsel %vm2379_vm5, %v16692_v43, %v9075_v52  ;;  %v5828_v38 = vsel %vm2379_vm5, %v16688_v61, %v9076_v22  ;;  %v20923_v37 = vld [vmem:[#allocation316_spill] sm:$0xff]  ;;  %v20924_v5 = vld [vmem:[#allocation247_spill] sm:$0xff] }
 0x52f   :  { %20919 = vst [vmem:[#allocation275_spill] sm:$0xff] %v16991_v16  ;;  %v9111_v26 = vunpack.i.h.bf16 %v20920_v7  ;;  %v9110_v25 = vunpack.i.l.bf16 %v20920_v7  ;;  %9808 = vrot.lane.b32.xlu0 %v20921_v59, %s10144_s14  ;;  %v9095_v45 = vunpack.i.l.bf16 %v20922_v0  ;;  %v17015_v7 = vsel %vm2379_vm5, %v16704_v13, %v9100_v48 }
 0x530   :  { %9793 = vrot.lane.b32.xlu1 %v20923_v37, %s10143_s9  ;;  %v17019_v59 = vsel %vm2379_vm5, %v16700_v46, %v9101_v27  ;;  %v9096_v54 = vunpack.i.h.bf16 %v20922_v0  ;;  %v9120_v43 = vunpack.i.l.bf16 %v20924_v5  ;;  %v9529_v52 = vpop.permute.xlu0 %9528  ;;  %v17025_v61 = vsel %vm2379_vm5, %v16719_v6, %v9085_v40  ;;  %v20925_v37 = vld [vmem:[#allocation32_spill] sm:$0xff]  ;;  %v20927_v40 = vld [vmem:[#allocation38_spill] sm:$0xff] }
 0x531   :  { %v9121_v22 = vunpack.i.h.bf16 %v20924_v5  ;;  %v9106_v31 = vunpack.i.h.bf16 %v20925_v37  ;;  %v9105_v13 = vunpack.i.l.bf16 %v20925_v37  ;;  %v17034_v46 = vsel %vm2379_vm5, %v16708_v55, %v9086_v9  ;;  %v20928_v5 = vld [vmem:[#allocation209_spill] sm:$0xff] }
 0x532   :  { %v17030_v48 = vpop.permute.xlu1 %9513  ;;  %v17038_v27 = vsel %vm2379_vm5, %v16727_v1, %v9110_v25  ;;  %v17042_v6 = vsel %vm2379_vm5, %v16723_v50, %v9111_v26  ;;  %v9130_v0 = vunpack.i.l.bf16 %v20927_v40  ;;  %v17049_v37 = vsel %vm2379_vm5, %v16740_v41, %v9095_v45  ;;  %v20929_v9 = vld [vmem:[#allocation81_spill] sm:$0xff]  ;;  %v20930_v25 = vld [vmem:[#allocation151_spill] sm:$0xff] }
 0x533   :  { %20926 = vst [vmem:[#allocation102_spill] sm:$0xff] %v17030_v48  ;;  %9818 = vrot.lane.b32.xlu0 %v20928_v5, %s10145_s1  ;;  %v9131_v55 = vunpack.i.h.bf16 %v20927_v40  ;;  %v9231_v10 = vunpack.i.h.bf16 %v20929_v9  ;;  %v9230_v1 = vunpack.i.l.bf16 %v20929_v9  ;;  %v17058_v50 = vsel %vm2379_vm5, %v16736_v11, %v9096_v54  ;;  %v20931_v5 = vld [vmem:[#allocation188_spill] sm:$0xff]  ;;  %v20932_v54 = vld [vmem:[#allocation47_spill] sm:$0xff] }
 0x534   :  { %9803 = vrot.lane.b32.xlu1 %v20930_v25, %s10144_s14  ;;  %v17062_v26 = vsel %vm2379_vm5, %v16757_v62, %v9120_v43  ;;  %v9236_v41 = vunpack.i.h.bf16 %v20931_v5  ;;  %v9235_v45 = vunpack.i.l.bf16 %v20931_v5  ;;  %v9539_v40 = vpop.permute.xlu0 %9538  ;;  %v17068_v47 = vsel %vm2379_vm5, %v16748_v12, %v9121_v22  ;;  %v20933_v48 = vld [vmem:[#allocation48_spill] sm:$0xff] }
 0x535   :  { %v17072_v9 = vsel %vm2379_vm5, %v16765_v17, %v9105_v13  ;;  %v17076_v11 = vsel %vm2379_vm5, %v16761_v28, %v9106_v31  ;;  %v9116_v62 = vunpack.i.h.bf16 %v20932_v54  ;;  %v17081_v25 = vsel %vm2379_vm5, %v16780_v63, %v9130_v0  ;;  %v20935_v31 = vld [vmem:[#allocation177_spill] sm:$0xff] }
 0x536   :  { %v9524_v43 = vpop.permute.xlu1 %9523  ;;  %v9115_v5 = vunpack.i.l.bf16 %v20932_v54  ;;  %v9396_v12 = vunpack.i.h.bf16 %v20933_v48  ;;  %v9395_v22 = vunpack.i.l.bf16 %v20933_v48  ;;  %v20934_v17 = vpack.i.bf16 %v16471_v30, %v16469_v34  ;;  %v20936_v54 = vld [vmem:[#allocation120_spill] sm:$0xff] }
 0x537   :  { %v17092_v28 = vsel %vm2379_vm5, %v16771_v23, %v9131_v55  ;;  %v9140_v13 = vunpack.i.l.bf16 %v20935_v31  ;;  %v5890_v63 = vsel %vm2444_vm6, %v5826_v33, %v9231_v10  ;;  %v5889_v0 = vsel %vm2444_vm6, %v5825_v57, %v9230_v1 }
 0x538   :  { %9828 = vrot.lane.b32.xlu0 %v20934_v17, %s10143_s9  ;;  %9813 = vrot.lane.b32.xlu1 %v20936_v54, %s10145_s1  ;;  %v5891_v48 = vsel %vm2444_vm6, %v5827_v21, %v9235_v45  ;;  %v5892_v53 = vsel %vm2444_vm6, %v5828_v38, %v9236_v41  ;;  %v9531_v16 = vunpack.i.h.bf16 %v9529_v52  ;;  %v9530_v34 = vunpack.i.l.bf16 %v9529_v52  ;;  %v9549_v30 = vpop.permute.xlu0 %9548  ;;  %v20937_v17 = vld [vmem:[#allocation144_spill] sm:$0xff]  ;;  %v20939_v54 = vld [vmem:[#allocation318_spill] sm:$0xff] }
 0x539   :  { %v9391_v15 = vunpack.i.h.bf16 %v20937_v17  ;;  %v9390_v23 = vunpack.i.l.bf16 %v20937_v17  ;;  %v9541_v55 = vunpack.i.h.bf16 %v9539_v40  ;;  %v9540_v32 = vunpack.i.l.bf16 %v9539_v40  ;;  %v20938_v21 = vld [vmem:[#allocation256_spill] sm:$0xff]  ;;  %v20940_v17 = vld [vmem:[#allocation27_spill] sm:$0xff] }
 0x53a   :  { %v9534_v44 = vpop.permute.xlu1 %9533  ;;  %v5955_v10 = vsel %vm2509_vm7, %v5891_v48, %v9395_v22  ;;  %v5956_v57 = vsel %vm2509_vm7, %v5892_v53, %v9396_v12  ;;  %v9526_v33 = vunpack.i.h.bf16 %v9524_v43  ;;  %v9525_v1 = vunpack.i.l.bf16 %v9524_v43 }
 0x53b   :  { %v9551_v38 = vunpack.i.h.bf16 %v9549_v30  ;;  %v9550_v41 = vunpack.i.l.bf16 %v9549_v30  ;;  %v9536_v52 = vunpack.i.h.bf16 %v9534_v44  ;;  %v9535_v45 = vunpack.i.l.bf16 %v9534_v44 }
 0x53c   :  { %9838 = vrot.lane.b32.xlu0 %v20938_v21, %s10144_s14  ;;  %9823 = vrot.lane.b32.xlu1 %v20939_v54, %s10143_s9  ;;  %v9241_v4 = vunpack.i.h.bf16 %v20940_v17  ;;  %v9240_v40 = vunpack.i.l.bf16 %v20940_v17  ;;  %v6019_v22 = vsel %vm2574_vm8, %v5955_v10, %v9530_v34  ;;  %v6020_v53 = vsel %vm2574_vm8, %v5956_v57, %v9531_v16  ;;  %v17113_v12 = vpop.permute.xlu0 %9558 }
 0x53d   :  { %v5954_v43 = vsel %vm2509_vm7, %v5890_v63, %v9391_v15  ;;  %v5953_v48 = vsel %vm2509_vm7, %v5889_v0, %v9390_v23  ;;  %v6083_v30 = vsel %vm2639_vm9, %v6019_v22, %v9540_v32  ;;  %v6084_v44 = vsel %vm2639_vm9, %v6020_v53, %v9541_v55  ;;  %v20942_v63 = vld [vmem:[#allocation96_spill] sm:$0xff]  ;;  %v20943_v23 = vld [vmem:[#allocation211_spill] sm:$0xff]  ;;  %v20944_v22 = vld [vmem:[#allocation186_spill] sm:$0xff] }
 0x53e   :  { %v9544_v21 = vpop.permute.xlu1 %9543  ;;  %v6017_v34 = vsel %vm2574_vm8, %v5953_v48, %v9525_v1  ;;  %v6018_v16 = vsel %vm2574_vm8, %v5954_v43, %v9526_v33  ;;  %v6147_v10 = vsel %vm2704_vm10, %v6083_v30, %v9550_v41  ;;  %v6148_v15 = vsel %vm2704_vm10, %v6084_v44, %v9551_v38  ;;  %v20945_v43 = vld [vmem:[#allocation113_spill] sm:$0xff]  ;;  %v20946_v44 = vld [vmem:[#allocation272_spill] sm:$0xff] }
 0x53f   :  { %v9546_v54 = vunpack.i.h.bf16 %v9544_v21  ;;  %v9545_v49 = vunpack.i.l.bf16 %v9544_v21  ;;  %v6081_v32 = vsel %vm2639_vm9, %v6017_v34, %v9535_v45  ;;  %v6082_v0 = vsel %vm2639_vm9, %v6018_v16, %v9536_v52  ;;  %v20947_v21 = vld [vmem:[#allocation31_spill] sm:$0xff] }
 0x540   :  { %9848 = vrot.lane.b32.xlu0 %v20941_v51, %s10145_s1  ;;  %9833 = vrot.lane.b32.xlu1 %v20942_v63, %s10144_s14  ;;  %v9246_v55 = vunpack.i.h.bf16 %v20943_v23  ;;  %v9245_v57 = vunpack.i.l.bf16 %v20943_v23  ;;  %v9569_v51 = vpop.permute.xlu0 %9568  ;;  %v17135_v41 = vsel %vm2379_vm5, %v16792_v2, %v9115_v5  ;;  %v17139_v38 = vsel %vm2379_vm5, %v16784_v60, %v9116_v62  ;;  %v20951_v23 = vld [vmem:[#allocation148_spill] sm:$0xff] }
 0x541   :  { %v6145_v1 = vsel %vm2704_vm10, %v6081_v32, %v9545_v49  ;;  %v6146_v33 = vsel %vm2704_vm10, %v6082_v0, %v9546_v54  ;;  %v9141_v45 = vunpack.i.h.bf16 %v20935_v31  ;;  %v9126_v53 = vunpack.i.h.bf16 %v20944_v22  ;;  %v20949_v54 = vld [vmem:[#allocation207_spill] sm:$0xff] }
 0x542   :  { %v9554_v52 = vpop.permute.xlu1 %9553  ;;  %v6209_v17 = vpack.c.bf16 %v6146_v33, %v6145_v1  ;;  %v9406_v48 = vunpack.i.h.bf16 %v20945_v43  ;;  %v9405_v49 = vunpack.i.l.bf16 %v20945_v43  ;;  %v6210_v30 = vpack.c.bf16 %v6148_v15, %v6147_v10  ;;  %v20952_v33 = vld [vmem:[#allocation87_spill] sm:$0xff] }
 0x543   :  { %v20948_v2 = vpack.i.bf16 %v20946_v44, %v20947_v21  ;;  %v17151_v60 = vsel %vm2379_vm5, %v16800_v19, %v9140_v13  ;;  %v9125_v62 = vunpack.i.l.bf16 %v20944_v22  ;;  %v5894_v5 = vsel %vm2444_vm6, %v16988_v24, %v9241_v4  ;;  %v20950_v4 = vld [vmem:[#allocation237_spill] sm:$0xff]  ;;  %v20976_v22 = vld [vmem:[#allocation119_spill] sm:$0xff] }
 0x544   :  { %v5893_v31 = vsel %vm2444_vm6, %v16984_v39, %v9240_v40  ;;  %9843 = vrot.lane.b32.xlu1 %v20949_v54, %s10145_s1  ;;  %7392 = vmatprep.mubr.msk.bf16.mxu1 %vm2837_vm11, %v6209_v17  ;;  %v5895_v34 = vsel %vm2444_vm6, %v17025_v61, %v9245_v57  ;;  %v5896_v19 = vsel %vm2444_vm6, %v17034_v46, %v9246_v55  ;;  %v9561_v13 = vunpack.i.h.bf16 %v17113_v12  ;;  %v9579_v10 = vpop.permute.xlu0 %9578  ;;  %v20953_v17 = vld [vmem:[#allocation307_spill] sm:$0xff] }
 0x545   :  { %9858 = vrot.lane.b32.xlu0 %v20948_v2, %s10143_s9  ;;  %v9560_v16 = vunpack.i.l.bf16 %v17113_v12  ;;  %7393 = vmatmul.mubr.msk.bf16.vlgmr.msra.gmra.mrb[0].mxu1 %vm2837_vm11, %v6210_v30  ;;  %v9401_v39 = vunpack.i.h.bf16 %v20950_v4  ;;  %v9400_v24 = vunpack.i.l.bf16 %v20950_v4  ;;  %v9571_v40 = vunpack.i.h.bf16 %v9569_v51 }
 0x546   :  { %v9570_v15 = vunpack.i.l.bf16 %v9569_v51  ;;  %v9564_v63 = vpop.permute.xlu1 %9563  ;;  %v5959_v32 = vsel %vm2509_vm7, %v5895_v34, %v9405_v49  ;;  %v5960_v61 = vsel %vm2509_vm7, %v5896_v19, %v9406_v48  ;;  %v9556_v0 = vunpack.i.h.bf16 %v9554_v52  ;;  %v20955_v51 = vld [vmem:[#allocation7_spill] sm:$0xff] }
 0x547   :  { %v9555_v46 = vunpack.i.l.bf16 %v9554_v52  ;;  %v9581_v12 = vunpack.i.h.bf16 %v9579_v10  ;;  %v9580_v55 = vunpack.i.l.bf16 %v9579_v10  ;;  %v9566_v57 = vunpack.i.h.bf16 %v9564_v63 }
 0x548   :  { %v9565_v1 = vunpack.i.l.bf16 %v9564_v63  ;;  %v20954_v43 = vpack.i.bf16 %v20952_v33, %v20953_v17  ;;  %v9251_v30 = vunpack.i.h.bf16 %v20955_v51  ;;  %v9250_v49 = vunpack.i.l.bf16 %v20955_v51  ;;  %v17182_v44 = vpop.permute.xlu0 %9588  ;;  %v20960_v51 = vld [vmem:[#allocation261_spill] sm:$0xff] }
 0x549   :  { %9868 = vrot.lane.b32.xlu0 %v20951_v23, %s10144_s14  ;;  %v6023_v48 = vsel %vm2574_vm8, %v5959_v32, %v9560_v16  ;;  %v6024_v52 = vsel %vm2574_vm8, %v5960_v61, %v9561_v13  ;;  %v5958_v21 = vsel %vm2509_vm7, %v5894_v5, %v9401_v39  ;;  %v5957_v2 = vsel %vm2509_vm7, %v5893_v31, %v9400_v24  ;;  %v20956_v16 = vld [vmem:[#allocation273_spill] sm:$0xff]  ;;  %v20957_v24 = vld [vmem:[#allocation255_spill] sm:$0xff] }
 0x54a   :  { %9853 = vrot.lane.b32.xlu1 %v20954_v43, %s10143_s9  ;;  %v6087_v54 = vsel %vm2639_vm9, %v6023_v48, %v9570_v15  ;;  %v6088_v34 = vsel %vm2639_vm9, %v6024_v52, %v9571_v40  ;;  %v9574_v19 = vpop.permute.xlu1 %9573  ;;  %v6022_v10 = vsel %vm2574_vm8, %v5958_v21, %v9556_v0  ;;  %v6021_v4 = vsel %vm2574_vm8, %v5957_v2, %v9555_v46  ;;  %v20958_v40 = vld [vmem:[#allocation16_spill] sm:$0xff]  ;;  %v20961_v2 = vld [vmem:[#allocation55_spill] sm:$0xff] }
 0x54b   :  { %v9576_v63 = vunpack.i.h.bf16 %v9574_v19  ;;  %v9575_v23 = vunpack.i.l.bf16 %v9574_v19  ;;  %v6151_v13 = vsel %vm2704_vm10, %v6087_v54, %v9580_v55  ;;  %v6152_v5 = vsel %vm2704_vm10, %v6088_v34, %v9581_v12  ;;  %v20962_v54 = vld [vmem:[#allocation262_spill] sm:$0xff] }
 0x54c   :  { %v6085_v31 = vsel %vm2639_vm9, %v6021_v4, %v9565_v1  ;;  %v6086_v39 = vsel %vm2639_vm9, %v6022_v10, %v9566_v57  ;;  %v9256_v15 = vunpack.i.h.bf16 %v20958_v40  ;;  %v9255_v32 = vunpack.i.l.bf16 %v20958_v40  ;;  %v9599_v46 = vpop.permute.xlu0 %9598  ;;  %v20959_v57 = vld [vmem:[#allocation108_spill] sm:$0xff] }
 0x54d   :  { %9878 = vrot.lane.b32.xlu0 %v20956_v16, %s10145_s1  ;;  %v6149_v61 = vsel %vm2704_vm10, %v6085_v31, %v9575_v23  ;;  %v6150_v0 = vsel %vm2704_vm10, %v6086_v39, %v9576_v63  ;;  %v17204_v55 = vsel %vm2379_vm5, %v16796_v14, %v9141_v45  ;;  %v17208_v12 = vsel %vm2379_vm5, %v16816_v58, %v9125_v62  ;;  %v20964_v45 = vld [vmem:[#allocation85_spill] sm:$0xff]  ;;  %v20965_v10 = vld [vmem:[#allocation208_spill] sm:$0xff] }
 0x54e   :  { %9863 = vrot.lane.b32.xlu1 %v20957_v24, %s10144_s14  ;;  %v9151_v1 = vunpack.i.h.bf16 %v20959_v57  ;;  %v6211_v33 = vpack.c.bf16 %v6150_v0, %v6149_v61  ;;  %v9584_v17 = vpop.permute.xlu1 %9583  ;;  %v9150_v43 = vunpack.i.l.bf16 %v20959_v57  ;;  %v9416_v48 = vunpack.i.h.bf16 %v20960_v51  ;;  %v20967_v40 = vld [vmem:[#allocation264_spill] sm:$0xff]  ;;  %v20968_v0 = vld [vmem:[#allocation253_spill] sm:$0xff] }
 0x54f   :  { %v9415_v52 = vunpack.i.l.bf16 %v20960_v51  ;;  %v6212_v21 = vpack.c.bf16 %v6152_v5, %v6151_v13  ;;  %v20963_v14 = vpack.i.bf16 %v20961_v2, %v20962_v54  ;;  %v9136_v34 = vunpack.i.h.bf16 %v20964_v45 }
 0x550   :  { %v9135_v58 = vunpack.i.l.bf16 %v20964_v45  ;;  %v5898_v62 = vsel %vm2444_vm6, %v17004_v36, %v9251_v30  ;;  %v5897_v19 = vsel %vm2444_vm6, %v16995_v3, %v9250_v49  ;;  %7396 = vmatprep.mubr.msk.bf16.mxu1 %vm2837_vm11, %v6211_v33  ;;  %v5899_v4 = vsel %vm2444_vm6, %v17049_v37, %v9255_v32  ;;  %v9609_v13 = vpop.permute.xlu0 %9608  ;;  %v20966_v36 = vld [vmem:[#allocation213_spill] sm:$0xff]  ;;  %v20969_v33 = vld [vmem:[#allocation252_spill] sm:$0xff] }
 0x551   :  { %9888 = vrot.lane.b32.xlu0 %v20963_v14, %s10143_s9  ;;  %v5900_v63 = vsel %vm2444_vm6, %v17058_v50, %v9256_v15  ;;  %v9591_v23 = vunpack.i.h.bf16 %v17182_v44  ;;  %v9590_v16 = vunpack.i.l.bf16 %v17182_v44  ;;  %7397 = vmatmul.mubr.msk.bf16.gmra.mrb[4].mxu1 %vm2837_vm11, %v6212_v21  ;;  %v9411_v3 = vunpack.i.h.bf16 %v20966_v36 }
 0x552   :  { %9873 = vrot.lane.b32.xlu1 %v20965_v10, %s10145_s1  ;;  %v9410_v30 = vunpack.i.l.bf16 %v20966_v36  ;;  %v9601_v49 = vunpack.i.h.bf16 %v9599_v46  ;;  %v9600_v5 = vunpack.i.l.bf16 %v9599_v46  ;;  %v9594_v31 = vpop.permute.xlu1 %9593  ;;  %v5963_v39 = vsel %vm2509_vm7, %v5899_v4, %v9415_v52  ;;  %v20971_v46 = vld [vmem:[#allocation94_spill] sm:$0xff] }
 0x553   :  { %v5964_v37 = vsel %vm2509_vm7, %v5900_v63, %v9416_v48  ;;  %v9586_v24 = vunpack.i.h.bf16 %v9584_v17  ;;  %v9585_v50 = vunpack.i.l.bf16 %v9584_v17  ;;  %v9611_v44 = vunpack.i.h.bf16 %v9609_v13 }
 0x554   :  { %v9610_v15 = vunpack.i.l.bf16 %v9609_v13  ;;  %v9596_v32 = vunpack.i.h.bf16 %v9594_v31  ;;  %v9595_v61 = vunpack.i.l.bf16 %v9594_v31  ;;  %v20970_v51 = vpack.i.bf16 %v20968_v0, %v20969_v33  ;;  %v17248_v2 = vpop.permute.xlu0 %9618  ;;  %v20975_v33 = vld [vmem:[#allocation270_spill] sm:$0xff] }
 0x555   :  { %9898 = vrot.lane.b32.xlu0 %v20967_v40, %s10144_s14  ;;  %v9261_v21 = vunpack.i.h.bf16 %v20971_v46  ;;  %v9260_v52 = vunpack.i.l.bf16 %v20971_v46  ;;  %v6027_v48 = vsel %vm2574_vm8, %v5963_v39, %v9590_v16  ;;  %v6028_v17 = vsel %vm2574_vm8, %v5964_v37, %v9591_v23  ;;  %v20972_v16 = vld [vmem:[#allocation274_spill] sm:$0xff] }
 0x556   :  { %9883 = vrot.lane.b32.xlu1 %v20970_v51, %s10143_s9  ;;  %v5962_v54 = vsel %vm2509_vm7, %v5898_v62, %v9411_v3  ;;  %v5961_v14 = vsel %vm2509_vm7, %v5897_v19, %v9410_v30  ;;  %v6091_v10 = vsel %vm2639_vm9, %v6027_v48, %v9600_v5  ;;  %v6092_v4 = vsel %vm2639_vm9, %v6028_v17, %v9601_v49  ;;  %v9604_v63 = vpop.permute.xlu1 %9603  ;;  %v20973_v30 = vld [vmem:[#allocation259_spill] sm:$0xff]  ;;  %v20974_v49 = vld [vmem:[#allocation180_spill] sm:$0xff] }
 0x557   :  { %v6026_v13 = vsel %vm2574_vm8, %v5962_v54, %v9586_v24  ;;  %v6025_v36 = vsel %vm2574_vm8, %v5961_v14, %v9585_v50  ;;  %v9606_v31 = vunpack.i.h.bf16 %v9604_v63  ;;  %v9605_v40 = vunpack.i.l.bf16 %v9604_v63  ;;  %v20982_v14 = vld [vmem:[#allocation278_spill] sm:$0xff] }
 0x558   :  { %v6155_v23 = vsel %vm2704_vm10, %v6091_v10, %v9610_v15  ;;  %v6156_v62 = vsel %vm2704_vm10, %v6092_v4, %v9611_v44  ;;  %v6089_v19 = vsel %vm2639_vm9, %v6025_v36, %v9595_v61  ;;  %v6090_v3 = vsel %vm2639_vm9, %v6026_v13, %v9596_v32  ;;  %v9629_v50 = vpop.permute.xlu0 %9628 }
 0x559   :  { %9908 = vrot.lane.b32.xlu0 %v20972_v16, %s10145_s1  ;;  %v9266_v5 = vunpack.i.h.bf16 %v20974_v49  ;;  %v9265_v39 = vunpack.i.l.bf16 %v20974_v49  ;;  %v6153_v37 = vsel %vm2704_vm10, %v6089_v19, %v9605_v40  ;;  %v6154_v24 = vsel %vm2704_vm10, %v6090_v3, %v9606_v31  ;;  %v20984_v16 = vld [vmem:[#allocation263_spill] sm:$0xff]  ;;  %v20985_v3 = vld [vmem:[#allocation276_spill] sm:$0xff] }
 0x55a   :  { %9893 = vrot.lane.b32.xlu1 %v20973_v30, %s10144_s14  ;;  %v17272_v44 = vsel %vm2379_vm5, %v16807_v29, %v9126_v53  ;;  %v17276_v15 = vsel %vm2379_vm5, %v16824_v35, %v9150_v43  ;;  %v17282_v32 = vsel %vm2379_vm5, %v16820_v18, %v9151_v1  ;;  %v6213_v61 = vpack.c.bf16 %v6154_v24, %v6153_v37  ;;  %v9614_v0 = vpop.permute.xlu1 %9613  ;;  %v20977_v35 = vld [vmem:[#allocation251_spill] sm:$0xff]  ;;  %v20978_v43 = vld [vmem:[#allocation250_spill] sm:$0xff]  ;;  %v20980_v18 = vld [vmem:[#allocation189_spill] sm:$0xff] }
 0x55b   :  { %v17286_v51 = vsel %vm2379_vm5, %v20975_v33, %v9135_v58  ;;  %v9426_v46 = vunpack.i.h.bf16 %v20976_v22  ;;  %v9425_v29 = vunpack.i.l.bf16 %v20976_v22  ;;  %v6214_v53 = vpack.c.bf16 %v6156_v62, %v6155_v23  ;;  %v20981_v1 = vld [vmem:[#allocation173_spill] sm:$0xff] }
 0x55c   :  { %v20979_v48 = vpack.i.bf16 %v20977_v35, %v20978_v43  ;;  %v17298_v57 = vsel %vm2379_vm5, %v20980_v18, %v9136_v34  ;;  %v9160_v17 = vunpack.i.l.bf16 %v20981_v1  ;;  %v5902_v58 = vsel %vm2444_vm6, %v17019_v59, %v9261_v21  ;;  %7400 = vmatprep.mubr.msk.bf16.mxu1 %vm2837_vm11, %v6213_v61  ;;  %v9639_v63 = vpop.permute.xlu0 %9638  ;;  %v20983_v59 = vld [vmem:[#allocation258_spill] sm:$0xff]  ;;  %v20986_v30 = vld [vmem:[#allocation229_spill] sm:$0xff] }
 0x55d   :  { %v5901_v54 = vsel %vm2444_vm6, %v17015_v7, %v9260_v52  ;;  %v5903_v45 = vsel %vm2444_vm6, %v17072_v9, %v9265_v39  ;;  %v5904_v34 = vsel %vm2444_vm6, %v17076_v11, %v9266_v5  ;;  %v9621_v10 = vunpack.i.h.bf16 %v17248_v2  ;;  %7401 = vmatmul.mubr.msk.bf16.gmra.mrb[8].mxu1 %vm2837_vm11, %v6214_v53 }
 0x55e   :  { %9918 = vrot.lane.b32.xlu0 %v20979_v48, %s10143_s9  ;;  %9903 = vrot.lane.b32.xlu1 %v20982_v14, %s10145_s1  ;;  %v9620_v4 = vunpack.i.l.bf16 %v17248_v2  ;;  %v9421_v7 = vunpack.i.h.bf16 %v20983_v59  ;;  %v9420_v21 = vunpack.i.l.bf16 %v20983_v59  ;;  %v9631_v52 = vunpack.i.h.bf16 %v9629_v50  ;;  %v9624_v36 = vpop.permute.xlu1 %9623  ;;  %v20988_v14 = vld [vmem:[#allocation100_spill] sm:$0xff] }
 0x55f   :  { %v9630_v13 = vunpack.i.l.bf16 %v9629_v50  ;;  %v5967_v31 = vsel %vm2509_vm7, %v5903_v45, %v9425_v29  ;;  %v5968_v9 = vsel %vm2509_vm7, %v5904_v34, %v9426_v46  ;;  %v9616_v40 = vunpack.i.h.bf16 %v9614_v0  ;;  %v20990_v34 = vld [vmem:[#allocation98_spill] sm:$0xff] }
 0x560   :  { %v9615_v11 = vunpack.i.l.bf16 %v9614_v0  ;;  %v9641_v2 = vunpack.i.h.bf16 %v9639_v63  ;;  %v9640_v23 = vunpack.i.l.bf16 %v9639_v63  ;;  %v9626_v62 = vunpack.i.h.bf16 %v9624_v36  ;;  %v17327_v24 = vpop.permute.xlu0 %9648 }
 0x561   :  { %v9625_v19 = vunpack.i.l.bf16 %v9624_v36  ;;  %v9271_v49 = vunpack.i.h.bf16 %v20986_v30  ;;  %v9270_v5 = vunpack.i.l.bf16 %v20986_v30  ;;  %v6031_v39 = vsel %vm2574_vm8, %v5967_v31, %v9620_v4  ;;  %v20995_v30 = vld [vmem:[#allocation191_spill] sm:$0xff] }
 0x562   :  { %9928 = vrot.lane.b32.xlu0 %v20984_v16, %s10144_s14  ;;  %9913 = vrot.lane.b32.xlu1 %v20985_v3, %s10142_s8  ;;  %v6032_v37 = vsel %vm2574_vm8, %v5968_v9, %v9621_v10  ;;  %v5966_v50 = vsel %vm2509_vm7, %v5902_v58, %v9421_v7  ;;  %v5965_v61 = vsel %vm2509_vm7, %v5901_v54, %v9420_v21  ;;  %v9634_v22 = vpop.permute.xlu1 %9633  ;;  %v20987_v54 = vld [vmem:[#allocation248_spill] sm:$0xff]  ;;  %v9276_v10 = vunpack.i.h.bf16 %v20990_v34 }
 0x563   :  { %v6095_v0 = vsel %vm2639_vm9, %v6031_v39, %v9630_v13  ;;  %v6096_v33 = vsel %vm2639_vm9, %v6032_v37, %v9631_v52  ;;  %v6030_v46 = vsel %vm2574_vm8, %v5966_v50, %v9616_v40  ;;  %v6029_v29 = vsel %vm2574_vm8, %v5965_v61, %v9615_v11  ;;  %v20991_v52 = vld [vmem:[#allocation42_spill] sm:$0xff]  ;;  %v20992_v40 = vld [vmem:[#allocation77_spill] sm:$0xff]  ;;  %v20993_v16 = vld [vmem:[#allocation312_spill] sm:$0xff] }
 0x564   :  { %v9636_v53 = vunpack.i.h.bf16 %v9634_v22  ;;  %v9635_v35 = vunpack.i.l.bf16 %v9634_v22  ;;  %v6159_v43 = vsel %vm2704_vm10, %v6095_v0, %v9640_v23  ;;  %v6160_v48 = vsel %vm2704_vm10, %v6096_v33, %v9641_v2  ;;  %v9659_v7 = vpop.permute.xlu0 %9658 }
 0x565   :  { %v6093_v18 = vsel %vm2639_vm9, %v6029_v29, %v9625_v19  ;;  %v6094_v58 = vsel %vm2639_vm9, %v6030_v46, %v9626_v62  ;;  %v20989_v45 = vpack.i.bf16 %v20987_v54, %v20988_v14  ;;  %v9275_v4 = vunpack.i.l.bf16 %v20990_v34  ;;  %v20994_v19 = vld [vmem:[#allocation212_spill] sm:$0xff] }
 0x566   :  { %9938 = vrot.lane.b32.xlu0 %v20985_v3, %s10145_s1  ;;  %v6157_v63 = vsel %vm2704_vm10, %v6093_v18, %v9635_v35  ;;  %v6158_v59 = vsel %vm2704_vm10, %v6094_v58, %v9636_v53  ;;  %v9161_v21 = vunpack.i.h.bf16 %v20981_v1  ;;  %v9146_v13 = vunpack.i.h.bf16 %v20991_v52  ;;  %v9644_v9 = vpop.permute.xlu1 %9643 }
 0x567   :  { %9923 = vrot.lane.b32.xlu1 %v20989_v45, %s10143_s9  ;;  %v9145_v36 = vunpack.i.l.bf16 %v20991_v52  ;;  %v6215_v31 = vpack.c.bf16 %v6158_v59, %v6157_v63  ;;  %v17354_v11 = vsel %vm2379_vm5, %v20992_v40, %v9160_v17  ;;  %v9436_v2 = vunpack.i.h.bf16 %v20993_v16  ;;  %v20996_v17 = vld [vmem:[#allocation205_spill] sm:$0xff] }
 0x568   :  { %v9435_v23 = vunpack.i.l.bf16 %v20993_v16  ;;  %v6216_v62 = vpack.c.bf16 %v6160_v48, %v6159_v43  ;;  %v5906_v1 = vsel %vm2444_vm6, %v17042_v6, %v9271_v49  ;;  %v5905_v3 = vsel %vm2444_vm6, %v17038_v27, %v9270_v5  ;;  %v9669_v27 = vpop.permute.xlu0 %9668  ;;  %v20997_v5 = vld [vmem:[#allocation179_spill] sm:$0xff]  ;;  %v20998_v43 = vld [vmem:[#allocation257_spill] sm:$0xff]  ;;  %v20999_v48 = vld [vmem:[#allocation254_spill] sm:$0xff] }
 0x569   :  { %v9281_v39 = vunpack.i.h.bf16 %v20995_v30  ;;  %v9280_v37 = vunpack.i.l.bf16 %v20995_v30  ;;  %7404 = vmatprep.mubr.msk.bf16.mxu1 %vm2837_vm11, %v6215_v31  ;;  %v5907_v50 = vsel %vm2444_vm6, %v17135_v41, %v9275_v4  ;;  %v5908_v61 = vsel %vm2444_vm6, %v17139_v38, %v9276_v10  ;;  %v21001_v45 = vld [vmem:[#allocation69_spill] sm:$0xff] }
 0x56a   :  { %9948 = vrot.lane.b32.xlu0 %v20994_v19, %s10142_s8  ;;  %v9651_v6 = vunpack.i.h.bf16 %v17327_v24  ;;  %v9650_v49 = vunpack.i.l.bf16 %v17327_v24  ;;  %7405 = vmatmul.mubr.msk.bf16.gmra.mrb[12].mxu1 %vm2837_vm11, %v6216_v62  ;;  %v9431_v0 = vunpack.i.h.bf16 %v20997_v5  ;;  %v9430_v33 = vunpack.i.l.bf16 %v20997_v5  ;;  %v9654_v29 = vpop.permute.xlu1 %9653  ;;  %v21002_v30 = vld [vmem:[#allocation65_spill] sm:$0xff] }
 0x56b   :  { %9933 = vrot.lane.b32.xlu1 %v20996_v17, %s10144_s14  ;;  %v9661_v22 = vunpack.i.h.bf16 %v9659_v7  ;;  %v9660_v46 = vunpack.i.l.bf16 %v9659_v7  ;;  %v5971_v53 = vsel %vm2509_vm7, %v5907_v50, %v9435_v23  ;;  %v5972_v41 = vsel %vm2509_vm7, %v5908_v61, %v9436_v2  ;;  %v21003_v61 = vld [vmem:[#allocation279_spill] sm:$0xff] }
 0x56c   :  { %v9646_v35 = vunpack.i.h.bf16 %v9644_v9  ;;  %v9645_v38 = vunpack.i.l.bf16 %v9644_v9  ;;  %v21000_v24 = vpack.i.bf16 %v20998_v43, %v20999_v48  ;;  %v9671_v18 = vunpack.i.h.bf16 %v9669_v27  ;;  %v17390_v59 = vpop.permute.xlu0 %9678 }
 0x56d   :  { %v9670_v58 = vunpack.i.l.bf16 %v9669_v27  ;;  %v9656_v54 = vunpack.i.h.bf16 %v9654_v29  ;;  %v9655_v14 = vunpack.i.l.bf16 %v9654_v29  ;;  %v9286_v34 = vunpack.i.h.bf16 %v21001_v45  ;;  %v21005_v29 = vld [vmem:[#allocation10_spill] sm:$0xff] }
 0x56e   :  { %9958 = vrot.lane.b32.xlu0 %v21000_v24, %s10143_s9  ;;  %v9285_v10 = vunpack.i.l.bf16 %v21001_v45  ;;  %v6035_v4 = vsel %vm2574_vm8, %v5971_v53, %v9650_v49  ;;  %v6036_v63 = vsel %vm2574_vm8, %v5972_v41, %v9651_v6  ;;  %v5970_v7 = vsel %vm2509_vm7, %v5906_v1, %v9431_v0  ;;  %v9664_v16 = vpop.permute.xlu1 %9663  ;;  %v21004_v6 = vld [vmem:[#allocation73_spill] sm:$0xff] }
 0x56f   :  { %9943 = vrot.lane.b32.xlu1 %v20994_v19, %s10145_s1  ;;  %v5969_v31 = vsel %vm2509_vm7, %v5905_v3, %v9430_v33  ;;  %v6099_v9 = vsel %vm2639_vm9, %v6035_v4, %v9660_v46  ;;  %v6100_v40 = vsel %vm2639_vm9, %v6036_v63, %v9661_v22  ;;  %v6034_v2 = vsel %vm2574_vm8, %v5970_v7, %v9646_v35  ;;  %v17414_v22 = vld [vmem:[#allocation2 + $0x350] sm:$0xff] }
 0x570   :  { %v6033_v23 = vsel %vm2574_vm8, %v5969_v31, %v9645_v38  ;;  %v9666_v62 = vunpack.i.h.bf16 %v9664_v16  ;;  %v9665_v19 = vunpack.i.l.bf16 %v9664_v16  ;;  %v6163_v17 = vsel %vm2704_vm10, %v6099_v9, %v9670_v58  ;;  %v9689_v33 = vpop.permute.xlu0 %9688  ;;  %v17420_v38 = vld [vmem:[#allocation2 + $0x348] sm:$0xff]  ;;  %v21011_v7 = vld [vmem:[#allocation185_spill] sm:$0xff] }
 0x571   :  { %v6164_v1 = vsel %vm2704_vm10, %v6100_v40, %v9671_v18  ;;  %v6097_v3 = vsel %vm2639_vm9, %v6033_v23, %v9655_v14  ;;  %v6098_v50 = vsel %vm2639_vm9, %v6034_v2, %v9656_v54  ;;  %v17408_v49 = vsel %vm2379_vm5, %v21004_v6, %v9161_v21  ;;  %v21008_v54 = vld [vmem:[#allocation107_spill] sm:$0xff]  ;;  %v3692_v23 = vld [vmem:[#allocation2 + $0x358] sm:$0x3] }
 0x572   :  { %9968 = vrot.lane.b32.xlu0 %v21002_v30, %s10144_s14  ;;  %v5910_v27 = vsel %vm2444_vm6, %v17068_v47, %v9281_v39  ;;  %v6161_v5 = vsel %vm2704_vm10, %v6097_v3, %v9665_v19  ;;  %v6162_v0 = vsel %vm2704_vm10, %v6098_v50, %v9666_v62  ;;  %v5909_v46 = vsel %vm2444_vm6, %v17062_v26, %v9280_v37  ;;  %v9674_v21 = vpop.permute.xlu1 %9673  ;;  %v21006_v39 = vld [vmem:[#allocation260_spill] sm:$0xff]  ;;  %v21007_v37 = vld [vmem:[#allocation75_spill] sm:$0xff] }
 0x573   :  { %9953 = vrot.lane.b32.xlu1 %v21003_v61, %s10142_s8  ;;  %v9291_v53 = vunpack.i.h.bf16 %v21005_v29  ;;  %v9290_v41 = vunpack.i.l.bf16 %v21005_v29  ;;  %v6217_v35 = vpack.c.bf16 %v6162_v0, %v6161_v5  ;;  %v5911_v47 = vsel %vm2444_vm6, %v17208_v12, %v9285_v10  ;;  %v21009_v14 = vld [vmem:[#allocation143_spill] sm:$0xff] }
 0x574   :  { %v9446_v43 = vunpack.i.h.bf16 %v21006_v39  ;;  %v9445_v48 = vunpack.i.l.bf16 %v21006_v39  ;;  %v6218_v24 = vpack.c.bf16 %v6164_v1, %v6163_v17  ;;  %v5912_v26 = vsel %vm2444_vm6, %v17272_v44, %v9286_v34  ;;  %v9699_v63 = vpop.permute.xlu0 %9698  ;;  %v21012_v17 = vld [vmem:[#allocation118_spill] sm:$0xff]  ;;  %v21013_v6 = vld [vmem:[#allocation267_spill] sm:$0xff] }
 0x575   :  { %v9296_v18 = vunpack.i.h.bf16 %v21007_v37  ;;  %v9295_v58 = vunpack.i.l.bf16 %v21007_v37  ;;  %v21010_v45 = vpack.i.bf16 %v21008_v54, %v21009_v14  ;;  %7408 = vmatprep.mubr.msk.bf16.mxu1 %vm2837_vm11, %v6217_v35  ;;  %v5299_v12 = vrot.slane %v17414_v22, 1  ;;  %v21017_v29 = vld [vmem:[#allocation115_spill] sm:$0xff] }
 0x576   :  { %9978 = vrot.lane.b32.xlu0 %v21003_v61, %s10145_s1  ;;  %v9681_v10 = vunpack.i.h.bf16 %v17390_v59  ;;  %v9680_v4 = vunpack.i.l.bf16 %v17390_v59  ;;  %7409 = vmatmul.mubr.msk.bf16.gmra.mrb[16].mxu1 %vm2837_vm11, %v6218_v24  ;;  %v5501_v44 = vrot.slane %v17414_v22, 2  ;;  %v5298_v34 = vrot.slane %v17420_v38, 1  ;;  %v9684_v2 = vpop.permute.xlu1 %9683 }
 0x577   :  { %9963 = vrot.lane.b32.xlu1 %v21010_v45, %s10143_s9  ;;  %v9441_v31 = vunpack.i.h.bf16 %v21011_v7  ;;  %v9440_v9 = vunpack.i.l.bf16 %v21011_v7  ;;  %v9691_v40 = vunpack.i.h.bf16 %v9689_v33  ;;  %v9690_v16 = vunpack.i.l.bf16 %v9689_v33 }
 0x578   :  { %v5975_v62 = vsel %vm2509_vm7, %v5911_v47, %v9445_v48  ;;  %v5976_v19 = vsel %vm2509_vm7, %v5912_v26, %v9446_v43  ;;  %v9676_v59 = vunpack.i.h.bf16 %v9674_v21  ;;  %v9675_v30 = vunpack.i.l.bf16 %v9674_v21  ;;  %v17453_v33 = vpop.permute.xlu0 %9708 }
 0x579   :  { %v9701_v1 = vunpack.i.h.bf16 %v9699_v63  ;;  %v9700_v3 = vunpack.i.l.bf16 %v9699_v63  ;;  %v9686_v50 = vunpack.i.h.bf16 %v9684_v2  ;;  %v9685_v61 = vunpack.i.l.bf16 %v9684_v2 }
 0x57a   :  { %9988 = vrot.lane.b32.xlu0 %v21012_v17, %s10142_s8  ;;  %v6039_v5 = vsel %vm2574_vm8, %v5975_v62, %v9680_v4  ;;  %v6040_v0 = vsel %vm2574_vm8, %v5976_v19, %v9681_v10  ;;  %v5500_v35 = vrot.slane %v17420_v38, 2  ;;  %v5301_v47 = vrot.slane %v3692_v23, 1  ;;  %v9694_v24 = vpop.permute.xlu1 %9693  ;;  %v21014_v10 = vld [vmem:[#allocation292_spill] sm:$0xff] }
 0x57b   :  { %9973 = vrot.lane.b32.xlu1 %v21013_v6, %s10144_s14  ;;  %v5974_v21 = vsel %vm2509_vm7, %v5910_v27, %v9441_v31  ;;  %v5973_v39 = vsel %vm2509_vm7, %v5909_v46, %v9440_v9  ;;  %v6103_v43 = vsel %vm2639_vm9, %v6039_v5, %v9690_v16  ;;  %v6104_v48 = vsel %vm2639_vm9, %v6040_v0, %v9691_v40 }
 0x57c   :  { %v6038_v26 = vsel %vm2574_vm8, %v5974_v21, %v9676_v59  ;;  %v6037_v54 = vsel %vm2574_vm8, %v5973_v39, %v9675_v30  ;;  %v9696_v14 = vunpack.i.h.bf16 %v9694_v24  ;;  %v9695_v45 = vunpack.i.l.bf16 %v9694_v24  ;;  %v9719_v40 = vpop.permute.xlu0 %9718 }
 0x57d   :  { %v6167_v4 = vsel %vm2704_vm10, %v6103_v43, %v9700_v3  ;;  %v6168_v27 = vsel %vm2704_vm10, %v6104_v48, %v9701_v1  ;;  %v6101_v46 = vsel %vm2639_vm9, %v6037_v54, %v9685_v61  ;;  %v6102_v63 = vsel %vm2639_vm9, %v6038_v26, %v9686_v50  ;;  %v21019_v61 = vld [vmem:[#allocation311_spill] sm:$0xff] }
 0x57e   :  { %9998 = vrot.lane.b32.xlu0 %v21014_v10, %s10143_s9  ;;  %v5914_v7 = vsel %vm2444_vm6, %v17092_v28, %v9291_v53  ;;  %v6165_v31 = vsel %vm2704_vm10, %v6101_v46, %v9695_v45  ;;  %v6166_v9 = vsel %vm2704_vm10, %v6102_v63, %v9696_v14  ;;  %v5503_v16 = vrot.slane %v3692_v23, 2  ;;  %v9704_v19 = vpop.permute.xlu1 %9703  ;;  %v21015_v53 = vld [vmem:[#allocation114_spill] sm:$0xff]  ;;  %v21016_v23 = vld [vmem:[#allocation295_spill] sm:$0xff] }
 0x57f   :  { %9983 = vrot.lane.b32.xlu1 %v21012_v17, %s10145_s1  ;;  %v5913_v2 = vsel %vm2444_vm6, %v17081_v25, %v9290_v41  ;;  %v6219_v62 = vpack.c.bf16 %v6166_v9, %v6165_v31  ;;  %v5300_v59 = vsel %vm339_vm0, %v5298_v34, %v5299_v12  ;;  %v5302_v30 = vsel %vm339_vm0, %v5299_v12, %v5301_v47  ;;  %v21018_v41 = vld [vmem:[#allocation142_spill] sm:$0xff] }
 0x580   :  { %v5915_v28 = vsel %vm2444_vm6, %v17286_v51, %v9295_v58  ;;  %v9456_v17 = vunpack.i.h.bf16 %v21015_v53  ;;  %v9455_v1 = vunpack.i.l.bf16 %v21015_v53  ;;  %v6220_v3 = vpack.c.bf16 %v6168_v27, %v6167_v4  ;;  %v9729_v37 = vpop.permute.xlu0 %9728 }
 0x581   :  { %v9301_v50 = vunpack.i.h.bf16 %v21017_v29  ;;  %v5916_v25 = vsel %vm2444_vm6, %v17298_v57, %v9296_v18  ;;  %7412 = vmatprep.mubr.msk.bf16.mxu1 %vm2837_vm11, %v6219_v62  ;;  %v10002_v51 = vpack.i.bf16 %v17414_v22, %v17420_v38  ;;  %v5502_v58 = vsel %vm692_vm1, %v5500_v35, %v5501_v44 }
 0x582   :  { %10008 = vrot.lane.b32.xlu0 %v21016_v23, %s10144_s14  ;;  %v9711_v12 = vunpack.i.h.bf16 %v17453_v33  ;;  %v9710_v34 = vunpack.i.l.bf16 %v17453_v33  ;;  %7413 = vmatmul.mubr.msk.bf16.gmra.mrb[20].mxu1 %vm2837_vm11, %v6220_v3  ;;  %v10012_v57 = vpack.i.bf16 %v5302_v30, %v5300_v59  ;;  %v5504_v18 = vsel %vm692_vm1, %v5501_v44, %v5503_v16  ;;  %v9714_v47 = vpop.permute.xlu1 %9713  ;;  %v21021_v3 = vld [vmem:[#allocation68_spill] sm:$0xff] }
 0x583   :  { %9993 = vrot.lane.b32.xlu1 %v21018_v41, %s10142_s8  ;;  %v9451_v6 = vunpack.i.h.bf16 %v21019_v61  ;;  %v9450_v38 = vunpack.i.l.bf16 %v21019_v61  ;;  %v9721_v5 = vunpack.i.h.bf16 %v9719_v40  ;;  %v9720_v0 = vunpack.i.l.bf16 %v9719_v40 }
 0x584   :  { %v5979_v35 = vsel %vm2509_vm7, %v5915_v28, %v9455_v1  ;;  %v5980_v21 = vsel %vm2509_vm7, %v5916_v25, %v9456_v17  ;;  %v9706_v33 = vunpack.i.h.bf16 %v9704_v19  ;;  %v9705_v39 = vunpack.i.l.bf16 %v9704_v19  ;;  %v9739_v14 = vpop.permute.xlu0 %9738  ;;  %v21022_v25 = vld [vmem:[#allocation268_spill] sm:$0xff] }
 0x585   :  { %v9731_v43 = vunpack.i.h.bf16 %v9729_v37  ;;  %v9730_v22 = vunpack.i.l.bf16 %v9729_v37  ;;  %v9716_v48 = vunpack.i.h.bf16 %v9714_v47  ;;  %v9715_v44 = vunpack.i.l.bf16 %v9714_v47 }
 0x586   :  { %10018 = vrot.lane.b32.xlu0 %v21018_v41, %s10145_s1  ;;  %v9300_v24 = vunpack.i.l.bf16 %v21017_v29  ;;  %v6043_v26 = vsel %vm2574_vm8, %v5979_v35, %v9710_v34  ;;  %v6044_v54 = vsel %vm2574_vm8, %v5980_v21, %v9711_v12  ;;  %v10022_v45 = vpack.i.bf16 %v5504_v18, %v5502_v58  ;;  %v9724_v63 = vpop.permute.xlu1 %9723  ;;  %v21026_v29 = vld [vmem:[#allocation194_spill] sm:$0xff] }
 0x587   :  { %10003 = vrot.lane.b32.xlu1 %v10002_v51, %s10143_s9  ;;  %v5978_v10 = vsel %vm2509_vm7, %v5914_v7, %v9451_v6  ;;  %v5977_v4 = vsel %vm2509_vm7, %v5913_v2, %v9450_v38  ;;  %v6107_v27 = vsel %vm2639_vm9, %v6043_v26, %v9720_v0  ;;  %v6108_v46 = vsel %vm2639_vm9, %v6044_v54, %v9721_v5  ;;  %v21020_v2 = vld [vmem:[#allocation19_spill] sm:$0xff]  ;;  %v21023_v51 = vld [vmem:[#allocation226_spill] sm:$0xff] }
 0x588   :  { %v6042_v31 = vsel %vm2574_vm8, %v5978_v10, %v9706_v33  ;;  %v6041_v9 = vsel %vm2574_vm8, %v5977_v4, %v9705_v39  ;;  %v9726_v40 = vunpack.i.h.bf16 %v9724_v63  ;;  %v9725_v16 = vunpack.i.l.bf16 %v9724_v63  ;;  %v9749_v1 = vpop.permute.xlu0 %9748  ;;  %v21025_v38 = vld [vmem:[#allocation230_spill] sm:$0xff]  ;;  %v21027_v10 = vld [vmem:[#allocation93_spill] sm:$0xff] }
 0x589   :  { %v6171_v62 = vsel %vm2704_vm10, %v6107_v27, %v9730_v22  ;;  %v6172_v19 = vsel %vm2704_vm10, %v6108_v46, %v9731_v43  ;;  %v6105_v59 = vsel %vm2639_vm9, %v6041_v9, %v9715_v44  ;;  %v6106_v7 = vsel %vm2639_vm9, %v6042_v31, %v9716_v48 }
 0x58a   :  { %v9306_v30 = vunpack.i.h.bf16 %v21020_v2  ;;  %v9305_v28 = vunpack.i.l.bf16 %v21020_v2  ;;  %v6169_v53 = vsel %vm2704_vm10, %v6105_v59, %v9725_v16  ;;  %v6170_v17 = vsel %vm2704_vm10, %v6106_v7, %v9726_v40  ;;  %v9734_v34 = vpop.permute.xlu1 %9733 }
 0x58b   :  { %10013 = vrot.lane.b32.xlu1 %v10012_v57, %s10144_s14  ;;  %v5855_v23 = vsel %vm2379_vm5, %v21021_v3, %v9145_v36  ;;  %v5856_v41 = vsel %vm2379_vm5, %v21022_v25, %v9146_v13  ;;  %v9171_v58 = vunpack.i.h.bf16 %v21023_v51  ;;  %v6221_v12 = vpack.c.bf16 %v6170_v17, %v6169_v53  ;;  %v21024_v57 = vld [vmem:[#allocation266_spill] sm:$0xff] }
 0x58c   :  { %v9170_v37 = vunpack.i.l.bf16 %v21023_v51  ;;  %v9466_v18 = vunpack.i.h.bf16 %v21024_v57  ;;  %v9465_v61 = vunpack.i.l.bf16 %v21024_v57  ;;  %v6222_v6 = vpack.c.bf16 %v6172_v19, %v6171_v62  ;;  %v9759_v33 = vpop.permute.xlu0 %9758  ;;  %v21028_v3 = vld [vmem:[#allocation234_spill] sm:$0xff]  ;;  %v21029_v57 = vld [vmem:[#allocation269_spill] sm:$0xff] }
 0x58d   :  { %v9156_v5 = vunpack.i.h.bf16 %v21025_v38  ;;  %v9155_v36 = vunpack.i.l.bf16 %v21025_v38  ;;  %v5918_v52 = vsel %vm2444_vm6, %v17204_v55, %v9301_v50  ;;  %v5917_v13 = vsel %vm2444_vm6, %v17151_v60, %v9300_v24  ;;  %7416 = vmatprep.mubr.msk.bf16.mxu1 %vm2837_vm11, %v6221_v12 }
 0x58e   :  { %v5919_v0 = vsel %vm2444_vm6, %v5855_v23, %v9305_v28  ;;  %v5920_v47 = vsel %vm2444_vm6, %v5856_v41, %v9306_v30  ;;  %v9741_v35 = vunpack.i.h.bf16 %v9739_v14  ;;  %v9740_v21 = vunpack.i.l.bf16 %v9739_v14  ;;  %7417 = vmatmul.mubr.msk.bf16.gmra.mrb[24].mxu1 %vm2837_vm11, %v6222_v6  ;;  %v9744_v60 = vpop.permute.xlu1 %9743 }
 0x58f   :  { %10023 = vrot.lane.b32.xlu1 %v10022_v45, %s10145_s1  ;;  %v9461_v39 = vunpack.i.h.bf16 %v21026_v29  ;;  %v9460_v55 = vunpack.i.l.bf16 %v21026_v29  ;;  %v9751_v50 = vunpack.i.h.bf16 %v9749_v1  ;;  %v9750_v43 = vunpack.i.l.bf16 %v9749_v1  ;;  %v21033_v29 = vld [vmem:[#allocation63_spill] sm:$0xff] }
 0x590   :  { %v5983_v22 = vsel %vm2509_vm7, %v5919_v0, %v9465_v61  ;;  %v5984_v48 = vsel %vm2509_vm7, %v5920_v47, %v9466_v18  ;;  %v9736_v44 = vunpack.i.h.bf16 %v9734_v34  ;;  %v9735_v24 = vunpack.i.l.bf16 %v9734_v34  ;;  %v9769_v31 = vpop.permute.xlu0 %9768  ;;  %v21030_v61 = vld [vmem:[#allocation79_spill] sm:$0xff]  ;;  %v21032_v47 = vld [vmem:[#allocation265_spill] sm:$0xff] }
 0x591   :  { %v9761_v26 = vunpack.i.h.bf16 %v9759_v33  ;;  %v9760_v54 = vunpack.i.l.bf16 %v9759_v33  ;;  %v9746_v45 = vunpack.i.h.bf16 %v9744_v60  ;;  %v9745_v14 = vunpack.i.l.bf16 %v9744_v60  ;;  %v21034_v60 = vld [vmem:[#allocation187_spill] sm:$0xff] }
 0x592   :  { %v9311_v4 = vunpack.i.h.bf16 %v21027_v10  ;;  %v9310_v27 = vunpack.i.l.bf16 %v21027_v10  ;;  %v6047_v46 = vsel %vm2574_vm8, %v5983_v22, %v9740_v21  ;;  %v6048_v63 = vsel %vm2574_vm8, %v5984_v48, %v9741_v35  ;;  %v9754_v19 = vpop.permute.xlu1 %9753 }
 0x593   :  { %v5982_v9 = vsel %vm2509_vm7, %v5918_v52, %v9461_v39  ;;  %v5981_v40 = vsel %vm2509_vm7, %v5917_v13, %v9460_v55  ;;  %v6111_v16 = vsel %vm2639_vm9, %v6047_v46, %v9750_v43  ;;  %v6112_v62 = vsel %vm2639_vm9, %v6048_v63, %v9751_v50  ;;  %v21031_v13 = vld [vmem:[#allocation29_spill] sm:$0xff]  ;;  %v21035_v46 = vld [vmem:[#allocation15_spill] sm:$0xff] }
 0x594   :  { %v6046_v59 = vsel %vm2574_vm8, %v5982_v9, %v9736_v44  ;;  %v6045_v7 = vsel %vm2574_vm8, %v5981_v40, %v9735_v24  ;;  %v9756_v2 = vunpack.i.h.bf16 %v9754_v19  ;;  %v9755_v30 = vunpack.i.l.bf16 %v9754_v19  ;;  %v9779_v12 = vpop.permute.xlu0 %9778 }
 0x595   :  { %v6175_v28 = vsel %vm2704_vm10, %v6111_v16, %v9760_v54  ;;  %v6176_v53 = vsel %vm2704_vm10, %v6112_v62, %v9761_v26  ;;  %v6109_v17 = vsel %vm2639_vm9, %v6045_v7, %v9745_v14  ;;  %v6110_v1 = vsel %vm2639_vm9, %v6046_v59, %v9746_v45 }
 0x596   :  { %v9316_v23 = vunpack.i.h.bf16 %v21028_v3  ;;  %v9315_v25 = vunpack.i.l.bf16 %v21028_v3  ;;  %v6173_v41 = vsel %vm2704_vm10, %v6109_v17, %v9755_v30  ;;  %v6174_v51 = vsel %vm2704_vm10, %v6110_v1, %v9756_v2  ;;  %v9764_v52 = vpop.permute.xlu1 %9763 }
 0x597   :  { %v17579_v34 = vsel %vm2379_vm5, %v16876_v8, %v9170_v37  ;;  %v17583_v18 = vsel %vm2379_vm5, %v21029_v57, %v9171_v58  ;;  %v5859_v6 = vsel %vm2379_vm5, %v21030_v61, %v9155_v36  ;;  %v6223_v38 = vpack.c.bf16 %v6174_v51, %v6173_v41  ;;  %v21036_v41 = vld [vmem:[#allocation74_spill] sm:$0xff] }
 0x598   :  { %v5860_v0 = vsel %vm2379_vm5, %v21031_v13, %v9156_v5  ;;  %v9476_v35 = vunpack.i.h.bf16 %v21032_v47  ;;  %v9475_v21 = vunpack.i.l.bf16 %v21032_v47  ;;  %v6224_v33 = vpack.c.bf16 %v6176_v53, %v6175_v28 }
 0x599   :  { %v9166_v8 = vunpack.i.h.bf16 %v21033_v29  ;;  %v9165_v37 = vunpack.i.l.bf16 %v21033_v29  ;;  %v5922_v58 = vsel %vm2444_vm6, %v17282_v32, %v9311_v4  ;;  %v5921_v36 = vsel %vm2444_vm6, %v17276_v15, %v9310_v27  ;;  %7420 = vmatprep.mubr.msk.bf16.mxu1 %vm2837_vm11, %v6223_v38  ;;  %v9789_v43 = vpop.permute.xlu0 %9788  ;;  %v21037_v38 = vld [vmem:[#allocation178_spill] sm:$0xff] }
 0x59a   :  { %v5923_v39 = vsel %vm2444_vm6, %v5859_v6, %v9315_v25  ;;  %v5924_v5 = vsel %vm2444_vm6, %v5860_v0, %v9316_v23  ;;  %v9771_v55 = vunpack.i.h.bf16 %v9769_v31  ;;  %v9770_v50 = vunpack.i.l.bf16 %v9769_v31  ;;  %7421 = vmatmul.mubr.msk.bf16.gmra.mrb[28].mxu1 %vm2837_vm11, %v6224_v33  ;;  %v9774_v24 = vpop.permute.xlu1 %9773 }
 0x59b   :  { %v9471_v22 = vunpack.i.h.bf16 %v21034_v60  ;;  %v9470_v48 = vunpack.i.l.bf16 %v21034_v60  ;;  %v9781_v44 = vunpack.i.h.bf16 %v9779_v12  ;;  %v9780_v32 = vunpack.i.l.bf16 %v9779_v12 }
 0x59c   :  { %v5987_v15 = vsel %vm2509_vm7, %v5923_v39, %v9475_v21  ;;  %v5988_v26 = vsel %vm2509_vm7, %v5924_v5, %v9476_v35  ;;  %v9766_v54 = vunpack.i.h.bf16 %v9764_v52  ;;  %v9765_v45 = vunpack.i.l.bf16 %v9764_v52 }
 0x59d   :  { %v9791_v14 = vunpack.i.h.bf16 %v9789_v43  ;;  %v9790_v10 = vunpack.i.l.bf16 %v9789_v43  ;;  %v9776_v4 = vunpack.i.h.bf16 %v9774_v24  ;;  %v9775_v27 = vunpack.i.l.bf16 %v9774_v24  ;;  %v9799_v16 = vpop.permute.xlu0 %9798  ;;  %v21039_v43 = vld [vmem:[#allocation206_spill] sm:$0xff] }
 0x59e   :  { %v9321_v63 = vunpack.i.h.bf16 %v21035_v46  ;;  %v9320_v31 = vunpack.i.l.bf16 %v21035_v46  ;;  %v6051_v9 = vsel %vm2574_vm8, %v5987_v15, %v9770_v50  ;;  %v6052_v40 = vsel %vm2574_vm8, %v5988_v26, %v9771_v55  ;;  %v9784_v2 = vpop.permute.xlu1 %9783 }
 0x59f   :  { %v5986_v62 = vsel %vm2509_vm7, %v5922_v58, %v9471_v22  ;;  %v5985_v19 = vsel %vm2509_vm7, %v5921_v36, %v9470_v48  ;;  %v6115_v59 = vsel %vm2639_vm9, %v6051_v9, %v9780_v32  ;;  %v6116_v7 = vsel %vm2639_vm9, %v6052_v40, %v9781_v44  ;;  %v21038_v36 = vld [vmem:[#allocation78_spill] sm:$0xff] }
 0x5a0   :  { %v6050_v30 = vsel %vm2574_vm8, %v5986_v62, %v9766_v54  ;;  %v6049_v28 = vsel %vm2574_vm8, %v5985_v19, %v9765_v45  ;;  %v9786_v53 = vunpack.i.h.bf16 %v9784_v2  ;;  %v9785_v17 = vunpack.i.l.bf16 %v9784_v2 }
 0x5a1   :  { %v6179_v1 = vsel %vm2704_vm10, %v6115_v59, %v9790_v10  ;;  %v6180_v3 = vsel %vm2704_vm10, %v6116_v7, %v9791_v14  ;;  %v6113_v23 = vsel %vm2639_vm9, %v6049_v28, %v9775_v27  ;;  %v6114_v25 = vsel %vm2639_vm9, %v6050_v30, %v9776_v4  ;;  %v9809_v6 = vpop.permute.xlu0 %9808  ;;  %v21040_v10 = vld [vmem:[#allocation233_spill] sm:$0xff] }
 0x5a2   :  { %v9326_v51 = vunpack.i.h.bf16 %v21036_v41  ;;  %v9325_v12 = vunpack.i.l.bf16 %v21036_v41  ;;  %v6177_v57 = vsel %vm2704_vm10, %v6113_v23, %v9785_v17  ;;  %v6178_v61 = vsel %vm2704_vm10, %v6114_v25, %v9786_v53  ;;  %v9794_v35 = vpop.permute.xlu1 %9793 }
 0x5a3   :  { %v9181_v52 = vunpack.i.h.bf16 %v21037_v38  ;;  %v9180_v13 = vunpack.i.l.bf16 %v21037_v38  ;;  %v5863_v0 = vsel %vm2379_vm5, %v16912_v42, %v9165_v37  ;;  %v6225_v47 = vpack.c.bf16 %v6178_v61, %v6177_v57  ;;  %v21042_v57 = vld [vmem:[#allocation241_spill] sm:$0xff] }
 0x5a4   :  { %v5864_v21 = vsel %vm2379_vm5, %v16903_v56, %v9166_v8  ;;  %v9486_v33 = vunpack.i.h.bf16 %v16899_v20  ;;  %v9485_v29 = vunpack.i.l.bf16 %v16899_v20  ;;  %v6226_v58 = vpack.c.bf16 %v6180_v3, %v6179_v1  ;;  %v21041_v3 = vld [vmem:[#allocation193_spill] sm:$0xff] }
 0x5a5   :  { %v9176_v39 = vunpack.i.h.bf16 %v21038_v36  ;;  %v9175_v5 = vunpack.i.l.bf16 %v21038_v36  ;;  %v5926_v55 = vsel %vm2444_vm6, %v17408_v49, %v9321_v63  ;;  %v5925_v42 = vsel %vm2444_vm6, %v17354_v11, %v9320_v31  ;;  %7424 = vmatprep.mubr.msk.bf16.mxu1 %vm2837_vm11, %v6225_v47  ;;  %v9819_v20 = vpop.permute.xlu0 %9818 }
 0x5a6   :  { %v5927_v37 = vsel %vm2444_vm6, %v5863_v0, %v9325_v12  ;;  %v5928_v56 = vsel %vm2444_vm6, %v5864_v21, %v9326_v51  ;;  %v9801_v8 = vunpack.i.h.bf16 %v9799_v16  ;;  %v9800_v50 = vunpack.i.l.bf16 %v9799_v16  ;;  %7425 = vmatmul.mubr.msk.bf16.gmra.mrb[32].mxu1 %vm2837_vm11, %v6226_v58  ;;  %v9804_v44 = vpop.permute.xlu1 %9803  ;;  %v21044_v0 = vld [vmem:[#allocation243_spill] sm:$0xff]  ;;  %v21046_v58 = vld [vmem:[#allocation242_spill] sm:$0xff] }
 0x5a7   :  { %v9481_v60 = vunpack.i.h.bf16 %v21039_v43  ;;  %v9480_v22 = vunpack.i.l.bf16 %v21039_v43  ;;  %v9811_v48 = vunpack.i.h.bf16 %v9809_v6  ;;  %v9810_v49 = vunpack.i.l.bf16 %v9809_v6  ;;  %v21043_v6 = vld [vmem:[#allocation197_spill] sm:$0xff] }
 0x5a8   :  { %v5991_v11 = vsel %vm2509_vm7, %v5927_v37, %v9485_v29  ;;  %v5992_v32 = vsel %vm2509_vm7, %v5928_v56, %v9486_v33  ;;  %v9796_v24 = vunpack.i.h.bf16 %v9794_v35  ;;  %v9795_v15 = vunpack.i.l.bf16 %v9794_v35  ;;  %v21045_v33 = vld [vmem:[#allocation239_spill] sm:$0xff]  ;;  %v21047_v37 = vld [vmem:[#allocation17_spill] sm:$0xff] }
 0x5a9   :  { %v9821_v26 = vunpack.i.h.bf16 %v9819_v20  ;;  %v9820_v54 = vunpack.i.l.bf16 %v9819_v20  ;;  %v9806_v45 = vunpack.i.h.bf16 %v9804_v44  ;;  %v9805_v14 = vunpack.i.l.bf16 %v9804_v44 }
 0x5aa   :  { %v9331_v4 = vunpack.i.h.bf16 %v21040_v10  ;;  %v9330_v27 = vunpack.i.l.bf16 %v21040_v10  ;;  %v6055_v46 = vsel %vm2574_vm8, %v5991_v11, %v9800_v50  ;;  %v6056_v63 = vsel %vm2574_vm8, %v5992_v32, %v9801_v8  ;;  %v9829_v31 = vpop.permute.xlu0 %9828  ;;  %v9814_v19 = vpop.permute.xlu1 %9813 }
 0x5ab   :  { %v5990_v9 = vsel %vm2509_vm7, %v5926_v55, %v9481_v60  ;;  %v5989_v40 = vsel %vm2509_vm7, %v5925_v42, %v9480_v22  ;;  %v6119_v16 = vsel %vm2639_vm9, %v6055_v46, %v9810_v49  ;;  %v6120_v62 = vsel %vm2639_vm9, %v6056_v63, %v9811_v48  ;;  %v21048_v60 = vld [vmem:[#allocation70_spill] sm:$0xff] }
 0x5ac   :  { %v6054_v59 = vsel %vm2574_vm8, %v5990_v9, %v9796_v24  ;;  %v6053_v7 = vsel %vm2574_vm8, %v5989_v40, %v9795_v15  ;;  %v9816_v2 = vunpack.i.h.bf16 %v9814_v19  ;;  %v9815_v30 = vunpack.i.l.bf16 %v9814_v19 }
 0x5ad   :  { %v6183_v28 = vsel %vm2704_vm10, %v6119_v16, %v9820_v54  ;;  %v6184_v53 = vsel %vm2704_vm10, %v6120_v62, %v9821_v26  ;;  %v6117_v17 = vsel %vm2639_vm9, %v6053_v7, %v9805_v14  ;;  %v6118_v1 = vsel %vm2639_vm9, %v6054_v59, %v9806_v45  ;;  %v21049_v14 = vld [vmem:[#allocation181_spill] sm:$0xff] }
 0x5ae   :  { %v9336_v23 = vunpack.i.h.bf16 %v21041_v3  ;;  %v9335_v25 = vunpack.i.l.bf16 %v21041_v3  ;;  %v6181_v41 = vsel %vm2704_vm10, %v6117_v17, %v9815_v30  ;;  %v6182_v51 = vsel %vm2704_vm10, %v6118_v1, %v9816_v2  ;;  %v9839_v12 = vpop.permute.xlu0 %9838  ;;  %v9824_v21 = vpop.permute.xlu1 %9823  ;;  %v21050_v1 = vld [vmem:[#allocation123_spill] sm:$0xff] }
 0x5af   :  { %v17665_v61 = vsel %vm2379_vm5, %v21042_v57, %v9180_v13  ;;  %v17669_v38 = vsel %vm2379_vm5, %v21043_v6, %v9181_v52  ;;  %v5867_v47 = vsel %vm2379_vm5, %v21044_v0, %v9175_v5  ;;  %v6227_v35 = vpack.c.bf16 %v6182_v51, %v6181_v41  ;;  %v21052_v0 = vld [vmem:[#allocation51_spill] sm:$0xff] }
 0x5b0   :  { %v5868_v29 = vsel %vm2379_vm5, %v21045_v33, %v9176_v39  ;;  %v9496_v36 = vunpack.i.h.bf16 %v21046_v58  ;;  %v9495_v55 = vunpack.i.l.bf16 %v21046_v58  ;;  %v6228_v42 = vpack.c.bf16 %v6184_v53, %v6183_v28  ;;  %v21053_v33 = vld [vmem:[#allocation86_spill] sm:$0xff]  ;;  %v21054_v58 = vld [vmem:[#allocation275_spill] sm:$0xff] }
 0x5b1   :  { %v9186_v13 = vunpack.i.h.bf16 %v21047_v37  ;;  %v9185_v56 = vunpack.i.l.bf16 %v21047_v37  ;;  %v5930_v52 = vsel %vm2444_vm6, %v17583_v18, %v9331_v4  ;;  %v5929_v5 = vsel %vm2444_vm6, %v17579_v34, %v9330_v27  ;;  %7428 = vmatprep.mubr.msk.bf16.mxu1 %vm2837_vm11, %v6227_v35  ;;  %v21055_v37 = vld [vmem:[#allocation232_spill] sm:$0xff] }
 0x5b2   :  { %v5931_v8 = vsel %vm2444_vm6, %v5867_v47, %v9335_v25  ;;  %v5932_v39 = vsel %vm2444_vm6, %v5868_v29, %v9336_v23  ;;  %v9831_v50 = vunpack.i.h.bf16 %v9829_v31  ;;  %v9830_v20 = vunpack.i.l.bf16 %v9829_v31  ;;  %v9849_v43 = vpop.permute.xlu0 %9848  ;;  %7429 = vmatmul.mubr.msk.bf16.gmra.mrb[36].mxu1 %vm2837_vm11, %v6228_v42  ;;  %v9834_v44 = vpop.permute.xlu1 %9833 }
 0x5b3   :  { %v9491_v22 = vunpack.i.h.bf16 %v21048_v60  ;;  %v9490_v48 = vunpack.i.l.bf16 %v21048_v60  ;;  %v9841_v49 = vunpack.i.h.bf16 %v9839_v12  ;;  %v9840_v18 = vunpack.i.l.bf16 %v9839_v12  ;;  %v21051_v12 = vld [vmem:[#allocation5_spill] sm:$0xff]  ;;  %v21056_v60 = vld [vmem:[#allocation238_spill] sm:$0xff] }
 0x5b4   :  { %v5995_v34 = vsel %vm2509_vm7, %v5931_v8, %v9495_v55  ;;  %v5996_v11 = vsel %vm2509_vm7, %v5932_v39, %v9496_v36  ;;  %v9826_v32 = vunpack.i.h.bf16 %v9824_v21  ;;  %v9825_v24 = vunpack.i.l.bf16 %v9824_v21 }
 0x5b5   :  { %v9851_v15 = vunpack.i.h.bf16 %v9849_v43  ;;  %v9850_v26 = vunpack.i.l.bf16 %v9849_v43  ;;  %v9836_v54 = vunpack.i.h.bf16 %v9834_v44  ;;  %v9835_v45 = vunpack.i.l.bf16 %v9834_v44 }
 0x5b6   :  { %v9341_v10 = vunpack.i.h.bf16 %v21049_v14  ;;  %v9340_v4 = vunpack.i.l.bf16 %v21049_v14  ;;  %v6059_v27 = vsel %vm2574_vm8, %v5995_v34, %v9830_v20  ;;  %v6060_v46 = vsel %vm2574_vm8, %v5996_v11, %v9831_v50  ;;  %v9844_v62 = vpop.permute.xlu1 %9843 }
 0x5b7   :  { %v9859_v63 = vpop.permute.xlu0 %9858  ;;  %v5994_v31 = vsel %vm2509_vm7, %v5930_v52, %v9491_v22  ;;  %v5993_v9 = vsel %vm2509_vm7, %v5929_v5, %v9490_v48  ;;  %v6123_v40 = vsel %vm2639_vm9, %v6059_v27, %v9840_v18  ;;  %v6124_v16 = vsel %vm2639_vm9, %v6060_v46, %v9841_v49 }
 0x5b8   :  { %v6058_v19 = vsel %vm2574_vm8, %v5994_v31, %v9826_v32  ;;  %v6057_v59 = vsel %vm2574_vm8, %v5993_v9, %v9825_v24  ;;  %v9846_v7 = vunpack.i.h.bf16 %v9844_v62  ;;  %v9845_v2 = vunpack.i.l.bf16 %v9844_v62 }
 0x5b9   :  { %v6187_v30 = vsel %vm2704_vm10, %v6123_v40, %v9850_v26  ;;  %v6188_v28 = vsel %vm2704_vm10, %v6124_v16, %v9851_v15  ;;  %v6121_v53 = vsel %vm2639_vm9, %v6057_v59, %v9835_v45  ;;  %v6122_v17 = vsel %vm2639_vm9, %v6058_v19, %v9836_v54  ;;  %v21057_v54 = vld [vmem:[#allocation235_spill] sm:$0xff] }
 0x5ba   :  { %v9346_v3 = vunpack.i.h.bf16 %v21050_v1  ;;  %v9345_v23 = vunpack.i.l.bf16 %v21050_v1  ;;  %v6185_v25 = vsel %vm2704_vm10, %v6121_v53, %v9845_v2  ;;  %v6186_v41 = vsel %vm2704_vm10, %v6122_v17, %v9846_v7  ;;  %v21058_v53 = vld [vmem:[#allocation62_spill] sm:$0xff] }
 0x5bb   :  { %v9869_v51 = vpop.permute.xlu0 %9868  ;;  %v9191_v57 = vunpack.i.h.bf16 %v21051_v12  ;;  %v9190_v6 = vunpack.i.l.bf16 %v21051_v12  ;;  %v5871_v47 = vsel %vm2379_vm5, %v21052_v0, %v9185_v56  ;;  %v6229_v35 = vpack.c.bf16 %v6186_v41, %v6185_v25  ;;  %v21059_v41 = vld [vmem:[#allocation138_spill] sm:$0xff] }
 0x5bc   :  { %v9854_v21 = vpop.permute.xlu1 %9853  ;;  %v5872_v29 = vsel %vm2379_vm5, %v21053_v33, %v9186_v13  ;;  %v9506_v36 = vunpack.i.h.bf16 %v21054_v58  ;;  %v9505_v55 = vunpack.i.l.bf16 %v21054_v58  ;;  %v6230_v42 = vpack.c.bf16 %v6188_v28, %v6187_v30  ;;  %v21060_v12 = vld [vmem:[#allocation198_spill] sm:$0xff] }
 0x5bd   :  { %v9196_v52 = vunpack.i.h.bf16 %v21055_v37  ;;  %v9195_v5 = vunpack.i.l.bf16 %v21055_v37  ;;  %v5934_v8 = vsel %vm2444_vm6, %v17669_v38, %v9341_v10  ;;  %v5933_v56 = vsel %vm2444_vm6, %v17665_v61, %v9340_v4  ;;  %7432 = vmatprep.mubr.msk.bf16.mxu1 %vm2837_vm11, %v6229_v35  ;;  %v21062_v58 = vld [vmem:[#allocation102_spill] sm:$0xff]  ;;  %v21063_v37 = vld [vmem:[#allocation192_spill] sm:$0xff] }
 0x5be   :  { %v5935_v39 = vsel %vm2444_vm6, %v5871_v47, %v9345_v23  ;;  %v5936_v13 = vsel %vm2444_vm6, %v5872_v29, %v9346_v3  ;;  %v9861_v50 = vunpack.i.h.bf16 %v9859_v63  ;;  %v9860_v20 = vunpack.i.l.bf16 %v9859_v63  ;;  %7433 = vmatmul.mubr.msk.bf16.gmra.mrb[40].mxu1 %vm2837_vm11, %v6230_v42  ;;  %v21061_v47 = vld [vmem:[#allocation91_spill] sm:$0xff] }
 0x5bf   :  { %v9879_v43 = vpop.permute.xlu0 %9878  ;;  %v9501_v22 = vunpack.i.h.bf16 %v21056_v60  ;;  %v9500_v48 = vunpack.i.l.bf16 %v21056_v60  ;;  %v9871_v49 = vunpack.i.h.bf16 %v9869_v51  ;;  %v9870_v38 = vunpack.i.l.bf16 %v9869_v51 }
 0x5c0   :  { %v9864_v18 = vpop.permute.xlu1 %9863  ;;  %v5999_v61 = vsel %vm2509_vm7, %v5935_v39, %v9505_v55  ;;  %v6000_v44 = vsel %vm2509_vm7, %v5936_v13, %v9506_v36  ;;  %v9856_v34 = vunpack.i.h.bf16 %v9854_v21  ;;  %v9855_v11 = vunpack.i.l.bf16 %v9854_v21 }
 0x5c1   :  { %v9881_v32 = vunpack.i.h.bf16 %v9879_v43  ;;  %v9880_v24 = vunpack.i.l.bf16 %v9879_v43  ;;  %v9866_v15 = vunpack.i.h.bf16 %v9864_v18  ;;  %v9865_v26 = vunpack.i.l.bf16 %v9864_v18 }
 0x5c2   :  { %v9351_v45 = vunpack.i.h.bf16 %v21057_v54  ;;  %v9350_v14 = vunpack.i.l.bf16 %v21057_v54  ;;  %v6063_v10 = vsel %vm2574_vm8, %v5999_v61, %v9860_v20  ;;  %v6064_v4 = vsel %vm2574_vm8, %v6000_v44, %v9861_v50 }
 0x5c3   :  { %v9889_v27 = vpop.permute.xlu0 %9888  ;;  %v5998_v46 = vsel %vm2509_vm7, %v5934_v8, %v9501_v22  ;;  %v5997_v63 = vsel %vm2509_vm7, %v5933_v56, %v9500_v48  ;;  %v6127_v31 = vsel %vm2639_vm9, %v6063_v10, %v9870_v38  ;;  %v6128_v9 = vsel %vm2639_vm9, %v6064_v4, %v9871_v49  ;;  %v21064_v56 = vld [vmem:[#allocation190_spill] sm:$0xff]  ;;  %v21065_v22 = vld [vmem:[#allocation240_spill] sm:$0xff] }
 0x5c4   :  { %v9874_v40 = vpop.permute.xlu1 %9873  ;;  %v6062_v16 = vsel %vm2574_vm8, %v5998_v46, %v9856_v34  ;;  %v6061_v62 = vsel %vm2574_vm8, %v5997_v63, %v9855_v11  ;;  %v6191_v7 = vsel %vm2704_vm10, %v6127_v31, %v9880_v24  ;;  %v6192_v2 = vsel %vm2704_vm10, %v6128_v9, %v9881_v32 }
 0x5c5   :  { %v9876_v19 = vunpack.i.h.bf16 %v9874_v40  ;;  %v9875_v59 = vunpack.i.l.bf16 %v9874_v40  ;;  %v6125_v30 = vsel %vm2639_vm9, %v6061_v62, %v9865_v26  ;;  %v6126_v28 = vsel %vm2639_vm9, %v6062_v16, %v9866_v15  ;;  %v21066_v26 = vld [vmem:[#allocation82_spill] sm:$0xff] }
 0x5c6   :  { %v9356_v17 = vunpack.i.h.bf16 %v21058_v53  ;;  %v9355_v1 = vunpack.i.l.bf16 %v21058_v53  ;;  %v5873_v51 = vsel %vm2379_vm5, %v21059_v41, %v9190_v6  ;;  %v5874_v0 = vsel %vm2379_vm5, %v21060_v12, %v9191_v57 }
 0x5c7   :  { %v6189_v3 = vsel %vm2704_vm10, %v6125_v30, %v9875_v59  ;;  %v6190_v23 = vsel %vm2704_vm10, %v6126_v28, %v9876_v19  ;;  %v9899_v25 = vpop.permute.xlu0 %9898  ;;  %v9201_v35 = vunpack.i.h.bf16 %v21061_v47  ;;  %v9200_v29 = vunpack.i.l.bf16 %v21061_v47  ;;  %v21067_v28 = vld [vmem:[#allocation99_spill] sm:$0xff] }
 0x5c8   :  { %v6231_v21 = vpack.c.bf16 %v6190_v23, %v6189_v3  ;;  %v9884_v33 = vpop.permute.xlu1 %9883  ;;  %v9516_v36 = vunpack.i.h.bf16 %v21062_v58  ;;  %v9515_v55 = vunpack.i.l.bf16 %v21062_v58  ;;  %v6232_v42 = vpack.c.bf16 %v6192_v2, %v6191_v7 }
 0x5c9   :  { %v5875_v8 = vsel %vm2379_vm5, %v21063_v37, %v9195_v5  ;;  %v5876_v6 = vsel %vm2379_vm5, %v21064_v56, %v9196_v52  ;;  %v5938_v39 = vsel %vm2444_vm6, %v5874_v0, %v9351_v45  ;;  %v5937_v57 = vsel %vm2444_vm6, %v5873_v51, %v9350_v14  ;;  %v21070_v37 = vld [vmem:[#allocation314_spill] sm:$0xff] }
 0x5ca   :  { %7436 = vmatprep.mubr.msk.bf16.mxu1 %vm2837_vm11, %v6231_v21  ;;  %v5939_v13 = vsel %vm2444_vm6, %v5875_v8, %v9355_v1  ;;  %v5940_v50 = vsel %vm2444_vm6, %v5876_v6, %v9356_v17  ;;  %v9891_v20 = vunpack.i.h.bf16 %v9889_v27  ;;  %v9890_v43 = vunpack.i.l.bf16 %v9889_v27  ;;  %v21069_v21 = vld [vmem:[#allocation44_spill] sm:$0xff]  ;;  %v10129_v6 = vld [vmem:[#allocation2 + $0x2d0] sm:$0xff] }
 0x5cb   :  { %v9909_v60 = vpop.permute.xlu0 %9908  ;;  %7437 = vmatmul.mubr.msk.bf16.gmra.mrb[44].mxu1 %vm2837_vm11, %v6232_v42  ;;  %v9511_v5 = vunpack.i.h.bf16 %v21065_v22  ;;  %v9510_v48 = vunpack.i.l.bf16 %v21065_v22  ;;  %v9901_v52 = vunpack.i.h.bf16 %v9899_v25  ;;  %v9900_v49 = vunpack.i.l.bf16 %v9899_v25  ;;  %v21068_v25 = vld [vmem:[#allocation37_spill] sm:$0xff]  ;;  %v10128_v42 = vld [vmem:[#allocation2 + $0x2d8] sm:$0xff] }
 0x5cc   :  { %v9894_v38 = vpop.permute.xlu1 %9893  ;;  %v6003_v18 = vsel %vm2509_vm7, %v5939_v13, %v9515_v55  ;;  %v6004_v61 = vsel %vm2509_vm7, %v5940_v50, %v9516_v36  ;;  %v9886_v44 = vunpack.i.h.bf16 %v9884_v33  ;;  %v9885_v34 = vunpack.i.l.bf16 %v9884_v33  ;;  %v21073_v50 = vld [vmem:[#allocation225_spill] sm:$0xff] }
 0x5cd   :  { %v9911_v11 = vunpack.i.h.bf16 %v9909_v60  ;;  %v9910_v32 = vunpack.i.l.bf16 %v9909_v60  ;;  %v9896_v24 = vunpack.i.h.bf16 %v9894_v38  ;;  %v9895_v15 = vunpack.i.l.bf16 %v9894_v38  ;;  %v10131_v60 = vld [vmem:[#allocation2 + $0x2b8] sm:$0xff] }
 0x5ce   :  { %v9361_v54 = vunpack.i.h.bf16 %v21066_v26  ;;  %v9360_v45 = vunpack.i.l.bf16 %v21066_v26  ;;  %v6067_v14 = vsel %vm2574_vm8, %v6003_v18, %v9890_v43  ;;  %v6068_v10 = vsel %vm2574_vm8, %v6004_v61, %v9891_v20 }
 0x5cf   :  { %v6002_v27 = vsel %vm2509_vm7, %v5938_v39, %v9511_v5  ;;  %v6001_v46 = vsel %vm2509_vm7, %v5937_v57, %v9510_v48  ;;  %v6131_v63 = vsel %vm2639_vm9, %v6067_v14, %v9900_v49  ;;  %v6132_v31 = vsel %vm2639_vm9, %v6068_v10, %v9901_v52 }
 0x5d0   :  { %v9919_v4 = vpop.permute.xlu0 %9918  ;;  %v9904_v9 = vpop.permute.xlu1 %9903  ;;  %v6066_v40 = vsel %vm2574_vm8, %v6002_v27, %v9886_v44  ;;  %v6065_v16 = vsel %vm2574_vm8, %v6001_v46, %v9885_v34  ;;  %v6195_v59 = vsel %vm2704_vm10, %v6131_v63, %v9910_v32  ;;  %v6196_v7 = vsel %vm2704_vm10, %v6132_v31, %v9911_v11  ;;  %v21076_v11 = vld [vmem:[#allocation184_spill] sm:$0xff]  ;;  %v21078_v27 = vld [vmem:[#allocation203_spill] sm:$0xff]  ;;  %v21079_v63 = vld [vmem:[#allocation25_spill] sm:$0xff] }
 0x5d1   :  { %v9906_v62 = vunpack.i.h.bf16 %v9904_v9  ;;  %v9905_v19 = vunpack.i.l.bf16 %v9904_v9  ;;  %v6129_v2 = vsel %vm2639_vm9, %v6065_v16, %v9895_v15  ;;  %v6130_v30 = vsel %vm2639_vm9, %v6066_v40, %v9896_v24 }
 0x5d2   :  { %v9521_v53 = vunpack.i.h.bf16 %v21067_v28  ;;  %v9520_v17 = vunpack.i.l.bf16 %v21067_v28  ;;  %v5877_v41 = vsel %vm2379_vm5, %v21068_v25, %v9200_v29  ;;  %v9921_v51 = vunpack.i.h.bf16 %v9919_v4 }
 0x5d3   :  { %v6193_v1 = vsel %vm2704_vm10, %v6129_v2, %v9905_v19  ;;  %v6194_v3 = vsel %vm2704_vm10, %v6130_v30, %v9906_v62  ;;  %v9920_v12 = vunpack.i.l.bf16 %v9919_v4  ;;  %v5878_v33 = vsel %vm2379_vm5, %v21069_v21, %v9201_v35  ;;  %v10130_v35 = vld [vmem:[#allocation2 + $0x2c0] sm:$0xff]  ;;  %v21080_v62 = vld [vmem:[#allocation317_spill] sm:$0xff] }
 0x5d4   :  { %v9929_v23 = vpop.permute.xlu0 %9928  ;;  %v6233_v0 = vpack.c.bf16 %v6194_v3, %v6193_v1  ;;  %v9914_v47 = vpop.permute.xlu1 %9913  ;;  %v6234_v58 = vpack.c.bf16 %v6196_v7, %v6195_v59  ;;  %v21071_v8 = vunpack.i.h.bf16 %v21070_v37  ;;  %v21072_v39 = vunpack.i.l.bf16 %v21070_v37 }
 0x5d5   :  { %v9931_v36 = vunpack.i.h.bf16 %v9929_v23  ;;  %v9930_v55 = vunpack.i.l.bf16 %v9929_v23  ;;  %v5942_v57 = vsel %vm2444_vm6, %v5878_v33, %v9361_v54  ;;  %v5941_v13 = vsel %vm2444_vm6, %v5877_v41, %v9360_v45  ;;  %v21077_v54 = vld [vmem:[#allocation4_spill] sm:$0xff]  ;;  %v21081_v33 = vld [vmem:[#allocation175_spill] sm:$0xff] }
 0x5d6   :  { %v5754_v56 = vsel %vm2249_vm2, %v10128_v42, %v21071_v8  ;;  %v17799_v29 = vsel %vm2249_vm2, %v10129_v6, %v21072_v39  ;;  %7440 = vmatprep.mubr.msk.bf16.mxu1 %vm2837_vm11, %v6233_v0  ;;  %v21074_v20 = vunpack.i.h.bf16 %v21073_v50  ;;  %v21075_v22 = vunpack.i.l.bf16 %v21073_v50 }
 0x5d7   :  { %v6006_v48 = vsel %vm2509_vm7, %v5942_v57, %v9521_v53  ;;  %v6005_v52 = vsel %vm2509_vm7, %v5941_v13, %v9520_v17  ;;  %7441 = vmatmul.mubr.msk.bf16.gmra.mrb[48].mxu1 %vm2837_vm11, %v6234_v58  ;;  %v9046_v32 = vunpack.i.h.bf16 %v21076_v11  ;;  %v9045_v24 = vunpack.i.l.bf16 %v21076_v11  ;;  %v21082_v57 = vld [vmem:[#allocation126_spill] sm:$0xff] }
 0x5d8   :  { %v5752_v43 = vsel %vm2249_vm2, %v10130_v35, %v21074_v20  ;;  %v5751_v5 = vsel %vm2249_vm2, %v10131_v60, %v21075_v22  ;;  %v9939_v49 = vpop.permute.xlu0 %9938  ;;  %v6069_v38 = vsel %vm2574_vm8, %v6005_v52, %v9920_v12  ;;  %v6070_v18 = vsel %vm2574_vm8, %v6006_v48, %v9921_v51 }
 0x5d9   :  { %v9941_v61 = vunpack.i.h.bf16 %v9939_v49  ;;  %v9940_v44 = vunpack.i.l.bf16 %v9939_v49  ;;  %v9924_v34 = vpop.permute.xlu1 %9923  ;;  %v6133_v15 = vsel %vm2639_vm9, %v6069_v38, %v9930_v55  ;;  %v6134_v26 = vsel %vm2639_vm9, %v6070_v18, %v9931_v36 }
 0x5da   :  { %v9206_v45 = vunpack.i.h.bf16 %v21077_v54  ;;  %v9205_v14 = vunpack.i.l.bf16 %v21077_v54  ;;  %v9051_v46 = vunpack.i.h.bf16 %v21078_v27  ;;  %v9366_v31 = vunpack.i.h.bf16 %v21079_v63 }
 0x5db   :  { %v6197_v10 = vsel %vm2704_vm10, %v6133_v15, %v9940_v44  ;;  %v6198_v4 = vsel %vm2704_vm10, %v6134_v26, %v9941_v61  ;;  %v9365_v9 = vunpack.i.l.bf16 %v21079_v63  ;;  %v8901_v19 = vunpack.i.h.bf16 %v21080_v62 }
 0x5dc   :  { %v6235_v40 = vpack.c.bf16 %v6198_v4, %v6197_v10  ;;  %v9949_v16 = vpop.permute.xlu0 %9948  ;;  %v8900_v59 = vunpack.i.l.bf16 %v21080_v62  ;;  %v9916_v7 = vunpack.i.h.bf16 %v9914_v47  ;;  %v9915_v2 = vunpack.i.l.bf16 %v9914_v47  ;;  %v10133_v10 = vld [vmem:[#allocation2 + $0x300] sm:$0xff] }
 0x5dd   :  { %v9934_v30 = vpop.permute.xlu1 %9933  ;;  %v5816_v28 = vsel %vm2314_vm3, %v5752_v43, %v9046_v32  ;;  %v5815_v53 = vsel %vm2314_vm3, %v5751_v5, %v9045_v24  ;;  %v9926_v17 = vunpack.i.h.bf16 %v9924_v34  ;;  %v9925_v1 = vunpack.i.l.bf16 %v9924_v34  ;;  %v21083_v24 = vld [vmem:[#allocation11_spill] sm:$0xff] }
 0x5de   :  { %7444 = vmatprep.mubr.msk.bf16.mxu1 %vm2837_vm11, %v6235_v40  ;;  %v5879_v3 = vsel %vm2379_vm5, %v5815_v53, %v9205_v14  ;;  %v5880_v23 = vsel %vm2379_vm5, %v5816_v28, %v9206_v45  ;;  %v9936_v25 = vunpack.i.h.bf16 %v9934_v30  ;;  %v9935_v41 = vunpack.i.l.bf16 %v9934_v30  ;;  %v21085_v28 = vld [vmem:[#allocation210_spill] sm:$0xff] }
 0x5df   :  { %v5818_v51 = vsel %vm2314_vm3, %v5754_v56, %v9051_v46  ;;  %v9050_v12 = vunpack.i.l.bf16 %v21078_v27  ;;  %v5943_v0 = vsel %vm2444_vm6, %v5879_v3, %v9365_v9  ;;  %v5944_v47 = vsel %vm2444_vm6, %v5880_v23, %v9366_v31  ;;  %v21086_v23 = vld [vmem:[#allocation224_spill] sm:$0xff] }
 0x5e0   :  { %v9959_v21 = vpop.permute.xlu0 %9958  ;;  %v9211_v58 = vunpack.i.h.bf16 %v21081_v33  ;;  %v9210_v36 = vunpack.i.l.bf16 %v21081_v33  ;;  %v6007_v55 = vsel %vm2509_vm7, %v5943_v0, %v9915_v2  ;;  %v6008_v42 = vsel %vm2509_vm7, %v5944_v47, %v9916_v7  ;;  %v21084_v7 = vld [vmem:[#allocation204_spill] sm:$0xff] }
 0x5e1   :  { %v9944_v37 = vpop.permute.xlu1 %9943  ;;  %v6071_v8 = vsel %vm2574_vm8, %v6007_v55, %v9925_v1  ;;  %v6072_v56 = vsel %vm2574_vm8, %v6008_v42, %v9926_v17  ;;  %v9371_v13 = vunpack.i.h.bf16 %v21082_v57  ;;  %v9370_v35 = vunpack.i.l.bf16 %v21082_v57 }
 0x5e2   :  { %v9946_v6 = vunpack.i.h.bf16 %v9944_v37  ;;  %v9945_v39 = vunpack.i.l.bf16 %v9944_v37  ;;  %v6135_v50 = vsel %vm2639_vm9, %v6071_v8, %v9935_v41  ;;  %v6136_v20 = vsel %vm2639_vm9, %v6072_v56, %v9936_v25  ;;  %v21087_v41 = vld [vmem:[#allocation182_spill] sm:$0xff] }
 0x5e3   :  { %v9951_v43 = vunpack.i.h.bf16 %v9949_v16  ;;  %v9950_v60 = vunpack.i.l.bf16 %v9949_v16  ;;  %v5817_v52 = vsel %vm2314_vm3, %v17799_v29, %v9050_v12  ;;  %v9961_v49 = vunpack.i.h.bf16 %v9959_v21  ;;  %v10132_v29 = vld [vmem:[#allocation2 + $0x308] sm:$0xff] }
 0x5e4   :  { %v6199_v22 = vsel %vm2704_vm10, %v6135_v50, %v9945_v39  ;;  %v6200_v5 = vsel %vm2704_vm10, %v6136_v20, %v9946_v6  ;;  %v9969_v48 = vpop.permute.xlu0 %9968  ;;  %v9960_v38 = vunpack.i.l.bf16 %v9959_v21  ;;  %v5882_v44 = vsel %vm2379_vm5, %v5818_v51, %v9211_v58  ;;  %v10134_v21 = vld [vmem:[#allocation2 + $0x2f0] sm:$0xff]  ;;  %v10135_v58 = vld [vmem:[#allocation2 + $0x2e8] sm:$0xff] }
 0x5e5   :  { %v6236_v18 = vpack.c.bf16 %v6200_v5, %v6199_v22  ;;  %v9954_v61 = vpop.permute.xlu1 %9953  ;;  %v5881_v34 = vsel %vm2379_vm5, %v5817_v52, %v9210_v36  ;;  %v9971_v11 = vunpack.i.h.bf16 %v9969_v48  ;;  %v9970_v32 = vunpack.i.l.bf16 %v9969_v48  ;;  %v21088_v48 = vld [vmem:[#allocation13_spill] sm:$0xff] }
 0x5e6   :  { %v8896_v15 = vunpack.i.h.bf16 %v21083_v24  ;;  %v8895_v26 = vunpack.i.l.bf16 %v21083_v24  ;;  %v5946_v54 = vsel %vm2444_vm6, %v5882_v44, %v9371_v13  ;;  %v5945_v45 = vsel %vm2444_vm6, %v5881_v34, %v9370_v35  ;;  %v21089_v24 = vld [vmem:[#allocation26_spill] sm:$0xff] }
 0x5e7   :  { %7445 = vmatmul.mubr.msk.bf16.gmra.mrb[52].mxu1 %vm2837_vm11, %v6236_v18  ;;  %v17859_v14 = vsel %vm2249_vm2, %v10132_v29, %v8901_v19  ;;  %v5757_v4 = vsel %vm2249_vm2, %v10133_v10, %v8900_v59  ;;  %v6010_v27 = vsel %vm2509_vm7, %v5946_v54, %v9951_v43  ;;  %v6009_v46 = vsel %vm2509_vm7, %v5945_v45, %v9950_v60 }
 0x5e8   :  { %v9979_v63 = vpop.permute.xlu0 %9978  ;;  %v6073_v31 = vsel %vm2574_vm8, %v6009_v46, %v9960_v38  ;;  %v6074_v9 = vsel %vm2574_vm8, %v6010_v27, %v9961_v49  ;;  %v9056_v2 = vunpack.i.h.bf16 %v21084_v7  ;;  %v9055_v19 = vunpack.i.l.bf16 %v21084_v7 }
 0x5e9   :  { %v9981_v40 = vunpack.i.h.bf16 %v9979_v63  ;;  %v9980_v16 = vunpack.i.l.bf16 %v9979_v63  ;;  %v9964_v62 = vpop.permute.xlu1 %9963  ;;  %v6137_v30 = vsel %vm2639_vm9, %v6073_v31, %v9970_v32  ;;  %v6138_v59 = vsel %vm2639_vm9, %v6074_v9, %v9971_v11 }
 0x5ea   :  { %v9216_v53 = vunpack.i.h.bf16 %v21085_v28  ;;  %v9215_v17 = vunpack.i.l.bf16 %v21085_v28  ;;  %v9060_v25 = vunpack.i.l.bf16 %v21086_v23  ;;  %v9376_v51 = vunpack.i.h.bf16 %v21087_v41  ;;  %v21090_v28 = vld [vmem:[#allocation319_spill] sm:$0xff] }
 0x5eb   :  { %v6201_v1 = vsel %vm2704_vm10, %v6137_v30, %v9980_v16  ;;  %v6202_v3 = vsel %vm2704_vm10, %v6138_v59, %v9981_v40  ;;  %v9375_v12 = vunpack.i.l.bf16 %v21087_v41  ;;  %v5756_v33 = vsel %vm2249_vm2, %v10134_v21, %v8896_v15 }
 0x5ec   :  { %v6237_v0 = vpack.c.bf16 %v6202_v3, %v6201_v1  ;;  %v9989_v47 = vpop.permute.xlu0 %9988  ;;  %v5755_v36 = vsel %vm2249_vm2, %v10135_v58, %v8895_v26  ;;  %v9956_v55 = vunpack.i.h.bf16 %v9954_v61  ;;  %v9955_v42 = vunpack.i.l.bf16 %v9954_v61 }
 0x5ed   :  { %v9974_v37 = vpop.permute.xlu1 %9973  ;;  %v5820_v8 = vsel %vm2314_vm3, %v5756_v33, %v9056_v2  ;;  %v5819_v56 = vsel %vm2314_vm3, %v5755_v36, %v9055_v19  ;;  %v9966_v6 = vunpack.i.h.bf16 %v9964_v62  ;;  %v9965_v39 = vunpack.i.l.bf16 %v9964_v62  ;;  %v21092_v36 = vld [vmem:[#allocation6_spill] sm:$0xff] }
 0x5ee   :  { %7448 = vmatprep.mubr.msk.bf16.mxu1 %vm2837_vm11, %v6237_v0  ;;  %v5883_v57 = vsel %vm2379_vm5, %v5819_v56, %v9215_v17  ;;  %v5884_v13 = vsel %vm2379_vm5, %v5820_v8, %v9216_v53  ;;  %v9976_v35 = vunpack.i.h.bf16 %v9974_v37  ;;  %v9975_v50 = vunpack.i.l.bf16 %v9974_v37  ;;  %v21091_v0 = vld [vmem:[#allocation22_spill] sm:$0xff] }
 0x5ef   :  { %v9061_v20 = vunpack.i.h.bf16 %v21086_v23  ;;  %v5821_v43 = vsel %vm2314_vm3, %v5757_v4, %v9060_v25  ;;  %v5947_v60 = vsel %vm2444_vm6, %v5883_v57, %v9375_v12  ;;  %v5948_v22 = vsel %vm2444_vm6, %v5884_v13, %v9376_v51  ;;  %v21093_v56 = vld [vmem:[#allocation18_spill] sm:$0xff]  ;;  %v10136_v13 = vld [vmem:[#allocation2 + $0x320] sm:$0xff] }
 0x5f0   :  { %v9999_v5 = vpop.permute.xlu0 %9998  ;;  %v9221_v52 = vunpack.i.h.bf16 %v21088_v48  ;;  %v9220_v49 = vunpack.i.l.bf16 %v21088_v48  ;;  %v6011_v38 = vsel %vm2509_vm7, %v5947_v60, %v9955_v42  ;;  %v6012_v18 = vsel %vm2509_vm7, %v5948_v22, %v9956_v55 }
 0x5f1   :  { %v9984_v61 = vpop.permute.xlu1 %9983  ;;  %v6075_v44 = vsel %vm2574_vm8, %v6011_v38, %v9965_v39  ;;  %v6076_v34 = vsel %vm2574_vm8, %v6012_v18, %v9966_v6  ;;  %v9381_v15 = vunpack.i.h.bf16 %v21089_v24  ;;  %v9380_v26 = vunpack.i.l.bf16 %v21089_v24 }
 0x5f2   :  { %v9986_v11 = vunpack.i.h.bf16 %v9984_v61  ;;  %v9985_v32 = vunpack.i.l.bf16 %v9984_v61  ;;  %v6139_v54 = vsel %vm2639_vm9, %v6075_v44, %v9975_v50  ;;  %v6140_v45 = vsel %vm2639_vm9, %v6076_v34, %v9976_v35  ;;  %v10137_v50 = vld [vmem:[#allocation2 + $0x318] sm:$0xff] }
 0x5f3   :  { %v9991_v29 = vunpack.i.h.bf16 %v9989_v47  ;;  %v9990_v10 = vunpack.i.l.bf16 %v9989_v47  ;;  %v5822_v63 = vsel %vm2314_vm3, %v17859_v14, %v9061_v20  ;;  %v10001_v31 = vunpack.i.h.bf16 %v9999_v5 }
 0x5f4   :  { %v6203_v4 = vsel %vm2704_vm10, %v6139_v54, %v9985_v32  ;;  %v6204_v27 = vsel %vm2704_vm10, %v6140_v45, %v9986_v11  ;;  %v10009_v46 = vpop.permute.xlu0 %10008  ;;  %v10000_v9 = vunpack.i.l.bf16 %v9999_v5  ;;  %v5886_v62 = vsel %vm2379_vm5, %v5822_v63, %v9221_v52 }
 0x5f5   :  { %v6238_v40 = vpack.c.bf16 %v6204_v27, %v6203_v4  ;;  %v9994_v16 = vpop.permute.xlu1 %9993  ;;  %v5885_v7 = vsel %vm2379_vm5, %v5821_v43, %v9220_v49  ;;  %v10011_v2 = vunpack.i.h.bf16 %v10009_v46  ;;  %v10010_v19 = vunpack.i.l.bf16 %v10009_v46 }
 0x5f6   :  { %v5950_v30 = vsel %vm2444_vm6, %v5886_v62, %v9381_v15  ;;  %v5949_v59 = vsel %vm2444_vm6, %v5885_v7, %v9380_v26  ;;  %v8906_v53 = vunpack.i.h.bf16 %v21090_v28  ;;  %v8905_v14 = vunpack.i.l.bf16 %v21090_v28 }
 0x5f7   :  { %7449 = vmatmul.mubr.msk.bf16.gmra.mrb[56].mxu1 %vm2837_vm11, %v6238_v40  ;;  %v6013_v17 = vsel %vm2509_vm7, %v5949_v59, %v9990_v10  ;;  %v6014_v1 = vsel %vm2509_vm7, %v5950_v30, %v9991_v29  ;;  %v9066_v47 = vunpack.i.h.bf16 %v21091_v0  ;;  %v9065_v21 = vunpack.i.l.bf16 %v21091_v0  ;;  %v17949_v40 = vld [vmem:[%s18405_s6] ss:$0 sm:$0xff] }
 0x5f8   :  { %v10019_v3 = vpop.permute.xlu0 %10018  ;;  %v6077_v23 = vsel %vm2574_vm8, %v6013_v17, %v10000_v9  ;;  %v6078_v25 = vsel %vm2574_vm8, %v6014_v1, %v10001_v31  ;;  %v9226_v55 = vunpack.i.h.bf16 %v21092_v36  ;;  %v9225_v42 = vunpack.i.l.bf16 %v21092_v36  ;;  %v17944_v31 = vld [vmem:[%s18404_s5] ss:$0 sm:$0xff] }
 0x5f9   :  { %v10021_v41 = vunpack.i.h.bf16 %v10019_v3  ;;  %v10020_v51 = vunpack.i.l.bf16 %v10019_v3  ;;  %v10004_v12 = vpop.permute.xlu1 %10003  ;;  %v6141_v33 = vsel %vm2639_vm9, %v6077_v23, %v10010_v19  ;;  %v6142_v58 = vsel %vm2639_vm9, %v6078_v25, %v10011_v2  ;;  %v21095_v3 = vld [vmem:[#allocation20_spill] sm:$0xff] }
 0x5fa   :  { %v9386_v6 = vunpack.i.h.bf16 %v21093_v56  ;;  %v9385_v39 = vunpack.i.l.bf16 %v21093_v56  ;;  %v5760_v35 = vsel %vm2249_vm2, %v10136_v13, %v8906_v53  ;;  %v5759_v20 = vsel %vm2249_vm2, %v10137_v50, %v8905_v14  ;;  %v21094_v14 = vld [vmem:[#allocation8_spill] sm:$0xff] }
 0x5fb   :  { %v6205_v37 = vsel %vm2704_vm10, %v6141_v33, %v10020_v51  ;;  %v6206_v8 = vsel %vm2704_vm10, %v6142_v58, %v10021_v41  ;;  %v9996_v43 = vunpack.i.h.bf16 %v9994_v16  ;;  %v9995_v60 = vunpack.i.l.bf16 %v9994_v16  ;;  %v21096_v51 = vld [vmem:[#allocation9_spill] sm:$0xff] }
 0x5fc   :  { %v6239_v57 = vpack.c.bf16 %v6206_v8, %v6205_v37  ;;  %v5823_v5 = vsel %vm2314_vm3, %v5759_v20, %v9065_v21  ;;  %v5824_v48 = vsel %vm2314_vm3, %v5760_v35, %v9066_v47  ;;  %v10006_v52 = vunpack.i.h.bf16 %v10004_v12  ;;  %v21097_v47 = vld [vmem:[#allocation21_spill] sm:$0xff]  ;;  %v21098_v35 = vld [vmem:[#allocation28_spill] sm:$0xff] }
 0x5fd   :  { %v10014_v22 = vpop.permute.xlu1 %10013  ;;  %v10005_v49 = vunpack.i.l.bf16 %v10004_v12  ;;  %v5887_v38 = vsel %vm2379_vm5, %v5823_v5, %v9225_v42  ;;  %v5888_v18 = vsel %vm2379_vm5, %v5824_v48, %v9226_v55  ;;  %v21100_v48 = vld [vmem:[#allocation30_spill] sm:$0xff] }
 0x5fe   :  { %7452 = vmatprep.mubr.msk.bf16.mxu1 %vm2837_vm11, %v6239_v57  ;;  %v10016_v61 = vunpack.i.h.bf16 %v10014_v22  ;;  %v10015_v44 = vunpack.i.l.bf16 %v10014_v22  ;;  %v5951_v34 = vsel %vm2444_vm6, %v5887_v38, %v9385_v39  ;;  %v5952_v11 = vsel %vm2444_vm6, %v5888_v18, %v9386_v6  ;;  %v21101_v38 = vld [vmem:[#allocation14_spill] sm:$0xff] }
 0x5ff   :  { %v6015_v32 = vsel %vm2509_vm7, %v5951_v34, %v9995_v60  ;;  %v6016_v24 = vsel %vm2509_vm7, %v5952_v11, %v9996_v43  ;;  %v21099_v43 = vld [vmem:[#allocation12_spill] sm:$0xff] }
 0x600   :  { %v6079_v26 = vsel %vm2574_vm8, %v6015_v32, %v10005_v49  ;;  %v6080_v54 = vsel %vm2574_vm8, %v6016_v24, %v10006_v52 }
 0x601   :  { %v10024_v15 = vpop.permute.xlu1 %10023  ;;  %v6143_v10 = vsel %vm2639_vm9, %v6079_v26, %v10015_v44  ;;  %v6144_v4 = vsel %vm2639_vm9, %v6080_v54, %v10016_v61 }
 0x602   :  { %v10026_v45 = vunpack.i.h.bf16 %v10024_v15  ;;  %v10025_v29 = vunpack.i.l.bf16 %v10024_v15 }
 0x604   :  { %v6207_v27 = vsel %vm2704_vm10, %v6143_v10, %v10025_v29  ;;  %v6208_v46 = vsel %vm2704_vm10, %v6144_v4, %v10026_v45  ;;  %v21102_v4 = vld [vmem:[#allocation39_spill] sm:$0xff] }
 0x605   :  { %v6240_v63 = vpack.c.bf16 %v6208_v46, %v6207_v27 }
 0x607   :  { %7453 = vmatmul.mubr.msk.bf16.gmra.mrb[60].mxu1 %vm2837_vm11, %v6240_v63  ;;  %v21103_v63 = vld [vmem:[#allocation23_spill] sm:$0xff] }
 0x618   :  { %v7394_v9 = vpop.f32.mrb[0].mxu1 }
 0x619   :  { %v6738_v16 = vmul.f32 %v7394_v9, %v17944_v31  ;;  %v6410_v62 = vpop.f32.mrb[1].mxu1 }
 0x61a   :  { %v6736_v7 = vmul.f32 %v17944_v31, %v6410_v62  ;;  %v7395_v2 = vpop.f32.mrb[2].mxu1 }
 0x61b   :  { %v6809_v19 = vadd.f32 %v17949_v40, %v6738_v16  ;;  %v6739_v30 = vmul.f32 %v7395_v2, %v17944_v31  ;;  %v6413_v59 = vpop.f32.mrb[3].mxu1 }
 0x61c   :  { %v6807_v28 = vadd.f32 %v17949_v40, %v6736_v7  ;;  %v6737_v53 = vmul.f32 %v17944_v31, %v6413_v59  ;;  %v21104_v7 = vld [vmem:[#allocation40_spill] sm:$0xff] }
 0x61d   :  { %v6873_v17 = vadd.f32 %v6809_v19, %v21094_v14  ;;  %v6810_v1 = vadd.f32 %v17949_v40, %v6739_v30  ;;  %v21105_v30 = vld [vmem:[#allocation24_spill] sm:$0xff] }
 0x61e   :  { %v6871_v23 = vadd.f32 %v6807_v28, %v21095_v3  ;;  %v6808_v25 = vadd.f32 %v17949_v40, %v6737_v53 }
 0x61f   :  { %v6937_v41 = vmax.f32 %v6873_v17, 0.0  ;;  %v6874_v12 = vadd.f32 %v6810_v1, %v21096_v51 }
 0x620   :  { %v6935_v0 = vmax.f32 %v6871_v23, 0.0  ;;  %v6872_v21 = vadd.f32 %v6808_v25, %v21097_v47  ;;  %v21106_v47 = vld [vmem:[#allocation49_spill] sm:$0xff] }
 0x621   :  { %7001 = vst.msk [vmem:[%s18406_s7 + $0x10] sm:$0xff] %vm2249_vm2, %v6937_v41  ;;  %v6938_v33 = vmax.f32 %v6874_v12, 0.0 }
 0x622   :  { %6999 = vst.msk [vmem:[%s18406_s7] sm:$0xff] %vm2249_vm2, %v6935_v0  ;;  %v6936_v58 = vmax.f32 %v6872_v21, 0.0 }
 0x623   :  { %7002 = vst.msk [vmem:[%s18406_s7 + $0x18] sm:$0xff] %vm2249_vm2, %v6938_v33 }
 0x624   :  { %7000 = vst.msk [vmem:[%s18406_s7 + $0x8] sm:$0xff] %vm2249_vm2, %v6936_v58  ;;  %v7398_v36 = vpop.f32.mrb[4].mxu1  ;;  %v21107_v58 = vld [vmem:[#allocation33_spill] sm:$0xff] }
 0x625   :  { %v6742_v55 = vmul.f32 %v7398_v36, %v17944_v31  ;;  %v6426_v42 = vpop.f32.mrb[5].mxu1 }
 0x626   :  { %v6740_v37 = vmul.f32 %v17944_v31, %v6426_v42  ;;  %v7399_v8 = vpop.f32.mrb[6].mxu1 }
 0x627   :  { %v6813_v56 = vadd.f32 %v17949_v40, %v6742_v55  ;;  %v6743_v6 = vmul.f32 %v7399_v8, %v17944_v31  ;;  %v6429_v39 = vpop.f32.mrb[7].mxu1 }
 0x628   :  { %v6811_v57 = vadd.f32 %v17949_v40, %v6740_v37  ;;  %v6741_v13 = vmul.f32 %v17944_v31, %v6429_v39  ;;  %v21108_v37 = vld [vmem:[#allocation50_spill] sm:$0xff] }
 0x629   :  { %v6877_v50 = vadd.f32 %v6813_v56, %v21098_v35  ;;  %v6814_v20 = vadd.f32 %v17949_v40, %v6743_v6  ;;  %v21109_v6 = vld [vmem:[#allocation36_spill] sm:$0xff] }
 0x62a   :  { %v6875_v60 = vadd.f32 %v6811_v57, %v21099_v43  ;;  %v6812_v22 = vadd.f32 %v17949_v40, %v6741_v13 }
 0x62b   :  { %v6941_v5 = vmax.f32 %v6877_v50, 0.0  ;;  %v6878_v52 = vadd.f32 %v6814_v20, %v21100_v48 }
 0x62c   :  { %v6939_v49 = vmax.f32 %v6875_v60, 0.0  ;;  %v6876_v18 = vadd.f32 %v6812_v22, %v21101_v38  ;;  %v21110_v38 = vld [vmem:[#allocation59_spill] sm:$0xff] }
 0x62d   :  { %7005 = vst.msk [vmem:[%s18406_s7 + $0x30] sm:$0xff] %vm2249_vm2, %v6941_v5  ;;  %v6942_v61 = vmax.f32 %v6878_v52, 0.0 }
 0x62e   :  { %7003 = vst.msk [vmem:[%s18406_s7 + $0x20] sm:$0xff] %vm2249_vm2, %v6939_v49  ;;  %v6940_v44 = vmax.f32 %v6876_v18, 0.0 }
 0x62f   :  { %7006 = vst.msk [vmem:[%s18406_s7 + $0x38] sm:$0xff] %vm2249_vm2, %v6942_v61 }
 0x630   :  { %7004 = vst.msk [vmem:[%s18406_s7 + $0x28] sm:$0xff] %vm2249_vm2, %v6940_v44  ;;  %v7402_v34 = vpop.f32.mrb[8].mxu1  ;;  %v21111_v44 = vld [vmem:[#allocation43_spill] sm:$0xff] }
 0x631   :  { %v6746_v11 = vmul.f32 %v7402_v34, %v17944_v31  ;;  %v6442_v32 = vpop.f32.mrb[9].mxu1 }
 0x632   :  { %v6744_v24 = vmul.f32 %v17944_v31, %v6442_v32  ;;  %v7403_v15 = vpop.f32.mrb[10].mxu1 }
 0x633   :  { %v6817_v26 = vadd.f32 %v17949_v40, %v6746_v11  ;;  %v6747_v54 = vmul.f32 %v7403_v15, %v17944_v31  ;;  %v6445_v45 = vpop.f32.mrb[11].mxu1 }
 0x634   :  { %v6815_v29 = vadd.f32 %v17949_v40, %v6744_v24  ;;  %v6745_v10 = vmul.f32 %v17944_v31, %v6445_v45  ;;  %v21112_v24 = vld [vmem:[#allocation60_spill] sm:$0xff] }
 0x635   :  { %v6881_v27 = vadd.f32 %v6817_v26, %v21102_v4  ;;  %v6818_v46 = vadd.f32 %v17949_v40, %v6747_v54  ;;  %v21113_v54 = vld [vmem:[#allocation45_spill] sm:$0xff] }
 0x636   :  { %v6879_v9 = vadd.f32 %v6815_v29, %v21103_v63  ;;  %v6816_v16 = vadd.f32 %v17949_v40, %v6745_v10 }
 0x637   :  { %v6945_v62 = vmax.f32 %v6881_v27, 0.0  ;;  %v6882_v2 = vadd.f32 %v6818_v46, %v21104_v7 }
 0x638   :  { %v6943_v19 = vmax.f32 %v6879_v9, 0.0  ;;  %v6880_v59 = vadd.f32 %v6816_v16, %v21105_v30  ;;  %v21114_v30 = vld [vmem:[#allocation71_spill] sm:$0xff] }
 0x639   :  { %7009 = vst.msk [vmem:[%s18406_s7 + $0x50] sm:$0xff] %vm2249_vm2, %v6945_v62  ;;  %v6946_v28 = vmax.f32 %v6882_v2, 0.0 }
 0x63a   :  { %7007 = vst.msk [vmem:[%s18406_s7 + $0x40] sm:$0xff] %vm2249_vm2, %v6943_v19  ;;  %v6944_v53 = vmax.f32 %v6880_v59, 0.0 }
 0x63b   :  { %7010 = vst.msk [vmem:[%s18406_s7 + $0x58] sm:$0xff] %vm2249_vm2, %v6946_v28 }
 0x63c   :  { %7008 = vst.msk [vmem:[%s18406_s7 + $0x48] sm:$0xff] %vm2249_vm2, %v6944_v53  ;;  %v21115_v53 = vld [vmem:[#allocation53_spill] sm:$0xff] }
 0x63d   :  { %v7406_v14 = vpop.f32.mrb[12].mxu1 }
 0x63e   :  { %v6750_v17 = vmul.f32 %v7406_v14, %v17944_v31  ;;  %v6458_v1 = vpop.f32.mrb[13].mxu1 }
 0x63f   :  { %v6748_v3 = vmul.f32 %v17944_v31, %v6458_v1  ;;  %v7407_v23 = vpop.f32.mrb[14].mxu1 }
 0x640   :  { %v6821_v25 = vadd.f32 %v17949_v40, %v6750_v17  ;;  %v6751_v41 = vmul.f32 %v7407_v23, %v17944_v31  ;;  %v6461_v51 = vpop.f32.mrb[15].mxu1 }
 0x641   :  { %v6819_v12 = vadd.f32 %v17949_v40, %v6748_v3  ;;  %v6749_v0 = vmul.f32 %v17944_v31, %v6461_v51  ;;  %v21116_v3 = vld [vmem:[#allocation72_spill] sm:$0xff] }
 0x642   :  { %v6885_v21 = vadd.f32 %v6821_v25, %v21106_v47  ;;  %v6822_v33 = vadd.f32 %v17949_v40, %v6751_v41  ;;  %v21117_v41 = vld [vmem:[#allocation56_spill] sm:$0xff] }
 0x643   :  { %v6883_v36 = vadd.f32 %v6819_v12, %v21107_v58  ;;  %v6820_v55 = vadd.f32 %v17949_v40, %v6749_v0 }
 0x644   :  { %v6949_v42 = vmax.f32 %v6885_v21, 0.0  ;;  %v6886_v8 = vadd.f32 %v6822_v33, %v21108_v37 }
 0x645   :  { %v6947_v56 = vmax.f32 %v6883_v36, 0.0  ;;  %v6884_v39 = vadd.f32 %v6820_v55, %v21109_v6  ;;  %v21118_v6 = vld [vmem:[#allocation83_spill] sm:$0xff] }
 0x646   :  { %7013 = vst.msk [vmem:[%s18406_s7 + $0x70] sm:$0xff] %vm2249_vm2, %v6949_v42  ;;  %v6950_v57 = vmax.f32 %v6886_v8, 0.0 }
 0x647   :  { %7011 = vst.msk [vmem:[%s18406_s7 + $0x60] sm:$0xff] %vm2249_vm2, %v6947_v56  ;;  %v6948_v13 = vmax.f32 %v6884_v39, 0.0 }
 0x648   :  { %7014 = vst.msk [vmem:[%s18406_s7 + $0x78] sm:$0xff] %vm2249_vm2, %v6950_v57 }
 0x649   :  { %7012 = vst.msk [vmem:[%s18406_s7 + $0x68] sm:$0xff] %vm2249_vm2, %v6948_v13  ;;  %v7410_v35 = vpop.f32.mrb[16].mxu1  ;;  %v21119_v13 = vld [vmem:[#allocation64_spill] sm:$0xff] }
 0x64a   :  { %v6754_v50 = vmul.f32 %v7410_v35, %v17944_v31  ;;  %v6474_v20 = vpop.f32.mrb[17].mxu1 }
 0x64b   :  { %v6752_v43 = vmul.f32 %v17944_v31, %v6474_v20  ;;  %v7411_v60 = vpop.f32.mrb[18].mxu1 }
 0x64c   :  { %v6825_v22 = vadd.f32 %v17949_v40, %v6754_v50  ;;  %v6755_v5 = vmul.f32 %v7411_v60, %v17944_v31  ;;  %v6477_v48 = vpop.f32.mrb[19].mxu1 }
 0x64d   :  { %v6823_v52 = vadd.f32 %v17949_v40, %v6752_v43  ;;  %v6753_v49 = vmul.f32 %v17944_v31, %v6477_v48  ;;  %v21120_v43 = vld [vmem:[#allocation84_spill] sm:$0xff] }
 0x64e   :  { %v6889_v18 = vadd.f32 %v6825_v22, %v21110_v38  ;;  %v6826_v61 = vadd.f32 %v17949_v40, %v6755_v5  ;;  %v21121_v5 = vld [vmem:[#allocation66_spill] sm:$0xff] }
 0x64f   :  { %v6887_v34 = vadd.f32 %v6823_v52, %v21111_v44  ;;  %v6824_v11 = vadd.f32 %v17949_v40, %v6753_v49 }
 0x650   :  { %v6953_v32 = vmax.f32 %v6889_v18, 0.0  ;;  %v6890_v15 = vadd.f32 %v6826_v61, %v21112_v24 }
 0x651   :  { %v6951_v26 = vmax.f32 %v6887_v34, 0.0  ;;  %v6888_v45 = vadd.f32 %v6824_v11, %v21113_v54  ;;  %v21122_v54 = vld [vmem:[#allocation227_spill] sm:$0xff] }
 0x652   :  { %7017 = vst.msk [vmem:[%s18406_s7 + $0x90] sm:$0xff] %vm2249_vm2, %v6953_v32  ;;  %v6954_v29 = vmax.f32 %v6890_v15, 0.0 }
 0x653   :  { %7015 = vst.msk [vmem:[%s18406_s7 + $0x80] sm:$0xff] %vm2249_vm2, %v6951_v26  ;;  %v6952_v10 = vmax.f32 %v6888_v45, 0.0 }
 0x654   :  { %7018 = vst.msk [vmem:[%s18406_s7 + $0x98] sm:$0xff] %vm2249_vm2, %v6954_v29 }
 0x655   :  { %7016 = vst.msk [vmem:[%s18406_s7 + $0x88] sm:$0xff] %vm2249_vm2, %v6952_v10  ;;  %v7414_v4 = vpop.f32.mrb[20].mxu1  ;;  %v21123_v10 = vld [vmem:[#allocation76_spill] sm:$0xff] }
 0x656   :  { %v6758_v27 = vmul.f32 %v7414_v4, %v17944_v31  ;;  %v6490_v46 = vpop.f32.mrb[21].mxu1 }
 0x657   :  { %v6756_v63 = vmul.f32 %v17944_v31, %v6490_v46  ;;  %v7415_v9 = vpop.f32.mrb[22].mxu1 }
 0x658   :  { %v6829_v16 = vadd.f32 %v17949_v40, %v6758_v27  ;;  %v6759_v62 = vmul.f32 %v7415_v9, %v17944_v31  ;;  %v6493_v7 = vpop.f32.mrb[23].mxu1 }
 0x659   :  { %v6827_v2 = vadd.f32 %v17949_v40, %v6756_v63  ;;  %v6757_v19 = vmul.f32 %v17944_v31, %v6493_v7  ;;  %v21124_v63 = vld [vmem:[#allocation228_spill] sm:$0xff] }
 0x65a   :  { %v6893_v59 = vadd.f32 %v6829_v16, %v21114_v30  ;;  %v6830_v28 = vadd.f32 %v17949_v40, %v6759_v62  ;;  %v21125_v62 = vld [vmem:[#allocation80_spill] sm:$0xff] }
 0x65b   :  { %v6891_v14 = vadd.f32 %v6827_v2, %v21115_v53  ;;  %v6828_v17 = vadd.f32 %v17949_v40, %v6757_v19 }
 0x65c   :  { %v6957_v1 = vmax.f32 %v6893_v59, 0.0  ;;  %v6894_v23 = vadd.f32 %v6830_v28, %v21116_v3 }
 0x65d   :  { %v6955_v25 = vmax.f32 %v6891_v14, 0.0  ;;  %v6892_v51 = vadd.f32 %v6828_v17, %v21117_v41  ;;  %v21126_v41 = vld [vmem:[#allocation104_spill] sm:$0xff] }
 0x65e   :  { %7021 = vst.msk [vmem:[%s18406_s7 + $0xb0] sm:$0xff] %vm2249_vm2, %v6957_v1  ;;  %v6958_v12 = vmax.f32 %v6894_v23, 0.0 }
 0x65f   :  { %7019 = vst.msk [vmem:[%s18406_s7 + $0xa0] sm:$0xff] %vm2249_vm2, %v6955_v25  ;;  %v6956_v0 = vmax.f32 %v6892_v51, 0.0 }
 0x660   :  { %7022 = vst.msk [vmem:[%s18406_s7 + $0xb8] sm:$0xff] %vm2249_vm2, %v6958_v12 }
 0x661   :  { %7020 = vst.msk [vmem:[%s18406_s7 + $0xa8] sm:$0xff] %vm2249_vm2, %v6956_v0  ;;  %v7418_v47 = vpop.f32.mrb[24].mxu1  ;;  %v21127_v0 = vld [vmem:[#allocation88_spill] sm:$0xff] }
 0x662   :  { %v6762_v21 = vmul.f32 %v7418_v47, %v17944_v31  ;;  %v6506_v33 = vpop.f32.mrb[25].mxu1 }
 0x663   :  { %v6760_v58 = vmul.f32 %v17944_v31, %v6506_v33  ;;  %v7419_v36 = vpop.f32.mrb[26].mxu1 }
 0x664   :  { %v6833_v55 = vadd.f32 %v17949_v40, %v6762_v21  ;;  %v6763_v42 = vmul.f32 %v7419_v36, %v17944_v31  ;;  %v6509_v37 = vpop.f32.mrb[27].mxu1 }
 0x665   :  { %v6831_v8 = vadd.f32 %v17949_v40, %v6760_v58  ;;  %v6761_v56 = vmul.f32 %v17944_v31, %v6509_v37  ;;  %v21128_v58 = vld [vmem:[#allocation105_spill] sm:$0xff] }
 0x666   :  { %v6897_v39 = vadd.f32 %v6833_v55, %v21118_v6  ;;  %v6834_v57 = vadd.f32 %v17949_v40, %v6763_v42  ;;  %v21129_v42 = vld [vmem:[#allocation90_spill] sm:$0xff] }
 0x667   :  { %v6895_v35 = vadd.f32 %v6831_v8, %v21119_v13  ;;  %v6832_v50 = vadd.f32 %v17949_v40, %v6761_v56 }
 0x668   :  { %v6961_v20 = vmax.f32 %v6897_v39, 0.0  ;;  %v6898_v60 = vadd.f32 %v6834_v57, %v21120_v43 }
 0x669   :  { %v6959_v22 = vmax.f32 %v6895_v35, 0.0  ;;  %v6896_v48 = vadd.f32 %v6832_v50, %v21121_v5  ;;  %v21130_v5 = vld [vmem:[#allocation116_spill] sm:$0xff] }
 0x66a   :  { %7025 = vst.msk [vmem:[%s18406_s7 + $0xd0] sm:$0xff] %vm2249_vm2, %v6961_v20  ;;  %v6962_v52 = vmax.f32 %v6898_v60, 0.0 }
 0x66b   :  { %7023 = vst.msk [vmem:[%s18406_s7 + $0xc0] sm:$0xff] %vm2249_vm2, %v6959_v22  ;;  %v6960_v49 = vmax.f32 %v6896_v48, 0.0 }
 0x66c   :  { %7026 = vst.msk [vmem:[%s18406_s7 + $0xd8] sm:$0xff] %vm2249_vm2, %v6962_v52 }
 0x66d   :  { %7024 = vst.msk [vmem:[%s18406_s7 + $0xc8] sm:$0xff] %vm2249_vm2, %v6960_v49  ;;  %v7422_v38 = vpop.f32.mrb[28].mxu1  ;;  %v21131_v49 = vld [vmem:[#allocation97_spill] sm:$0xff] }
 0x66e   :  { %v6766_v18 = vmul.f32 %v7422_v38, %v17944_v31  ;;  %v6522_v61 = vpop.f32.mrb[29].mxu1 }
 0x66f   :  { %v6764_v44 = vmul.f32 %v17944_v31, %v6522_v61  ;;  %v7423_v34 = vpop.f32.mrb[30].mxu1 }
 0x670   :  { %v6837_v11 = vadd.f32 %v17949_v40, %v6766_v18  ;;  %v6767_v32 = vmul.f32 %v7423_v34, %v17944_v31  ;;  %v6525_v24 = vpop.f32.mrb[31].mxu1 }
 0x671   :  { %v6835_v15 = vadd.f32 %v17949_v40, %v6764_v44  ;;  %v6765_v26 = vmul.f32 %v17944_v31, %v6525_v24  ;;  %v21132_v44 = vld [vmem:[#allocation117_spill] sm:$0xff] }
 0x672   :  { %v6901_v45 = vadd.f32 %v6837_v11, %v21122_v54  ;;  %v6838_v29 = vadd.f32 %v17949_v40, %v6767_v32  ;;  %v21133_v32 = vld [vmem:[#allocation101_spill] sm:$0xff] }
 0x673   :  { %v6899_v4 = vadd.f32 %v6835_v15, %v21123_v10  ;;  %v6836_v27 = vadd.f32 %v17949_v40, %v6765_v26 }
 0x674   :  { %v6965_v46 = vmax.f32 %v6901_v45, 0.0  ;;  %v6902_v9 = vadd.f32 %v6838_v29, %v21124_v63 }
 0x675   :  { %v6963_v16 = vmax.f32 %v6899_v4, 0.0  ;;  %v6900_v7 = vadd.f32 %v6836_v27, %v21125_v62  ;;  %v21134_v62 = vld [vmem:[#allocation128_spill] sm:$0xff] }
 0x676   :  { %7029 = vst.msk [vmem:[%s18406_s7 + $0xf0] sm:$0xff] %vm2249_vm2, %v6965_v46  ;;  %v6966_v2 = vmax.f32 %v6902_v9, 0.0 }
 0x677   :  { %7027 = vst.msk [vmem:[%s18406_s7 + $0xe0] sm:$0xff] %vm2249_vm2, %v6963_v16  ;;  %v6964_v19 = vmax.f32 %v6900_v7, 0.0 }
 0x678   :  { %7030 = vst.msk [vmem:[%s18406_s7 + $0xf8] sm:$0xff] %vm2249_vm2, %v6966_v2 }
 0x679   :  { %7028 = vst.msk [vmem:[%s18406_s7 + $0xe8] sm:$0xff] %vm2249_vm2, %v6964_v19  ;;  %v7426_v30 = vpop.f32.mrb[32].mxu1  ;;  %v21135_v19 = vld [vmem:[#allocation109_spill] sm:$0xff] }
 0x67a   :  { %v6770_v59 = vmul.f32 %v7426_v30, %v17944_v31  ;;  %v6538_v28 = vpop.f32.mrb[33].mxu1 }
 0x67b   :  { %v6768_v53 = vmul.f32 %v17944_v31, %v6538_v28  ;;  %v7427_v14 = vpop.f32.mrb[34].mxu1 }
 0x67c   :  { %v6841_v17 = vadd.f32 %v17949_v40, %v6770_v59  ;;  %v6771_v1 = vmul.f32 %v7427_v14, %v17944_v31  ;;  %v6541_v3 = vpop.f32.mrb[35].mxu1 }
 0x67d   :  { %v6839_v23 = vadd.f32 %v17949_v40, %v6768_v53  ;;  %v6769_v25 = vmul.f32 %v17944_v31, %v6541_v3  ;;  %v21136_v53 = vld [vmem:[#allocation129_spill] sm:$0xff] }
 0x67e   :  { %v6905_v51 = vadd.f32 %v6841_v17, %v21126_v41  ;;  %v6842_v12 = vadd.f32 %v17949_v40, %v6771_v1  ;;  %v21137_v1 = vld [vmem:[#allocation111_spill] sm:$0xff] }
 0x67f   :  { %v6903_v47 = vadd.f32 %v6839_v23, %v21127_v0  ;;  %v6840_v21 = vadd.f32 %v17949_v40, %v6769_v25 }
 0x680   :  { %v6969_v33 = vmax.f32 %v6905_v51, 0.0  ;;  %v6906_v36 = vadd.f32 %v6842_v12, %v21128_v58 }
 0x681   :  { %v6967_v55 = vmax.f32 %v6903_v47, 0.0  ;;  %v6904_v37 = vadd.f32 %v6840_v21, %v21129_v42  ;;  %v21138_v42 = vld [vmem:[#allocation140_spill] sm:$0xff] }
 0x682   :  { %7033 = vst.msk [vmem:[%s18406_s7 + $0x110] sm:$0xff] %vm2249_vm2, %v6969_v33  ;;  %v6970_v8 = vmax.f32 %v6906_v36, 0.0 }
 0x683   :  { %7031 = vst.msk [vmem:[%s18406_s7 + $0x100] sm:$0xff] %vm2249_vm2, %v6967_v55  ;;  %v6968_v56 = vmax.f32 %v6904_v37, 0.0 }
 0x684   :  { %7034 = vst.msk [vmem:[%s18406_s7 + $0x118] sm:$0xff] %vm2249_vm2, %v6970_v8 }
 0x685   :  { %7032 = vst.msk [vmem:[%s18406_s7 + $0x108] sm:$0xff] %vm2249_vm2, %v6968_v56  ;;  %v7430_v6 = vpop.f32.mrb[36].mxu1  ;;  %v21139_v56 = vld [vmem:[#allocation121_spill] sm:$0xff] }
 0x686   :  { %v6774_v39 = vmul.f32 %v7430_v6, %v17944_v31  ;;  %v6554_v57 = vpop.f32.mrb[37].mxu1 }
 0x687   :  { %v6772_v13 = vmul.f32 %v17944_v31, %v6554_v57  ;;  %v7431_v35 = vpop.f32.mrb[38].mxu1 }
 0x688   :  { %v6845_v50 = vadd.f32 %v17949_v40, %v6774_v39  ;;  %v6775_v20 = vmul.f32 %v7431_v35, %v17944_v31  ;;  %v6557_v43 = vpop.f32.mrb[39].mxu1 }
 0x689   :  { %v6843_v60 = vadd.f32 %v17949_v40, %v6772_v13  ;;  %v6773_v22 = vmul.f32 %v17944_v31, %v6557_v43  ;;  %v21140_v13 = vld [vmem:[#allocation141_spill] sm:$0xff] }
 0x68a   :  { %v6909_v48 = vadd.f32 %v6845_v50, %v21130_v5  ;;  %v6846_v52 = vadd.f32 %v17949_v40, %v6775_v20  ;;  %v21141_v20 = vld [vmem:[#allocation125_spill] sm:$0xff] }
 0x68b   :  { %v6907_v38 = vadd.f32 %v6843_v60, %v21131_v49  ;;  %v6844_v18 = vadd.f32 %v17949_v40, %v6773_v22 }
 0x68c   :  { %v6973_v61 = vmax.f32 %v6909_v48, 0.0  ;;  %v6910_v34 = vadd.f32 %v6846_v52, %v21132_v44 }
 0x68d   :  { %v6971_v11 = vmax.f32 %v6907_v38, 0.0  ;;  %v6908_v24 = vadd.f32 %v6844_v18, %v21133_v32  ;;  %v21142_v32 = vld [vmem:[#allocation152_spill] sm:$0xff] }
 0x68e   :  { %7037 = vst.msk [vmem:[%s18406_s7 + $0x130] sm:$0xff] %vm2249_vm2, %v6973_v61  ;;  %v6974_v15 = vmax.f32 %v6910_v34, 0.0 }
 0x68f   :  { %7035 = vst.msk [vmem:[%s18406_s7 + $0x120] sm:$0xff] %vm2249_vm2, %v6971_v11  ;;  %v6972_v26 = vmax.f32 %v6908_v24, 0.0 }
 0x690   :  { %7038 = vst.msk [vmem:[%s18406_s7 + $0x138] sm:$0xff] %vm2249_vm2, %v6974_v15 }
 0x691   :  { %7036 = vst.msk [vmem:[%s18406_s7 + $0x128] sm:$0xff] %vm2249_vm2, %v6972_v26  ;;  %v7434_v54 = vpop.f32.mrb[40].mxu1  ;;  %v21143_v26 = vld [vmem:[#allocation133_spill] sm:$0xff] }
 0x692   :  { %v6778_v45 = vmul.f32 %v7434_v54, %v17944_v31  ;;  %v6570_v29 = vpop.f32.mrb[41].mxu1 }
 0x693   :  { %v6776_v10 = vmul.f32 %v17944_v31, %v6570_v29  ;;  %v7435_v4 = vpop.f32.mrb[42].mxu1 }
 0x694   :  { %v6849_v27 = vadd.f32 %v17949_v40, %v6778_v45  ;;  %v6779_v46 = vmul.f32 %v7435_v4, %v17944_v31  ;;  %v6573_v63 = vpop.f32.mrb[43].mxu1 }
 0x695   :  { %v6847_v9 = vadd.f32 %v17949_v40, %v6776_v10  ;;  %v6777_v16 = vmul.f32 %v17944_v31, %v6573_v63  ;;  %v21144_v10 = vld [vmem:[#allocation153_spill] sm:$0xff] }
 0x696   :  { %v6913_v7 = vadd.f32 %v6849_v27, %v21134_v62  ;;  %v6850_v2 = vadd.f32 %v17949_v40, %v6779_v46  ;;  %v21145_v46 = vld [vmem:[#allocation135_spill] sm:$0xff] }
 0x697   :  { %v6911_v30 = vadd.f32 %v6847_v9, %v21135_v19  ;;  %v6848_v59 = vadd.f32 %v17949_v40, %v6777_v16 }
 0x698   :  { %v6977_v28 = vmax.f32 %v6913_v7, 0.0  ;;  %v6914_v14 = vadd.f32 %v6850_v2, %v21136_v53 }
 0x699   :  { %v6975_v17 = vmax.f32 %v6911_v30, 0.0  ;;  %v6912_v3 = vadd.f32 %v6848_v59, %v21137_v1  ;;  %v21146_v1 = vld [vmem:[#allocation162_spill] sm:$0xff] }
 0x69a   :  { %7041 = vst.msk [vmem:[%s18406_s7 + $0x150] sm:$0xff] %vm2249_vm2, %v6977_v28  ;;  %v6978_v23 = vmax.f32 %v6914_v14, 0.0 }
 0x69b   :  { %7039 = vst.msk [vmem:[%s18406_s7 + $0x140] sm:$0xff] %vm2249_vm2, %v6975_v17  ;;  %v6976_v25 = vmax.f32 %v6912_v3, 0.0 }
 0x69c   :  { %7042 = vst.msk [vmem:[%s18406_s7 + $0x158] sm:$0xff] %vm2249_vm2, %v6978_v23 }
 0x69d   :  { %7040 = vst.msk [vmem:[%s18406_s7 + $0x148] sm:$0xff] %vm2249_vm2, %v6976_v25  ;;  %v21147_v25 = vld [vmem:[#allocation145_spill] sm:$0xff] }
 0x69e   :  { %v7438_v41 = vpop.f32.mrb[44].mxu1 }
 0x69f   :  { %v6782_v51 = vmul.f32 %v7438_v41, %v17944_v31  ;;  %v6586_v12 = vpop.f32.mrb[45].mxu1 }
 0x6a0   :  { %v6780_v0 = vmul.f32 %v17944_v31, %v6586_v12  ;;  %v7439_v47 = vpop.f32.mrb[46].mxu1 }
 0x6a1   :  { %v6853_v21 = vadd.f32 %v17949_v40, %v6782_v51  ;;  %v6783_v33 = vmul.f32 %v7439_v47, %v17944_v31  ;;  %v6589_v58 = vpop.f32.mrb[47].mxu1 }
 0x6a2   :  { %v6851_v36 = vadd.f32 %v17949_v40, %v6780_v0  ;;  %v6781_v55 = vmul.f32 %v17944_v31, %v6589_v58  ;;  %v21148_v0 = vld [vmem:[#allocation163_spill] sm:$0xff] }
 0x6a3   :  { %v6917_v37 = vadd.f32 %v6853_v21, %v21138_v42  ;;  %v6854_v8 = vadd.f32 %v17949_v40, %v6783_v33  ;;  %v21149_v33 = vld [vmem:[#allocation149_spill] sm:$0xff] }
 0x6a4   :  { %v6915_v6 = vadd.f32 %v6851_v36, %v21139_v56  ;;  %v6852_v39 = vadd.f32 %v17949_v40, %v6781_v55 }
 0x6a5   :  { %v6981_v57 = vmax.f32 %v6917_v37, 0.0  ;;  %v6918_v35 = vadd.f32 %v6854_v8, %v21140_v13 }
 0x6a6   :  { %v6979_v50 = vmax.f32 %v6915_v6, 0.0  ;;  %v6916_v43 = vadd.f32 %v6852_v39, %v21141_v20  ;;  %v21150_v20 = vld [vmem:[#allocation169_spill] sm:$0xff] }
 0x6a7   :  { %7045 = vst.msk [vmem:[%s18406_s7 + $0x170] sm:$0xff] %vm2249_vm2, %v6981_v57  ;;  %v6982_v60 = vmax.f32 %v6918_v35, 0.0 }
 0x6a8   :  { %7043 = vst.msk [vmem:[%s18406_s7 + $0x160] sm:$0xff] %vm2249_vm2, %v6979_v50  ;;  %v6980_v22 = vmax.f32 %v6916_v43, 0.0 }
 0x6a9   :  { %7046 = vst.msk [vmem:[%s18406_s7 + $0x178] sm:$0xff] %vm2249_vm2, %v6982_v60 }
 0x6aa   :  { %7044 = vst.msk [vmem:[%s18406_s7 + $0x168] sm:$0xff] %vm2249_vm2, %v6980_v22  ;;  %v7442_v5 = vpop.f32.mrb[48].mxu1  ;;  %v21151_v22 = vld [vmem:[#allocation156_spill] sm:$0xff] }
 0x6ab   :  { %v6786_v48 = vmul.f32 %v7442_v5, %v17944_v31  ;;  %v6602_v52 = vpop.f32.mrb[49].mxu1 }
 0x6ac   :  { %v6784_v49 = vmul.f32 %v17944_v31, %v6602_v52  ;;  %v7443_v38 = vpop.f32.mrb[50].mxu1 }
 0x6ad   :  { %v6857_v18 = vadd.f32 %v17949_v40, %v6786_v48  ;;  %v6787_v61 = vmul.f32 %v7443_v38, %v17944_v31  ;;  %v6605_v44 = vpop.f32.mrb[51].mxu1 }
 0x6ae   :  { %v6855_v34 = vadd.f32 %v17949_v40, %v6784_v49  ;;  %v6785_v11 = vmul.f32 %v17944_v31, %v6605_v44  ;;  %v21152_v49 = vld [vmem:[#allocation170_spill] sm:$0xff] }
 0x6af   :  { %v6921_v24 = vadd.f32 %v6857_v18, %v21142_v32  ;;  %v6858_v15 = vadd.f32 %v17949_v40, %v6787_v61  ;;  %v21153_v61 = vld [vmem:[#allocation158_spill] sm:$0xff] }
 0x6b0   :  { %v6919_v54 = vadd.f32 %v6855_v34, %v21143_v26  ;;  %v6856_v45 = vadd.f32 %v17949_v40, %v6785_v11 }
 0x6b1   :  { %v6985_v29 = vmax.f32 %v6921_v24, 0.0  ;;  %v6922_v4 = vadd.f32 %v6858_v15, %v21144_v10 }
 0x6b2   :  { %v6983_v27 = vmax.f32 %v6919_v54, 0.0  ;;  %v6920_v63 = vadd.f32 %v6856_v45, %v21145_v46  ;;  %v21154_v46 = vld [vmem:[#allocation244_spill] sm:$0xff] }
 0x6b3   :  { %7049 = vst.msk [vmem:[%s18406_s7 + $0x190] sm:$0xff] %vm2249_vm2, %v6985_v29  ;;  %v6986_v9 = vmax.f32 %v6922_v4, 0.0 }
 0x6b4   :  { %7047 = vst.msk [vmem:[%s18406_s7 + $0x180] sm:$0xff] %vm2249_vm2, %v6983_v27  ;;  %v6984_v16 = vmax.f32 %v6920_v63, 0.0 }
 0x6b5   :  { %7050 = vst.msk [vmem:[%s18406_s7 + $0x198] sm:$0xff] %vm2249_vm2, %v6986_v9 }
 0x6b6   :  { %7048 = vst.msk [vmem:[%s18406_s7 + $0x188] sm:$0xff] %vm2249_vm2, %v6984_v16  ;;  %v21155_v16 = vld [vmem:[#allocation166_spill] sm:$0xff] }
 0x6ba   :  { %v7446_v62 = vpop.f32.mrb[52].mxu1 }
 0x6bb   :  { %v6790_v7 = vmul.f32 %v7446_v62, %v17944_v31  ;;  %v6618_v2 = vpop.f32.mrb[53].mxu1 }
 0x6bc   :  { %v6788_v19 = vmul.f32 %v17944_v31, %v6618_v2  ;;  %v7447_v30 = vpop.f32.mrb[54].mxu1 }
 0x6bd   :  { %v6861_v59 = vadd.f32 %v17949_v40, %v6790_v7  ;;  %v6791_v28 = vmul.f32 %v7447_v30, %v17944_v31  ;;  %v6621_v53 = vpop.f32.mrb[55].mxu1 }
 0x6be   :  { %v6859_v14 = vadd.f32 %v17949_v40, %v6788_v19  ;;  %v6789_v17 = vmul.f32 %v17944_v31, %v6621_v53  ;;  %v21156_v19 = vld [vmem:[#allocation245_spill] sm:$0xff] }
 0x6bf   :  { %v6925_v3 = vadd.f32 %v6861_v59, %v21146_v1  ;;  %v6862_v23 = vadd.f32 %v17949_v40, %v6791_v28  ;;  %v21157_v28 = vld [vmem:[#allocation167_spill] sm:$0xff] }
 0x6c0   :  { %v6923_v41 = vadd.f32 %v6859_v14, %v21147_v25  ;;  %v6860_v51 = vadd.f32 %v17949_v40, %v6789_v17 }
 0x6c1   :  { %v6989_v12 = vmax.f32 %v6925_v3, 0.0  ;;  %v6926_v47 = vadd.f32 %v6862_v23, %v21148_v0 }
 0x6c2   :  { %v6987_v21 = vmax.f32 %v6923_v41, 0.0  ;;  %v6924_v58 = vadd.f32 %v6860_v51, %v21149_v33 }
 0x6c3   :  { %7053 = vst.msk [vmem:[%s18406_s7 + $0x1b0] sm:$0xff] %vm2249_vm2, %v6989_v12  ;;  %v6990_v36 = vmax.f32 %v6926_v47, 0.0 }
 0x6c4   :  { %7051 = vst.msk [vmem:[%s18406_s7 + $0x1a0] sm:$0xff] %vm2249_vm2, %v6987_v21  ;;  %v6988_v55 = vmax.f32 %v6924_v58, 0.0 }
 0x6c5   :  { %7054 = vst.msk [vmem:[%s18406_s7 + $0x1b8] sm:$0xff] %vm2249_vm2, %v6990_v36 }
 0x6c6   :  { %7052 = vst.msk [vmem:[%s18406_s7 + $0x1a8] sm:$0xff] %vm2249_vm2, %v6988_v55 }
 0x6ca   :  { %v7450_v42 = vpop.f32.mrb[56].mxu1 }
 0x6cb   :  { %v6794_v37 = vmul.f32 %v7450_v42, %v17944_v31  ;;  %v6634_v8 = vpop.f32.mrb[57].mxu1 }
 0x6cc   :  { %v6792_v56 = vmul.f32 %v17944_v31, %v6634_v8  ;;  %v7451_v6 = vpop.f32.mrb[58].mxu1 }
 0x6cd   :  { %v6865_v39 = vadd.f32 %v17949_v40, %v6794_v37  ;;  %v6795_v57 = vmul.f32 %v7451_v6, %v17944_v31  ;;  %v6637_v13 = vpop.f32.mrb[59].mxu1 }
 0x6ce   :  { %v6863_v35 = vadd.f32 %v17949_v40, %v6792_v56  ;;  %v6793_v50 = vmul.f32 %v17944_v31, %v6637_v13 }
 0x6cf   :  { %v6929_v43 = vadd.f32 %v6865_v39, %v21150_v20  ;;  %v6866_v60 = vadd.f32 %v17949_v40, %v6795_v57 }
 0x6d0   :  { %v6927_v5 = vadd.f32 %v6863_v35, %v21151_v22  ;;  %v6864_v48 = vadd.f32 %v17949_v40, %v6793_v50 }
 0x6d1   :  { %v6993_v52 = vmax.f32 %v6929_v43, 0.0  ;;  %v6930_v38 = vadd.f32 %v6866_v60, %v21152_v49 }
 0x6d2   :  { %v6991_v18 = vmax.f32 %v6927_v5, 0.0  ;;  %v6928_v44 = vadd.f32 %v6864_v48, %v21153_v61 }
 0x6d3   :  { %7057 = vst.msk [vmem:[%s18406_s7 + $0x1d0] sm:$0xff] %vm2249_vm2, %v6993_v52  ;;  %v6994_v34 = vmax.f32 %v6930_v38, 0.0 }
 0x6d4   :  { %7055 = vst.msk [vmem:[%s18406_s7 + $0x1c0] sm:$0xff] %vm2249_vm2, %v6991_v18  ;;  %v6992_v11 = vmax.f32 %v6928_v44, 0.0 }
 0x6d5   :  { %7058 = vst.msk [vmem:[%s18406_s7 + $0x1d8] sm:$0xff] %vm2249_vm2, %v6994_v34 }
 0x6d6   :  { %7056 = vst.msk [vmem:[%s18406_s7 + $0x1c8] sm:$0xff] %vm2249_vm2, %v6992_v11 }
 0x6da   :  { %v7454_v32 = vpop.f32.mrb[60].mxu1 }
 0x6db   :  { %v6798_v24 = vmul.f32 %v7454_v32, %v17944_v31  ;;  %v6650_v15 = vpop.f32.mrb[61].mxu1 }
 0x6dc   :  { %v6796_v26 = vmul.f32 %v17944_v31, %v6650_v15  ;;  %v7455_v54 = vpop.f32.mrb[62].mxu1 }
 0x6dd   :  { %v6869_v45 = vadd.f32 %v17949_v40, %v6798_v24  ;;  %v6799_v29 = vmul.f32 %v7455_v54, %v17944_v31  ;;  %v6653_v10 = vpop.f32.mrb[63].mxu1 }
 0x6de   :  { %v6867_v4 = vadd.f32 %v17949_v40, %v6796_v26  ;;  %v6797_v27 = vmul.f32 %v17944_v31, %v6653_v10 }
 0x6df   :  { %v6933_v63 = vadd.f32 %v6869_v45, %v21154_v46  ;;  %v6870_v9 = vadd.f32 %v17949_v40, %v6799_v29 }
 0x6e0   :  { %v6931_v62 = vadd.f32 %v6867_v4, %v21155_v16  ;;  %v6868_v7 = vadd.f32 %v17949_v40, %v6797_v27 }
 0x6e1   :  { %v6997_v2 = vmax.f32 %v6933_v63, 0.0  ;;  %v6934_v30 = vadd.f32 %v6870_v9, %v21156_v19 }
 0x6e2   :  { %v6995_v59 = vmax.f32 %v6931_v62, 0.0  ;;  %v6932_v53 = vadd.f32 %v6868_v7, %v21157_v28 }
 0x6e3   :  { %7061 = vst.msk [vmem:[%s18406_s7 + $0x1f0] sm:$0xff] %vm2249_vm2, %v6997_v2  ;;  %v6998_v31 = vmax.f32 %v6934_v30, 0.0 }
 0x6e4   :  { %7059 = vst.msk [vmem:[%s18406_s7 + $0x1e0] sm:$0xff] %vm2249_vm2, %v6995_v59  ;;  %v6996_v14 = vmax.f32 %v6932_v53, 0.0 }
 0x6e5   :  { %7062 = vst.msk [vmem:[%s18406_s7 + $0x1f8] sm:$0xff] %vm2249_vm2, %v6998_v31 }
 0x6e6   :  { %7060 = vst.msk [vmem:[%s18406_s7 + $0x1e8] sm:$0xff] %vm2249_vm2, %v6996_v14 }

</bundles_post_ra>
